<compile_context>
chip_gen: v7x
topology: tpu7x:2x2x1
jax: 0.10.0
libtpu: 0.0.40
codegen_flags: <defaults>
</compile_context>

<pallas_src>
import functools
import numpy as np

import jax
import jax.numpy as jnp
from jax.experimental import pallas as pl
from jax.experimental.pallas import tpu as pltpu

_MAX_WIN_TILE = 8                # max windows per attention-kernel invocation


# ----------------------------- small helpers --------------------------------

def _cdiv(a, b):
    return -(-a // b)


def _round_up(x, m):
    return ((x + m - 1) // m) * m


@functools.lru_cache(maxsize=None)
def _tpu_budget():
    """(vmem_limit_bytes, max_row_tile) picked per chip generation."""
    vmem_cap = 0
    try:
        vmem_cap = int(getattr(pltpu.get_tpu_info(), "vmem_capacity_bytes", 0))
    except Exception:
        vmem_cap = 0
    if vmem_cap >= 100 * 1024 * 1024:          # v5e / v6e: 128 MiB physical VMEM
        return 64 * 1024 * 1024, 512
    if vmem_cap >= 60 * 1024 * 1024:           # v7x: 64 MiB physical VMEM
        return 48 * 1024 * 1024, 256
    return 32 * 1024 * 1024, 256               # unknown chip: conservative defaults


def _pick_row_tile(M, max_tile):
    """Row tile (multiple of 8) with minimal padding and >=2 grid steps when possible."""
    nb = _cdiv(M, max_tile)
    if nb < 2 and M >= 16:
        nb = 2                                  # keep both v7x TensorCores busy
    tm = _round_up(_cdiv(M, nb), 8)
    tm = max(8, min(tm, max_tile))
    Mp = _round_up(M, tm)
    return tm, Mp


def _pad_rows(x, Mp):
    M = x.shape[0]
    if Mp == M:
        return x
    return jnp.pad(x, ((0, Mp - M), (0, 0)))


def _gelu(y):
    # TODO(synk): torch.nn.GELU uses exact erf; tanh approximation used here.
    c = 0.7978845608028654  # sqrt(2/pi)
    return 0.5 * y * (1.0 + jnp.tanh(c * (y + 0.044715 * y * y * y)))


def _mm_params():
    vmem, _ = _tpu_budget()
    return pltpu.CompilerParams(dimension_semantics=("parallel",),
                                vmem_limit_bytes=vmem)


# ----------------------------- Pallas kernels ------------------------------

def _linear_kernel(x_ref, w_ref, b_ref, o_ref, *, act):
    y = jnp.dot(x_ref[...].astype(jnp.bfloat16), w_ref[...],
                preferred_element_type=jnp.float32) + b_ref[...]
    if act == "relu":
        y = jnp.maximum(y, 0.0)
    elif act == "gelu":
        y = _gelu(y)
    o_ref[...] = y.astype(o_ref.dtype)


def _ln_linear_kernel(x_ref, g_ref, bt_ref, w_ref, b_ref, o_ref, *, act, eps):
    x = x_ref[...].astype(jnp.float32)
    mu = jnp.mean(x, axis=-1, keepdims=True)
    xc = x - mu
    var = jnp.mean(xc * xc, axis=-1, keepdims=True)
    xn = xc * jax.lax.rsqrt(var + eps) * g_ref[...] + bt_ref[...]
    y = jnp.dot(xn.astype(jnp.bfloat16), w_ref[...],
                preferred_element_type=jnp.float32) + b_ref[...]
    if act == "gelu":
        y = _gelu(y)
    elif act == "relu":
        y = jnp.maximum(y, 0.0)
    o_ref[...] = y.astype(o_ref.dtype)


def _mlp_kernel(x_ref, g_ref, bt_ref, w1_ref, b1_ref, w2_ref, b2_ref, o_ref, *, eps):
    # Fully fused MLP: LN(norm2) + fc1 + GELU + fc2 + residual.  The (tm, hidden)
    # activation stays in VMEM/vregs; no HBM round-trip between fc1 and fc2.
    x = x_ref[...].astype(jnp.float32)                     # (tm, C)
    mu = jnp.mean(x, axis=-1, keepdims=True)
    xc = x - mu
    var = jnp.mean(xc * xc, axis=-1, keepdims=True)
    xn = xc * jax.lax.rsqrt(var + eps) * g_ref[...] + bt_ref[...]
    h = jnp.dot(xn.astype(jnp.bfloat16), w1_ref[...],
                preferred_element_type=jnp.float32) + b1_ref[...]
    h = _gelu(h)
    y = jnp.dot(h.astype(jnp.bfloat16), w2_ref[...],
                preferred_element_type=jnp.float32) + b2_ref[...]
    o_ref[...] = (x + y).astype(o_ref.dtype)


def _window_attention_kernel(*refs, num_heads, eps, has_mask):
    if has_mask:
        (x_ref, g_ref, bt_ref, wqkv_ref, bqkv_ref, wproj_ref, bproj_ref,
         rb_ref, mask_ref, o_ref) = refs
    else:
        (x_ref, g_ref, bt_ref, wqkv_ref, bqkv_ref, wproj_ref, bproj_ref,
         rb_ref, o_ref) = refs
        mask_ref = None

    x = x_ref[...].astype(jnp.float32)                     # (tw, N, C) pre-norm tokens
    tw, n, c = x.shape
    hd = c // num_heads
    # ---- fused LayerNorm (norm1) ----
    mu = jnp.mean(x, axis=-1, keepdims=True)
    xc = x - mu
    var = jnp.mean(xc * xc, axis=-1, keepdims=True)
    xn = xc * jax.lax.rsqrt(var + eps) * g_ref[...] + bt_ref[...]
    # ---- qkv projection: one full-width bf16 MXU matmul ----
    # columns are pre-permuted head-major [head][q|k|v][hd]; the attention scale is
    # already folded into the q columns/bias at param-build time
    qkv = jnp.dot(xn.reshape(tw * n, c).astype(jnp.bfloat16), wqkv_ref[...],
                  preferred_element_type=jnp.float32) + bqkv_ref[...]
    # ---- regroup heads into a single batched dim with ONE reshape+transpose ----
    qkv = qkv.reshape(tw, n, num_heads, 3 * hd)
    qkv = jnp.transpose(qkv, (2, 0, 1, 3)).reshape(num_heads * tw, n, 3 * hd)
    q = qkv[:, :, :hd]
    k = qkv[:, :, hd:2 * hd]
    v = qkv[:, :, 2 * hd:]
    # ---- batched QK^T over (head, window) ----
    attn = jax.lax.dot_general(q.astype(jnp.bfloat16), k.astype(jnp.bfloat16),
                               (((2,), (2,)), ((0,), (0,))),
                               preferred_element_type=jnp.float32)
    attn = attn.reshape(num_heads, tw, n, n) + rb_ref[...][:, None, :, :]
    if has_mask:
        attn = attn + mask_ref[...][None, :, :, :]
    # ---- softmax (approx reciprocal goes to the EUP slot) ----
    attn = attn - jnp.max(attn, axis=-1, keepdims=True)
    e = jnp.exp(attn)
    p = e * pl.reciprocal(jnp.sum(e, axis=-1, keepdims=True), approx=True)
    p = p.reshape(num_heads * tw, n, n)
    # ---- batched AV ----
    y = jax.lax.dot_general(p.astype(jnp.bfloat16), v.astype(jnp.bfloat16),
                            (((2,), (1,)), ((0,), (0,))),
                            preferred_element_type=jnp.float32)
    # ---- concat heads via one transpose, then output projection + residual ----
    y = jnp.transpose(y.reshape(num_heads, tw, n, hd), (1, 2, 0, 3)).reshape(tw * n, c)
    out = jnp.dot(y.astype(jnp.bfloat16), wproj_ref[...],
                  preferred_element_type=jnp.float32) + bproj_ref[...]
    # TODO(synk): with C < 128 this store is lane-masked; a lane-dense (tw, N*C) out
    # block would need an in-kernel relayout.
    o_ref[...] = (x + out.reshape(tw, n, c)).astype(o_ref.dtype)


def _head_kernel(x_ref, g_ref, bt_ref, wh_ref, bh_ref, o_ref, *, eps):
    x = x_ref[...].astype(jnp.float32)                     # (B, L, C)
    mu = jnp.mean(x, axis=-1, keepdims=True)
    xc = x - mu
    var = jnp.mean(xc * xc, axis=-1, keepdims=True)
    xn = xc * jax.lax.rsqrt(var + eps) * g_ref[...] + bt_ref[...]
    pooled = jnp.mean(xn, axis=1)                          # AdaptiveAvgPool1d(1) over tokens
    o_ref[...] = (jnp.dot(pooled.astype(jnp.bfloat16), wh_ref[...],
                          preferred_element_type=jnp.float32)
                  + bh_ref[...]).astype(o_ref.dtype)


# ----------------------------- Pallas wrappers ------------------------------

def pallas_linear(x, w, b, act="none", out_dtype=jnp.bfloat16):
    M, K = x.shape
    N = w.shape[1]
    _, max_tile = _tpu_budget()
    tm, Mp = _pick_row_tile(M, max_tile)
    xp = _pad_rows(x, Mp)
    out = pl.pallas_call(
        functools.partial(_linear_kernel, act=act),
        out_shape=jax.ShapeDtypeStruct((Mp, N), out_dtype),
        grid=(Mp // tm,),
        in_specs=[
            pl.BlockSpec((tm, K), lambda i: (i, 0)),
            pl.BlockSpec((K, N), lambda i: (0, 0)),
            pl.BlockSpec((1, N), lambda i: (0, 0)),
        ],
        out_specs=pl.BlockSpec((tm, N), lambda i: (i, 0)),
        compiler_params=_mm_params(),
    )(xp, w, b.reshape(1, N))
    return out if Mp == M else out[:M]


def pallas_ln_linear(x, gamma, beta, w, b, act="none", eps=1e-5,
                     out_dtype=jnp.bfloat16):
    M, K = x.shape
    N = w.shape[1]
    _, max_tile = _tpu_budget()
    tm, Mp = _pick_row_tile(M, max_tile)
    xp = _pad_rows(x, Mp)
    out = pl.pallas_call(
        functools.partial(_ln_linear_kernel, act=act, eps=eps),
        out_shape=jax.ShapeDtypeStruct((Mp, N), out_dtype),
        grid=(Mp // tm,),
        in_specs=[
            pl.BlockSpec((tm, K), lambda i: (i, 0)),
            pl.BlockSpec((1, K), lambda i: (0, 0)),
            pl.BlockSpec((1, K), lambda i: (0, 0)),
            pl.BlockSpec((K, N), lambda i: (0, 0)),
            pl.BlockSpec((1, N), lambda i: (0, 0)),
        ],
        out_specs=pl.BlockSpec((tm, N), lambda i: (i, 0)),
        compiler_params=_mm_params(),
    )(xp, gamma.reshape(1, K), beta.reshape(1, K), w, b.reshape(1, N))
    return out if Mp == M else out[:M]


def pallas_mlp(x, n2g, n2b, w1, b1, w2, b2, eps=1e-5):
    """Fused LN + fc1 + GELU + fc2 + residual; x is (M, C)."""
    M, C = x.shape
    H = w1.shape[1]
    _, max_tile = _tpu_budget()
    tm, Mp = _pick_row_tile(M, max_tile)
    xp = _pad_rows(x, Mp)
    out = pl.pallas_call(
        functools.partial(_mlp_kernel, eps=eps),
        out_shape=jax.ShapeDtypeStruct((Mp, C), jnp.bfloat16),
        grid=(Mp // tm,),
        in_specs=[
            pl.BlockSpec((tm, C), lambda i: (i, 0)),
            pl.BlockSpec((1, C), lambda i: (0, 0)),
            pl.BlockSpec((1, C), lambda i: (0, 0)),
            pl.BlockSpec((C, H), lambda i: (0, 0)),
            pl.BlockSpec((1, H), lambda i: (0, 0)),
            pl.BlockSpec((H, C), lambda i: (0, 0)),
            pl.BlockSpec((1, C), lambda i: (0, 0)),
        ],
        out_specs=pl.BlockSpec((tm, C), lambda i: (i, 0)),
        compiler_params=_mm_params(),
    )(xp, n2g.reshape(1, C), n2b.reshape(1, C), w1, b1.reshape(1, H),
      w2, b2.reshape(1, C))
    return out if Mp == M else out[:M]


def pallas_window_attention(xw, n1g, n1b, wqkv, bqkv, wproj, bproj, relbias, mask,
                            num_heads, n_win_per_img):
    BW, N, C = xw.shape
    nW = n_win_per_img
    # windows per grid step: must divide nW (keeps the shifted-mask index_map exact and
    # window ordering batch-major), capped so the grid keeps >=2 "parallel" steps.
    tw = 1
    for t in range(1, min(_MAX_WIN_TILE, nW) + 1):
        if nW % t == 0 and (BW // t >= 2 or BW == t):
            tw = t
    in_specs = [
        pl.BlockSpec((tw, N, C), lambda i: (i, 0, 0)),
        pl.BlockSpec((1, C), lambda i: (0, 0)),
        pl.BlockSpec((1, C), lambda i: (0, 0)),
        pl.BlockSpec((C, 3 * C), lambda i: (0, 0)),
        pl.BlockSpec((1, 3 * C), lambda i: (0, 0)),
        pl.BlockSpec((C, C), lambda i: (0, 0)),
        pl.BlockSpec((1, C), lambda i: (0, 0)),
        pl.BlockSpec((num_heads, N, N), lambda i: (0, 0, 0)),
    ]
    args = [xw, n1g.reshape(1, C), n1b.reshape(1, C), wqkv, bqkv.reshape(1, 3 * C),
            wproj, bproj.reshape(1, C), relbias]
    has_mask = mask is not None
    if has_mask:
        nmb = nW // tw
        in_specs.append(pl.BlockSpec((tw, N, N), lambda i, nmb=nmb: (i % nmb, 0, 0)))
        args.append(mask)
    vmem, _ = _tpu_budget()
    return pl.pallas_call(
        functools.partial(_window_attention_kernel, num_heads=num_heads,
                          eps=1e-5, has_mask=has_mask),
        out_shape=jax.ShapeDtypeStruct((BW, N, C), jnp.bfloat16),
        grid=(BW // tw,),
        in_specs=in_specs,
        out_specs=pl.BlockSpec((tw, N, C), lambda i: (i, 0, 0)),
        compiler_params=pltpu.CompilerParams(
            dimension_semantics=("parallel",), vmem_limit_bytes=vmem),
    )(*args)


def pallas_norm_pool_head(x, gamma, beta, wh, bh, eps=1e-5):
    B, L, C = x.shape
    NC = wh.shape[1]
    vmem, _ = _tpu_budget()
    return pl.pallas_call(
        functools.partial(_head_kernel, eps=eps),
        out_shape=jax.ShapeDtypeStruct((B, NC), jnp.float32),
        compiler_params=pltpu.CompilerParams(vmem_limit_bytes=vmem),
    )(x, gamma.reshape(1, 1, C), beta.reshape(1, 1, C), wh, bh.reshape(1, NC))


# ----------------------------- plain-JAX glue -------------------------------

def window_partition(x, ws):
    B, H, W, C = x.shape
    x = x.reshape(B, H // ws, ws, W // ws, ws, C)
    x = jnp.transpose(x, (0, 1, 3, 2, 4, 5))
    return x.reshape(-1, ws, ws, C)


def window_reverse(windows, ws, H, W):
    B = windows.shape[0] // ((H // ws) * (W // ws))
    x = windows.reshape(B, H // ws, W // ws, ws, ws, -1)
    x = jnp.transpose(x, (0, 1, 3, 2, 4, 5))
    return x.reshape(B, H, W, -1)


def relative_position_index(ws):
    coords = np.stack(np.meshgrid(np.arange(ws), np.arange(ws), indexing="ij"))
    cf = coords.reshape(2, -1)
    rel = cf[:, :, None] - cf[:, None, :]
    rel = rel.transpose(1, 2, 0).astype(np.int64)
    rel[:, :, 0] += ws - 1
    rel[:, :, 1] += ws - 1
    rel[:, :, 0] *= 2 * ws - 1
    return rel.sum(-1)                                # (N, N)


def compute_attn_mask_np(H, W, ws, shift):
    img_mask = np.zeros((1, H, W, 1), dtype=np.float32)
    cnt = 0
    for hs in (slice(0, -ws), slice(-ws, -shift), slice(-shift, None)):
        for wsl in (slice(0, -ws), slice(-ws, -shift), slice(-shift, None)):
            img_mask[:, hs, wsl, :] = cnt
            cnt += 1
    mw = img_mask.reshape(1, H // ws, ws, W // ws, ws, 1)
    mw = mw.transpose(0, 1, 3, 2, 4, 5).reshape(-1, ws * ws)
    am = mw[:, None, :] - mw[:, :, None]
    return jnp.asarray(np.where(am != 0, -100.0, 0.0).astype(np.float32))   # (nW, N, N)


def im2col(xp, k, s, Ho, Wo):
    B, Hp, Wp, C = xp.shape
    ih = (jnp.arange(Ho) * s)[:, None] + jnp.arange(k)[None, :]
    iw = (jnp.arange(Wo) * s)[:, None] + jnp.arange(k)[None, :]
    rows = xp[:, ih]                       # (B, Ho, k, Wp, C)
    cols = rows[:, :, :, iw]               # (B, Ho, k, Wo, k, C)
    patches = jnp.transpose(cols, (0, 1, 3, 2, 4, 5))
    return patches.reshape(B * Ho * Wo, k * k * C)


# ----------------------------- model pieces --------------------------------

def swin_block_fwd(x, p, mask, res, heads, ws, shift):
    H, W = res
    B, L, C = x.shape
    N = ws * ws
    nW = (H // ws) * (W // ws)
    # spatial view of the pre-norm tokens (norm1 + attn residual are fused in-kernel)
    h = x.reshape(B, H, W, C)
    if shift > 0:
        h = jnp.roll(h, shift=(-shift, -shift), axis=(1, 2))
    # TODO(synk): window partition/reverse still round-trip HBM; moving the split into
    # the attention kernel (row-band BlockSpec (1, ws, W, C)) would remove both passes.
    xw = window_partition(h, ws).reshape(-1, N, C)
    aw = pallas_window_attention(xw, p["n1g"], p["n1b"], p["wqkv"], p["bqkv"],
                                 p["wproj"], p["bproj"], p["relbias"], mask,
                                 heads, nW)
    aw = aw.reshape(-1, ws, ws, C)
    h = window_reverse(aw, ws, H, W)
    if shift > 0:
        h = jnp.roll(h, shift=(shift, shift), axis=(1, 2))
    x = h.reshape(B, L, C)                 # == shortcut + attn(LN(shortcut))
    # MLP: fully fused LN + fc1 + GELU + fc2 + residual (single kernel)
    out = pallas_mlp(x.reshape(B * L, C), p["n2g"], p["n2b"],
                     p["fc1w"], p["fc1b"], p["fc2w"], p["fc2b"])
    return out.reshape(B, L, C)


def patch_merging_fwd(x, res, ng, nb, wred):
    H, W = res
    B, L, C = x.shape
    x = x.reshape(B, H, W, C)
    x0 = x[:, 0::2, 0::2, :]
    x1 = x[:, 1::2, 0::2, :]
    x2 = x[:, 0::2, 1::2, :]
    x3 = x[:, 1::2, 1::2, :]
    xc = jnp.concatenate([x0, x1, x2, x3], axis=-1).reshape(B * (H // 2) * (W // 2), 4 * C)
    # fused LayerNorm + reduction linear (bias-free)
    y = pallas_ln_linear(xc, ng, nb, wred, jnp.zeros((wred.shape[1],), jnp.float32))
    return y.reshape(B, (H // 2) * (W // 2), 2 * C)


def mobileswin_forward(x_nhwc, params, cfg):
    B = x_nhwc.shape[0]
    Ho = Wo = cfg["img"] // 2
    # conv_stem (3x3, stride 2, pad 1, no bias) + BN(eval) + ReLU as one fused matmul
    # TODO(synk): im2col patches are still materialized in HBM; a fully fused Pallas stem
    # (in-kernel patch gather over input row bands) would remove that 9x write+read pass.
    xp = jnp.pad(x_nhwc, ((0, 0), (1, 1), (1, 1), (0, 0)))
    patches = im2col(xp, 3, 2, Ho, Wo).astype(jnp.bfloat16)   # (B*Ho*Wo, 9*Cin) bf16
    k_pad = params["stem_w"].shape[0]
    if patches.shape[1] != k_pad:
        patches = jnp.pad(patches, ((0, 0), (0, k_pad - patches.shape[1])))
    x = pallas_linear(patches, params["stem_w"], params["stem_b"], act="relu")
    # TODO(synk): EfficientNetBuilder `blocks` stage is identity here — block_args are not
    # specified in the reference module, so the stem output feeds the Swin layers directly.
    x = x.reshape(B, Ho * Wo, -1)                             # flatten(2).transpose(1, 2)

    for i_layer in range(cfg["num_layers"]):
        res = (cfg["patch_grid"][0] // 2 ** i_layer, cfg["patch_grid"][1] // 2 ** i_layer)
        heads = cfg["num_heads"][i_layer]
        lp = params["layers"][i_layer]
        for blk_i in range(cfg["depths"][i_layer]):
            ws = cfg["window_size"]
            shift = 0 if blk_i % 2 == 0 else ws // 2
            if min(res) <= ws:
                shift = 0
                ws = min(res)
            mask = lp["attn_mask"] if shift > 0 else None
            x = swin_block_fwd(x, lp["blocks"][blk_i], mask, res, heads, ws, shift)
        x = patch_merging_fwd(x, res, lp["ds_ng"], lp["ds_nb"], lp["ds_w"])

    return pallas_norm_pool_head(x, params["norm_g"], params["norm_b"],
                                 params["head_w"], params["head_b"])


# ----------------------------- params ---------------------------------------

def make_params(key, cfg):
    state = {"key": key}

    def normal(shape, std=0.02):
        state["key"], k = jax.random.split(state["key"])
        return jax.random.normal(k, shape, jnp.float32) * std

    p = {}
    # --- stem conv (3x3/s2, no bias) folded with eval-mode BatchNorm ---
    cin, stem = cfg["in_chans"], cfg["embed_dim"]
    conv_w = normal((3, 3, cin, stem), 0.1)
    bn_g = 1.0 + normal((stem,), 0.05)
    bn_b = normal((stem,), 0.05)
    bn_mean = jnp.zeros((stem,), jnp.float32)
    bn_var = jnp.ones((stem,), jnp.float32)
    scale = bn_g / jnp.sqrt(bn_var + 1e-5)
    k_raw = 9 * cin
    k_pad = _round_up(k_raw, 8)                     # align the stem matmul K dim
    stem_w = (conv_w * scale).reshape(k_raw, stem)
    p["stem_w"] = jnp.pad(stem_w, ((0, k_pad - k_raw), (0, 0))).astype(jnp.bfloat16)
    p["stem_b"] = bn_b - bn_mean * scale

    layers = []
    for i_layer in range(cfg["num_layers"]):
        dim = cfg["embed_dim"] * 2 ** i_layer
        res = (cfg["patch_grid"][0] // 2 ** i_layer, cfg["patch_grid"][1] // 2 ** i_layer)
        ws = cfg["window_size"] if min(res) > cfg["window_size"] else min(res)
        heads = cfg["num_heads"][i_layer]
        hd = dim // heads
        hidden = int(dim * cfg["mlp_ratio"])
        N = ws * ws
        rel_idx = jnp.asarray(relative_position_index(ws).reshape(-1))
        # head-major column permutation of the qkv projection so each head's (q,k,v)
        # lanes are contiguous inside the attention kernel (no per-head matmul loop)
        qkv_perm = np.arange(3 * dim).reshape(3, heads, hd).transpose(1, 0, 2).reshape(-1)
        attn_scale = float(hd ** -0.5)
        blocks = []
        for _ in range(cfg["depths"][i_layer]):
            rpb = normal(((2 * ws - 1) * (2 * ws - 1), heads))
            relbias = jnp.take(rpb, rel_idx, axis=0).reshape(N, N, heads)
            relbias = jnp.transpose(relbias, (2, 0, 1))          # (heads, N, N)
            wqkv = normal((dim, 3 * dim))
            bqkv = normal((3 * dim,))
            # fold the attention scale into the q columns (first dim columns) / q bias
            wqkv = wqkv.at[:, :dim].multiply(attn_scale)
            bqkv = bqkv.at[:dim].multiply(attn_scale)
            blocks.append(dict(
                n1g=jnp.ones((dim,), jnp.float32), n1b=jnp.zeros((dim,), jnp.float32),
                wqkv=wqkv[:, qkv_perm].astype(jnp.bfloat16), bqkv=bqkv[qkv_perm],
                wproj=normal((dim, dim)).astype(jnp.bfloat16), bproj=normal((dim,)),
                relbias=relbias,
                n2g=jnp.ones((dim,), jnp.float32), n2b=jnp.zeros((dim,), jnp.float32),
                fc1w=normal((dim, hidden)).astype(jnp.bfloat16), fc1b=normal((hidden,)),
                fc2w=normal((hidden, dim)).astype(jnp.bfloat16), fc2b=normal((dim,)),
            ))
        # shifted-window mask for this layer (None when no block shifts)
        if min(res) > cfg["window_size"] and cfg["depths"][i_layer] > 1:
            mask = compute_attn_mask_np(res[0], res[1], ws, cfg["window_size"] // 2)
        else:
            mask = None
        layers.append(dict(
            blocks=blocks, attn_mask=mask,
            ds_ng=jnp.ones((4 * dim,), jnp.float32), ds_nb=jnp.zeros((4 * dim,), jnp.float32),
            ds_w=normal((4 * dim, 2 * dim)).astype(jnp.bfloat16),
        ))
    p["layers"] = layers

    nf = cfg["embed_dim"] * 2 ** cfg["num_layers"]   # num_features after all PatchMergings
    p["norm_g"] = jnp.ones((nf,), jnp.float32)
    p["norm_b"] = jnp.zeros((nf,), jnp.float32)
    p["head_w"] = normal((nf, cfg["num_classes"])).astype(jnp.bfloat16)
    p["head_b"] = jnp.zeros((cfg["num_classes"],), jnp.float32)
    return p, state["key"]


# ----------------------------- main ------------------------------------------

if __name__ == "__main__":
    cfg = dict(
        batch=2, in_chans=3, img=16,
        embed_dim=32, patch_grid=(8, 8),
        depths=(2, 2), num_heads=(2, 4), window_size=4,
        mlp_ratio=4.0, num_layers=2, num_classes=10,
    )
    key = jax.random.PRNGKey(0)
    params, key = make_params(key, cfg)
    key, kx = jax.random.split(key)
    # NHWC input (PyTorch reference would take NCHW (2, 3, 16, 16))
    x = jax.random.normal(kx, (cfg["batch"], cfg["img"], cfg["img"], cfg["in_chans"]),
                          jnp.float32)

    fwd = jax.jit(lambda xx, pp: mobileswin_forward(xx, pp, cfg))
    out = fwd(x, params)
    jax.block_until_ready(out)
    assert out.shape == (cfg["batch"], cfg["num_classes"])
    print("KERNEL_OK")
</pallas_src>

<mosaic_0001>
module attributes {stable_mosaic.version = 11 : i64} {
  func.func @_linear_kernel(%arg0: i32, %arg1: memref<64x32xbf16, #tpu.memory_space<vmem>>, %arg2: memref<32x32xbf16, #tpu.memory_space<vmem>>, %arg3: memref<1x32xf32, #tpu.memory_space<vmem>>, %arg4: memref<64x32xbf16, #tpu.memory_space<vmem>>) attributes {dimension_semantics = [#tpu.dimension_semantics<parallel>], iteration_bounds = array<i64: 2>, scalar_prefetch = 0 : i64, scratch_operands = 0 : i64, tpu.core_type = #tpu.core_type<tc>, window_params = [{transform_indices = @transform_0, window_bounds = array<i64: 64, 32>}, {pipeline_mode = #tpu.pipeline_mode<synchronous>, transform_indices = @transform_1, window_bounds = array<i64: 32, 32>}, {pipeline_mode = #tpu.pipeline_mode<synchronous>, transform_indices = @transform_2, window_bounds = array<i64: 1, 32>}, {transform_indices = @transform_3, window_bounds = array<i64: 64, 32>}]} {
    %c0 = arith.constant 0 : index
    %c0_0 = arith.constant 0 : index
    %0 = vector.load %arg1[%c0, %c0_0] : memref<64x32xbf16, #tpu.memory_space<vmem>>, vector<64x32xbf16>
    %c0_1 = arith.constant 0 : index
    %c0_2 = arith.constant 0 : index
    %1 = vector.load %arg2[%c0_1, %c0_2] : memref<32x32xbf16, #tpu.memory_space<vmem>>, vector<32x32xbf16>
    %cst = arith.constant dense<0.000000e+00> : vector<64x32xf32>
    %2 = tpu.matmul %0, %1, %cst {dimension_numbers = #tpu.dot_dimension_numbers<[1], [0], [0], [1], [0, 0, 1, 1], [], []>} : vector<64x32xbf16>, vector<32x32xbf16>, vector<64x32xf32> -> vector<64x32xf32>
    %c0_3 = arith.constant 0 : index
    %c0_4 = arith.constant 0 : index
    %3 = vector.load %arg3[%c0_3, %c0_4] : memref<1x32xf32, #tpu.memory_space<vmem>>, vector<1x32xf32>
    %4 = vector.broadcast %3 : vector<1x32xf32> to vector<64x32xf32>
    %5 = arith.addf %2, %4 : vector<64x32xf32>
    %cst_5 = arith.constant 0.000000e+00 : f32
    %6 = vector.broadcast %cst_5 : f32 to vector<64x32xf32>
    %7 = arith.maximumf %5, %6 : vector<64x32xf32>
    %8 = arith.truncf %7 : vector<64x32xf32> to vector<64x32xbf16>
    %c0_6 = arith.constant 0 : index
    %c0_7 = arith.constant 0 : index
    %9 = vector.load %arg4[%c0_6, %c0_7] : memref<64x32xbf16, #tpu.memory_space<vmem>>, vector<64x32xbf16>
    tpu.vector_store %arg4[%c0_6, %c0_7], %8 {strides = array<i32>} : memref<64x32xbf16, #tpu.memory_space<vmem>>, vector<64x32xbf16>,
    return
  }
  func.func @transform_0(%arg0: i32) -> (i32, i32) {
    %c0_i32 = arith.constant 0 : i32
    %c0_i32_0 = arith.constant 0 : i32
    return %arg0, %c0_i32 : i32, i32
  }
  func.func @transform_1(%arg0: i32) -> (i32, i32) {
    %c0_i32 = arith.constant 0 : i32
    %c0_i32_0 = arith.constant 0 : i32
    %c0_i32_1 = arith.constant 0 : i32
    return %c0_i32, %c0_i32_0 : i32, i32
  }
  func.func @transform_2(%arg0: i32) -> (i32, i32) {
    %c0_i32 = arith.constant 0 : i32
    %c0_i32_0 = arith.constant 0 : i32
    %c0_i32_1 = arith.constant 0 : i32
    return %c0_i32, %c0_i32_0 : i32, i32
  }
  func.func @transform_3(%arg0: i32) -> (i32, i32) {
    %c0_i32 = arith.constant 0 : i32
    %c0_i32_0 = arith.constant 0 : i32
    return %arg0, %c0_i32 : i32, i32
  }
}

module attributes {stable_mosaic.version = 11 : i64} {
  func.func @_window_attention_kernel(%arg0: i32, %arg1: memref<4x16x32xbf16, #tpu.memory_space<vmem>>, %arg2: memref<1x32xf32, #tpu.memory_space<vmem>>, %arg3: memref<1x32xf32, #tpu.memory_space<vmem>>, %arg4: memref<32x96xbf16, #tpu.memory_space<vmem>>, %arg5: memref<1x96xf32, #tpu.memory_space<vmem>>, %arg6: memref<32x32xbf16, #tpu.memory_space<vmem>>, %arg7: memref<1x32xf32, #tpu.memory_space<vmem>>, %arg8: memref<2x16x16xf32, #tpu.memory_space<vmem>>, %arg9: memref<4x16x32xbf16, #tpu.memory_space<vmem>>) attributes {dimension_semantics = [#tpu.dimension_semantics<parallel>], iteration_bounds = array<i64: 2>, scalar_prefetch = 0 : i64, scratch_operands = 0 : i64, tpu.core_type = #tpu.core_type<tc>, window_params = [{transform_indices = @transform_0, window_bounds = array<i64: 4, 16, 32>}, {pipeline_mode = #tpu.pipeline_mode<synchronous>, transform_indices = @transform_1, window_bounds = array<i64: 1, 32>}, {pipeline_mode = #tpu.pipeline_mode<synchronous>, transform_indices = @transform_2, window_bounds = array<i64: 1, 32>}, {pipeline_mode = #tpu.pipeline_mode<synchronous>, transform_indices = @transform_3, window_bounds = array<i64: 32, 96>}, {pipeline_mode = #tpu.pipeline_mode<synchronous>, transform_indices = @transform_4, window_bounds = array<i64: 1, 96>}, {pipeline_mode = #tpu.pipeline_mode<synchronous>, transform_indices = @transform_5, window_bounds = array<i64: 32, 32>}, {pipeline_mode = #tpu.pipeline_mode<synchronous>, transform_indices = @transform_6, window_bounds = array<i64: 1, 32>}, {pipeline_mode = #tpu.pipeline_mode<synchronous>, transform_indices = @transform_7, window_bounds = array<i64: 2, 16, 16>}, {transform_indices = @transform_8, window_bounds = array<i64: 4, 16, 32>}]} {
    %c0 = arith.constant 0 : index
    %c0_0 = arith.constant 0 : index
    %c0_1 = arith.constant 0 : index
    %0 = vector.load %arg1[%c0, %c0_0, %c0_1] : memref<4x16x32xbf16, #tpu.memory_space<vmem>>, vector<4x16x32xbf16>
    %1 = arith.extf %0 : vector<4x16x32xbf16> to vector<4x16x32xf32>
    %cst = arith.constant dense<0.000000e+00> : vector<4x16xf32>
    %2 = vector.multi_reduction <add>, %1, %cst [2] : vector<4x16x32xf32> to vector<4x16xf32>
    %3 = vector.shape_cast %2 : vector<4x16xf32> to vector<4x16x1xf32>
    %cst_2 = arith.constant 3.200000e+01 : f32
    %4 = vector.broadcast %cst_2 : f32 to vector<4x16x1xf32>
    %5 = arith.divf %3, %4 : vector<4x16x1xf32>
    %6 = vector.broadcast %5 : vector<4x16x1xf32> to vector<4x16x32xf32>
    %7 = arith.subf %1, %6 : vector<4x16x32xf32>
    %8 = arith.mulf %7, %7 : vector<4x16x32xf32>
    %cst_3 = arith.constant dense<0.000000e+00> : vector<4x16xf32>
    %9 = vector.multi_reduction <add>, %8, %cst_3 [2] : vector<4x16x32xf32> to vector<4x16xf32>
    %10 = vector.shape_cast %9 : vector<4x16xf32> to vector<4x16x1xf32>
    %cst_4 = arith.constant 3.200000e+01 : f32
    %11 = vector.broadcast %cst_4 : f32 to vector<4x16x1xf32>
    %12 = arith.divf %10, %11 : vector<4x16x1xf32>
    %cst_5 = arith.constant 9.99999974E-6 : f32
    %13 = vector.broadcast %cst_5 : f32 to vector<4x16x1xf32>
    %14 = arith.addf %12, %13 : vector<4x16x1xf32>
    %15 = math.rsqrt %14 : vector<4x16x1xf32>
    %16 = vector.broadcast %15 : vector<4x16x1xf32> to vector<4x16x32xf32>
    %17 = arith.mulf %7, %16 : vector<4x16x32xf32>
    %c0_6 = arith.constant 0 : index
    %c0_7 = arith.constant 0 : index
    %18 = vector.load %arg2[%c0_6, %c0_7] : memref<1x32xf32, #tpu.memory_space<vmem>>, vector<1x32xf32>
    %19 = vector.shape_cast %18 : vector<1x32xf32> to vector<1x1x32xf32>
    %20 = vector.broadcast %19 : vector<1x1x32xf32> to vector<4x16x32xf32>
    %21 = arith.mulf %17, %20 : vector<4x16x32xf32>
    %c0_8 = arith.constant 0 : index
    %c0_9 = arith.constant 0 : index
    %22 = vector.load %arg3[%c0_8, %c0_9] : memref<1x32xf32, #tpu.memory_space<vmem>>, vector<1x32xf32>
    %23 = vector.shape_cast %22 : vector<1x32xf32> to vector<1x1x32xf32>
    %24 = vector.broadcast %23 : vector<1x1x32xf32> to vector<4x16x32xf32>
    %25 = arith.addf %21, %24 : vector<4x16x32xf32>
    %26 = vector.shape_cast %25 : vector<4x16x32xf32> to vector<64x32xf32>
    %27 = arith.truncf %26 : vector<64x32xf32> to vector<64x32xbf16>
    %c0_10 = arith.constant 0 : index
    %c0_11 = arith.constant 0 : index
    %28 = vector.load %arg4[%c0_10, %c0_11] : memref<32x96xbf16, #tpu.memory_space<vmem>>, vector<32x96xbf16>
    %cst_12 = arith.constant dense<0.000000e+00> : vector<64x96xf32>
    %29 = tpu.matmul %27, %28, %cst_12 {dimension_numbers = #tpu.dot_dimension_numbers<[1], [0], [0], [1], [0, 0, 1, 1], [], []>} : vector<64x32xbf16>, vector<32x96xbf16>, vector<64x96xf32> -> vector<64x96xf32>
    %c0_13 = arith.constant 0 : index
    %c0_14 = arith.constant 0 : index
    %30 = vector.load %arg5[%c0_13, %c0_14] : memref<1x96xf32, #tpu.memory_space<vmem>>, vector<1x96xf32>
    %31 = vector.broadcast %30 : vector<1x96xf32> to vector<64x96xf32>
    %32 = arith.addf %29, %31 : vector<64x96xf32>
    %33 = vector.shape_cast %32 : vector<64x96xf32> to vector<4x16x2x48xf32>
    %34 = tpu.transpose %33, [2, 0, 1, 3] : vector<4x16x2x48xf32> -> vector<2x4x16x48xf32>
    %35 = vector.shape_cast %34 : vector<2x4x16x48xf32> to vector<8x16x48xf32>
    %36 = vector.extract_strided_slice %35 {offsets = [0, 0, 0], sizes = [8, 16, 16], strides = [1, 1, 1]} : vector<8x16x48xf32> to vector<8x16x16xf32>
    %37 = vector.extract_strided_slice %35 {offsets = [0, 0, 16], sizes = [8, 16, 16], strides = [1, 1, 1]} : vector<8x16x48xf32> to vector<8x16x16xf32>
    %38 = vector.extract_strided_slice %35 {offsets = [0, 0, 32], sizes = [8, 16, 16], strides = [1, 1, 1]} : vector<8x16x48xf32> to vector<8x16x16xf32>
    %39 = arith.truncf %36 : vector<8x16x16xf32> to vector<8x16x16xbf16>
    %40 = arith.truncf %37 : vector<8x16x16xf32> to vector<8x16x16xbf16>
    %cst_15 = arith.constant dense<0.000000e+00> : vector<8x16x16xf32>
    %41 = tpu.matmul %39, %40, %cst_15 {dimension_numbers = #tpu.dot_dimension_numbers<[2], [2], [1], [1], [0, 0, 0, 1, 1, 1], [0], [0]>} : vector<8x16x16xbf16>, vector<8x16x16xbf16>, vector<8x16x16xf32> -> vector<8x16x16xf32>
    %42 = vector.shape_cast %41 : vector<8x16x16xf32> to vector<2x4x16x16xf32>
    %c0_16 = arith.constant 0 : index
    %c0_17 = arith.constant 0 : index
    %c0_18 = arith.constant 0 : index
    %43 = vector.load %arg8[%c0_16, %c0_17, %c0_18] : memref<2x16x16xf32, #tpu.memory_space<vmem>>, vector<2x16x16xf32>
    %44 = vector.shape_cast %43 : vector<2x16x16xf32> to vector<2x1x16x16xf32>
    %45 = vector.broadcast %44 : vector<2x1x16x16xf32> to vector<2x4x16x16xf32>
    %46 = arith.addf %42, %45 : vector<2x4x16x16xf32>
    %cst_19 = arith.constant dense<0xFF800000> : vector<2x4x16xf32>
    %47 = vector.multi_reduction <maximumf>, %46, %cst_19 [3] : vector<2x4x16x16xf32> to vector<2x4x16xf32>
    %48 = vector.shape_cast %47 : vector<2x4x16xf32> to vector<2x4x16x1xf32>
    %49 = vector.broadcast %48 : vector<2x4x16x1xf32> to vector<2x4x16x16xf32>
    %50 = arith.subf %46, %49 : vector<2x4x16x16xf32>
    %51 = math.exp %50 : vector<2x4x16x16xf32>
    %cst_20 = arith.constant dense<0.000000e+00> : vector<2x4x16xf32>
    %52 = vector.multi_reduction <add>, %51, %cst_20 [3] : vector<2x4x16x16xf32> to vector<2x4x16xf32>
    %53 = vector.shape_cast %52 : vector<2x4x16xf32> to vector<2x4x16x1xf32>
    %54 = tpu.reciprocal %53 {approx = true} : vector<2x4x16x1xf32> -> vector<2x4x16x1xf32>
    %55 = vector.broadcast %54 : vector<2x4x16x1xf32> to vector<2x4x16x16xf32>
    %56 = arith.mulf %51, %55 : vector<2x4x16x16xf32>
    %57 = vector.shape_cast %56 : vector<2x4x16x16xf32> to vector<8x16x16xf32>
    %58 = arith.truncf %57 : vector<8x16x16xf32> to vector<8x16x16xbf16>
    %59 = arith.truncf %38 : vector<8x16x16xf32> to vector<8x16x16xbf16>
    %cst_21 = arith.constant dense<0.000000e+00> : vector<8x16x16xf32>
    %60 = tpu.matmul %58, %59, %cst_21 {dimension_numbers = #tpu.dot_dimension_numbers<[2], [1], [1], [2], [0, 0, 0, 1, 1, 2], [0], [0]>} : vector<8x16x16xbf16>, vector<8x16x16xbf16>, vector<8x16x16xf32> -> vector<8x16x16xf32>
    %61 = vector.shape_cast %60 : vector<8x16x16xf32> to vector<2x4x16x16xf32>
    %62 = tpu.transpose %61, [1, 2, 0, 3] : vector<2x4x16x16xf32> -> vector<4x16x2x16xf32>
    %63 = vector.shape_cast %62 : vector<4x16x2x16xf32> to vector<64x32xf32>
    %64 = arith.truncf %63 : vector<64x32xf32> to vector<64x32xbf16>
    %c0_22 = arith.constant 0 : index
    %c0_23 = arith.constant 0 : index
    %65 = vector.load %arg6[%c0_22, %c0_23] : memref<32x32xbf16, #tpu.memory_space<vmem>>, vector<32x32xbf16>
    %cst_24 = arith.constant dense<0.000000e+00> : vector<64x32xf32>
    %66 = tpu.matmul %64, %65, %cst_24 {dimension_numbers = #tpu.dot_dimension_numbers<[1], [0], [0], [1], [0, 0, 1, 1], [], []>} : vector<64x32xbf16>, vector<32x32xbf16>, vector<64x32xf32> -> vector<64x32xf32>
    %c0_25 = arith.constant 0 : index
    %c0_26 = arith.constant 0 : index
    %67 = vector.load %arg7[%c0_25, %c0_26] : memref<1x32xf32, #tpu.memory_space<vmem>>, vector<1x32xf32>
    %68 = vector.broadcast %67 : vector<1x32xf32> to vector<64x32xf32>
    %69 = arith.addf %66, %68 : vector<64x32xf32>
    %70 = vector.shape_cast %69 : vector<64x32xf32> to vector<4x16x32xf32>
    %71 = arith.addf %1, %70 : vector<4x16x32xf32>
    %72 = arith.truncf %71 : vector<4x16x32xf32> to vector<4x16x32xbf16>
    %c0_27 = arith.constant 0 : index
    %c0_28 = arith.constant 0 : index
    %c0_29 = arith.constant 0 : index
    %73 = vector.load %arg9[%c0_27, %c0_28, %c0_29] : memref<4x16x32xbf16, #tpu.memory_space<vmem>>, vector<4x16x32xbf16>
    tpu.vector_store %arg9[%c0_27, %c0_28, %c0_29], %72 {strides = array<i32>} : memref<4x16x32xbf16, #tpu.memory_space<vmem>>, vector<4x16x32xbf16>,
    return
  }
  func.func @transform_0(%arg0: i32) -> (i32, i32, i32) {
    %c0_i32 = arith.constant 0 : i32
    %c0_i32_0 = arith.constant 0 : i32
    %c0_i32_1 = arith.constant 0 : i32
    return %arg0, %c0_i32, %c0_i32_0 : i32, i32, i32
  }
  func.func @transform_1(%arg0: i32) -> (i32, i32) {
    %c0_i32 = arith.constant 0 : i32
    %c0_i32_0 = arith.constant 0 : i32
    %c0_i32_1 = arith.constant 0 : i32
    return %c0_i32, %c0_i32_0 : i32, i32
  }
  func.func @transform_2(%arg0: i32) -> (i32, i32) {
    %c0_i32 = arith.constant 0 : i32
    %c0_i32_0 = arith.constant 0 : i32
    %c0_i32_1 = arith.constant 0 : i32
    return %c0_i32, %c0_i32_0 : i32, i32
  }
  func.func @transform_3(%arg0: i32) -> (i32, i32) {
    %c0_i32 = arith.constant 0 : i32
    %c0_i32_0 = arith.constant 0 : i32
    %c0_i32_1 = arith.constant 0 : i32
    return %c0_i32, %c0_i32_0 : i32, i32
  }
  func.func @transform_4(%arg0: i32) -> (i32, i32) {
    %c0_i32 = arith.constant 0 : i32
    %c0_i32_0 = arith.constant 0 : i32
    %c0_i32_1 = arith.constant 0 : i32
    return %c0_i32, %c0_i32_0 : i32, i32
  }
  func.func @transform_5(%arg0: i32) -> (i32, i32) {
    %c0_i32 = arith.constant 0 : i32
    %c0_i32_0 = arith.constant 0 : i32
    %c0_i32_1 = arith.constant 0 : i32
    return %c0_i32, %c0_i32_0 : i32, i32
  }
  func.func @transform_6(%arg0: i32) -> (i32, i32) {
    %c0_i32 = arith.constant 0 : i32
    %c0_i32_0 = arith.constant 0 : i32
    %c0_i32_1 = arith.constant 0 : i32
    return %c0_i32, %c0_i32_0 : i32, i32
  }
  func.func @transform_7(%arg0: i32) -> (i32, i32, i32) {
    %c0_i32 = arith.constant 0 : i32
    %c0_i32_0 = arith.constant 0 : i32
    %c0_i32_1 = arith.constant 0 : i32
    %c0_i32_2 = arith.constant 0 : i32
    return %c0_i32, %c0_i32_0, %c0_i32_1 : i32, i32, i32
  }
  func.func @transform_8(%arg0: i32) -> (i32, i32, i32) {
    %c0_i32 = arith.constant 0 : i32
    %c0_i32_0 = arith.constant 0 : i32
    %c0_i32_1 = arith.constant 0 : i32
    return %arg0, %c0_i32, %c0_i32_0 : i32, i32, i32
  }
}

module attributes {stable_mosaic.version = 11 : i64} {
  func.func @_mlp_kernel(%arg0: i32, %arg1: memref<64x32xbf16, #tpu.memory_space<vmem>>, %arg2: memref<1x32xf32, #tpu.memory_space<vmem>>, %arg3: memref<1x32xf32, #tpu.memory_space<vmem>>, %arg4: memref<32x128xbf16, #tpu.memory_space<vmem>>, %arg5: memref<1x128xf32, #tpu.memory_space<vmem>>, %arg6: memref<128x32xbf16, #tpu.memory_space<vmem>>, %arg7: memref<1x32xf32, #tpu.memory_space<vmem>>, %arg8: memref<64x32xbf16, #tpu.memory_space<vmem>>) attributes {dimension_semantics = [#tpu.dimension_semantics<parallel>], iteration_bounds = array<i64: 2>, scalar_prefetch = 0 : i64, scratch_operands = 0 : i64, tpu.core_type = #tpu.core_type<tc>, window_params = [{transform_indices = @transform_0, window_bounds = array<i64: 64, 32>}, {pipeline_mode = #tpu.pipeline_mode<synchronous>, transform_indices = @transform_1, window_bounds = array<i64: 1, 32>}, {pipeline_mode = #tpu.pipeline_mode<synchronous>, transform_indices = @transform_2, window_bounds = array<i64: 1, 32>}, {pipeline_mode = #tpu.pipeline_mode<synchronous>, transform_indices = @transform_3, window_bounds = array<i64: 32, 128>}, {pipeline_mode = #tpu.pipeline_mode<synchronous>, transform_indices = @transform_4, window_bounds = array<i64: 1, 128>}, {pipeline_mode = #tpu.pipeline_mode<synchronous>, transform_indices = @transform_5, window_bounds = array<i64: 128, 32>}, {pipeline_mode = #tpu.pipeline_mode<synchronous>, transform_indices = @transform_6, window_bounds = array<i64: 1, 32>}, {transform_indices = @transform_7, window_bounds = array<i64: 64, 32>}]} {
    %c0 = arith.constant 0 : index
    %c0_0 = arith.constant 0 : index
    %0 = vector.load %arg1[%c0, %c0_0] : memref<64x32xbf16, #tpu.memory_space<vmem>>, vector<64x32xbf16>
    %1 = arith.extf %0 : vector<64x32xbf16> to vector<64x32xf32>
    %cst = arith.constant dense<0.000000e+00> : vector<64xf32>
    %2 = vector.multi_reduction <add>, %1, %cst [1] : vector<64x32xf32> to vector<64xf32>
    %3 = vector.shape_cast %2 : vector<64xf32> to vector<64x1xf32>
    %cst_1 = arith.constant 3.200000e+01 : f32
    %4 = vector.broadcast %cst_1 : f32 to vector<64x1xf32>
    %5 = arith.divf %3, %4 : vector<64x1xf32>
    %6 = vector.broadcast %5 : vector<64x1xf32> to vector<64x32xf32>
    %7 = arith.subf %1, %6 : vector<64x32xf32>
    %8 = arith.mulf %7, %7 : vector<64x32xf32>
    %cst_2 = arith.constant dense<0.000000e+00> : vector<64xf32>
    %9 = vector.multi_reduction <add>, %8, %cst_2 [1] : vector<64x32xf32> to vector<64xf32>
    %10 = vector.shape_cast %9 : vector<64xf32> to vector<64x1xf32>
    %cst_3 = arith.constant 3.200000e+01 : f32
    %11 = vector.broadcast %cst_3 : f32 to vector<64x1xf32>
    %12 = arith.divf %10, %11 : vector<64x1xf32>
    %cst_4 = arith.constant 9.99999974E-6 : f32
    %13 = vector.broadcast %cst_4 : f32 to vector<64x1xf32>
    %14 = arith.addf %12, %13 : vector<64x1xf32>
    %15 = math.rsqrt %14 : vector<64x1xf32>
    %16 = vector.broadcast %15 : vector<64x1xf32> to vector<64x32xf32>
    %17 = arith.mulf %7, %16 : vector<64x32xf32>
    %c0_5 = arith.constant 0 : index
    %c0_6 = arith.constant 0 : index
    %18 = vector.load %arg2[%c0_5, %c0_6] : memref<1x32xf32, #tpu.memory_space<vmem>>, vector<1x32xf32>
    %19 = vector.broadcast %18 : vector<1x32xf32> to vector<64x32xf32>
    %20 = arith.mulf %17, %19 : vector<64x32xf32>
    %c0_7 = arith.constant 0 : index
    %c0_8 = arith.constant 0 : index
    %21 = vector.load %arg3[%c0_7, %c0_8] : memref<1x32xf32, #tpu.memory_space<vmem>>, vector<1x32xf32>
    %22 = vector.broadcast %21 : vector<1x32xf32> to vector<64x32xf32>
    %23 = arith.addf %20, %22 : vector<64x32xf32>
    %24 = arith.truncf %23 : vector<64x32xf32> to vector<64x32xbf16>
    %c0_9 = arith.constant 0 : index
    %c0_10 = arith.constant 0 : index
    %25 = vector.load %arg4[%c0_9, %c0_10] : memref<32x128xbf16, #tpu.memory_space<vmem>>, vector<32x128xbf16>
    %cst_11 = arith.constant dense<0.000000e+00> : vector<64x128xf32>
    %26 = tpu.matmul %24, %25, %cst_11 {dimension_numbers = #tpu.dot_dimension_numbers<[1], [0], [0], [1], [0, 0, 1, 1], [], []>} : vector<64x32xbf16>, vector<32x128xbf16>, vector<64x128xf32> -> vector<64x128xf32>
    %c0_12 = arith.constant 0 : index
    %c0_13 = arith.constant 0 : index
    %27 = vector.load %arg5[%c0_12, %c0_13] : memref<1x128xf32, #tpu.memory_space<vmem>>, vector<1x128xf32>
    %28 = vector.broadcast %27 : vector<1x128xf32> to vector<64x128xf32>
    %29 = arith.addf %26, %28 : vector<64x128xf32>
    %cst_14 = arith.constant 5.000000e-01 : f32
    %30 = vector.broadcast %cst_14 : f32 to vector<64x128xf32>
    %31 = arith.mulf %30, %29 : vector<64x128xf32>
    %cst_15 = arith.constant 4.471500e-02 : f32
    %32 = vector.broadcast %cst_15 : f32 to vector<64x128xf32>
    %33 = arith.mulf %32, %29 : vector<64x128xf32>
    %34 = arith.mulf %33, %29 : vector<64x128xf32>
    %35 = arith.mulf %34, %29 : vector<64x128xf32>
    %36 = arith.addf %29, %35 : vector<64x128xf32>
    %cst_16 = arith.constant 0.797884583 : f32
    %37 = vector.broadcast %cst_16 : f32 to vector<64x128xf32>
    %38 = arith.mulf %37, %36 : vector<64x128xf32>
    %39 = math.tanh %38 : vector<64x128xf32>
    %cst_17 = arith.constant 1.000000e+00 : f32
    %40 = vector.broadcast %cst_17 : f32 to vector<64x128xf32>
    %41 = arith.addf %40, %39 : vector<64x128xf32>
    %42 = arith.mulf %31, %41 : vector<64x128xf32>
    %43 = arith.truncf %42 : vector<64x128xf32> to vector<64x128xbf16>
    %c0_18 = arith.constant 0 : index
    %c0_19 = arith.constant 0 : index
    %44 = vector.load %arg6[%c0_18, %c0_19] : memref<128x32xbf16, #tpu.memory_space<vmem>>, vector<128x32xbf16>
    %cst_20 = arith.constant dense<0.000000e+00> : vector<64x32xf32>
    %45 = tpu.matmul %43, %44, %cst_20 {dimension_numbers = #tpu.dot_dimension_numbers<[1], [0], [0], [1], [0, 0, 1, 1], [], []>} : vector<64x128xbf16>, vector<128x32xbf16>, vector<64x32xf32> -> vector<64x32xf32>
    %c0_21 = arith.constant 0 : index
    %c0_22 = arith.constant 0 : index
    %46 = vector.load %arg7[%c0_21, %c0_22] : memref<1x32xf32, #tpu.memory_space<vmem>>, vector<1x32xf32>
    %47 = vector.broadcast %46 : vector<1x32xf32> to vector<64x32xf32>
    %48 = arith.addf %45, %47 : vector<64x32xf32>
    %49 = arith.addf %1, %48 : vector<64x32xf32>
    %50 = arith.truncf %49 : vector<64x32xf32> to vector<64x32xbf16>
    %c0_23 = arith.constant 0 : index
    %c0_24 = arith.constant 0 : index
    %51 = vector.load %arg8[%c0_23, %c0_24] : memref<64x32xbf16, #tpu.memory_space<vmem>>, vector<64x32xbf16>
    tpu.vector_store %arg8[%c0_23, %c0_24], %50 {strides = array<i32>} : memref<64x32xbf16, #tpu.memory_space<vmem>>, vector<64x32xbf16>,
    return
  }
  func.func @transform_0(%arg0: i32) -> (i32, i32) {
    %c0_i32 = arith.constant 0 : i32
    %c0_i32_0 = arith.constant 0 : i32
    return %arg0, %c0_i32 : i32, i32
  }
  func.func @transform_1(%arg0: i32) -> (i32, i32) {
    %c0_i32 = arith.constant 0 : i32
    %c0_i32_0 = arith.constant 0 : i32
    %c0_i32_1 = arith.constant 0 : i32
    return %c0_i32, %c0_i32_0 : i32, i32
  }
  func.func @transform_2(%arg0: i32) -> (i32, i32) {
    %c0_i32 = arith.constant 0 : i32
    %c0_i32_0 = arith.constant 0 : i32
    %c0_i32_1 = arith.constant 0 : i32
    return %c0_i32, %c0_i32_0 : i32, i32
  }
  func.func @transform_3(%arg0: i32) -> (i32, i32) {
    %c0_i32 = arith.constant 0 : i32
    %c0_i32_0 = arith.constant 0 : i32
    %c0_i32_1 = arith.constant 0 : i32
    return %c0_i32, %c0_i32_0 : i32, i32
  }
  func.func @transform_4(%arg0: i32) -> (i32, i32) {
    %c0_i32 = arith.constant 0 : i32
    %c0_i32_0 = arith.constant 0 : i32
    %c0_i32_1 = arith.constant 0 : i32
    return %c0_i32, %c0_i32_0 : i32, i32
  }
  func.func @transform_5(%arg0: i32) -> (i32, i32) {
    %c0_i32 = arith.constant 0 : i32
    %c0_i32_0 = arith.constant 0 : i32
    %c0_i32_1 = arith.constant 0 : i32
    return %c0_i32, %c0_i32_0 : i32, i32
  }
  func.func @transform_6(%arg0: i32) -> (i32, i32) {
    %c0_i32 = arith.constant 0 : i32
    %c0_i32_0 = arith.constant 0 : i32
    %c0_i32_1 = arith.constant 0 : i32
    return %c0_i32, %c0_i32_0 : i32, i32
  }
  func.func @transform_7(%arg0: i32) -> (i32, i32) {
    %c0_i32 = arith.constant 0 : i32
    %c0_i32_0 = arith.constant 0 : i32
    return %arg0, %c0_i32 : i32, i32
  }
}

module attributes {stable_mosaic.version = 11 : i64} {
  func.func @_window_attention_kernel(%arg0: i32, %arg1: memref<4x16x32xbf16, #tpu.memory_space<vmem>>, %arg2: memref<1x32xf32, #tpu.memory_space<vmem>>, %arg3: memref<1x32xf32, #tpu.memory_space<vmem>>, %arg4: memref<32x96xbf16, #tpu.memory_space<vmem>>, %arg5: memref<1x96xf32, #tpu.memory_space<vmem>>, %arg6: memref<32x32xbf16, #tpu.memory_space<vmem>>, %arg7: memref<1x32xf32, #tpu.memory_space<vmem>>, %arg8: memref<2x16x16xf32, #tpu.memory_space<vmem>>, %arg9: memref<4x16x16xf32, #tpu.memory_space<vmem>>, %arg10: memref<4x16x32xbf16, #tpu.memory_space<vmem>>) attributes {dimension_semantics = [#tpu.dimension_semantics<parallel>], iteration_bounds = array<i64: 2>, scalar_prefetch = 0 : i64, scratch_operands = 0 : i64, tpu.core_type = #tpu.core_type<tc>, window_params = [{transform_indices = @transform_0, window_bounds = array<i64: 4, 16, 32>}, {pipeline_mode = #tpu.pipeline_mode<synchronous>, transform_indices = @transform_1, window_bounds = array<i64: 1, 32>}, {pipeline_mode = #tpu.pipeline_mode<synchronous>, transform_indices = @transform_2, window_bounds = array<i64: 1, 32>}, {pipeline_mode = #tpu.pipeline_mode<synchronous>, transform_indices = @transform_3, window_bounds = array<i64: 32, 96>}, {pipeline_mode = #tpu.pipeline_mode<synchronous>, transform_indices = @transform_4, window_bounds = array<i64: 1, 96>}, {pipeline_mode = #tpu.pipeline_mode<synchronous>, transform_indices = @transform_5, window_bounds = array<i64: 32, 32>}, {pipeline_mode = #tpu.pipeline_mode<synchronous>, transform_indices = @transform_6, window_bounds = array<i64: 1, 32>}, {pipeline_mode = #tpu.pipeline_mode<synchronous>, transform_indices = @transform_7, window_bounds = array<i64: 2, 16, 16>}, {transform_indices = @transform_8, window_bounds = array<i64: 4, 16, 16>}, {transform_indices = @transform_9, window_bounds = array<i64: 4, 16, 32>}]} {
    %c0 = arith.constant 0 : index
    %c0_0 = arith.constant 0 : index
    %c0_1 = arith.constant 0 : index
    %0 = vector.load %arg1[%c0, %c0_0, %c0_1] : memref<4x16x32xbf16, #tpu.memory_space<vmem>>, vector<4x16x32xbf16>
    %1 = arith.extf %0 : vector<4x16x32xbf16> to vector<4x16x32xf32>
    %cst = arith.constant dense<0.000000e+00> : vector<4x16xf32>
    %2 = vector.multi_reduction <add>, %1, %cst [2] : vector<4x16x32xf32> to vector<4x16xf32>
    %3 = vector.shape_cast %2 : vector<4x16xf32> to vector<4x16x1xf32>
    %cst_2 = arith.constant 3.200000e+01 : f32
    %4 = vector.broadcast %cst_2 : f32 to vector<4x16x1xf32>
    %5 = arith.divf %3, %4 : vector<4x16x1xf32>
    %6 = vector.broadcast %5 : vector<4x16x1xf32> to vector<4x16x32xf32>
    %7 = arith.subf %1, %6 : vector<4x16x32xf32>
    %8 = arith.mulf %7, %7 : vector<4x16x32xf32>
    %cst_3 = arith.constant dense<0.000000e+00> : vector<4x16xf32>
    %9 = vector.multi_reduction <add>, %8, %cst_3 [2] : vector<4x16x32xf32> to vector<4x16xf32>
    %10 = vector.shape_cast %9 : vector<4x16xf32> to vector<4x16x1xf32>
    %cst_4 = arith.constant 3.200000e+01 : f32
    %11 = vector.broadcast %cst_4 : f32 to vector<4x16x1xf32>
    %12 = arith.divf %10, %11 : vector<4x16x1xf32>
    %cst_5 = arith.constant 9.99999974E-6 : f32
    %13 = vector.broadcast %cst_5 : f32 to vector<4x16x1xf32>
    %14 = arith.addf %12, %13 : vector<4x16x1xf32>
    %15 = math.rsqrt %14 : vector<4x16x1xf32>
    %16 = vector.broadcast %15 : vector<4x16x1xf32> to vector<4x16x32xf32>
    %17 = arith.mulf %7, %16 : vector<4x16x32xf32>
    %c0_6 = arith.constant 0 : index
    %c0_7 = arith.constant 0 : index
    %18 = vector.load %arg2[%c0_6, %c0_7] : memref<1x32xf32, #tpu.memory_space<vmem>>, vector<1x32xf32>
    %19 = vector.shape_cast %18 : vector<1x32xf32> to vector<1x1x32xf32>
    %20 = vector.broadcast %19 : vector<1x1x32xf32> to vector<4x16x32xf32>
    %21 = arith.mulf %17, %20 : vector<4x16x32xf32>
    %c0_8 = arith.constant 0 : index
    %c0_9 = arith.constant 0 : index
    %22 = vector.load %arg3[%c0_8, %c0_9] : memref<1x32xf32, #tpu.memory_space<vmem>>, vector<1x32xf32>
    %23 = vector.shape_cast %22 : vector<1x32xf32> to vector<1x1x32xf32>
    %24 = vector.broadcast %23 : vector<1x1x32xf32> to vector<4x16x32xf32>
    %25 = arith.addf %21, %24 : vector<4x16x32xf32>
    %26 = vector.shape_cast %25 : vector<4x16x32xf32> to vector<64x32xf32>
    %27 = arith.truncf %26 : vector<64x32xf32> to vector<64x32xbf16>
    %c0_10 = arith.constant 0 : index
    %c0_11 = arith.constant 0 : index
    %28 = vector.load %arg4[%c0_10, %c0_11] : memref<32x96xbf16, #tpu.memory_space<vmem>>, vector<32x96xbf16>
    %cst_12 = arith.constant dense<0.000000e+00> : vector<64x96xf32>
    %29 = tpu.matmul %27, %28, %cst_12 {dimension_numbers = #tpu.dot_dimension_numbers<[1], [0], [0], [1], [0, 0, 1, 1], [], []>} : vector<64x32xbf16>, vector<32x96xbf16>, vector<64x96xf32> -> vector<64x96xf32>
    %c0_13 = arith.constant 0 : index
    %c0_14 = arith.constant 0 : index
    %30 = vector.load %arg5[%c0_13, %c0_14] : memref<1x96xf32, #tpu.memory_space<vmem>>, vector<1x96xf32>
    %31 = vector.broadcast %30 : vector<1x96xf32> to vector<64x96xf32>
    %32 = arith.addf %29, %31 : vector<64x96xf32>
    %33 = vector.shape_cast %32 : vector<64x96xf32> to vector<4x16x2x48xf32>
    %34 = tpu.transpose %33, [2, 0, 1, 3] : vector<4x16x2x48xf32> -> vector<2x4x16x48xf32>
    %35 = vector.shape_cast %34 : vector<2x4x16x48xf32> to vector<8x16x48xf32>
    %36 = vector.extract_strided_slice %35 {offsets = [0, 0, 0], sizes = [8, 16, 16], strides = [1, 1, 1]} : vector<8x16x48xf32> to vector<8x16x16xf32>
    %37 = vector.extract_strided_slice %35 {offsets = [0, 0, 16], sizes = [8, 16, 16], strides = [1, 1, 1]} : vector<8x16x48xf32> to vector<8x16x16xf32>
    %38 = vector.extract_strided_slice %35 {offsets = [0, 0, 32], sizes = [8, 16, 16], strides = [1, 1, 1]} : vector<8x16x48xf32> to vector<8x16x16xf32>
    %39 = arith.truncf %36 : vector<8x16x16xf32> to vector<8x16x16xbf16>
    %40 = arith.truncf %37 : vector<8x16x16xf32> to vector<8x16x16xbf16>
    %cst_15 = arith.constant dense<0.000000e+00> : vector<8x16x16xf32>
    %41 = tpu.matmul %39, %40, %cst_15 {dimension_numbers = #tpu.dot_dimension_numbers<[2], [2], [1], [1], [0, 0, 0, 1, 1, 1], [0], [0]>} : vector<8x16x16xbf16>, vector<8x16x16xbf16>, vector<8x16x16xf32> -> vector<8x16x16xf32>
    %42 = vector.shape_cast %41 : vector<8x16x16xf32> to vector<2x4x16x16xf32>
    %c0_16 = arith.constant 0 : index
    %c0_17 = arith.constant 0 : index
    %c0_18 = arith.constant 0 : index
    %43 = vector.load %arg8[%c0_16, %c0_17, %c0_18] : memref<2x16x16xf32, #tpu.memory_space<vmem>>, vector<2x16x16xf32>
    %44 = vector.shape_cast %43 : vector<2x16x16xf32> to vector<2x1x16x16xf32>
    %45 = vector.broadcast %44 : vector<2x1x16x16xf32> to vector<2x4x16x16xf32>
    %46 = arith.addf %42, %45 : vector<2x4x16x16xf32>
    %c0_19 = arith.constant 0 : index
    %c0_20 = arith.constant 0 : index
    %c0_21 = arith.constant 0 : index
    %47 = vector.load %arg9[%c0_19, %c0_20, %c0_21] : memref<4x16x16xf32, #tpu.memory_space<vmem>>, vector<4x16x16xf32>
    %48 = vector.shape_cast %47 : vector<4x16x16xf32> to vector<1x4x16x16xf32>
    %49 = vector.broadcast %48 : vector<1x4x16x16xf32> to vector<2x4x16x16xf32>
    %50 = arith.addf %46, %49 : vector<2x4x16x16xf32>
    %cst_22 = arith.constant dense<0xFF800000> : vector<2x4x16xf32>
    %51 = vector.multi_reduction <maximumf>, %50, %cst_22 [3] : vector<2x4x16x16xf32> to vector<2x4x16xf32>
    %52 = vector.shape_cast %51 : vector<2x4x16xf32> to vector<2x4x16x1xf32>
    %53 = vector.broadcast %52 : vector<2x4x16x1xf32> to vector<2x4x16x16xf32>
    %54 = arith.subf %50, %53 : vector<2x4x16x16xf32>
    %55 = math.exp %54 : vector<2x4x16x16xf32>
    %cst_23 = arith.constant dense<0.000000e+00> : vector<2x4x16xf32>
    %56 = vector.multi_reduction <add>, %55, %cst_23 [3] : vector<2x4x16x16xf32> to vector<2x4x16xf32>
    %57 = vector.shape_cast %56 : vector<2x4x16xf32> to vector<2x4x16x1xf32>
    %58 = tpu.reciprocal %57 {approx = true} : vector<2x4x16x1xf32> -> vector<2x4x16x1xf32>
    %59 = vector.broadcast %58 : vector<2x4x16x1xf32> to vector<2x4x16x16xf32>
    %60 = arith.mulf %55, %59 : vector<2x4x16x16xf32>
    %61 = vector.shape_cast %60 : vector<2x4x16x16xf32> to vector<8x16x16xf32>
    %62 = arith.truncf %61 : vector<8x16x16xf32> to vector<8x16x16xbf16>
    %63 = arith.truncf %38 : vector<8x16x16xf32> to vector<8x16x16xbf16>
    %cst_24 = arith.constant dense<0.000000e+00> : vector<8x16x16xf32>
    %64 = tpu.matmul %62, %63, %cst_24 {dimension_numbers = #tpu.dot_dimension_numbers<[2], [1], [1], [2], [0, 0, 0, 1, 1, 2], [0], [0]>} : vector<8x16x16xbf16>, vector<8x16x16xbf16>, vector<8x16x16xf32> -> vector<8x16x16xf32>
    %65 = vector.shape_cast %64 : vector<8x16x16xf32> to vector<2x4x16x16xf32>
    %66 = tpu.transpose %65, [1, 2, 0, 3] : vector<2x4x16x16xf32> -> vector<4x16x2x16xf32>
    %67 = vector.shape_cast %66 : vector<4x16x2x16xf32> to vector<64x32xf32>
    %68 = arith.truncf %67 : vector<64x32xf32> to vector<64x32xbf16>
    %c0_25 = arith.constant 0 : index
    %c0_26 = arith.constant 0 : index
    %69 = vector.load %arg6[%c0_25, %c0_26] : memref<32x32xbf16, #tpu.memory_space<vmem>>, vector<32x32xbf16>
    %cst_27 = arith.constant dense<0.000000e+00> : vector<64x32xf32>
    %70 = tpu.matmul %68, %69, %cst_27 {dimension_numbers = #tpu.dot_dimension_numbers<[1], [0], [0], [1], [0, 0, 1, 1], [], []>} : vector<64x32xbf16>, vector<32x32xbf16>, vector<64x32xf32> -> vector<64x32xf32>
    %c0_28 = arith.constant 0 : index
    %c0_29 = arith.constant 0 : index
    %71 = vector.load %arg7[%c0_28, %c0_29] : memref<1x32xf32, #tpu.memory_space<vmem>>, vector<1x32xf32>
    %72 = vector.broadcast %71 : vector<1x32xf32> to vector<64x32xf32>
    %73 = arith.addf %70, %72 : vector<64x32xf32>
    %74 = vector.shape_cast %73 : vector<64x32xf32> to vector<4x16x32xf32>
    %75 = arith.addf %1, %74 : vector<4x16x32xf32>
    %76 = arith.truncf %75 : vector<4x16x32xf32> to vector<4x16x32xbf16>
    %c0_30 = arith.constant 0 : index
    %c0_31 = arith.constant 0 : index
    %c0_32 = arith.constant 0 : index
    %77 = vector.load %arg10[%c0_30, %c0_31, %c0_32] : memref<4x16x32xbf16, #tpu.memory_space<vmem>>, vector<4x16x32xbf16>
    tpu.vector_store %arg10[%c0_30, %c0_31, %c0_32], %76 {strides = array<i32>} : memref<4x16x32xbf16, #tpu.memory_space<vmem>>, vector<4x16x32xbf16>,
    return
  }
  func.func @transform_0(%arg0: i32) -> (i32, i32, i32) {
    %c0_i32 = arith.constant 0 : i32
    %c0_i32_0 = arith.constant 0 : i32
    %c0_i32_1 = arith.constant 0 : i32
    return %arg0, %c0_i32, %c0_i32_0 : i32, i32, i32
  }
  func.func @transform_1(%arg0: i32) -> (i32, i32) {
    %c0_i32 = arith.constant 0 : i32
    %c0_i32_0 = arith.constant 0 : i32
    %c0_i32_1 = arith.constant 0 : i32
    return %c0_i32, %c0_i32_0 : i32, i32
  }
  func.func @transform_2(%arg0: i32) -> (i32, i32) {
    %c0_i32 = arith.constant 0 : i32
    %c0_i32_0 = arith.constant 0 : i32
    %c0_i32_1 = arith.constant 0 : i32
    return %c0_i32, %c0_i32_0 : i32, i32
  }
  func.func @transform_3(%arg0: i32) -> (i32, i32) {
    %c0_i32 = arith.constant 0 : i32
    %c0_i32_0 = arith.constant 0 : i32
    %c0_i32_1 = arith.constant 0 : i32
    return %c0_i32, %c0_i32_0 : i32, i32
  }
  func.func @transform_4(%arg0: i32) -> (i32, i32) {
    %c0_i32 = arith.constant 0 : i32
    %c0_i32_0 = arith.constant 0 : i32
    %c0_i32_1 = arith.constant 0 : i32
    return %c0_i32, %c0_i32_0 : i32, i32
  }
  func.func @transform_5(%arg0: i32) -> (i32, i32) {
    %c0_i32 = arith.constant 0 : i32
    %c0_i32_0 = arith.constant 0 : i32
    %c0_i32_1 = arith.constant 0 : i32
    return %c0_i32, %c0_i32_0 : i32, i32
  }
  func.func @transform_6(%arg0: i32) -> (i32, i32) {
    %c0_i32 = arith.constant 0 : i32
    %c0_i32_0 = arith.constant 0 : i32
    %c0_i32_1 = arith.constant 0 : i32
    return %c0_i32, %c0_i32_0 : i32, i32
  }
  func.func @transform_7(%arg0: i32) -> (i32, i32, i32) {
    %c0_i32 = arith.constant 0 : i32
    %c0_i32_0 = arith.constant 0 : i32
    %c0_i32_1 = arith.constant 0 : i32
    %c0_i32_2 = arith.constant 0 : i32
    return %c0_i32, %c0_i32_0, %c0_i32_1 : i32, i32, i32
  }
  func.func @transform_8(%arg0: i32) -> (i32, i32, i32) {
    %c1_i32 = arith.constant 1 : i32
    %c0_i32 = arith.constant 0 : i32
    %0 = arith.cmpi eq, %c1_i32, %c0_i32 : i32
    %c1_i32_0 = arith.constant 1 : i32
    %1 = arith.select %0, %c1_i32_0, %c1_i32 : i32
    %2 = arith.remsi %arg0, %1 : i32
    %c0_i32_1 = arith.constant 0 : i32
    %3 = arith.cmpi ne, %2, %c0_i32_1 : i32
    %c0_i32_2 = arith.constant 0 : i32
    %4 = arith.cmpi slt, %2, %c0_i32_2 : i32
    %c0_i32_3 = arith.constant 0 : i32
    %5 = arith.cmpi slt, %1, %c0_i32_3 : i32
    %6 = arith.xori %4, %5 : i1
    %7 = arith.andi %6, %3 : i1
    %8 = arith.addi %2, %1 : i32
    %9 = arith.select %7, %8, %2 : i32
    %c0_i32_4 = arith.constant 0 : i32
    %c0_i32_5 = arith.constant 0 : i32
    %c0_i32_6 = arith.constant 0 : i32
    return %9, %c0_i32_4, %c0_i32_5 : i32, i32, i32
  }
  func.func @transform_9(%arg0: i32) -> (i32, i32, i32) {
    %c0_i32 = arith.constant 0 : i32
    %c0_i32_0 = arith.constant 0 : i32
    %c0_i32_1 = arith.constant 0 : i32
    return %arg0, %c0_i32, %c0_i32_0 : i32, i32, i32
  }
}

module attributes {stable_mosaic.version = 11 : i64} {
  func.func @_ln_linear_kernel(%arg0: i32, %arg1: memref<16x128xbf16, #tpu.memory_space<vmem>>, %arg2: memref<1x128xf32, #tpu.memory_space<vmem>>, %arg3: memref<1x128xf32, #tpu.memory_space<vmem>>, %arg4: memref<128x64xbf16, #tpu.memory_space<vmem>>, %arg5: memref<1x64xf32, #tpu.memory_space<vmem>>, %arg6: memref<16x64xbf16, #tpu.memory_space<vmem>>) attributes {dimension_semantics = [#tpu.dimension_semantics<parallel>], iteration_bounds = array<i64: 2>, scalar_prefetch = 0 : i64, scratch_operands = 0 : i64, tpu.core_type = #tpu.core_type<tc>, window_params = [{transform_indices = @transform_0, window_bounds = array<i64: 16, 128>}, {pipeline_mode = #tpu.pipeline_mode<synchronous>, transform_indices = @transform_1, window_bounds = array<i64: 1, 128>}, {pipeline_mode = #tpu.pipeline_mode<synchronous>, transform_indices = @transform_2, window_bounds = array<i64: 1, 128>}, {pipeline_mode = #tpu.pipeline_mode<synchronous>, transform_indices = @transform_3, window_bounds = array<i64: 128, 64>}, {pipeline_mode = #tpu.pipeline_mode<synchronous>, transform_indices = @transform_4, window_bounds = array<i64: 1, 64>}, {transform_indices = @transform_5, window_bounds = array<i64: 16, 64>}]} {
    %c0 = arith.constant 0 : index
    %c0_0 = arith.constant 0 : index
    %0 = vector.load %arg1[%c0, %c0_0] : memref<16x128xbf16, #tpu.memory_space<vmem>>, vector<16x128xbf16>
    %1 = arith.extf %0 : vector<16x128xbf16> to vector<16x128xf32>
    %cst = arith.constant dense<0.000000e+00> : vector<16xf32>
    %2 = vector.multi_reduction <add>, %1, %cst [1] : vector<16x128xf32> to vector<16xf32>
    %3 = vector.shape_cast %2 : vector<16xf32> to vector<16x1xf32>
    %cst_1 = arith.constant 1.280000e+02 : f32
    %4 = vector.broadcast %cst_1 : f32 to vector<16x1xf32>
    %5 = arith.divf %3, %4 : vector<16x1xf32>
    %6 = vector.broadcast %5 : vector<16x1xf32> to vector<16x128xf32>
    %7 = arith.subf %1, %6 : vector<16x128xf32>
    %8 = arith.mulf %7, %7 : vector<16x128xf32>
    %cst_2 = arith.constant dense<0.000000e+00> : vector<16xf32>
    %9 = vector.multi_reduction <add>, %8, %cst_2 [1] : vector<16x128xf32> to vector<16xf32>
    %10 = vector.shape_cast %9 : vector<16xf32> to vector<16x1xf32>
    %cst_3 = arith.constant 1.280000e+02 : f32
    %11 = vector.broadcast %cst_3 : f32 to vector<16x1xf32>
    %12 = arith.divf %10, %11 : vector<16x1xf32>
    %cst_4 = arith.constant 9.99999974E-6 : f32
    %13 = vector.broadcast %cst_4 : f32 to vector<16x1xf32>
    %14 = arith.addf %12, %13 : vector<16x1xf32>
    %15 = math.rsqrt %14 : vector<16x1xf32>
    %16 = vector.broadcast %15 : vector<16x1xf32> to vector<16x128xf32>
    %17 = arith.mulf %7, %16 : vector<16x128xf32>
    %c0_5 = arith.constant 0 : index
    %c0_6 = arith.constant 0 : index
    %18 = vector.load %arg2[%c0_5, %c0_6] : memref<1x128xf32, #tpu.memory_space<vmem>>, vector<1x128xf32>
    %19 = vector.broadcast %18 : vector<1x128xf32> to vector<16x128xf32>
    %20 = arith.mulf %17, %19 : vector<16x128xf32>
    %c0_7 = arith.constant 0 : index
    %c0_8 = arith.constant 0 : index
    %21 = vector.load %arg3[%c0_7, %c0_8] : memref<1x128xf32, #tpu.memory_space<vmem>>, vector<1x128xf32>
    %22 = vector.broadcast %21 : vector<1x128xf32> to vector<16x128xf32>
    %23 = arith.addf %20, %22 : vector<16x128xf32>
    %24 = arith.truncf %23 : vector<16x128xf32> to vector<16x128xbf16>
    %c0_9 = arith.constant 0 : index
    %c0_10 = arith.constant 0 : index
    %25 = vector.load %arg4[%c0_9, %c0_10] : memref<128x64xbf16, #tpu.memory_space<vmem>>, vector<128x64xbf16>
    %cst_11 = arith.constant dense<0.000000e+00> : vector<16x64xf32>
    %26 = tpu.matmul %24, %25, %cst_11 {dimension_numbers = #tpu.dot_dimension_numbers<[1], [0], [0], [1], [0, 0, 1, 1], [], []>} : vector<16x128xbf16>, vector<128x64xbf16>, vector<16x64xf32> -> vector<16x64xf32>
    %c0_12 = arith.constant 0 : index
    %c0_13 = arith.constant 0 : index
    %27 = vector.load %arg5[%c0_12, %c0_13] : memref<1x64xf32, #tpu.memory_space<vmem>>, vector<1x64xf32>
    %28 = vector.broadcast %27 : vector<1x64xf32> to vector<16x64xf32>
    %29 = arith.addf %26, %28 : vector<16x64xf32>
    %30 = arith.truncf %29 : vector<16x64xf32> to vector<16x64xbf16>
    %c0_14 = arith.constant 0 : index
    %c0_15 = arith.constant 0 : index
    %31 = vector.load %arg6[%c0_14, %c0_15] : memref<16x64xbf16, #tpu.memory_space<vmem>>, vector<16x64xbf16>
    tpu.vector_store %arg6[%c0_14, %c0_15], %30 {strides = array<i32>} : memref<16x64xbf16, #tpu.memory_space<vmem>>, vector<16x64xbf16>,
    return
  }
  func.func @transform_0(%arg0: i32) -> (i32, i32) {
    %c0_i32 = arith.constant 0 : i32
    %c0_i32_0 = arith.constant 0 : i32
    return %arg0, %c0_i32 : i32, i32
  }
  func.func @transform_1(%arg0: i32) -> (i32, i32) {
    %c0_i32 = arith.constant 0 : i32
    %c0_i32_0 = arith.constant 0 : i32
    %c0_i32_1 = arith.constant 0 : i32
    return %c0_i32, %c0_i32_0 : i32, i32
  }
  func.func @transform_2(%arg0: i32) -> (i32, i32) {
    %c0_i32 = arith.constant 0 : i32
    %c0_i32_0 = arith.constant 0 : i32
    %c0_i32_1 = arith.constant 0 : i32
    return %c0_i32, %c0_i32_0 : i32, i32
  }
  func.func @transform_3(%arg0: i32) -> (i32, i32) {
    %c0_i32 = arith.constant 0 : i32
    %c0_i32_0 = arith.constant 0 : i32
    %c0_i32_1 = arith.constant 0 : i32
    return %c0_i32, %c0_i32_0 : i32, i32
  }
  func.func @transform_4(%arg0: i32) -> (i32, i32) {
    %c0_i32 = arith.constant 0 : i32
    %c0_i32_0 = arith.constant 0 : i32
    %c0_i32_1 = arith.constant 0 : i32
    return %c0_i32, %c0_i32_0 : i32, i32
  }
  func.func @transform_5(%arg0: i32) -> (i32, i32) {
    %c0_i32 = arith.constant 0 : i32
    %c0_i32_0 = arith.constant 0 : i32
    return %arg0, %c0_i32 : i32, i32
  }
}

module attributes {stable_mosaic.version = 11 : i64} {
  func.func @_window_attention_kernel(%arg0: i32, %arg1: memref<1x16x64xbf16, #tpu.memory_space<vmem>>, %arg2: memref<1x64xf32, #tpu.memory_space<vmem>>, %arg3: memref<1x64xf32, #tpu.memory_space<vmem>>, %arg4: memref<64x192xbf16, #tpu.memory_space<vmem>>, %arg5: memref<1x192xf32, #tpu.memory_space<vmem>>, %arg6: memref<64x64xbf16, #tpu.memory_space<vmem>>, %arg7: memref<1x64xf32, #tpu.memory_space<vmem>>, %arg8: memref<4x16x16xf32, #tpu.memory_space<vmem>>, %arg9: memref<1x16x64xbf16, #tpu.memory_space<vmem>>) attributes {dimension_semantics = [#tpu.dimension_semantics<parallel>], iteration_bounds = array<i64: 2>, scalar_prefetch = 0 : i64, scratch_operands = 0 : i64, tpu.core_type = #tpu.core_type<tc>, window_params = [{transform_indices = @transform_0, window_bounds = array<i64: 1, 16, 64>}, {pipeline_mode = #tpu.pipeline_mode<synchronous>, transform_indices = @transform_1, window_bounds = array<i64: 1, 64>}, {pipeline_mode = #tpu.pipeline_mode<synchronous>, transform_indices = @transform_2, window_bounds = array<i64: 1, 64>}, {pipeline_mode = #tpu.pipeline_mode<synchronous>, transform_indices = @transform_3, window_bounds = array<i64: 64, 192>}, {pipeline_mode = #tpu.pipeline_mode<synchronous>, transform_indices = @transform_4, window_bounds = array<i64: 1, 192>}, {pipeline_mode = #tpu.pipeline_mode<synchronous>, transform_indices = @transform_5, window_bounds = array<i64: 64, 64>}, {pipeline_mode = #tpu.pipeline_mode<synchronous>, transform_indices = @transform_6, window_bounds = array<i64: 1, 64>}, {pipeline_mode = #tpu.pipeline_mode<synchronous>, transform_indices = @transform_7, window_bounds = array<i64: 4, 16, 16>}, {transform_indices = @transform_8, window_bounds = array<i64: 1, 16, 64>}]} {
    %c0 = arith.constant 0 : index
    %c0_0 = arith.constant 0 : index
    %c0_1 = arith.constant 0 : index
    %0 = vector.load %arg1[%c0, %c0_0, %c0_1] : memref<1x16x64xbf16, #tpu.memory_space<vmem>>, vector<1x16x64xbf16>
    %1 = arith.extf %0 : vector<1x16x64xbf16> to vector<1x16x64xf32>
    %cst = arith.constant dense<0.000000e+00> : vector<1x16xf32>
    %2 = vector.multi_reduction <add>, %1, %cst [2] : vector<1x16x64xf32> to vector<1x16xf32>
    %3 = vector.shape_cast %2 : vector<1x16xf32> to vector<1x16x1xf32>
    %cst_2 = arith.constant 6.400000e+01 : f32
    %4 = vector.broadcast %cst_2 : f32 to vector<1x16x1xf32>
    %5 = arith.divf %3, %4 : vector<1x16x1xf32>
    %6 = vector.broadcast %5 : vector<1x16x1xf32> to vector<1x16x64xf32>
    %7 = arith.subf %1, %6 : vector<1x16x64xf32>
    %8 = arith.mulf %7, %7 : vector<1x16x64xf32>
    %cst_3 = arith.constant dense<0.000000e+00> : vector<1x16xf32>
    %9 = vector.multi_reduction <add>, %8, %cst_3 [2] : vector<1x16x64xf32> to vector<1x16xf32>
    %10 = vector.shape_cast %9 : vector<1x16xf32> to vector<1x16x1xf32>
    %cst_4 = arith.constant 6.400000e+01 : f32
    %11 = vector.broadcast %cst_4 : f32 to vector<1x16x1xf32>
    %12 = arith.divf %10, %11 : vector<1x16x1xf32>
    %cst_5 = arith.constant 9.99999974E-6 : f32
    %13 = vector.broadcast %cst_5 : f32 to vector<1x16x1xf32>
    %14 = arith.addf %12, %13 : vector<1x16x1xf32>
    %15 = math.rsqrt %14 : vector<1x16x1xf32>
    %16 = vector.broadcast %15 : vector<1x16x1xf32> to vector<1x16x64xf32>
    %17 = arith.mulf %7, %16 : vector<1x16x64xf32>
    %c0_6 = arith.constant 0 : index
    %c0_7 = arith.constant 0 : index
    %18 = vector.load %arg2[%c0_6, %c0_7] : memref<1x64xf32, #tpu.memory_space<vmem>>, vector<1x64xf32>
    %19 = vector.shape_cast %18 : vector<1x64xf32> to vector<1x1x64xf32>
    %20 = vector.broadcast %19 : vector<1x1x64xf32> to vector<1x16x64xf32>
    %21 = arith.mulf %17, %20 : vector<1x16x64xf32>
    %c0_8 = arith.constant 0 : index
    %c0_9 = arith.constant 0 : index
    %22 = vector.load %arg3[%c0_8, %c0_9] : memref<1x64xf32, #tpu.memory_space<vmem>>, vector<1x64xf32>
    %23 = vector.shape_cast %22 : vector<1x64xf32> to vector<1x1x64xf32>
    %24 = vector.broadcast %23 : vector<1x1x64xf32> to vector<1x16x64xf32>
    %25 = arith.addf %21, %24 : vector<1x16x64xf32>
    %26 = vector.shape_cast %25 : vector<1x16x64xf32> to vector<16x64xf32>
    %27 = arith.truncf %26 : vector<16x64xf32> to vector<16x64xbf16>
    %c0_10 = arith.constant 0 : index
    %c0_11 = arith.constant 0 : index
    %28 = vector.load %arg4[%c0_10, %c0_11] : memref<64x192xbf16, #tpu.memory_space<vmem>>, vector<64x192xbf16>
    %cst_12 = arith.constant dense<0.000000e+00> : vector<16x192xf32>
    %29 = tpu.matmul %27, %28, %cst_12 {dimension_numbers = #tpu.dot_dimension_numbers<[1], [0], [0], [1], [0, 0, 1, 1], [], []>} : vector<16x64xbf16>, vector<64x192xbf16>, vector<16x192xf32> -> vector<16x192xf32>
    %c0_13 = arith.constant 0 : index
    %c0_14 = arith.constant 0 : index
    %30 = vector.load %arg5[%c0_13, %c0_14] : memref<1x192xf32, #tpu.memory_space<vmem>>, vector<1x192xf32>
    %31 = vector.broadcast %30 : vector<1x192xf32> to vector<16x192xf32>
    %32 = arith.addf %29, %31 : vector<16x192xf32>
    %33 = vector.shape_cast %32 : vector<16x192xf32> to vector<1x16x4x48xf32>
    %34 = tpu.transpose %33, [2, 0, 1, 3] : vector<1x16x4x48xf32> -> vector<4x1x16x48xf32>
    %35 = vector.shape_cast %34 : vector<4x1x16x48xf32> to vector<4x16x48xf32>
    %36 = vector.extract_strided_slice %35 {offsets = [0, 0, 0], sizes = [4, 16, 16], strides = [1, 1, 1]} : vector<4x16x48xf32> to vector<4x16x16xf32>
    %37 = vector.extract_strided_slice %35 {offsets = [0, 0, 16], sizes = [4, 16, 16], strides = [1, 1, 1]} : vector<4x16x48xf32> to vector<4x16x16xf32>
    %38 = vector.extract_strided_slice %35 {offsets = [0, 0, 32], sizes = [4, 16, 16], strides = [1, 1, 1]} : vector<4x16x48xf32> to vector<4x16x16xf32>
    %39 = arith.truncf %36 : vector<4x16x16xf32> to vector<4x16x16xbf16>
    %40 = arith.truncf %37 : vector<4x16x16xf32> to vector<4x16x16xbf16>
    %cst_15 = arith.constant dense<0.000000e+00> : vector<4x16x16xf32>
    %41 = tpu.matmul %39, %40, %cst_15 {dimension_numbers = #tpu.dot_dimension_numbers<[2], [2], [1], [1], [0, 0, 0, 1, 1, 1], [0], [0]>} : vector<4x16x16xbf16>, vector<4x16x16xbf16>, vector<4x16x16xf32> -> vector<4x16x16xf32>
    %42 = vector.shape_cast %41 : vector<4x16x16xf32> to vector<4x1x16x16xf32>
    %c0_16 = arith.constant 0 : index
    %c0_17 = arith.constant 0 : index
    %c0_18 = arith.constant 0 : index
    %43 = vector.load %arg8[%c0_16, %c0_17, %c0_18] : memref<4x16x16xf32, #tpu.memory_space<vmem>>, vector<4x16x16xf32>
    %44 = vector.shape_cast %43 : vector<4x16x16xf32> to vector<4x1x16x16xf32>
    %45 = arith.addf %42, %44 : vector<4x1x16x16xf32>
    %cst_19 = arith.constant dense<0xFF800000> : vector<4x1x16xf32>
    %46 = vector.multi_reduction <maximumf>, %45, %cst_19 [3] : vector<4x1x16x16xf32> to vector<4x1x16xf32>
    %47 = vector.shape_cast %46 : vector<4x1x16xf32> to vector<4x1x16x1xf32>
    %48 = vector.broadcast %47 : vector<4x1x16x1xf32> to vector<4x1x16x16xf32>
    %49 = arith.subf %45, %48 : vector<4x1x16x16xf32>
    %50 = math.exp %49 : vector<4x1x16x16xf32>
    %cst_20 = arith.constant dense<0.000000e+00> : vector<4x1x16xf32>
    %51 = vector.multi_reduction <add>, %50, %cst_20 [3] : vector<4x1x16x16xf32> to vector<4x1x16xf32>
    %52 = vector.shape_cast %51 : vector<4x1x16xf32> to vector<4x1x16x1xf32>
    %53 = tpu.reciprocal %52 {approx = true} : vector<4x1x16x1xf32> -> vector<4x1x16x1xf32>
    %54 = vector.broadcast %53 : vector<4x1x16x1xf32> to vector<4x1x16x16xf32>
    %55 = arith.mulf %50, %54 : vector<4x1x16x16xf32>
    %56 = vector.shape_cast %55 : vector<4x1x16x16xf32> to vector<4x16x16xf32>
    %57 = arith.truncf %56 : vector<4x16x16xf32> to vector<4x16x16xbf16>
    %58 = arith.truncf %38 : vector<4x16x16xf32> to vector<4x16x16xbf16>
    %cst_21 = arith.constant dense<0.000000e+00> : vector<4x16x16xf32>
    %59 = tpu.matmul %57, %58, %cst_21 {dimension_numbers = #tpu.dot_dimension_numbers<[2], [1], [1], [2], [0, 0, 0, 1, 1, 2], [0], [0]>} : vector<4x16x16xbf16>, vector<4x16x16xbf16>, vector<4x16x16xf32> -> vector<4x16x16xf32>
    %60 = vector.shape_cast %59 : vector<4x16x16xf32> to vector<4x1x16x16xf32>
    %61 = tpu.transpose %60, [1, 2, 0, 3] : vector<4x1x16x16xf32> -> vector<1x16x4x16xf32>
    %62 = vector.shape_cast %61 : vector<1x16x4x16xf32> to vector<16x64xf32>
    %63 = arith.truncf %62 : vector<16x64xf32> to vector<16x64xbf16>
    %c0_22 = arith.constant 0 : index
    %c0_23 = arith.constant 0 : index
    %64 = vector.load %arg6[%c0_22, %c0_23] : memref<64x64xbf16, #tpu.memory_space<vmem>>, vector<64x64xbf16>
    %cst_24 = arith.constant dense<0.000000e+00> : vector<16x64xf32>
    %65 = tpu.matmul %63, %64, %cst_24 {dimension_numbers = #tpu.dot_dimension_numbers<[1], [0], [0], [1], [0, 0, 1, 1], [], []>} : vector<16x64xbf16>, vector<64x64xbf16>, vector<16x64xf32> -> vector<16x64xf32>
    %c0_25 = arith.constant 0 : index
    %c0_26 = arith.constant 0 : index
    %66 = vector.load %arg7[%c0_25, %c0_26] : memref<1x64xf32, #tpu.memory_space<vmem>>, vector<1x64xf32>
    %67 = vector.broadcast %66 : vector<1x64xf32> to vector<16x64xf32>
    %68 = arith.addf %65, %67 : vector<16x64xf32>
    %69 = vector.shape_cast %68 : vector<16x64xf32> to vector<1x16x64xf32>
    %70 = arith.addf %1, %69 : vector<1x16x64xf32>
    %71 = arith.truncf %70 : vector<1x16x64xf32> to vector<1x16x64xbf16>
    %c0_27 = arith.constant 0 : index
    %c0_28 = arith.constant 0 : index
    %c0_29 = arith.constant 0 : index
    %72 = vector.load %arg9[%c0_27, %c0_28, %c0_29] : memref<1x16x64xbf16, #tpu.memory_space<vmem>>, vector<1x16x64xbf16>
    tpu.vector_store %arg9[%c0_27, %c0_28, %c0_29], %71 {strides = array<i32>} : memref<1x16x64xbf16, #tpu.memory_space<vmem>>, vector<1x16x64xbf16>,
    return
  }
  func.func @transform_0(%arg0: i32) -> (i32, i32, i32) {
    %c0_i32 = arith.constant 0 : i32
    %c0_i32_0 = arith.constant 0 : i32
    %c0_i32_1 = arith.constant 0 : i32
    return %arg0, %c0_i32, %c0_i32_0 : i32, i32, i32
  }
  func.func @transform_1(%arg0: i32) -> (i32, i32) {
    %c0_i32 = arith.constant 0 : i32
    %c0_i32_0 = arith.constant 0 : i32
    %c0_i32_1 = arith.constant 0 : i32
    return %c0_i32, %c0_i32_0 : i32, i32
  }
  func.func @transform_2(%arg0: i32) -> (i32, i32) {
    %c0_i32 = arith.constant 0 : i32
    %c0_i32_0 = arith.constant 0 : i32
    %c0_i32_1 = arith.constant 0 : i32
    return %c0_i32, %c0_i32_0 : i32, i32
  }
  func.func @transform_3(%arg0: i32) -> (i32, i32) {
    %c0_i32 = arith.constant 0 : i32
    %c0_i32_0 = arith.constant 0 : i32
    %c0_i32_1 = arith.constant 0 : i32
    return %c0_i32, %c0_i32_0 : i32, i32
  }
  func.func @transform_4(%arg0: i32) -> (i32, i32) {
    %c0_i32 = arith.constant 0 : i32
    %c0_i32_0 = arith.constant 0 : i32
    %c0_i32_1 = arith.constant 0 : i32
    return %c0_i32, %c0_i32_0 : i32, i32
  }
  func.func @transform_5(%arg0: i32) -> (i32, i32) {
    %c0_i32 = arith.constant 0 : i32
    %c0_i32_0 = arith.constant 0 : i32
    %c0_i32_1 = arith.constant 0 : i32
    return %c0_i32, %c0_i32_0 : i32, i32
  }
  func.func @transform_6(%arg0: i32) -> (i32, i32) {
    %c0_i32 = arith.constant 0 : i32
    %c0_i32_0 = arith.constant 0 : i32
    %c0_i32_1 = arith.constant 0 : i32
    return %c0_i32, %c0_i32_0 : i32, i32
  }
  func.func @transform_7(%arg0: i32) -> (i32, i32, i32) {
    %c0_i32 = arith.constant 0 : i32
    %c0_i32_0 = arith.constant 0 : i32
    %c0_i32_1 = arith.constant 0 : i32
    %c0_i32_2 = arith.constant 0 : i32
    return %c0_i32, %c0_i32_0, %c0_i32_1 : i32, i32, i32
  }
  func.func @transform_8(%arg0: i32) -> (i32, i32, i32) {
    %c0_i32 = arith.constant 0 : i32
    %c0_i32_0 = arith.constant 0 : i32
    %c0_i32_1 = arith.constant 0 : i32
    return %arg0, %c0_i32, %c0_i32_0 : i32, i32, i32
  }
}

module attributes {stable_mosaic.version = 11 : i64} {
  func.func @_mlp_kernel(%arg0: i32, %arg1: memref<16x64xbf16, #tpu.memory_space<vmem>>, %arg2: memref<1x64xf32, #tpu.memory_space<vmem>>, %arg3: memref<1x64xf32, #tpu.memory_space<vmem>>, %arg4: memref<64x256xbf16, #tpu.memory_space<vmem>>, %arg5: memref<1x256xf32, #tpu.memory_space<vmem>>, %arg6: memref<256x64xbf16, #tpu.memory_space<vmem>>, %arg7: memref<1x64xf32, #tpu.memory_space<vmem>>, %arg8: memref<16x64xbf16, #tpu.memory_space<vmem>>) attributes {dimension_semantics = [#tpu.dimension_semantics<parallel>], iteration_bounds = array<i64: 2>, scalar_prefetch = 0 : i64, scratch_operands = 0 : i64, tpu.core_type = #tpu.core_type<tc>, window_params = [{transform_indices = @transform_0, window_bounds = array<i64: 16, 64>}, {pipeline_mode = #tpu.pipeline_mode<synchronous>, transform_indices = @transform_1, window_bounds = array<i64: 1, 64>}, {pipeline_mode = #tpu.pipeline_mode<synchronous>, transform_indices = @transform_2, window_bounds = array<i64: 1, 64>}, {pipeline_mode = #tpu.pipeline_mode<synchronous>, transform_indices = @transform_3, window_bounds = array<i64: 64, 256>}, {pipeline_mode = #tpu.pipeline_mode<synchronous>, transform_indices = @transform_4, window_bounds = array<i64: 1, 256>}, {pipeline_mode = #tpu.pipeline_mode<synchronous>, transform_indices = @transform_5, window_bounds = array<i64: 256, 64>}, {pipeline_mode = #tpu.pipeline_mode<synchronous>, transform_indices = @transform_6, window_bounds = array<i64: 1, 64>}, {transform_indices = @transform_7, window_bounds = array<i64: 16, 64>}]} {
    %c0 = arith.constant 0 : index
    %c0_0 = arith.constant 0 : index
    %0 = vector.load %arg1[%c0, %c0_0] : memref<16x64xbf16, #tpu.memory_space<vmem>>, vector<16x64xbf16>
    %1 = arith.extf %0 : vector<16x64xbf16> to vector<16x64xf32>
    %cst = arith.constant dense<0.000000e+00> : vector<16xf32>
    %2 = vector.multi_reduction <add>, %1, %cst [1] : vector<16x64xf32> to vector<16xf32>
    %3 = vector.shape_cast %2 : vector<16xf32> to vector<16x1xf32>
    %cst_1 = arith.constant 6.400000e+01 : f32
    %4 = vector.broadcast %cst_1 : f32 to vector<16x1xf32>
    %5 = arith.divf %3, %4 : vector<16x1xf32>
    %6 = vector.broadcast %5 : vector<16x1xf32> to vector<16x64xf32>
    %7 = arith.subf %1, %6 : vector<16x64xf32>
    %8 = arith.mulf %7, %7 : vector<16x64xf32>
    %cst_2 = arith.constant dense<0.000000e+00> : vector<16xf32>
    %9 = vector.multi_reduction <add>, %8, %cst_2 [1] : vector<16x64xf32> to vector<16xf32>
    %10 = vector.shape_cast %9 : vector<16xf32> to vector<16x1xf32>
    %cst_3 = arith.constant 6.400000e+01 : f32
    %11 = vector.broadcast %cst_3 : f32 to vector<16x1xf32>
    %12 = arith.divf %10, %11 : vector<16x1xf32>
    %cst_4 = arith.constant 9.99999974E-6 : f32
    %13 = vector.broadcast %cst_4 : f32 to vector<16x1xf32>
    %14 = arith.addf %12, %13 : vector<16x1xf32>
    %15 = math.rsqrt %14 : vector<16x1xf32>
    %16 = vector.broadcast %15 : vector<16x1xf32> to vector<16x64xf32>
    %17 = arith.mulf %7, %16 : vector<16x64xf32>
    %c0_5 = arith.constant 0 : index
    %c0_6 = arith.constant 0 : index
    %18 = vector.load %arg2[%c0_5, %c0_6] : memref<1x64xf32, #tpu.memory_space<vmem>>, vector<1x64xf32>
    %19 = vector.broadcast %18 : vector<1x64xf32> to vector<16x64xf32>
    %20 = arith.mulf %17, %19 : vector<16x64xf32>
    %c0_7 = arith.constant 0 : index
    %c0_8 = arith.constant 0 : index
    %21 = vector.load %arg3[%c0_7, %c0_8] : memref<1x64xf32, #tpu.memory_space<vmem>>, vector<1x64xf32>
    %22 = vector.broadcast %21 : vector<1x64xf32> to vector<16x64xf32>
    %23 = arith.addf %20, %22 : vector<16x64xf32>
    %24 = arith.truncf %23 : vector<16x64xf32> to vector<16x64xbf16>
    %c0_9 = arith.constant 0 : index
    %c0_10 = arith.constant 0 : index
    %25 = vector.load %arg4[%c0_9, %c0_10] : memref<64x256xbf16, #tpu.memory_space<vmem>>, vector<64x256xbf16>
    %cst_11 = arith.constant dense<0.000000e+00> : vector<16x256xf32>
    %26 = tpu.matmul %24, %25, %cst_11 {dimension_numbers = #tpu.dot_dimension_numbers<[1], [0], [0], [1], [0, 0, 1, 1], [], []>} : vector<16x64xbf16>, vector<64x256xbf16>, vector<16x256xf32> -> vector<16x256xf32>
    %c0_12 = arith.constant 0 : index
    %c0_13 = arith.constant 0 : index
    %27 = vector.load %arg5[%c0_12, %c0_13] : memref<1x256xf32, #tpu.memory_space<vmem>>, vector<1x256xf32>
    %28 = vector.broadcast %27 : vector<1x256xf32> to vector<16x256xf32>
    %29 = arith.addf %26, %28 : vector<16x256xf32>
    %cst_14 = arith.constant 5.000000e-01 : f32
    %30 = vector.broadcast %cst_14 : f32 to vector<16x256xf32>
    %31 = arith.mulf %30, %29 : vector<16x256xf32>
    %cst_15 = arith.constant 4.471500e-02 : f32
    %32 = vector.broadcast %cst_15 : f32 to vector<16x256xf32>
    %33 = arith.mulf %32, %29 : vector<16x256xf32>
    %34 = arith.mulf %33, %29 : vector<16x256xf32>
    %35 = arith.mulf %34, %29 : vector<16x256xf32>
    %36 = arith.addf %29, %35 : vector<16x256xf32>
    %cst_16 = arith.constant 0.797884583 : f32
    %37 = vector.broadcast %cst_16 : f32 to vector<16x256xf32>
    %38 = arith.mulf %37, %36 : vector<16x256xf32>
    %39 = math.tanh %38 : vector<16x256xf32>
    %cst_17 = arith.constant 1.000000e+00 : f32
    %40 = vector.broadcast %cst_17 : f32 to vector<16x256xf32>
    %41 = arith.addf %40, %39 : vector<16x256xf32>
    %42 = arith.mulf %31, %41 : vector<16x256xf32>
    %43 = arith.truncf %42 : vector<16x256xf32> to vector<16x256xbf16>
    %c0_18 = arith.constant 0 : index
    %c0_19 = arith.constant 0 : index
    %44 = vector.load %arg6[%c0_18, %c0_19] : memref<256x64xbf16, #tpu.memory_space<vmem>>, vector<256x64xbf16>
    %cst_20 = arith.constant dense<0.000000e+00> : vector<16x64xf32>
    %45 = tpu.matmul %43, %44, %cst_20 {dimension_numbers = #tpu.dot_dimension_numbers<[1], [0], [0], [1], [0, 0, 1, 1], [], []>} : vector<16x256xbf16>, vector<256x64xbf16>, vector<16x64xf32> -> vector<16x64xf32>
    %c0_21 = arith.constant 0 : index
    %c0_22 = arith.constant 0 : index
    %46 = vector.load %arg7[%c0_21, %c0_22] : memref<1x64xf32, #tpu.memory_space<vmem>>, vector<1x64xf32>
    %47 = vector.broadcast %46 : vector<1x64xf32> to vector<16x64xf32>
    %48 = arith.addf %45, %47 : vector<16x64xf32>
    %49 = arith.addf %1, %48 : vector<16x64xf32>
    %50 = arith.truncf %49 : vector<16x64xf32> to vector<16x64xbf16>
    %c0_23 = arith.constant 0 : index
    %c0_24 = arith.constant 0 : index
    %51 = vector.load %arg8[%c0_23, %c0_24] : memref<16x64xbf16, #tpu.memory_space<vmem>>, vector<16x64xbf16>
    tpu.vector_store %arg8[%c0_23, %c0_24], %50 {strides = array<i32>} : memref<16x64xbf16, #tpu.memory_space<vmem>>, vector<16x64xbf16>,
    return
  }
  func.func @transform_0(%arg0: i32) -> (i32, i32) {
    %c0_i32 = arith.constant 0 : i32
    %c0_i32_0 = arith.constant 0 : i32
    return %arg0, %c0_i32 : i32, i32
  }
  func.func @transform_1(%arg0: i32) -> (i32, i32) {
    %c0_i32 = arith.constant 0 : i32
    %c0_i32_0 = arith.constant 0 : i32
    %c0_i32_1 = arith.constant 0 : i32
    return %c0_i32, %c0_i32_0 : i32, i32
  }
  func.func @transform_2(%arg0: i32) -> (i32, i32) {
    %c0_i32 = arith.constant 0 : i32
    %c0_i32_0 = arith.constant 0 : i32
    %c0_i32_1 = arith.constant 0 : i32
    return %c0_i32, %c0_i32_0 : i32, i32
  }
  func.func @transform_3(%arg0: i32) -> (i32, i32) {
    %c0_i32 = arith.constant 0 : i32
    %c0_i32_0 = arith.constant 0 : i32
    %c0_i32_1 = arith.constant 0 : i32
    return %c0_i32, %c0_i32_0 : i32, i32
  }
  func.func @transform_4(%arg0: i32) -> (i32, i32) {
    %c0_i32 = arith.constant 0 : i32
    %c0_i32_0 = arith.constant 0 : i32
    %c0_i32_1 = arith.constant 0 : i32
    return %c0_i32, %c0_i32_0 : i32, i32
  }
  func.func @transform_5(%arg0: i32) -> (i32, i32) {
    %c0_i32 = arith.constant 0 : i32
    %c0_i32_0 = arith.constant 0 : i32
    %c0_i32_1 = arith.constant 0 : i32
    return %c0_i32, %c0_i32_0 : i32, i32
  }
  func.func @transform_6(%arg0: i32) -> (i32, i32) {
    %c0_i32 = arith.constant 0 : i32
    %c0_i32_0 = arith.constant 0 : i32
    %c0_i32_1 = arith.constant 0 : i32
    return %c0_i32, %c0_i32_0 : i32, i32
  }
  func.func @transform_7(%arg0: i32) -> (i32, i32) {
    %c0_i32 = arith.constant 0 : i32
    %c0_i32_0 = arith.constant 0 : i32
    return %arg0, %c0_i32 : i32, i32
  }
}

module attributes {stable_mosaic.version = 11 : i64} {
  func.func @_ln_linear_kernel(%arg0: i32, %arg1: memref<8x256xbf16, #tpu.memory_space<vmem>>, %arg2: memref<1x256xf32, #tpu.memory_space<vmem>>, %arg3: memref<1x256xf32, #tpu.memory_space<vmem>>, %arg4: memref<256x128xbf16, #tpu.memory_space<vmem>>, %arg5: memref<1x128xf32, #tpu.memory_space<vmem>>, %arg6: memref<8x128xbf16, #tpu.memory_space<vmem>>) attributes {dimension_semantics = [#tpu.dimension_semantics<parallel>], iteration_bounds = array<i64: 1>, scalar_prefetch = 0 : i64, scratch_operands = 0 : i64, tpu.core_type = #tpu.core_type<tc>, window_params = [{transform_indices = @transform_0, window_bounds = array<i64: 8, 256>}, {pipeline_mode = #tpu.pipeline_mode<synchronous>, transform_indices = @transform_1, window_bounds = array<i64: 1, 256>}, {pipeline_mode = #tpu.pipeline_mode<synchronous>, transform_indices = @transform_2, window_bounds = array<i64: 1, 256>}, {pipeline_mode = #tpu.pipeline_mode<synchronous>, transform_indices = @transform_3, window_bounds = array<i64: 256, 128>}, {pipeline_mode = #tpu.pipeline_mode<synchronous>, transform_indices = @transform_4, window_bounds = array<i64: 1, 128>}, {transform_indices = @transform_5, window_bounds = array<i64: 8, 128>}]} {
    %c0 = arith.constant 0 : index
    %c0_0 = arith.constant 0 : index
    %0 = vector.load %arg1[%c0, %c0_0] : memref<8x256xbf16, #tpu.memory_space<vmem>>, vector<8x256xbf16>
    %1 = arith.extf %0 : vector<8x256xbf16> to vector<8x256xf32>
    %cst = arith.constant dense<0.000000e+00> : vector<8xf32>
    %2 = vector.multi_reduction <add>, %1, %cst [1] : vector<8x256xf32> to vector<8xf32>
    %3 = vector.shape_cast %2 : vector<8xf32> to vector<8x1xf32>
    %cst_1 = arith.constant 2.560000e+02 : f32
    %4 = vector.broadcast %cst_1 : f32 to vector<8x1xf32>
    %5 = arith.divf %3, %4 : vector<8x1xf32>
    %6 = vector.broadcast %5 : vector<8x1xf32> to vector<8x256xf32>
    %7 = arith.subf %1, %6 : vector<8x256xf32>
    %8 = arith.mulf %7, %7 : vector<8x256xf32>
    %cst_2 = arith.constant dense<0.000000e+00> : vector<8xf32>
    %9 = vector.multi_reduction <add>, %8, %cst_2 [1] : vector<8x256xf32> to vector<8xf32>
    %10 = vector.shape_cast %9 : vector<8xf32> to vector<8x1xf32>
    %cst_3 = arith.constant 2.560000e+02 : f32
    %11 = vector.broadcast %cst_3 : f32 to vector<8x1xf32>
    %12 = arith.divf %10, %11 : vector<8x1xf32>
    %cst_4 = arith.constant 9.99999974E-6 : f32
    %13 = vector.broadcast %cst_4 : f32 to vector<8x1xf32>
    %14 = arith.addf %12, %13 : vector<8x1xf32>
    %15 = math.rsqrt %14 : vector<8x1xf32>
    %16 = vector.broadcast %15 : vector<8x1xf32> to vector<8x256xf32>
    %17 = arith.mulf %7, %16 : vector<8x256xf32>
    %c0_5 = arith.constant 0 : index
    %c0_6 = arith.constant 0 : index
    %18 = vector.load %arg2[%c0_5, %c0_6] : memref<1x256xf32, #tpu.memory_space<vmem>>, vector<1x256xf32>
    %19 = vector.broadcast %18 : vector<1x256xf32> to vector<8x256xf32>
    %20 = arith.mulf %17, %19 : vector<8x256xf32>
    %c0_7 = arith.constant 0 : index
    %c0_8 = arith.constant 0 : index
    %21 = vector.load %arg3[%c0_7, %c0_8] : memref<1x256xf32, #tpu.memory_space<vmem>>, vector<1x256xf32>
    %22 = vector.broadcast %21 : vector<1x256xf32> to vector<8x256xf32>
    %23 = arith.addf %20, %22 : vector<8x256xf32>
    %24 = arith.truncf %23 : vector<8x256xf32> to vector<8x256xbf16>
    %c0_9 = arith.constant 0 : index
    %c0_10 = arith.constant 0 : index
    %25 = vector.load %arg4[%c0_9, %c0_10] : memref<256x128xbf16, #tpu.memory_space<vmem>>, vector<256x128xbf16>
    %cst_11 = arith.constant dense<0.000000e+00> : vector<8x128xf32>
    %26 = tpu.matmul %24, %25, %cst_11 {dimension_numbers = #tpu.dot_dimension_numbers<[1], [0], [0], [1], [0, 0, 1, 1], [], []>} : vector<8x256xbf16>, vector<256x128xbf16>, vector<8x128xf32> -> vector<8x128xf32>
    %c0_12 = arith.constant 0 : index
    %c0_13 = arith.constant 0 : index
    %27 = vector.load %arg5[%c0_12, %c0_13] : memref<1x128xf32, #tpu.memory_space<vmem>>, vector<1x128xf32>
    %28 = vector.broadcast %27 : vector<1x128xf32> to vector<8x128xf32>
    %29 = arith.addf %26, %28 : vector<8x128xf32>
    %30 = arith.truncf %29 : vector<8x128xf32> to vector<8x128xbf16>
    %c0_14 = arith.constant 0 : index
    %c0_15 = arith.constant 0 : index
    %31 = vector.load %arg6[%c0_14, %c0_15] : memref<8x128xbf16, #tpu.memory_space<vmem>>, vector<8x128xbf16>
    tpu.vector_store %arg6[%c0_14, %c0_15], %30 {strides = array<i32>} : memref<8x128xbf16, #tpu.memory_space<vmem>>, vector<8x128xbf16>,
    return
  }
  func.func @transform_0(%arg0: i32) -> (i32, i32) {
    %c0_i32 = arith.constant 0 : i32
    %c0_i32_0 = arith.constant 0 : i32
    return %arg0, %c0_i32 : i32, i32
  }
  func.func @transform_1(%arg0: i32) -> (i32, i32) {
    %c0_i32 = arith.constant 0 : i32
    %c0_i32_0 = arith.constant 0 : i32
    %c0_i32_1 = arith.constant 0 : i32
    return %c0_i32, %c0_i32_0 : i32, i32
  }
  func.func @transform_2(%arg0: i32) -> (i32, i32) {
    %c0_i32 = arith.constant 0 : i32
    %c0_i32_0 = arith.constant 0 : i32
    %c0_i32_1 = arith.constant 0 : i32
    return %c0_i32, %c0_i32_0 : i32, i32
  }
  func.func @transform_3(%arg0: i32) -> (i32, i32) {
    %c0_i32 = arith.constant 0 : i32
    %c0_i32_0 = arith.constant 0 : i32
    %c0_i32_1 = arith.constant 0 : i32
    return %c0_i32, %c0_i32_0 : i32, i32
  }
  func.func @transform_4(%arg0: i32) -> (i32, i32) {
    %c0_i32 = arith.constant 0 : i32
    %c0_i32_0 = arith.constant 0 : i32
    %c0_i32_1 = arith.constant 0 : i32
    return %c0_i32, %c0_i32_0 : i32, i32
  }
  func.func @transform_5(%arg0: i32) -> (i32, i32) {
    %c0_i32 = arith.constant 0 : i32
    %c0_i32_0 = arith.constant 0 : i32
    return %arg0, %c0_i32 : i32, i32
  }
}

module attributes {stable_mosaic.version = 11 : i64} {
  func.func @_head_kernel(%arg0: memref<2x4x128xbf16, #tpu.memory_space<vmem>>, %arg1: memref<1x1x128xf32, #tpu.memory_space<vmem>>, %arg2: memref<1x1x128xf32, #tpu.memory_space<vmem>>, %arg3: memref<128x10xbf16, #tpu.memory_space<vmem>>, %arg4: memref<1x10xf32, #tpu.memory_space<vmem>>, %arg5: memref<2x10xf32, #tpu.memory_space<vmem>>) attributes {dimension_semantics = [], scalar_prefetch = 0 : i64, scratch_operands = 0 : i64, tpu.core_type = #tpu.core_type<tc>} {
    %c0 = arith.constant 0 : index
    %c0_0 = arith.constant 0 : index
    %c0_1 = arith.constant 0 : index
    %0 = vector.load %arg0[%c0, %c0_0, %c0_1] : memref<2x4x128xbf16, #tpu.memory_space<vmem>>, vector<2x4x128xbf16>
    %1 = arith.extf %0 : vector<2x4x128xbf16> to vector<2x4x128xf32>
    %cst = arith.constant dense<0.000000e+00> : vector<2x4xf32>
    %2 = vector.multi_reduction <add>, %1, %cst [2] : vector<2x4x128xf32> to vector<2x4xf32>
    %3 = vector.shape_cast %2 : vector<2x4xf32> to vector<2x4x1xf32>
    %cst_2 = arith.constant 1.280000e+02 : f32
    %4 = vector.broadcast %cst_2 : f32 to vector<2x4x1xf32>
    %5 = arith.divf %3, %4 : vector<2x4x1xf32>
    %6 = vector.broadcast %5 : vector<2x4x1xf32> to vector<2x4x128xf32>
    %7 = arith.subf %1, %6 : vector<2x4x128xf32>
    %8 = arith.mulf %7, %7 : vector<2x4x128xf32>
    %cst_3 = arith.constant dense<0.000000e+00> : vector<2x4xf32>
    %9 = vector.multi_reduction <add>, %8, %cst_3 [2] : vector<2x4x128xf32> to vector<2x4xf32>
    %10 = vector.shape_cast %9 : vector<2x4xf32> to vector<2x4x1xf32>
    %cst_4 = arith.constant 1.280000e+02 : f32
    %11 = vector.broadcast %cst_4 : f32 to vector<2x4x1xf32>
    %12 = arith.divf %10, %11 : vector<2x4x1xf32>
    %cst_5 = arith.constant 9.99999974E-6 : f32
    %13 = vector.broadcast %cst_5 : f32 to vector<2x4x1xf32>
    %14 = arith.addf %12, %13 : vector<2x4x1xf32>
    %15 = math.rsqrt %14 : vector<2x4x1xf32>
    %16 = vector.broadcast %15 : vector<2x4x1xf32> to vector<2x4x128xf32>
    %17 = arith.mulf %7, %16 : vector<2x4x128xf32>
    %c0_6 = arith.constant 0 : index
    %c0_7 = arith.constant 0 : index
    %c0_8 = arith.constant 0 : index
    %18 = vector.load %arg1[%c0_6, %c0_7, %c0_8] : memref<1x1x128xf32, #tpu.memory_space<vmem>>, vector<1x1x128xf32>
    %19 = vector.broadcast %18 : vector<1x1x128xf32> to vector<2x4x128xf32>
    %20 = arith.mulf %17, %19 : vector<2x4x128xf32>
    %c0_9 = arith.constant 0 : index
    %c0_10 = arith.constant 0 : index
    %c0_11 = arith.constant 0 : index
    %21 = vector.load %arg2[%c0_9, %c0_10, %c0_11] : memref<1x1x128xf32, #tpu.memory_space<vmem>>, vector<1x1x128xf32>
    %22 = vector.broadcast %21 : vector<1x1x128xf32> to vector<2x4x128xf32>
    %23 = arith.addf %20, %22 : vector<2x4x128xf32>
    %cst_12 = arith.constant dense<0.000000e+00> : vector<2x128xf32>
    %24 = vector.multi_reduction <add>, %23, %cst_12 [1] : vector<2x4x128xf32> to vector<2x128xf32>
    %cst_13 = arith.constant 4.000000e+00 : f32
    %25 = vector.broadcast %cst_13 : f32 to vector<2x128xf32>
    %26 = arith.divf %24, %25 : vector<2x128xf32>
    %27 = arith.truncf %26 : vector<2x128xf32> to vector<2x128xbf16>
    %c0_14 = arith.constant 0 : index
    %c0_15 = arith.constant 0 : index
    %28 = vector.load %arg3[%c0_14, %c0_15] : memref<128x10xbf16, #tpu.memory_space<vmem>>, vector<128x10xbf16>
    %cst_16 = arith.constant dense<0.000000e+00> : vector<2x10xf32>
    %29 = tpu.matmul %27, %28, %cst_16 {dimension_numbers = #tpu.dot_dimension_numbers<[1], [0], [0], [1], [0, 0, 1, 1], [], []>} : vector<2x128xbf16>, vector<128x10xbf16>, vector<2x10xf32> -> vector<2x10xf32>
    %c0_17 = arith.constant 0 : index
    %c0_18 = arith.constant 0 : index
    %30 = vector.load %arg4[%c0_17, %c0_18] : memref<1x10xf32, #tpu.memory_space<vmem>>, vector<1x10xf32>
    %31 = vector.broadcast %30 : vector<1x10xf32> to vector<2x10xf32>
    %32 = arith.addf %29, %31 : vector<2x10xf32>
    %c0_19 = arith.constant 0 : index
    %c0_20 = arith.constant 0 : index
    %33 = vector.load %arg5[%c0_19, %c0_20] : memref<2x10xf32, #tpu.memory_space<vmem>>, vector<2x10xf32>
    tpu.vector_store %arg5[%c0_19, %c0_20], %32 {strides = array<i32>} : memref<2x10xf32, #tpu.memory_space<vmem>>, vector<2x10xf32>,
    return
  }
}

</mosaic_0001>

<bundles_post_ra>
// kernel: _lambda_.12
= control target key start
LH: loop header
LB: loop body
LE: loop exit
PB: predicated region body
PF: predicated region fallthrough
CT: control target
= control target key end

     0   :  { %s511_s12 = smov 0   ;;  %s548_s0 = inlined_call_operand.vmem [shape: bf16[128,32], index: 0, kind: input, shape index: {}]   ;;  %s549_s1 = inlined_call_operand.vmem [shape: bf16[32,32], index: 1, kind: input, shape index: {}]   ;;  %s550_s2 = inlined_call_operand.vmem [shape: f32[1,32], index: 2, kind: input, shape index: {}]   ;;  %s551_s3 = inlined_call_operand.vmem [shape: bf16[128,32], index: 3, kind: output, shape index: {}]  }
   0x1 LB: > { %s409_s13 = sadd.s32 4294967295, %s489_s12   ;;  %p413_p0 = scmp.ge.s32.totalorder %s489_s12, 1  ;;  %s489_s12 = sphi %s511_s12, %s13_s12  }
   0x2   : > { %p138_p1 = scmp.lt.s32.totalorder %s489_s12, 3 }
   0x4   : > { %p139_p2 = pnand %p413_p0, %p138_p1 }
   0x5   : > { %v477_v0 = vld [vmem:[%s549_s1] sm:$0xff] (!%p139_p2)   ;;  %s414_s16 = sshll.u32 (!%p139_p2), %s409_s13, 3  ;;  %v478_v1 = vld [vmem:[%s549_s1 + $0x8] sm:$0xff] (!%p139_p2)   ;;  %vm226_vm0 = vcmask (!%p139_p2), 261120   ;;  %vm344_vm1 = vcmask (!%p139_p2), 257024  }
   0x6   : > { %142 = sbr.rel (%p139_p2) target bundleno = 240 (0xf0), region = 32  ;;  %p163_p3 = scmp.lt.s32.totalorder (!%p139_p2), %s414_s16, 15  ;;  %453 = vmatprep.subr.bf16.mxu0 (!%p139_p2), %v477_v0  ;;  %465 = vmatprep.subr.bf16.mxu1 (!%p139_p2), %v477_v0  ;;  %v418_v6 = vld [vmem:[%s550_s2] ss:$0 sm:$0xff] (!%p139_p2) }
   0x7   : > { %454 = vmatpush3.bf16.msra.mxu0 (!%p139_p2), %v477_v0  ;;  %467 = vmatpush3.bf16.msra.mxu1 (!%p139_p2), %v477_v0 }
   0x8   : > { %455 = vmatprep.subr.bf16.mxu0 (!%p139_p2), %v478_v1  ;;  %466 = vmatprep.subr.bf16.mxu1 (!%p139_p2), %v478_v1 }
   0xb   : > { %456 = vmatpush3.bf16.msra.mxu0 (!%p139_p2), %v478_v1  ;;  %468 = vmatpush3.bf16.msra.mxu1 (!%p139_p2), %v478_v1 }
   0xd   : > { %s553_s16 = smov (!%p163_p3, %s414_s16), 15 }
   0xe   : > { %s415_s19 = sshll.u32 %s553_s16, 2 }
   0xf   : > { %s166_s22 = scalar_lea.vmem %s548_s0, %s415_s19  ;;  %s172_s27 = scalar_lea.vmem %s551_s3, %s415_s19 }
  0x10   : > { %v479_v2 = vld [vmem:[%s166_s22] sm:$0xff]   ;;  %v480_v3 = vld [vmem:[%s166_s22 + $0x10] sm:$0xff]   ;;  %v481_v4 = vld [vmem:[%s166_s22 + $0x8] sm:$0xff]  }
  0x11   : > { %457 = vmatprep.mubr.msk.bf16.mxu0 %vm226_vm0, %v479_v2  ;;  %461 = vmatprep.mubr.msk.bf16.mxu1 %vm226_vm0, %v480_v3  ;;  %v482_v5 = vld [vmem:[%s166_s22 + $0x18] sm:$0xff]  }
  0x12   : > { %458 = vmatmul.mubr.msk.bf16.vlgmr.msra.gmra.mrb[0].mxu0 %vm226_vm0, %v481_v4  ;;  %462 = vmatmul.mubr.msk.bf16.vlgmr.msra.gmra.mrb[0].mxu1 %vm226_vm0, %v482_v5 }
  0xe5   : > { %v459_v7 = vpop.f32.mrb[0].mxu0  ;;  %v463_v9 = vpop.f32.mrb[0].mxu1 }
  0xe6   : > { %v282_v8 = vadd.f32 %v459_v7, %v418_v6  ;;  %v273_v10 = vpop.f32.mrb[1].mxu0  ;;  %v298_v11 = vadd.f32 %v463_v9, %v418_v6  ;;  %v289_v13 = vpop.f32.mrb[1].mxu1 }
  0xe7   : > { %v274_v12 = vadd.f32 %v418_v6, %v273_v10  ;;  %v460_v14 = vpop.f32.mrb[2].mxu0  ;;  %v290_v16 = vadd.f32 %v418_v6, %v289_v13  ;;  %v464_v18 = vpop.f32.mrb[2].mxu1 }
  0xe8   : > { %v306_v15 = vmax.f32 %v282_v8, 0.0  ;;  %v285_v17 = vadd.f32 %v460_v14, %v418_v6  ;;  %v276_v19 = vpop.f32.mrb[3].mxu0  ;;  %v310_v20 = vmax.f32 %v298_v11, 0.0  ;;  %v301_v22 = vadd.f32 %v464_v18, %v418_v6  ;;  %v292_v24 = vpop.f32.mrb[3].mxu1 }
  0xe9   : > { %v304_v21 = vmax.f32 %v274_v12, 0.0  ;;  %v277_v23 = vadd.f32 %v418_v6, %v276_v19  ;;  %v308_v26 = vmax.f32 %v290_v16, 0.0  ;;  %v293_v28 = vadd.f32 %v418_v6, %v292_v24 }
  0xea   : > { %v441_v25 = vpack.c.bf16 %v306_v15, %v306_v15  ;;  %v307_v27 = vmax.f32 %v285_v17, 0.0  ;;  %v445_v29 = vpack.c.bf16 %v310_v20, %v310_v20  ;;  %v311_v31 = vmax.f32 %v301_v22, 0.0 }
  0xeb   : > { %v439_v30 = vpack.c.bf16 %v304_v21, %v304_v21  ;;  %v305_v32 = vmax.f32 %v277_v23, 0.0  ;;  %v443_v33 = vpack.c.bf16 %v308_v26, %v308_v26  ;;  %v309_v35 = vmax.f32 %v293_v28, 0.0 }
  0xec   : > { %347 = vst.msk [vmem:[%s172_s27 + $0x8] sm:$0xf] %vm344_vm1, %v441_v25  ;;  %v442_v34 = vpack.c.bf16 %v307_v27, %v307_v27  ;;  %351 = vst.msk [vmem:[%s172_s27 + $0x18] sm:$0xf] %vm344_vm1, %v445_v29  ;;  %v446_v36 = vpack.c.bf16 %v311_v31, %v311_v31 }
  0xed   : > { %345 = vst.msk [vmem:[%s172_s27] sm:$0xf] %vm344_vm1, %v439_v30  ;;  %v440_v37 = vpack.c.bf16 %v305_v32, %v305_v32  ;;  %349 = vst.msk [vmem:[%s172_s27 + $0x10] sm:$0xf] %vm344_vm1, %v443_v33  ;;  %v444_v38 = vpack.c.bf16 %v309_v35, %v309_v35 }
  0xee   : > { %348 = vst.msk [vmem:[%s172_s27 + $0xc] sm:$0xf] %vm344_vm1, %v442_v34  ;;  %352 = vst.msk [vmem:[%s172_s27 + $0x1c] sm:$0xf] %vm344_vm1, %v446_v36 }
  0xef   : > { %346 = vst.msk [vmem:[%s172_s27 + $0x4] sm:$0xf] %vm344_vm1, %v440_v37  ;;  %350 = vst.msk [vmem:[%s172_s27 + $0x14] sm:$0xf] %vm344_vm1, %v444_v38 }
  0xf0 PF: > { %s13_s12 = sadd.s32 1, %s489_s12  }
  0xf1   : > { %p10_p4 = scmp.ge.s32.totalorder %s13_s12, 4  }
  0xf3   :  { %12 = sbr.rel (!%p10_p4) target bundleno = 1 (0x1), region = 62 }

// kernel: _lambda_.14
= control target key start
LH: loop header
LB: loop body
LE: loop exit
PB: predicated region body
PF: predicated region fallthrough
CT: control target
= control target key end

     0   :  { %s1072_s24 = smov 0   ;;  %s1298_s0 = inlined_call_operand.vmem [shape: bf16[128,32], index: 0, kind: input, shape index: {}]   ;;  %s1299_s1 = inlined_call_operand.vmem [shape: f32[1,32], index: 1, kind: input, shape index: {}]   ;;  %s1300_s2 = inlined_call_operand.vmem [shape: f32[1,32], index: 2, kind: input, shape index: {}]   ;;  %s1301_s3 = inlined_call_operand.vmem [shape: bf16[32,128], index: 3, kind: input, shape index: {}]   ;;  %s1302_s4 = inlined_call_operand.vmem [shape: f32[1,128], index: 4, kind: input, shape index: {}]   ;;  %s1303_s5 = inlined_call_operand.vmem [shape: bf16[128,32], index: 5, kind: input, shape index: {}]   ;;  %s1304_s6 = inlined_call_operand.vmem [shape: f32[1,32], index: 6, kind: input, shape index: {}]   ;;  %s1305_s7 = inlined_call_operand.vmem [shape: bf16[128,32], index: 7, kind: output, shape index: {}]  }
   0x1 LB: > { %s856_s25 = sadd.s32 4294967295, %s1030_s24   ;;  %p860_p0 = scmp.ge.s32.totalorder %s1030_s24, 1  ;;  %s1030_s24 = sphi %s1072_s24, %s17_s24  }
   0x2   : > { %p238_p1 = scmp.lt.s32.totalorder %s1030_s24, 3 }
   0x4   : > { %p239_p2 = pnand %p860_p0, %p238_p1 }
   0x5   : > { %s861_s26 = sshll.u32 (!%p239_p2), %s856_s25, 3  ;;  %vm299_vm0 = vcmask (!%p239_p2), 261120   ;;  %v982_v60 = vld [vmem:[%s1301_s3] sm:$0xff] (!%p239_p2)   ;;  %v983_v61 = vld [vmem:[%s1301_s3 + $0x8] sm:$0xff] (!%p239_p2)   ;;  %vm791_vm1 = vcmask (!%p239_p2), 257024  }
   0x6   : > { %242 = sbr.rel (%p239_p2) target bundleno = 817 (0x331), region = 48  ;;  %p271_p3 = scmp.lt.s32.totalorder (!%p239_p2), %s861_s26, 15  ;;  %938 = vmatprep.subr.bf16.mxu0 (!%p239_p2), %v982_v60 }
   0x7   : > { %939 = vmatpush3.bf16.msra.mxu0 (!%p239_p2), %v982_v60 }
   0x8   : > { %940 = vmatprep.subr.bf16.mxu0 (!%p239_p2), %v983_v61 }
   0xb   : > { %941 = vmatpush3.bf16.msra.mxu0 (!%p239_p2), %v983_v61 }
   0xd   : > { %s1307_s26 = smov (!%p271_p3, %s861_s26), 15 }
   0xe   : > { %s862_s27 = sshll.u32 %s1307_s26, 2 }
   0xf   : > { %s274_s30 = scalar_lea.vmem %s1298_s0, %s862_s27  ;;  %s1270_s18 = scalar_lea.vmem %s1305_s7, %s862_s27 }
  0x10   : > { %v902_v0 = vld [vmem:[%s274_s30] sm:$0xff]   ;;  %v917_v1 = vld [vmem:[%s274_s30 + $0x8] sm:$0xff]   ;;  %v918_v6 = vld [vmem:[%s274_s30 + $0x10] sm:$0xff]  }
  0x11   : > { %v1088_v2 = vunpack.c.l.bf16 %v902_v0  ;;  %v1090_v3 = vunpack.c.l.bf16 %v917_v1  ;;  %v1092_v4 = vunpack.c.h.bf16 %v902_v0  ;;  %v1094_v5 = vunpack.c.h.bf16 %v917_v1  ;;  %v919_v13 = vld [vmem:[%s274_s30 + $0x18] sm:$0xff]  }
  0x12   : > { %v1104_v11 = vunpack.c.l.bf16 %v918_v6  ;;  %v1106_v12 = vunpack.c.h.bf16 %v918_v6  ;;  %v1112_v16 = vunpack.c.l.bf16 %v919_v13  ;;  %v1114_v17 = vunpack.c.h.bf16 %v919_v13 }
  0x13   : > { %v300_v7 = vsel %vm299_vm0, %v1088_v2, 0.0  ;;  %v306_v8 = vsel %vm299_vm0, %v1090_v3, 0.0  ;;  %v303_v9 = vsel %vm299_vm0, %v1092_v4, 0.0  ;;  %v309_v10 = vsel %vm299_vm0, %v1094_v5, 0.0 }
  0x14   : > { %301 = vadd.xlane.f32.xlu0 %v300_v7  ;;  %307 = vadd.xlane.f32.xlu1 %v306_v8  ;;  %v312_v14 = vsel %vm299_vm0, %v1104_v11, 0.0  ;;  %v315_v15 = vsel %vm299_vm0, %v1106_v12, 0.0  ;;  %v318_v18 = vsel %vm299_vm0, %v1112_v16, 0.0  ;;  %v321_v19 = vsel %vm299_vm0, %v1114_v17, 0.0 }
  0x18   : > { %304 = vadd.xlane.f32.xlu0 %v303_v9  ;;  %310 = vadd.xlane.f32.xlu1 %v309_v10 }
  0x1c   : > { %313 = vadd.xlane.f32.xlu0 %v312_v14  ;;  %316 = vadd.xlane.f32.xlu1 %v315_v15 }
  0x20   : > { %319 = vadd.xlane.f32.xlu0 %v318_v18  ;;  %322 = vadd.xlane.f32.xlu1 %v321_v19 }
  0xa1   : > { %v302_v20 = vpop.xlane.xlu0 %301  ;;  %v308_v21 = vpop.xlane.xlu1 %307 }
  0xa2   : > { %v325_v22 = vmul.f32 0.03125, %v302_v20  ;;  %v327_v23 = vmul.f32 0.03125, %v308_v21 }
  0xa4   : > { %v1121_v24 = vsub.f32 %v1088_v2, %v325_v22  ;;  %v1124_v25 = vsub.f32 %v1090_v3, %v327_v23 }
  0xa5   : > { %v305_v26 = vpop.xlane.xlu0 %304  ;;  %v311_v27 = vpop.xlane.xlu1 %310 }
  0xa6   : > { %v326_v28 = vmul.f32 0.03125, %v305_v26  ;;  %v328_v29 = vmul.f32 0.03125, %v311_v27  ;;  %v341_v30 = vmul.f32 %v1121_v24, %v1121_v24  ;;  %v343_v31 = vmul.f32 %v1124_v25, %v1124_v25 }
  0xa8   : > { %v1131_v32 = vsub.f32 %v1092_v4, %v326_v28  ;;  %v1134_v33 = vsub.f32 %v1094_v5, %v328_v29  ;;  %v349_v34 = vsel %vm299_vm0, %v341_v30, 0.0  ;;  %v355_v37 = vsel %vm299_vm0, %v343_v31, 0.0 }
  0xa9   : > { %350 = vadd.xlane.f32.xlu0 %v349_v34  ;;  %v314_v35 = vpop.xlane.xlu0 %313  ;;  %v317_v36 = vpop.xlane.xlu1 %316 }
  0xaa   : > { %v329_v38 = vmul.f32 0.03125, %v314_v35  ;;  %v330_v39 = vmul.f32 0.03125, %v317_v36  ;;  %v342_v40 = vmul.f32 %v1131_v32, %v1131_v32  ;;  %v344_v41 = vmul.f32 %v1134_v33, %v1134_v33  ;;  %v865_v35 = vld [vmem:[%s1299_s1] ss:$0 sm:$0xff] }
  0xac   : > { %v1143_v42 = vsub.f32 %v1104_v11, %v329_v38  ;;  %v1146_v43 = vsub.f32 %v1106_v12, %v330_v39  ;;  %v352_v44 = vsel %vm299_vm0, %v342_v40, 0.0  ;;  %v358_v47 = vsel %vm299_vm0, %v344_v41, 0.0 }
  0xad   : > { %356 = vadd.xlane.f32.xlu0 %v355_v37  ;;  %353 = vadd.xlane.f32.xlu1 %v352_v44  ;;  %v320_v45 = vpop.xlane.xlu0 %319  ;;  %v323_v46 = vpop.xlane.xlu1 %322 }
  0xae   : > { %v331_v48 = vmul.f32 0.03125, %v320_v45  ;;  %v332_v49 = vmul.f32 0.03125, %v323_v46  ;;  %v345_v50 = vmul.f32 %v1143_v42, %v1143_v42  ;;  %v346_v51 = vmul.f32 %v1146_v43, %v1146_v43 }
  0xb0   : > { %v1155_v52 = vsub.f32 %v1112_v16, %v331_v48  ;;  %v1158_v53 = vsub.f32 %v1114_v17, %v332_v49  ;;  %v361_v54 = vsel %vm299_vm0, %v345_v50, 0.0  ;;  %v364_v55 = vsel %vm299_vm0, %v346_v51, 0.0 }
  0xb1   : > { %359 = vadd.xlane.f32.xlu1 %v358_v47  ;;  %362 = vadd.xlane.f32.xlu0 %v361_v54 }
  0xb2   : > { %v347_v56 = vmul.f32 %v1155_v52, %v1155_v52  ;;  %v348_v57 = vmul.f32 %v1158_v53, %v1158_v53 }
  0xb4   : > { %v367_v58 = vsel %vm299_vm0, %v347_v56, 0.0  ;;  %v370_v59 = vsel %vm299_vm0, %v348_v57, 0.0 }
  0xb5   : > { %365 = vadd.xlane.f32.xlu1 %v364_v55  ;;  %368 = vadd.xlane.f32.xlu0 %v367_v58 }
  0xb9   : > { %371 = vadd.xlane.f32.xlu1 %v370_v59 }
 0x136   : > { %v351_v62 = vpop.xlane.xlu0 %350 }
 0x137   : > { %v373_v63 = vmul.f32 0.03125, %v351_v62 }
 0x139   : > { %v381_v0 = vadd.f32 1e-05, %v373_v63 }
 0x13a   : > { %v354_v1 = vpop.xlane.xlu1 %353  ;;  %v357_v6 = vpop.xlane.xlu0 %356 }
 0x13b   : > { %992 = vrsqrt.f32 %v381_v0  ;;  %v374_v7 = vmul.f32 0.03125, %v354_v1  ;;  %v375_v8 = vmul.f32 0.03125, %v357_v6 }
 0x13d   : > { %v382_v9 = vadd.f32 1e-05, %v374_v7  ;;  %v383_v10 = vadd.f32 1e-05, %v375_v8 }
 0x13e   : > { %v360_v13 = vpop.xlane.xlu1 %359  ;;  %v363_v14 = vpop.xlane.xlu0 %362 }
 0x13f   : > { %994 = vrsqrt.f32 %v382_v9  ;;  %v376_v15 = vmul.f32 0.03125, %v360_v13  ;;  %v377_v18 = vmul.f32 0.03125, %v363_v14  ;;  %v987_v13 = vld [vmem:[%s1303_s5 + $0x18] sm:$0xff]   ;;  %v988_v14 = vld [vmem:[%s1303_s5 + $0x20] sm:$0xff]  }
 0x140   : > { %996 = vrsqrt.f32 %v383_v10  ;;  %v986_v10 = vld [vmem:[%s1303_s5 + $0x10] sm:$0xff]  }
 0x141   : > { %v384_v19 = vadd.f32 1e-05, %v376_v15  ;;  %v385_v20 = vadd.f32 1e-05, %v377_v18  ;;  %v989_v15 = vld [vmem:[%s1303_s5 + $0x28] sm:$0xff]   ;;  %v990_v18 = vld [vmem:[%s1303_s5 + $0x30] sm:$0xff]  }
 0x142   : > { %v366_v21 = vpop.xlane.xlu1 %365  ;;  %v369_v22 = vpop.xlane.xlu0 %368 }
 0x143   : > { %998 = vrsqrt.f32 %v384_v19  ;;  %v378_v23 = vmul.f32 0.03125, %v366_v21  ;;  %v379_v26 = vmul.f32 0.03125, %v369_v22  ;;  %v991_v19 = vld [vmem:[%s1303_s5 + $0x38] sm:$0xff]  }
 0x144   : > { %1000 = vrsqrt.f32 %v385_v20  ;;  %v867_v20 = vld [vmem:[%s1302_s4] ss:$0 sm:$0xff] }
 0x145   : > { %v993_v27 = vpop.eup %992  ;;  %v386_v28 = vadd.f32 1e-05, %v378_v23  ;;  %v387_v29 = vadd.f32 1e-05, %v379_v26 }
 0x146   : > { %v372_v30 = vpop.xlane.xlu1 %371  ;;  %v397_v31 = vmul.f32 %v993_v27, %v1121_v24  ;;  %v866_v24 = vld [vmem:[%s1300_s2] ss:$0 sm:$0xff] }
 0x147   : > { %1002 = vrsqrt.f32 %v386_v28  ;;  %v380_v34 = vmul.f32 0.03125, %v372_v30 }
 0x148   : > { %1004 = vrsqrt.f32 %v387_v29  ;;  %v412_v40 = vmul.f32 %v865_v35, %v397_v31 }
 0x149   : > { %v995_v36 = vpop.eup %994  ;;  %v388_v37 = vadd.f32 1e-05, %v380_v34 }
 0x14a   : > { %v997_v38 = vpop.eup %996  ;;  %v398_v39 = vmul.f32 %v995_v36, %v1131_v32  ;;  %v427_v48 = vadd.f32 %v866_v24, %v412_v40 }
 0x14b   : > { %v399_v41 = vmul.f32 %v997_v38, %v1124_v25  ;;  %1006 = vrsqrt.f32 %v388_v37 }
 0x14c   : > { %v413_v44 = vmul.f32 %v865_v35, %v398_v39 }
 0x14d   : > { %v999_v45 = vpop.eup %998  ;;  %v414_v50 = vmul.f32 %v865_v35, %v399_v41 }
 0x14e   : > { %v1001_v46 = vpop.eup %1000  ;;  %v400_v47 = vmul.f32 %v999_v45, %v1134_v33  ;;  %v428_v49 = vadd.f32 %v866_v24, %v413_v44 }
 0x14f   : > { %v401_v51 = vmul.f32 %v1001_v46, %v1143_v42  ;;  %v429_v57 = vadd.f32 %v866_v24, %v414_v50 }
 0x150   : > { %v435_v54 = vpack.c.bf16 %v428_v49, %v427_v48  ;;  %v415_v32 = vmul.f32 %v865_v35, %v400_v47 }
 0x151   : > { %v1003_v55 = vpop.eup %1002  ;;  %v416_v59 = vmul.f32 %v865_v35, %v401_v51 }
 0x152   : > { %v1005_v56 = vpop.eup %1004  ;;  %v402_v25 = vmul.f32 %v1003_v55, %v1146_v43  ;;  %942 = vmatprep.mubr.msk.bf16.mxu0 %vm299_vm0, %v435_v54  ;;  %v430_v58 = vadd.f32 %v866_v24, %v415_v32 }
 0x153   : > { %v403_v60 = vmul.f32 %v1005_v56, %v1155_v52  ;;  %v431_v42 = vadd.f32 %v866_v24, %v416_v59  ;;  %v984_v52 = vld [vmem:[%s1303_s5] sm:$0xff]  }
 0x154   : > { %v436_v61 = vpack.c.bf16 %v430_v58, %v429_v57  ;;  %v417_v33 = vmul.f32 %v865_v35, %v402_v25  ;;  %950 = vmatprep.subr.bf16.mxu1 %v984_v52 }
 0x155   : > { %v1007_v62 = vpop.eup %1006  ;;  %v418_v1 = vmul.f32 %v865_v35, %v403_v60  ;;  %951 = vmatpush3.bf16.msra.mxu1 %v984_v52 }
 0x156   : > { %v404_v63 = vmul.f32 %v1007_v62, %v1158_v53  ;;  %943 = vmatmul.mubr.msk.bf16.vlgmr.msra.gmra.mrb[0].mxu0 %vm299_vm0, %v436_v61  ;;  %v432_v0 = vadd.f32 %v866_v24, %v417_v33  ;;  %v985_v53 = vld [vmem:[%s1303_s5 + $0x8] sm:$0xff]  }
 0x157   : > { %v433_v43 = vadd.f32 %v866_v24, %v418_v1  ;;  %952 = vmatprep.subr.bf16.mxu1 %v985_v53 }
 0x158   : > { %v437_v6 = vpack.c.bf16 %v432_v0, %v431_v42  ;;  %v419_v7 = vmul.f32 %v865_v35, %v404_v63 }
 0x159   : > { %953 = vmatpush3.bf16.msra.mxu1 %v985_v53 }
 0x15a   : > { %946 = vmatprep.mubr.msk.bf16.mxu0 %vm299_vm0, %v437_v6  ;;  %v434_v8 = vadd.f32 %v866_v24, %v419_v7  ;;  %954 = vmatprep.subr.bf16.mxu1 %v986_v10 }
 0x15c   : > { %v438_v9 = vpack.c.bf16 %v434_v8, %v433_v43 }
 0x15d   : > { %955 = vmatpush3.bf16.msra.mxu1 %v986_v10 }
 0x15e   : > { %947 = vmatmul.mubr.msk.bf16.gmra.mrb[4].mxu0 %vm299_vm0, %v438_v9  ;;  %956 = vmatprep.subr.bf16.mxu1 %v987_v13 }
 0x161   : > { %957 = vmatpush3.bf16.msra.mxu1 %v987_v13 }
 0x162   : > { %958 = vmatprep.subr.bf16.mxu1 %v988_v14 }
 0x165   : > { %959 = vmatpush3.bf16.msra.mxu1 %v988_v14 }
 0x166   : > { %960 = vmatprep.subr.bf16.mxu1 %v989_v15 }
 0x169   : > { %961 = vmatpush3.bf16.msra.mxu1 %v989_v15 }
 0x16a   : > { %962 = vmatprep.subr.bf16.mxu1 %v990_v18 }
 0x16d   : > { %963 = vmatpush3.bf16.msra.mxu1 %v990_v18 }
 0x16e   : > { %964 = vmatprep.subr.bf16.mxu1 %v991_v19 }
 0x171   : > { %965 = vmatpush3.bf16.msra.mxu1 %v991_v19 }
 0x229   : > { %v944_v21 = vpop.f32.mrb[0].mxu0 }
 0x22a   : > { %v1219_v22 = vadd.f32 %v944_v21, %v867_v20  ;;  %v508_v23 = vpop.f32.mrb[1].mxu0 }
 0x22b   : > { %v1221_v26 = vadd.f32 %v867_v20, %v508_v23  ;;  %v945_v27 = vpop.f32.mrb[2].mxu0 }
 0x22c   : > { %v549_v28 = vmul.f32 0.044715, %v1219_v22  ;;  %v1224_v29 = vadd.f32 %v945_v27, %v867_v20  ;;  %v511_v30 = vpop.f32.mrb[3].mxu0 }
 0x22d   : > { %v547_v31 = vmul.f32 0.044715, %v1221_v26  ;;  %v1227_v34 = vadd.f32 %v867_v20, %v511_v30 }
 0x22e   : > { %v557_v35 = vmul.f32 %v549_v28, %v1219_v22  ;;  %v550_v36 = vmul.f32 0.044715, %v1224_v29 }
 0x22f   : > { %v548_v37 = vmul.f32 0.044715, %v1227_v34  ;;  %v555_v38 = vmul.f32 %v547_v31, %v1221_v26 }
 0x230   : > { %v565_v39 = vmul.f32 %v557_v35, %v1219_v22  ;;  %v558_v40 = vmul.f32 %v550_v36, %v1224_v29  ;;  %v541_v35 = vmul.f32 0.5, %v1219_v22  ;;  %v542_v36 = vmul.f32 0.5, %v1224_v29 }
 0x231   : > { %v948_v41 = vpop.f32.mrb[4].mxu0  ;;  %v556_v24 = vmul.f32 %v548_v37, %v1227_v34  ;;  %v563_v44 = vmul.f32 %v555_v38, %v1221_v26  ;;  %v539_v38 = vmul.f32 0.5, %v1221_v26 }
 0x232   : > { %v566_v45 = vmul.f32 %v558_v40, %v1224_v29  ;;  %v1238_v46 = vadd.f32 %v948_v41, %v867_v20  ;;  %v524_v47 = vpop.f32.mrb[5].mxu0  ;;  %v573_v48 = vadd.f32 %v565_v39, %v1219_v22  ;;  %v540_v39 = vmul.f32 0.5, %v1227_v34 }
 0x233   : > { %v1241_v49 = vadd.f32 %v867_v20, %v524_v47  ;;  %v949_v50 = vpop.f32.mrb[6].mxu0  ;;  %v564_v51 = vmul.f32 %v556_v24, %v1227_v34  ;;  %v571_v54 = vadd.f32 %v563_v44, %v1221_v26 }
 0x234   : > { %v553_v32 = vmul.f32 0.044715, %v1238_v46  ;;  %v536_v55 = vadd.f32 %v949_v50, %v867_v20  ;;  %v527_v56 = vpop.f32.mrb[7].mxu0  ;;  %v574_v25 = vadd.f32 %v566_v45, %v1224_v29  ;;  %v581_v57 = vmul.f32 0.7978846, %v573_v48 }
 0x235   : > { %v551_v58 = vmul.f32 0.044715, %v1241_v49  ;;  %v528_v59 = vadd.f32 %v867_v20, %v527_v56  ;;  %v572_v60 = vadd.f32 %v564_v51, %v1227_v34  ;;  %v579_v61 = vmul.f32 0.7978846, %v571_v54 }
 0x236   : > { %v561_v33 = vmul.f32 %v553_v32, %v1238_v46  ;;  %v554_v62 = vmul.f32 0.044715, %v536_v55  ;;  %v582_v63 = vmul.f32 0.7978846, %v574_v25  ;;  %1008 = vtanh.f32 %v581_v57 }
 0x237   : > { %v559_v42 = vmul.f32 %v551_v58, %v1241_v49  ;;  %v552_v0 = vmul.f32 0.044715, %v528_v59  ;;  %v580_v1 = vmul.f32 0.7978846, %v572_v60  ;;  %1010 = vtanh.f32 %v579_v61 }
 0x238   : > { %v569_v6 = vmul.f32 %v561_v33, %v1238_v46  ;;  %v562_v7 = vmul.f32 %v554_v62, %v536_v55  ;;  %1012 = vtanh.f32 %v582_v63  ;;  %v545_v29 = vmul.f32 0.5, %v1238_v46 }
 0x239   : > { %v567_v43 = vmul.f32 %v559_v42, %v1241_v49  ;;  %v560_v8 = vmul.f32 %v552_v0, %v528_v59  ;;  %1014 = vtanh.f32 %v580_v1  ;;  %v546_v26 = vmul.f32 0.5, %v536_v55  ;;  %v874_v0 = vld [vmem:[%s1304_s6] ss:$0 sm:$0xff] }
 0x23a   : > { %v570_v9 = vmul.f32 %v562_v7, %v536_v55  ;;  %v577_v52 = vadd.f32 %v569_v6, %v1238_v46  ;;  %v543_v34 = vmul.f32 0.5, %v1241_v49  ;;  %v544_v57 = vmul.f32 0.5, %v528_v59 }
 0x23b   : > { %v568_v53 = vmul.f32 %v560_v8, %v528_v59  ;;  %v575_v10 = vadd.f32 %v567_v43, %v1241_v49 }
 0x23c   : > { %v578_v13 = vadd.f32 %v570_v9, %v536_v55  ;;  %v585_v14 = vmul.f32 0.7978846, %v577_v52 }
 0x23d   : > { %v576_v15 = vadd.f32 %v568_v53, %v528_v59  ;;  %v583_v18 = vmul.f32 0.7978846, %v575_v10 }
 0x23e   : > { %v586_v19 = vmul.f32 0.7978846, %v578_v13  ;;  %1016 = vtanh.f32 %v585_v14 }
 0x23f   : > { %v584_v20 = vmul.f32 0.7978846, %v576_v15  ;;  %1018 = vtanh.f32 %v583_v18 }
 0x240   : > { %v1009_v21 = vpop.eup %1008  ;;  %1020 = vtanh.f32 %v586_v19 }
 0x241   : > { %v1011_v23 = vpop.eup %1010  ;;  %v597_v27 = vadd.f32 1.0, %v1009_v21  ;;  %1022 = vtanh.f32 %v584_v20 }
 0x242   : > { %v1013_v28 = vpop.eup %1012  ;;  %v595_v30 = vadd.f32 1.0, %v1011_v23 }
 0x243   : > { %v1015_v31 = vpop.eup %1014  ;;  %v598_v37 = vadd.f32 1.0, %v1013_v28  ;;  %v605_v41 = vmul.f32 %v597_v27, %v541_v35 }
 0x244   : > { %v596_v40 = vadd.f32 1.0, %v1015_v31  ;;  %v603_v44 = vmul.f32 %v595_v30, %v539_v38 }
 0x245   : > { %v606_v24 = vmul.f32 %v598_v37, %v542_v36 }
 0x246   : > { %v604_v45 = vmul.f32 %v596_v40, %v540_v39 }
 0x247   : > { %v612_v47 = vpack.c.bf16 %v606_v24, %v605_v41 }
 0x248   : > { %v1017_v48 = vpop.eup %1016  ;;  %v611_v50 = vpack.c.bf16 %v604_v45, %v603_v44 }
 0x249   : > { %v1019_v51 = vpop.eup %1018  ;;  %v601_v54 = vadd.f32 1.0, %v1017_v48 }
 0x24a   : > { %v1021_v32 = vpop.eup %1020  ;;  %966 = vmatprep.mubr.bf16.mxu1 %v611_v50  ;;  %v599_v22 = vadd.f32 1.0, %v1019_v51 }
 0x24b   : > { %v1023_v56 = vpop.eup %1022  ;;  %967 = vmatmul.mubr.bf16.vlgmr.msra.gmra.mrb[0].mxu1 %v612_v47  ;;  %v602_v25 = vadd.f32 1.0, %v1021_v32  ;;  %v609_v60 = vmul.f32 %v601_v54, %v545_v29 }
 0x24c   : > { %v600_v58 = vadd.f32 1.0, %v1023_v56  ;;  %v607_v33 = vmul.f32 %v599_v22, %v543_v34 }
 0x24d   : > { %v610_v61 = vmul.f32 %v602_v25, %v546_v26 }
 0x24e   : > { %v608_v62 = vmul.f32 %v600_v58, %v544_v57 }
 0x24f   : > { %v614_v63 = vpack.c.bf16 %v610_v61, %v609_v60 }
 0x250   : > { %v613_v42 = vpack.c.bf16 %v608_v62, %v607_v33 }
 0x252   : > { %970 = vmatprep.mubr.bf16.mxu1 %v613_v42 }
 0x253   : > { %971 = vmatmul.mubr.bf16.gmra.mrb[4].mxu1 %v614_v63 }
 0x31e   : > { %v968_v46 = vpop.f32.mrb[0].mxu1 }
 0x31f   : > { %v729_v55 = vadd.f32 %v968_v46, %v874_v0  ;;  %v720_v1 = vpop.f32.mrb[1].mxu1 }
 0x320   : > { %v721_v6 = vadd.f32 %v874_v0, %v720_v1  ;;  %v969_v49 = vpop.f32.mrb[2].mxu1 }
 0x321   : > { %v753_v59 = vadd.f32 %v1090_v3, %v729_v55  ;;  %v732_v7 = vadd.f32 %v969_v49, %v874_v0  ;;  %v723_v43 = vpop.f32.mrb[3].mxu1 }
 0x322   : > { %v751_v8 = vadd.f32 %v1088_v2, %v721_v6  ;;  %v724_v9 = vadd.f32 %v874_v0, %v723_v43 }
 0x323   : > { %v895_v52 = vpack.c.bf16 %v753_v59, %v753_v59  ;;  %v754_v53 = vadd.f32 %v1094_v5, %v732_v7 }
 0x324   : > { %v893_v3 = vpack.c.bf16 %v751_v8, %v751_v8  ;;  %v752_v10 = vadd.f32 %v1092_v4, %v724_v9 }
 0x325   : > { %794 = vst.msk [vmem:[%s1270_s18 + $0x8] sm:$0xf] %vm791_vm1, %v895_v52  ;;  %v896_v13 = vpack.c.bf16 %v754_v53, %v754_v53 }
 0x326   : > { %792 = vst.msk [vmem:[%s1270_s18] sm:$0xf] %vm791_vm1, %v893_v3  ;;  %v894_v14 = vpack.c.bf16 %v752_v10, %v752_v10  ;;  %v972_v15 = vpop.f32.mrb[4].mxu1 }
 0x327   : > { %795 = vst.msk [vmem:[%s1270_s18 + $0xc] sm:$0xf] %vm791_vm1, %v896_v13  ;;  %v745_v18 = vadd.f32 %v972_v15, %v874_v0  ;;  %v736_v2 = vpop.f32.mrb[5].mxu1 }
 0x328   : > { %793 = vst.msk [vmem:[%s1270_s18 + $0x4] sm:$0xf] %vm791_vm1, %v894_v14  ;;  %v737_v5 = vadd.f32 %v874_v0, %v736_v2  ;;  %v973_v19 = vpop.f32.mrb[6].mxu1 }
 0x329   : > { %v757_v4 = vadd.f32 %v1112_v16, %v745_v18  ;;  %v748_v20 = vadd.f32 %v973_v19, %v874_v0  ;;  %v739_v21 = vpop.f32.mrb[7].mxu1 }
 0x32a   : > { %v755_v23 = vadd.f32 %v1104_v11, %v737_v5  ;;  %v740_v27 = vadd.f32 %v874_v0, %v739_v21 }
 0x32b   : > { %v899_v28 = vpack.c.bf16 %v757_v4, %v757_v4  ;;  %v758_v30 = vadd.f32 %v1114_v17, %v748_v20 }
 0x32c   : > { %v897_v31 = vpack.c.bf16 %v755_v23, %v755_v23  ;;  %v756_v35 = vadd.f32 %v1106_v12, %v740_v27 }
 0x32d   : > { %798 = vst.msk [vmem:[%s1270_s18 + $0x18] sm:$0xf] %vm791_vm1, %v899_v28  ;;  %v900_v36 = vpack.c.bf16 %v758_v30, %v758_v30 }
 0x32e   : > { %796 = vst.msk [vmem:[%s1270_s18 + $0x10] sm:$0xf] %vm791_vm1, %v897_v31  ;;  %v898_v37 = vpack.c.bf16 %v756_v35, %v756_v35 }
 0x32f   : > { %799 = vst.msk [vmem:[%s1270_s18 + $0x1c] sm:$0xf] %vm791_vm1, %v900_v36 }
 0x330   : > { %797 = vst.msk [vmem:[%s1270_s18 + $0x14] sm:$0xf] %vm791_vm1, %v898_v37 }
 0x331 PF: > { %s17_s24 = sadd.s32 1, %s1030_s24  }
 0x332   : > { %p14_p4 = scmp.ge.s32.totalorder %s17_s24, 4  }
 0x334   :  { %16 = sbr.rel (!%p14_p4) target bundleno = 1 (0x1), region = 78 }

// kernel: _lambda_.13
= control target key start
LH: loop header
LB: loop body
LE: loop exit
PB: predicated region body
PF: predicated region fallthrough
CT: control target
= control target key end

     0   :  { %s4162_s27 = smov 0   ;;  %s5162_s0 = inlined_call_operand.vmem [shape: bf16[8,16,32], index: 0, kind: input, shape index: {}]   ;;  %s5163_s1 = inlined_call_operand.vmem [shape: f32[1,32], index: 1, kind: input, shape index: {}]   ;;  %s5164_s2 = inlined_call_operand.vmem [shape: f32[1,32], index: 2, kind: input, shape index: {}]   ;;  %s5165_s3 = inlined_call_operand.vmem [shape: bf16[32,96], index: 3, kind: input, shape index: {}]   ;;  %s5166_s4 = inlined_call_operand.vmem [shape: f32[1,96], index: 4, kind: input, shape index: {}]   ;;  %s5167_s5 = inlined_call_operand.vmem [shape: bf16[32,32], index: 5, kind: input, shape index: {}]   ;;  %s5168_s6 = inlined_call_operand.vmem [shape: f32[1,32], index: 6, kind: input, shape index: {}]   ;;  %s5169_s7 = inlined_call_operand.vmem [shape: f32[2,16,16], index: 7, kind: input, shape index: {}]   ;;  %s5170_s8 = inlined_call_operand.vmem [shape: bf16[8,16,32], index: 8, kind: output, shape index: {}]  }
   0x1 LB: > { %s3699_s28 = sadd.s32 4294967295, %s4107_s27   ;;  %p3703_p0 = scmp.ge.s32.totalorder %s4107_s27, 1  ;;  %s4107_s27 = sphi %s4162_s27, %s18_s27  }
   0x2   : > { %p264_p1 = scmp.lt.s32.totalorder %s4107_s27, 3 }
   0x4   : > { %p265_p2 = pnand %p3703_p0, %p264_p1 }
   0x5   : > { %s3704_s29 = sshll.u32 (!%p265_p2), %s3699_s28, 2  ;;  %vm331_vm0 = vcmask (!%p265_p2), 261120   ;;  %v4017_v60 = vld [vmem:[%s5165_s3] sm:$0xff] (!%p265_p2)   ;;  %v4018_v61 = vld [vmem:[%s5165_s3 + $0x8] sm:$0xff] (!%p265_p2)   ;;  %s4110_s22 = smov (!%p265_p2), 80   ;;  %vm4114_vm1 = vmmov (!%p265_p2), 0  }
   0x6   : > { %268 = sbr.rel (%p265_p2) target bundleno = 2039 (0x7f7), region = 52  ;;  %p301_p3 = scmp.lt.s32.totalorder (!%p265_p2), %s3704_s29, 7  ;;  %3857 = vmatprep.subr.bf16.mxu0 (!%p265_p2), %v4017_v60  ;;  %3977 = vmatprep.subr.bf16.mxu1 (!%p265_p2), %v4017_v60  ;;  %vm1542_vm2 = vcmask (!%p265_p2), 130048   ;;  %vm3632_vm3 = vcmask (!%p265_p2), 257024  }
   0x7   : > { %3858 = vmatpush3.bf16.msra.mxu0 (!%p265_p2), %v4017_v60  ;;  %3979 = vmatpush3.bf16.msra.mxu1 (!%p265_p2), %v4017_v60  ;;  %s4113_s23 = smov (!%p265_p2), 112   ;;  %s4115_s13 = smov (!%p265_p2), 96  }
   0x8   : > { %3859 = vmatprep.subr.bf16.mxu0 (!%p265_p2), %v4018_v61  ;;  %3978 = vmatprep.subr.bf16.mxu1 (!%p265_p2), %v4018_v61  ;;  %s4116_s18 = smov (!%p265_p2), 16  }
   0xb   : > { %3860 = vmatpush3.bf16.msra.mxu0 (!%p265_p2), %v4018_v61  ;;  %3980 = vmatpush3.bf16.msra.mxu1 (!%p265_p2), %v4018_v61 }
   0xd   : > { %s5172_s29 = smov (!%p301_p3, %s3704_s29), 7 }
   0xe   : > { %s3784_s30 = sshll.u32 %s5172_s29, 3 }
   0xf   : > { %s305_s11 = scalar_lea.vmem %s5162_s0, %s3784_s30 }
  0x10   : > { %v3795_v0 = vld [vmem:[%s305_s11] sm:$0xff]   ;;  %v3810_v1 = vld [vmem:[%s305_s11 + $0x8] sm:$0xff]   ;;  %v3811_v6 = vld [vmem:[%s305_s11 + $0x10] sm:$0xff]  }
  0x11   : > { %v4178_v2 = vunpack.c.l.bf16 %v3795_v0  ;;  %v4180_v3 = vunpack.c.l.bf16 %v3810_v1  ;;  %v4182_v4 = vunpack.c.h.bf16 %v3795_v0  ;;  %v4184_v5 = vunpack.c.h.bf16 %v3810_v1  ;;  %v3812_v13 = vld [vmem:[%s305_s11 + $0x18] sm:$0xff]  }
  0x12   : > { %v4194_v11 = vunpack.c.l.bf16 %v3811_v6  ;;  %v4196_v12 = vunpack.c.h.bf16 %v3811_v6  ;;  %v4202_v16 = vunpack.c.l.bf16 %v3812_v13  ;;  %v4204_v17 = vunpack.c.h.bf16 %v3812_v13 }
  0x13   : > { %v332_v7 = vsel %vm331_vm0, %v4178_v2, 0.0  ;;  %v338_v8 = vsel %vm331_vm0, %v4180_v3, 0.0  ;;  %v335_v9 = vsel %vm331_vm0, %v4182_v4, 0.0  ;;  %v341_v10 = vsel %vm331_vm0, %v4184_v5, 0.0 }
  0x14   : > { %333 = vadd.xlane.f32.xlu0 %v332_v7  ;;  %339 = vadd.xlane.f32.xlu1 %v338_v8  ;;  %v344_v14 = vsel %vm331_vm0, %v4194_v11, 0.0  ;;  %v347_v15 = vsel %vm331_vm0, %v4196_v12, 0.0  ;;  %v350_v18 = vsel %vm331_vm0, %v4202_v16, 0.0  ;;  %v353_v19 = vsel %vm331_vm0, %v4204_v17, 0.0 }
  0x18   : > { %336 = vadd.xlane.f32.xlu0 %v335_v9  ;;  %342 = vadd.xlane.f32.xlu1 %v341_v10 }
  0x1c   : > { %345 = vadd.xlane.f32.xlu0 %v344_v14  ;;  %348 = vadd.xlane.f32.xlu1 %v347_v15 }
  0x20   : > { %351 = vadd.xlane.f32.xlu0 %v350_v18  ;;  %354 = vadd.xlane.f32.xlu1 %v353_v19 }
  0xa1   : > { %v334_v20 = vpop.xlane.xlu0 %333  ;;  %v340_v21 = vpop.xlane.xlu1 %339 }
  0xa2   : > { %v357_v22 = vmul.f32 0.03125, %v334_v20  ;;  %v359_v23 = vmul.f32 0.03125, %v340_v21 }
  0xa4   : > { %v4211_v24 = vsub.f32 %v4178_v2, %v357_v22  ;;  %v4214_v25 = vsub.f32 %v4180_v3, %v359_v23 }
  0xa5   : > { %v337_v26 = vpop.xlane.xlu0 %336  ;;  %v343_v27 = vpop.xlane.xlu1 %342 }
  0xa6   : > { %v358_v28 = vmul.f32 0.03125, %v337_v26  ;;  %v360_v29 = vmul.f32 0.03125, %v343_v27  ;;  %v373_v30 = vmul.f32 %v4211_v24, %v4211_v24  ;;  %v375_v31 = vmul.f32 %v4214_v25, %v4214_v25 }
  0xa8   : > { %v4221_v32 = vsub.f32 %v4182_v4, %v358_v28  ;;  %v4224_v33 = vsub.f32 %v4184_v5, %v360_v29  ;;  %v381_v34 = vsel %vm331_vm0, %v373_v30, 0.0  ;;  %v387_v37 = vsel %vm331_vm0, %v375_v31, 0.0 }
  0xa9   : > { %382 = vadd.xlane.f32.xlu0 %v381_v34  ;;  %v346_v35 = vpop.xlane.xlu0 %345  ;;  %v349_v36 = vpop.xlane.xlu1 %348 }
  0xaa   : > { %v361_v38 = vmul.f32 0.03125, %v346_v35  ;;  %v362_v39 = vmul.f32 0.03125, %v349_v36  ;;  %v374_v40 = vmul.f32 %v4221_v32, %v4221_v32  ;;  %v376_v41 = vmul.f32 %v4224_v33, %v4224_v33  ;;  %v3710_v35 = vld [vmem:[%s5163_s1] ss:$0 sm:$0xff] }
  0xac   : > { %v4233_v42 = vsub.f32 %v4194_v11, %v361_v38  ;;  %v4236_v43 = vsub.f32 %v4196_v12, %v362_v39  ;;  %v384_v44 = vsel %vm331_vm0, %v374_v40, 0.0  ;;  %v390_v47 = vsel %vm331_vm0, %v376_v41, 0.0 }
  0xad   : > { %388 = vadd.xlane.f32.xlu0 %v387_v37  ;;  %385 = vadd.xlane.f32.xlu1 %v384_v44  ;;  %v352_v45 = vpop.xlane.xlu0 %351  ;;  %v355_v46 = vpop.xlane.xlu1 %354 }
  0xae   : > { %v363_v48 = vmul.f32 0.03125, %v352_v45  ;;  %v364_v49 = vmul.f32 0.03125, %v355_v46  ;;  %v377_v50 = vmul.f32 %v4233_v42, %v4233_v42  ;;  %v378_v51 = vmul.f32 %v4236_v43, %v4236_v43 }
  0xb0   : > { %v4245_v52 = vsub.f32 %v4202_v16, %v363_v48  ;;  %v4248_v53 = vsub.f32 %v4204_v17, %v364_v49  ;;  %v393_v54 = vsel %vm331_vm0, %v377_v50, 0.0  ;;  %v396_v55 = vsel %vm331_vm0, %v378_v51, 0.0 }
  0xb1   : > { %391 = vadd.xlane.f32.xlu1 %v390_v47  ;;  %394 = vadd.xlane.f32.xlu0 %v393_v54 }
  0xb2   : > { %v379_v56 = vmul.f32 %v4245_v52, %v4245_v52  ;;  %v380_v57 = vmul.f32 %v4248_v53, %v4248_v53 }
  0xb4   : > { %v399_v58 = vsel %vm331_vm0, %v379_v56, 0.0  ;;  %v402_v59 = vsel %vm331_vm0, %v380_v57, 0.0 }
  0xb5   : > { %397 = vadd.xlane.f32.xlu1 %v396_v55  ;;  %400 = vadd.xlane.f32.xlu0 %v399_v58 }
  0xb9   : > { %403 = vadd.xlane.f32.xlu1 %v402_v59 }
 0x136   : > { %v383_v62 = vpop.xlane.xlu0 %382 }
 0x137   : > { %v405_v63 = vmul.f32 0.03125, %v383_v62 }
 0x139   : > { %v413_v0 = vadd.f32 1e-05, %v405_v63 }
 0x13a   : > { %v386_v1 = vpop.xlane.xlu1 %385  ;;  %v389_v6 = vpop.xlane.xlu0 %388 }
 0x13b   : > { %4021 = vrsqrt.f32 %v413_v0  ;;  %v406_v7 = vmul.f32 0.03125, %v386_v1  ;;  %v407_v8 = vmul.f32 0.03125, %v389_v6 }
 0x13d   : > { %v414_v9 = vadd.f32 1e-05, %v406_v7  ;;  %v415_v10 = vadd.f32 1e-05, %v407_v8 }
 0x13e   : > { %v392_v13 = vpop.xlane.xlu1 %391  ;;  %v395_v14 = vpop.xlane.xlu0 %394 }
 0x13f   : > { %4023 = vrsqrt.f32 %v414_v9  ;;  %v408_v15 = vmul.f32 0.03125, %v392_v13  ;;  %v409_v18 = vmul.f32 0.03125, %v395_v14 }
 0x140   : > { %4025 = vrsqrt.f32 %v415_v10 }
 0x141   : > { %v416_v19 = vadd.f32 1e-05, %v408_v15  ;;  %v417_v20 = vadd.f32 1e-05, %v409_v18 }
 0x142   : > { %v398_v21 = vpop.xlane.xlu1 %397  ;;  %v401_v22 = vpop.xlane.xlu0 %400 }
 0x143   : > { %4027 = vrsqrt.f32 %v416_v19  ;;  %v410_v23 = vmul.f32 0.03125, %v398_v21  ;;  %v411_v26 = vmul.f32 0.03125, %v401_v22 }
 0x144   : > { %4029 = vrsqrt.f32 %v417_v20 }
 0x145   : > { %v4022_v27 = vpop.eup %4021  ;;  %v418_v28 = vadd.f32 1e-05, %v410_v23  ;;  %v419_v29 = vadd.f32 1e-05, %v411_v26 }
 0x146   : > { %v404_v30 = vpop.xlane.xlu1 %403  ;;  %v429_v31 = vmul.f32 %v4022_v27, %v4211_v24  ;;  %v3711_v24 = vld [vmem:[%s5164_s2] ss:$0 sm:$0xff] }
 0x147   : > { %4031 = vrsqrt.f32 %v418_v28  ;;  %v412_v34 = vmul.f32 0.03125, %v404_v30 }
 0x148   : > { %4033 = vrsqrt.f32 %v419_v29  ;;  %v444_v40 = vmul.f32 %v3710_v35, %v429_v31 }
 0x149   : > { %v4024_v36 = vpop.eup %4023  ;;  %v420_v37 = vadd.f32 1e-05, %v412_v34  ;;  %v4111_v34 = vmov 1983009808  }
 0x14a   : > { %v4026_v38 = vpop.eup %4025  ;;  %v430_v39 = vmul.f32 %v4024_v36, %v4221_v32  ;;  %v459_v48 = vadd.f32 %v3711_v24, %v444_v40  ;;  %v607_v36 = vlaneseq }
 0x14b   : > { %v431_v41 = vmul.f32 %v4026_v38, %v4214_v25  ;;  %4035 = vrsqrt.f32 %v420_v37 }
 0x14c   : > { %v445_v44 = vmul.f32 %v3710_v35, %v430_v39  ;;  %v608_v38 = vshrl.u32 %v607_v36, 7  ;;  %v4112_v39 = vmov 1934713408  }
 0x14d   : > { %v4028_v45 = vpop.eup %4027  ;;  %v446_v50 = vmul.f32 %v3710_v35, %v431_v41  ;;  %v636_v40 = vunpack.c.l.s4 %v4112_v39 }
 0x14e   : > { %v4030_v46 = vpop.eup %4029  ;;  %v432_v47 = vmul.f32 %v4028_v45, %v4224_v33  ;;  %v460_v49 = vadd.f32 %v3711_v24, %v445_v44 }
 0x14f   : > { %v433_v51 = vmul.f32 %v4030_v46, %v4233_v42  ;;  %v461_v25 = vadd.f32 %v3711_v24, %v446_v50 }
 0x150   : > { %v467_v54 = vpack.c.bf16 %v460_v49, %v459_v48  ;;  %v447_v32 = vmul.f32 %v3710_v35, %v432_v47 }
 0x151   : > { %v4032_v55 = vpop.eup %4031  ;;  %v448_v59 = vmul.f32 %v3710_v35, %v433_v51 }
 0x152   : > { %v4034_v56 = vpop.eup %4033  ;;  %3861 = vmatprep.mubr.msk.bf16.mxu0 %vm331_vm0, %v467_v54  ;;  %v462_v57 = vadd.f32 %v3711_v24, %v447_v32  ;;  %v434_v58 = vmul.f32 %v4032_v55, %v4236_v43 }
 0x153   : > { %v435_v60 = vmul.f32 %v4034_v56, %v4245_v52  ;;  %v463_v42 = vadd.f32 %v3711_v24, %v448_v59  ;;  %v4109_v52 = vmov 0.0  }
 0x154   : > { %v468_v61 = vpack.c.bf16 %v462_v57, %v461_v25  ;;  %v449_v33 = vmul.f32 %v3710_v35, %v434_v58  ;;  %3869 = vmatprep.subr.bf16.mxu1 %v4109_v52  ;;  %3881 = vmatprep.subr.bf16.mxu0 %v4109_v52 }
 0x155   : > { %v4036_v62 = vpop.eup %4035  ;;  %v450_v1 = vmul.f32 %v3710_v35, %v435_v60 }
 0x156   : > { %v436_v63 = vmul.f32 %v4036_v62, %v4248_v53  ;;  %3862 = vmatmul.mubr.msk.bf16.vlgmr.msra.gmra.mrb[0].mxu0 %vm331_vm0, %v468_v61  ;;  %v464_v0 = vadd.f32 %v3711_v24, %v449_v33  ;;  %v3712_v53 = vld [vmem:[%s5166_s4] ss:$0 sm:$0xff] }
 0x157   : > { %v465_v8 = vadd.f32 %v3711_v24, %v450_v1  ;;  %3883 = vmatprep.mubr.msk.bf16.mxu0 %vm4114_vm1, %v4109_v52 }
 0x158   : > { %v469_v6 = vpack.c.bf16 %v464_v0, %v463_v42  ;;  %v451_v7 = vmul.f32 %v3710_v35, %v436_v63  ;;  %v605_v35 = vunpack.c.l.s4 %v4111_v34 }
 0x15a   : > { %3865 = vmatprep.mubr.msk.bf16.mxu1 %vm331_vm0, %v469_v6  ;;  %v466_v9 = vadd.f32 %v3711_v24, %v451_v7  ;;  %v606_v37 = vunpack.c.0.s8 %v605_v35  ;;  %v637_v24 = vunpack.c.0.s8 %v636_v40 }
 0x15c   : > { %v470_v43 = vpack.c.bf16 %v466_v9, %v465_v8  ;;  %v4287_v41 = vsub.s32 %v606_v37, %v608_v38  ;;  %v4297_v50 = vsub.s32 %v637_v24, %v608_v38 }
 0x15e   : > { %3866 = vmatmul.mubr.msk.bf16.vlgmr.msra.gmra.mrb[0].mxu1 %vm331_vm0, %v470_v43 }
 0x15f   : > { %3871 = vmatprep.mubr.msk.bf16.mxu1 %vm4114_vm1, %v4109_v52 }
 0x229   : > { %v3863_v10 = vpop.f32.mrb[0].mxu0 }
 0x22a   : > { %v540_v13 = vpop.f32.mrb[1].mxu0  ;;  %v549_v20 = vadd.f32 %v3863_v10, %v3712_v53 }
 0x22b   : > { %v541_v14 = vadd.f32 %v3712_v53, %v540_v13  ;;  %v3864_v15 = vpop.f32.mrb[2].mxu0 }
 0x22c   : > { %v543_v18 = vpop.f32.mrb[3].mxu0  ;;  %v552_v28 = vadd.f32 %v3864_v15, %v3712_v53  ;;  %v735_v44 = vcombine.high %v549_v20, %v4109_v52  ;;  %v4294_v48 = vrot.slane %v549_v20, %v4287_v41 }
 0x22d   : > { %v544_v19 = vadd.f32 %v3712_v53, %v543_v18  ;;  %579 = vrot.lane.b32.xlu0 %v541_v14, %s4110_s22  ;;  %v603_v45 = vcombine.high %v541_v14, %v4109_v52  ;;  %v610_v54 = vrot.slane %v541_v14, %v4287_v41 }
 0x22e   : > { %v801_v46 = vcombine.high %v552_v28, %v4109_v52  ;;  %v4300_v51 = vrot.slane %v735_v44, %v4287_v41  ;;  %v4305_v55 = vrot.slane %v552_v28, %v4287_v41 }
 0x22f   : > { %581 = vrot.lane.b32.xlu1 %v544_v19, %s4110_s22  ;;  %v669_v47 = vcombine.high %v544_v19, %v4109_v52  ;;  %v617_v32 = vrot.slane %v603_v45, %v4287_v41  ;;  %v676_v25 = vrot.slane %v544_v19, %v4287_v41 }
 0x230   : > { %v4308_v56 = vrot.slane %v801_v46, %v4287_v41 }
 0x231   : > { %v3867_v21 = vpop.f32.mrb[0].mxu1  ;;  %v683_v60 = vrot.slane %v669_v47, %v4287_v41 }
 0x232   : > { %v556_v22 = vpop.f32.mrb[1].mxu1  ;;  %v565_v29 = vadd.f32 %v3867_v21, %v3712_v53 }
 0x233   : > { %v557_v23 = vadd.f32 %v3712_v53, %v556_v22  ;;  %583 = vrot.lane.b32.xlu1 %v549_v20, %s4110_s22  ;;  %v3868_v26 = vpop.f32.mrb[2].mxu1 }
 0x234   : > { %v559_v27 = vpop.f32.mrb[3].mxu1  ;;  %v568_v31 = vadd.f32 %v3868_v26, %v3712_v53  ;;  %v999_v49 = vcombine.high %v565_v29, %v4109_v52  ;;  %v4315_v61 = vrot.slane %v565_v29, %v4287_v41 }
 0x235   : > { %587 = vrot.lane.b32.xlu0 %v557_v23, %s4110_s22  ;;  %v560_v30 = vadd.f32 %v3712_v53, %v559_v27  ;;  %v867_v57 = vcombine.high %v557_v23, %v4109_v52  ;;  %v4323_v42 = vrot.slane %v557_v23, %v4287_v41 }
 0x236   : > { %v1065_v58 = vcombine.high %v568_v31, %v4109_v52  ;;  %v4320_v63 = vrot.slane %v999_v49, %v4287_v41  ;;  %v4326_v0 = vrot.slane %v568_v31, %v4287_v41 }
 0x237   : > { %585 = vrot.lane.b32.xlu1 %v552_v28, %s4110_s22  ;;  %v933_v1 = vcombine.high %v560_v30, %v4109_v52  ;;  %v4332_v53 = vrot.slane %v867_v57, %v4287_v41  ;;  %v4338_v13 = vrot.slane %v560_v30, %v4287_v41 }
 0x238   : > { %v4335_v10 = vrot.slane %v1065_v58, %v4287_v41 }
 0x239   : > { %591 = vrot.lane.b32.xlu0 %v565_v29, %s4110_s22  ;;  %v4344_v21 = vrot.slane %v933_v1, %v4287_v41 }
 0x23b   : > { %589 = vrot.lane.b32.xlu1 %v560_v30, %s4110_s22 }
 0x23f   : > { %593 = vrot.lane.b32.xlu1 %v568_v31, %s4110_s22 }
 0x29f   : > { %v580_v59 = vpop.permute.xlu0 %579 }
 0x2a0   : > { %v618_v33 = vcombine.high %v580_v59, %v4109_v52  ;;  %v625_v62 = vrot.slane %v580_v59, %v4287_v41 }
 0x2a1   : > { %v582_v6 = vpop.permute.xlu1 %581 }
 0x2a2   : > { %v632_v7 = vrot.slane %v618_v33, %v4287_v41  ;;  %v633_v8 = vcombine.low %v610_v54, %v625_v62  ;;  %v634_v9 = vcombine.high %v610_v54, %v625_v62  ;;  %v684_v43 = vcombine.high %v582_v6, %v4109_v52 }
 0x2a3   : > { %v691_v14 = vrot.slane %v582_v6, %v4287_v41 }
 0x2a4   : > { %v641_v15 = vrot.slane %v633_v8, %v4297_v50  ;;  %v648_v18 = vrot.slane %v634_v9, %v4297_v50  ;;  %v649_v19 = vcombine.low %v617_v32, %v632_v7  ;;  %v650_v20 = vcombine.high %v617_v32, %v632_v7 }
 0x2a5   : > { %v698_v22 = vrot.slane %v684_v43, %v4287_v41  ;;  %v699_v23 = vcombine.low %v676_v25, %v691_v14  ;;  %v700_v26 = vcombine.high %v676_v25, %v691_v14  ;;  %v584_v27 = vpop.permute.xlu1 %583 }
 0x2a6   : > { %v657_v28 = vrot.slane %v649_v19, %v4297_v50  ;;  %v664_v29 = vrot.slane %v650_v20, %v4297_v50  ;;  %v1131_v30 = vcombine.low %v641_v15, %v648_v18  ;;  %v3719_v31 = vcombine.high %v641_v15, %v648_v18 }
 0x2a7   : > { %v707_v34 = vrot.slane %v699_v23, %v4297_v50  ;;  %v714_v35 = vrot.slane %v700_v26, %v4297_v50  ;;  %v715_v36 = vcombine.low %v683_v60, %v698_v22  ;;  %v716_v37 = vcombine.high %v683_v60, %v698_v22  ;;  %v588_v49 = vpop.permute.xlu0 %587 }
 0x2a8   : > { %v4352_v38 = vrot.slane %v1131_v30, %v4287_v41  ;;  %v4355_v39 = vrot.slane %v3719_v31, %v4287_v41  ;;  %v1147_v40 = vcombine.low %v657_v28, %v664_v29  ;;  %v3720_v24 = vcombine.high %v657_v28, %v664_v29 }
 0x2a9   : > { %v723_v44 = vrot.slane %v715_v36, %v4297_v50  ;;  %v730_v45 = vrot.slane %v716_v37, %v4297_v50  ;;  %v1181_v46 = vcombine.low %v707_v34, %v714_v35  ;;  %v3721_v47 = vcombine.high %v707_v34, %v714_v35  ;;  %v586_v58 = vpop.permute.xlu1 %585 }
 0x2aa   : > { %v4360_v54 = vrot.slane %v1147_v40, %v4287_v41  ;;  %v4363_v32 = vrot.slane %v3720_v24, %v4287_v41  ;;  %v750_v25 = vcombine.high %v584_v27, %v4109_v52  ;;  %v757_v57 = vrot.slane %v584_v27, %v4287_v41 }
 0x2ab   : > { %v4368_v59 = vrot.slane %v1181_v46, %v4287_v41  ;;  %v4371_v60 = vrot.slane %v3721_v47, %v4287_v41  ;;  %v1197_v33 = vcombine.low %v723_v44, %v730_v45  ;;  %v3722_v62 = vcombine.high %v723_v44, %v730_v45 }
 0x2ac   : > { %v764_v1 = vrot.slane %v750_v25, %v4287_v41  ;;  %v765_v6 = vcombine.low %v4294_v48, %v757_v57  ;;  %v766_v7 = vcombine.high %v4294_v48, %v757_v57  ;;  %v882_v8 = vcombine.high %v588_v49, %v4109_v52 }
 0x2ad   : > { %v4378_v9 = vrot.slane %v1197_v33, %v4287_v41  ;;  %v4381_v43 = vrot.slane %v3722_v62, %v4287_v41  ;;  %v889_v14 = vrot.slane %v588_v49, %v4287_v41  ;;  %v816_v15 = vcombine.high %v586_v58, %v4109_v52 }
 0x2ae   : > { %v773_v18 = vrot.slane %v765_v6, %v4297_v50  ;;  %v780_v19 = vrot.slane %v766_v7, %v4297_v50  ;;  %v781_v20 = vcombine.low %v4300_v51, %v764_v1  ;;  %v782_v48 = vcombine.high %v4300_v51, %v764_v1  ;;  %v590_v7 = vpop.permute.xlu1 %589 }
 0x2af   : > { %v896_v22 = vrot.slane %v882_v8, %v4287_v41  ;;  %v897_v23 = vcombine.low %v4323_v42, %v889_v14  ;;  %v898_v26 = vcombine.high %v4323_v42, %v889_v14  ;;  %v823_v27 = vrot.slane %v586_v58, %v4287_v41  ;;  %v592_v58 = vpop.permute.xlu0 %591 }
 0x2b0   : > { %v789_v28 = vrot.slane %v781_v20, %v4297_v50  ;;  %v796_v29 = vrot.slane %v782_v48, %v4297_v50  ;;  %v1231_v30 = vcombine.low %v773_v18, %v780_v19  ;;  %v3723_v31 = vcombine.high %v773_v18, %v780_v19 }
 0x2b1   : > { %v905_v34 = vrot.slane %v897_v23, %v4297_v50  ;;  %v912_v35 = vrot.slane %v898_v26, %v4297_v50  ;;  %v913_v51 = vcombine.low %v4332_v53, %v896_v22  ;;  %v914_v36 = vcombine.high %v4332_v53, %v896_v22 }
 0x2b2   : > { %v4400_v37 = vrot.slane %v1231_v30, %v4287_v41  ;;  %v4403_v42 = vrot.slane %v3723_v31, %v4287_v41  ;;  %v1247_v40 = vcombine.low %v789_v28, %v796_v29  ;;  %v3724_v24 = vcombine.high %v789_v28, %v796_v29 }
 0x2b3   : > { %v921_v44 = vrot.slane %v913_v51, %v4297_v50  ;;  %v928_v45 = vrot.slane %v914_v36, %v4297_v50  ;;  %v1331_v46 = vcombine.low %v905_v34, %v912_v35  ;;  %v3727_v47 = vcombine.high %v905_v34, %v912_v35 }
 0x2b4   : > { %v4408_v49 = vrot.slane %v1247_v40, %v4287_v41  ;;  %v4411_v25 = vrot.slane %v3724_v24, %v4287_v41  ;;  %v830_v53 = vrot.slane %v816_v15, %v4287_v41  ;;  %v831_v57 = vcombine.low %v4305_v55, %v823_v27 }
 0x2b5   : > { %v4416_v33 = vrot.slane %v1331_v46, %v4287_v41  ;;  %v4419_v62 = vrot.slane %v3727_v47, %v4287_v41  ;;  %v1347_v1 = vcombine.low %v921_v44, %v928_v45  ;;  %v3728_v6 = vcombine.high %v921_v44, %v928_v45  ;;  %v594_v45 = vpop.permute.xlu1 %593 }
 0x2b6   : > { %v832_v8 = vcombine.high %v4305_v55, %v823_v27  ;;  %v839_v14 = vrot.slane %v831_v57, %v4297_v50  ;;  %v847_v18 = vcombine.low %v4308_v56, %v830_v53  ;;  %v848_v15 = vcombine.high %v4308_v56, %v830_v53 }
 0x2b7   : > { %v4426_v19 = vrot.slane %v1347_v1, %v4287_v41  ;;  %v4429_v20 = vrot.slane %v3728_v6, %v4287_v41  ;;  %v1014_v48 = vcombine.high %v592_v58, %v4109_v52  ;;  %v1021_v22 = vrot.slane %v592_v58, %v4287_v41 }
 0x2b8   : > { %v846_v23 = vrot.slane %v832_v8, %v4297_v50  ;;  %v855_v55 = vrot.slane %v847_v18, %v4297_v50  ;;  %v862_v26 = vrot.slane %v848_v15, %v4297_v50  ;;  %v948_v27 = vcombine.high %v590_v7, %v4109_v52 }
 0x2b9   : > { %v1028_v56 = vrot.slane %v1014_v48, %v4287_v41  ;;  %v1029_v28 = vcombine.low %v4315_v61, %v1021_v22  ;;  %v1030_v29 = vcombine.high %v4315_v61, %v1021_v22  ;;  %v955_v30 = vrot.slane %v590_v7, %v4287_v41 }
 0x2ba   : > { %v1281_v31 = vcombine.low %v839_v14, %v846_v23  ;;  %v3725_v34 = vcombine.high %v839_v14, %v846_v23  ;;  %v1297_v35 = vcombine.low %v855_v55, %v862_v26  ;;  %v3726_v51 = vcombine.high %v855_v55, %v862_v26 }
 0x2bb   : > { %v1037_v36 = vrot.slane %v1029_v28, %v4297_v50  ;;  %v1044_v40 = vrot.slane %v1030_v29, %v4297_v50  ;;  %v1045_v24 = vcombine.low %v4320_v63, %v1028_v56  ;;  %v1046_v44 = vcombine.high %v4320_v63, %v1028_v56 }
 0x2bc   : > { %v4446_v46 = vrot.slane %v1281_v31, %v4287_v41  ;;  %v4449_v61 = vrot.slane %v3725_v34, %v4287_v41  ;;  %v4452_v47 = vrot.slane %v1297_v35, %v4287_v41  ;;  %v4455_v53 = vrot.slane %v3726_v51, %v4287_v41 }
 0x2bd   : > { %v1053_v57 = vrot.slane %v1045_v24, %v4297_v50  ;;  %v1060_v58 = vrot.slane %v1046_v44, %v4297_v50  ;;  %v1431_v1 = vcombine.low %v1037_v36, %v1044_v40  ;;  %v3731_v6 = vcombine.high %v1037_v36, %v1044_v40 }
 0x2be   : > { %v962_v63 = vrot.slane %v948_v27, %v4287_v41  ;;  %v963_v7 = vcombine.low %v4338_v13, %v955_v30  ;;  %v964_v8 = vcombine.high %v4338_v13, %v955_v30  ;;  %v1080_v14 = vcombine.high %v594_v45, %v4109_v52 }
 0x2bf   : > { %v4464_v18 = vrot.slane %v1431_v1, %v4287_v41  ;;  %v4467_v15 = vrot.slane %v3731_v6, %v4287_v41  ;;  %v1447_v48 = vcombine.low %v1053_v57, %v1060_v58  ;;  %v3732_v22 = vcombine.high %v1053_v57, %v1060_v58 }
 0x2c0   : > { %v971_v23 = vrot.slane %v963_v7, %v4297_v50  ;;  %v978_v55 = vrot.slane %v964_v8, %v4297_v50  ;;  %v979_v26 = vcombine.low %v4344_v21, %v962_v63  ;;  %v980_v27 = vcombine.high %v4344_v21, %v962_v63 }
 0x2c1   : > { %v4474_v13 = vrot.slane %v1447_v48, %v4287_v41  ;;  %v4477_v56 = vrot.slane %v3732_v22, %v4287_v41  ;;  %v1087_v28 = vrot.slane %v594_v45, %v4287_v41  ;;  %v1094_v29 = vrot.slane %v1080_v14, %v4287_v41 }
 0x2c2   : > { %v987_v30 = vrot.slane %v979_v26, %v4297_v50  ;;  %v994_v31 = vrot.slane %v980_v27, %v4297_v50  ;;  %v1381_v34 = vcombine.low %v971_v23, %v978_v55  ;;  %v3729_v35 = vcombine.high %v971_v23, %v978_v55 }
 0x2c3   : > { %v1095_v51 = vcombine.low %v4326_v0, %v1087_v28  ;;  %v1096_v21 = vcombine.high %v4326_v0, %v1087_v28  ;;  %v1111_v36 = vcombine.low %v4335_v10, %v1094_v29  ;;  %v1112_v40 = vcombine.high %v4335_v10, %v1094_v29 }
 0x2c4   : > { %v1388_v24 = vrot.slane %v1381_v34, %v4287_v41  ;;  %v1396_v44 = vrot.slane %v3729_v35, %v4287_v41  ;;  %v1397_v45 = vcombine.low %v987_v30, %v994_v31  ;;  %v3730_v57 = vcombine.high %v987_v30, %v994_v31 }
 0x2c5   : > { %v1103_v58 = vrot.slane %v1095_v51, %v4297_v50  ;;  %v1110_v1 = vrot.slane %v1096_v21, %v4297_v50  ;;  %v1119_v6 = vrot.slane %v1111_v36, %v4297_v50  ;;  %v1126_v63 = vrot.slane %v1112_v40, %v4297_v50 }
 0x2c6   : > { %v1404_v0 = vrot.slane %v1397_v45, %v4287_v41  ;;  %v1412_v7 = vrot.slane %v3730_v57, %v4287_v41  ;;  %v1163_v10 = vcombine.low %v4352_v38, %v4355_v39  ;;  %v1171_v8 = vcombine.low %v4360_v54, %v4363_v32 }
 0x2c7   : > { %v1481_v14 = vcombine.low %v1103_v58, %v1110_v1  ;;  %v3733_v48 = vcombine.high %v1103_v58, %v1110_v1  ;;  %v1497_v22 = vcombine.low %v1119_v6, %v1126_v63  ;;  %v3734_v23 = vcombine.high %v1119_v6, %v1126_v63 }
 0x2c8   : > { %v1170_v55 = vrot.slane %v1163_v10, %v4297_v50  ;;  %v1178_v26 = vrot.slane %v1171_v8, %v4297_v50  ;;  %v1213_v27 = vcombine.low %v4368_v59, %v4371_v60  ;;  %v1221_v28 = vcombine.low %v4378_v9, %v4381_v43 }
 0x2c9   : > { %v1488_v29 = vrot.slane %v1481_v14, %v4287_v41  ;;  %v1496_v38 = vrot.slane %v3733_v48, %v4287_v41  ;;  %v1504_v39 = vrot.slane %v1497_v22, %v4287_v41  ;;  %v1512_v54 = vrot.slane %v3734_v23, %v4287_v41 }
 0x2ca   : > { %v1179_v32 = vcombine.low %v1170_v55, %v1178_v26  ;;  %v1220_v30 = vrot.slane %v1213_v27, %v4297_v50  ;;  %v1228_v31 = vrot.slane %v1221_v28, %v4297_v50  ;;  %v1263_v34 = vcombine.low %v4400_v37, %v4403_v42 }
 0x2cb   : > { %v1271_v59 = vcombine.low %v4408_v49, %v4411_v25  ;;  %v1313_v60 = vcombine.low %v4446_v46, %v4449_v61  ;;  %v1321_v9 = vcombine.low %v4452_v47, %v4455_v53  ;;  %v1363_v43 = vcombine.low %v4416_v33, %v4419_v62 }
 0x2cc   : > { %v1229_v35 = vcombine.low %v1220_v30, %v1228_v31  ;;  %v1270_v51 = vrot.slane %v1263_v34, %v4297_v50  ;;  %v1371_v21 = vcombine.low %v4426_v19, %v4429_v20  ;;  %v1413_v36 = vcombine.low %v1388_v24, %v1396_v44 }
 0x2cd   : > { %v1278_v37 = vrot.slane %v1271_v59, %v4297_v50  ;;  %v1320_v42 = vrot.slane %v1313_v60, %v4297_v50  ;;  %v1328_v49 = vrot.slane %v1321_v9, %v4297_v50  ;;  %v1370_v25 = vrot.slane %v1363_v43, %v4297_v50 }
 0x2ce   : > { %v4528_v46 = vpack.c.bf16 %v1229_v35, %v1179_v32  ;;  %v1378_v61 = vrot.slane %v1371_v21, %v4297_v50  ;;  %v1420_v33 = vrot.slane %v1413_v36, %v4297_v50  ;;  %v1421_v62 = vcombine.low %v1404_v0, %v1412_v7 }
 0x2cf   : > { %v1279_v47 = vcombine.low %v1270_v51, %v1278_v37  ;;  %v1329_v53 = vcombine.low %v1320_v42, %v1328_v49  ;;  %v1180_v40 = vcombine.high %v1170_v55, %v1178_v26  ;;  %v1230_v19 = vcombine.high %v1220_v30, %v1228_v31 }
 0x2d0   : > { %1540 = vrot.lane.b32.xlu0 %v4528_v46, %s4113_s23  ;;  %v1379_v20 = vcombine.low %v1370_v25, %v1378_v61  ;;  %v1428_v24 = vrot.slane %v1421_v62, %v4297_v50  ;;  %v1463_v44 = vcombine.low %v4464_v18, %v4467_v15  ;;  %v1471_v45 = vcombine.low %v4474_v13, %v4477_v56 }
 0x2d1   : > { %v4539_v57 = vpack.c.bf16 %v1329_v53, %v1279_v47  ;;  %v4541_v58 = vpack.c.bf16 %v1230_v19, %v1180_v40  ;;  %v1513_v1 = vcombine.low %v1488_v29, %v1496_v38  ;;  %v1521_v6 = vcombine.low %v1504_v39, %v1512_v54 }
 0x2d2   : > { %v1429_v63 = vcombine.low %v1420_v33, %v1428_v24  ;;  %v1470_v0 = vrot.slane %v1463_v44, %v4297_v50  ;;  %v1478_v7 = vrot.slane %v1471_v45, %v4297_v50  ;;  %v1380_v10 = vcombine.high %v1370_v25, %v1378_v61  ;;  %v1941_v25 = vld [vmem:[%s5169_s7 + $0x8] sm:$0xff] }
 0x2d3   : > { %1591 = vrot.lane.b32.xlu1 %v4539_v57, %s4113_s23  ;;  %v1520_v18 = vrot.slane %v1513_v1, %v4297_v50  ;;  %v1528_v15 = vrot.slane %v1521_v6, %v4297_v50  ;;  %v1430_v13 = vcombine.high %v1420_v33, %v1428_v24  ;;  %v1280_v56 = vcombine.high %v1270_v51, %v1278_v37 }
 0x2d4   : > { %v4549_v8 = vpack.c.bf16 %v1429_v63, %v1379_v20  ;;  %v1479_v14 = vcombine.low %v1470_v0, %v1478_v7  ;;  %v1330_v48 = vcombine.high %v1320_v42, %v1328_v49  ;;  %v1480_v22 = vcombine.high %v1470_v0, %v1478_v7  ;;  %v1940_v42 = vld [vmem:[%s5169_s7] sm:$0xff] }
 0x2d5   : > { %v1529_v23 = vcombine.low %v1520_v18, %v1528_v15  ;;  %v4551_v55 = vpack.c.bf16 %v1430_v13, %v1380_v10  ;;  %v1530_v26 = vcombine.high %v1520_v18, %v1528_v15 }
 0x2d6   : > { %1641 = vrot.lane.b32.xlu0 %v4549_v8, %s4113_s23  ;;  %v4555_v27 = vpack.c.bf16 %v1330_v48, %v1280_v56 }
 0x2d7   : > { %v4559_v28 = vpack.c.bf16 %v1529_v23, %v1479_v14  ;;  %v4561_v29 = vpack.c.bf16 %v1530_v26, %v1480_v22  ;;  %v1943_v14 = vld [vmem:[%s5169_s7 + $0x18] sm:$0xff] }
 0x2d9   : > { %1691 = vrot.lane.b32.xlu1 %v4559_v28, %s4113_s23 }
 0x2da   : > { %1741 = vrot.lane.b32.xlu0 %v4541_v58, %s4113_s23 }
 0x2dd   : > { %1791 = vrot.lane.b32.xlu1 %v4555_v27, %s4113_s23 }
 0x2de   : > { %1841 = vrot.lane.b32.xlu0 %v4551_v55, %s4113_s23 }
 0x2e1   : > { %1891 = vrot.lane.b32.xlu1 %v4561_v29, %s4113_s23  ;;  %s5135_s23 = scalar_lea.vmem %s5170_s8, %s3784_s30 }
 0x342   : > { %v1541_v38 = vpop.permute.xlu0 %1540 }
 0x343   : > { %v1547_v39 = vsel %vm1542_vm2, %v1541_v38, 0 }
 0x344   : > { %3870 = vmatpush3.bf16.xpose.msra.mxu1 %v1547_v39 }
 0x345   : > { %3875 = vmatprep.subr.bf16.mxu1 %v4109_v52  ;;  %v1592_v54 = vpop.permute.xlu1 %1591 }
 0x346   : > { %v1597_v30 = vsel %vm1542_vm2, %v1592_v54, 0 }
 0x348   : > { %v1642_v32 = vpop.permute.xlu0 %1641 }
 0x349   : > { %v1647_v31 = vsel %vm1542_vm2, %v1642_v32, 0 }
 0x34a   : > { %3882 = vmatpush3.bf16.xpose.msra.mxu0 %v1647_v31 }
 0x34b   : > { %3872 = vmatmul.mubr.msk.bf16.vlgmr.msra.gmra.mrb[4].mxu1 %vm1542_vm2, %v4528_v46  ;;  %3893 = vmatprep.subr.bf16.mxu0 %v4109_v52  ;;  %v1692_v34 = vpop.permute.xlu1 %1691 }
 0x34c   : > { %3876 = vmatpush3.bf16.xpose.msra.mxu1 %v1597_v30  ;;  %3877 = vmatprep.mubr.msk.bf16.mxu1 %vm4114_vm1, %v4109_v52  ;;  %v1742_v59 = vpop.permute.xlu0 %1741  ;;  %v1697_v60 = vsel %vm1542_vm2, %v1692_v34, 0 }
 0x34d   : > { %3887 = vmatprep.subr.bf16.mxu1 %v4109_v52  ;;  %v1747_v9 = vsel %vm1542_vm2, %v1742_v59, 0 }
 0x34f   : > { %v1792_v35 = vpop.permute.xlu1 %1791 }
 0x350   : > { %v1842_v43 = vpop.permute.xlu0 %1841  ;;  %v1797_v21 = vsel %vm1542_vm2, %v1792_v35, 0 }
 0x351   : > { %3884 = vmatmul.mubr.msk.bf16.vlgmr.msra.gmra.mrb[4].mxu0 %vm1542_vm2, %v4549_v8  ;;  %v1847_v51 = vsel %vm1542_vm2, %v1842_v43, 0  ;;  %v1942_v43 = vld [vmem:[%s5169_s7 + $0x10] sm:$0xff] }
 0x352   : > { %3894 = vmatpush3.bf16.xpose.msra.mxu0 %v1747_v9  ;;  %3895 = vmatprep.mubr.msk.bf16.mxu0 %vm4114_vm1, %v4109_v52 }
 0x353   : > { %3878 = vmatmul.mubr.msk.bf16.vlgmr.msra.gmra.mrb[8].mxu1 %vm1542_vm2, %v4539_v57  ;;  %3905 = vmatprep.subr.bf16.mxu0 %v4109_v52  ;;  %v1892_v36 = vpop.permute.xlu1 %1891 }
 0x354   : > { %3888 = vmatpush3.bf16.xpose.msra.mxu1 %v1697_v60  ;;  %3889 = vmatprep.mubr.msk.bf16.mxu1 %vm4114_vm1, %v4109_v52  ;;  %v1897_v37 = vsel %vm1542_vm2, %v1892_v36, 0 }
 0x355   : > { %3899 = vmatprep.subr.bf16.mxu1 %v4109_v52 }
 0x359   : > { %3896 = vmatmul.mubr.msk.bf16.vlgmr.msra.gmra.mrb[8].mxu0 %vm1542_vm2, %v4541_v58 }
 0x35a   : > { %3906 = vmatpush3.bf16.xpose.msra.mxu0 %v1847_v51  ;;  %3907 = vmatprep.mubr.msk.bf16.mxu0 %vm4114_vm1, %v4109_v52 }
 0x35b   : > { %3890 = vmatmul.mubr.msk.bf16.vlgmr.msra.gmra.mrb[12].mxu1 %vm1542_vm2, %v4559_v28  ;;  %3917 = vmatprep.subr.bf16.mxu0 %v4109_v52 }
 0x35c   : > { %3900 = vmatpush3.bf16.xpose.msra.mxu1 %v1797_v21  ;;  %3901 = vmatprep.mubr.msk.bf16.mxu1 %vm4114_vm1, %v4109_v52 }
 0x35d   : > { %3911 = vmatprep.subr.bf16.mxu1 %v4109_v52 }
 0x361   : > { %3908 = vmatmul.mubr.msk.bf16.vlgmr.msra.gmra.mrb[12].mxu0 %vm1542_vm2, %v4551_v55 }
 0x362   : > { %3919 = vmatprep.mubr.msk.bf16.mxu0 %vm4114_vm1, %v4109_v52 }
 0x363   : > { %3902 = vmatmul.mubr.msk.bf16.vlgmr.msra.gmra.mrb[16].mxu1 %vm1542_vm2, %v4555_v27 }
 0x364   : > { %3912 = vmatpush3.bf16.xpose.msra.mxu1 %v1897_v37  ;;  %3913 = vmatprep.mubr.msk.bf16.mxu1 %vm4114_vm1, %v4109_v52 }
 0x365   : > { %3923 = vmatprep.subr.bf16.mxu1 %v4109_v52 }
 0x36b   : > { %3914 = vmatmul.mubr.msk.bf16.vlgmr.msra.gmra.mrb[20].mxu1 %vm1542_vm2, %v4561_v29 }
 0x36c   : > { %3925 = vmatprep.mubr.msk.bf16.mxu1 %vm4114_vm1, %v4109_v52 }
 0x41e   : > { %v1583_v49 = vpop.f32.mrb[4].mxu1 }
 0x41f   : > { %v4629_v61 = vadd.f32 %v1940_v42, %v1583_v49  ;;  %v3873_v33 = vpop.f32.mrb[5].mxu1 }
 0x420   : > { %v1586_v62 = vpop.f32.mrb[6].mxu1 }
 0x421   : > { %v4631_v47 = vadd.f32 %v1941_v25, %v1586_v62  ;;  %v3874_v53 = vpop.f32.mrb[7].mxu1  ;;  %v1960_v40 = vsel %vm1542_vm2, %v4629_v61, -inf }
 0x422   : > { %1961 = vmax.xlane.f32.xlu0 %v1960_v40 }
 0x423   : > { %v1963_v19 = vsel %vm1542_vm2, %v4631_v47, -inf }
 0x424   : > { %1964 = vmax.xlane.f32.xlu1 %v1963_v19  ;;  %v1683_v20 = vpop.f32.mrb[4].mxu0 }
 0x425   : > { %v3885_v24 = vpop.f32.mrb[5].mxu0  ;;  %v4650_v48 = vadd.f32 %v1940_v42, %v1683_v20 }
 0x426   : > { %v1633_v44 = vpop.f32.mrb[8].mxu1  ;;  %v1686_v45 = vpop.f32.mrb[6].mxu0 }
 0x427   : > { %v4637_v1 = vadd.f32 %v1940_v42, %v1633_v44  ;;  %v3879_v6 = vpop.f32.mrb[9].mxu1  ;;  %v4639_v63 = vadd.f32 %v1941_v25, %v1686_v45  ;;  %v3886_v0 = vpop.f32.mrb[7].mxu0  ;;  %v1972_v60 = vsel %vm1542_vm2, %v4650_v48, -inf }
 0x428   : > { %v1636_v7 = vpop.f32.mrb[10].mxu1 }
 0x429   : > { %v4641_v10 = vadd.f32 %v1941_v25, %v1636_v7  ;;  %v3880_v18 = vpop.f32.mrb[11].mxu1  ;;  %v1966_v15 = vsel %vm1542_vm2, %v4637_v1, -inf  ;;  %v1975_v13 = vsel %vm1542_vm2, %v4639_v63, -inf }
 0x42a   : > { %1967 = vmax.xlane.f32.xlu0 %v1966_v15  ;;  %1976 = vmax.xlane.f32.xlu1 %v1975_v13 }
 0x42b   : > { %v1969_v22 = vsel %vm1542_vm2, %v4641_v10, -inf }
 0x42c   : > { %v1783_v56 = vpop.f32.mrb[8].mxu0 }
 0x42d   : > { %v3897_v23 = vpop.f32.mrb[9].mxu0  ;;  %v4667_v51 = vadd.f32 %v1942_v43, %v1783_v56 }
 0x42e   : > { %1970 = vmax.xlane.f32.xlu0 %v1969_v22  ;;  %v1733_v26 = vpop.f32.mrb[12].mxu1  ;;  %v1786_v38 = vpop.f32.mrb[10].mxu0 }
 0x42f   : > { %v3891_v39 = vpop.f32.mrb[13].mxu1  ;;  %v4654_v54 = vadd.f32 %v1943_v14, %v1786_v38  ;;  %v3898_v32 = vpop.f32.mrb[11].mxu0  ;;  %v4656_v31 = vadd.f32 %v1940_v42, %v1733_v26  ;;  %v1984_v24 = vsel %vm1542_vm2, %v4667_v51, -inf }
 0x430   : > { %v1736_v30 = vpop.f32.mrb[14].mxu1 }
 0x431   : > { %v4658_v34 = vadd.f32 %v1941_v25, %v1736_v30  ;;  %v3892_v59 = vpop.f32.mrb[15].mxu1  ;;  %v1987_v9 = vsel %vm1542_vm2, %v4654_v54, -inf  ;;  %v1978_v21 = vsel %vm1542_vm2, %v4656_v31, -inf }
 0x432   : > { %1973 = vmax.xlane.f32.xlu0 %v1972_v60  ;;  %1988 = vmax.xlane.f32.xlu1 %v1987_v9 }
 0x433   : > { %v1981_v37 = vsel %vm1542_vm2, %v4658_v34, -inf }
 0x434   : > { %v1883_v35 = vpop.f32.mrb[12].mxu0 }
 0x435   : > { %v3909_v36 = vpop.f32.mrb[13].mxu0  ;;  %v4683_v45 = vadd.f32 %v1942_v43, %v1883_v35 }
 0x436   : > { %v1833_v42 = vpop.f32.mrb[16].mxu1  ;;  %1979 = vmax.xlane.f32.xlu0 %v1978_v21  ;;  %1982 = vmax.xlane.f32.xlu1 %v1981_v37  ;;  %v1886_v49 = vpop.f32.mrb[14].mxu0 }
 0x437   : > { %v3903_v25 = vpop.f32.mrb[17].mxu1  ;;  %v4673_v33 = vadd.f32 %v1943_v14, %v1886_v49  ;;  %v3910_v62 = vpop.f32.mrb[15].mxu0  ;;  %v4675_v40 = vadd.f32 %v1942_v43, %v1833_v42  ;;  %v1996_v23 = vsel %vm1542_vm2, %v4683_v45, -inf }
 0x438   : > { %v1836_v53 = vpop.f32.mrb[18].mxu1 }
 0x439   : > { %v4677_v19 = vadd.f32 %v1943_v14, %v1836_v53  ;;  %v3904_v20 = vpop.f32.mrb[19].mxu1  ;;  %v1999_v44 = vsel %vm1542_vm2, %v4673_v33, -inf  ;;  %v1990_v6 = vsel %vm1542_vm2, %v4675_v40, -inf }
 0x43a   : > { %1985 = vmax.xlane.f32.xlu0 %v1984_v24  ;;  %2000 = vmax.xlane.f32.xlu1 %v1999_v44 }
 0x43b   : > { %v1993_v0 = vsel %vm1542_vm2, %v4677_v19, -inf }
 0x43e   : > { %v1933_v7 = vpop.f32.mrb[20].mxu1  ;;  %1991 = vmax.xlane.f32.xlu0 %v1990_v6  ;;  %1994 = vmax.xlane.f32.xlu1 %v1993_v0 }
 0x43f   : > { %v3915_v18 = vpop.f32.mrb[21].mxu1  ;;  %v4689_v13 = vadd.f32 %v1942_v43, %v1933_v7 }
 0x440   : > { %v1936_v15 = vpop.f32.mrb[22].mxu1 }
 0x441   : > { %v4691_v56 = vadd.f32 %v1943_v14, %v1936_v15  ;;  %v3916_v22 = vpop.f32.mrb[23].mxu1  ;;  %v2002_v26 = vsel %vm1542_vm2, %v4689_v13, -inf }
 0x442   : > { %1997 = vmax.xlane.f32.xlu0 %v1996_v23 }
 0x443   : > { %v2005_v14 = vsel %vm1542_vm2, %v4691_v56, -inf }
 0x446   : > { %2003 = vmax.xlane.f32.xlu0 %v2002_v26 }
 0x44f   : > { %2191 = vrot.lane.b32.xlu1 %v4539_v57, %s4115_s13 }
 0x453   : > { %2238 = vrot.lane.b32.xlu1 %v4549_v8, %s4115_s13 }
 0x457   : > { %2285 = vrot.lane.b32.xlu1 %v4559_v28, %s4115_s13 }
 0x45c   : > { %2144 = vrot.lane.b32.xlu0 %v4528_v46, %s4115_s13 }
 0x460   : > { %2332 = vrot.lane.b32.xlu0 %v4541_v58, %s4115_s13 }
 0x47b   : > { %2006 = vmax.xlane.f32.xlu1 %v2005_v14 }
 0x48c   : > { %2379 = vrot.lane.b32.xlu1 %v4555_v27, %s4115_s13 }
 0x4af   : > { %v1962_v57 = vpop.xlane.xlu0 %1961 }
 0x4b0   : > { %v2008_v38 = vsub.f32 %v4629_v61, %v1962_v57 }
 0x4b1   : > { %v1965_v8 = vpop.xlane.xlu1 %1964 }
 0x4b2   : > { %v2024_v39 = vmul.f32 1.442695, %v2008_v38  ;;  %v2009_v28 = vsub.f32 %v4631_v47, %v1965_v8 }
 0x4b4   : > { %4037 = vpow2.f32 %v2024_v39  ;;  %v2026_v32 = vmul.f32 1.442695, %v2009_v28 }
 0x4b6   : > { %4039 = vpow2.f32 %v2026_v32 }
 0x4b7   : > { %v1968_v46 = vpop.xlane.xlu0 %1967  ;;  %v1977_v30 = vpop.xlane.xlu1 %1976 }
 0x4b8   : > { %v2013_v58 = vsub.f32 %v4639_v63, %v1977_v30  ;;  %v2010_v61 = vsub.f32 %v4637_v1, %v1968_v46 }
 0x4ba   : > { %v2034_v59 = vmul.f32 1.442695, %v2013_v58  ;;  %v2028_v42 = vmul.f32 1.442695, %v2010_v61 }
 0x4bb   : > { %v1971_v60 = vpop.xlane.xlu0 %1970 }
 0x4bc   : > { %v2011_v9 = vsub.f32 %v4641_v10, %v1971_v60  ;;  %4041 = vpow2.f32 %v2034_v59 }
 0x4be   : > { %v4715_v27 = vpop.eup %4037  ;;  %v2030_v43 = vmul.f32 1.442695, %v2011_v9 }
 0x4bf   : > { %v1974_v35 = vpop.xlane.xlu0 %1973  ;;  %v2056_v47 = vsel %vm1542_vm2, %v4715_v27, 0.0  ;;  %v1989_v21 = vpop.xlane.xlu1 %1988 }
 0x4c0   : > { %v4720_v36 = vpop.eup %4039  ;;  %4043 = vpow2.f32 %v2030_v43  ;;  %v2012_v63 = vsub.f32 %v4650_v48, %v1974_v35  ;;  %2057 = vadd.xlane.f32.xlu0 %v2056_v47  ;;  %v2017_v37 = vsub.f32 %v4654_v54, %v1989_v21 }
 0x4c1   : > { %v2059_v10 = vsel %vm1542_vm2, %v4720_v36, 0.0 }
 0x4c2   : > { %v2032_v49 = vmul.f32 1.442695, %v2012_v63  ;;  %2060 = vadd.xlane.f32.xlu1 %v2059_v10  ;;  %v2042_v1 = vmul.f32 1.442695, %v2017_v37 }
 0x4c3   : > { %v1980_v25 = vpop.xlane.xlu0 %1979  ;;  %v1983_v62 = vpop.xlane.xlu1 %1982 }
 0x4c4   : > { %4045 = vpow2.f32 %v2032_v49  ;;  %v2015_v53 = vsub.f32 %v4658_v34, %v1983_v62  ;;  %v2014_v20 = vsub.f32 %v4656_v31, %v1980_v25 }
 0x4c5   : > { %4047 = vpow2.f32 %v2042_v1 }
 0x4c6   : > { %4049 = vpow2.f32 %v2028_v42  ;;  %v2038_v48 = vmul.f32 1.442695, %v2015_v53  ;;  %v4728_v24 = vpop.eup %4041  ;;  %v2036_v34 = vmul.f32 1.442695, %v2014_v20 }
 0x4c7   : > { %v1986_v54 = vpop.xlane.xlu0 %1985  ;;  %v2001_v44 = vpop.xlane.xlu1 %2000  ;;  %v2071_v7 = vsel %vm1542_vm2, %v4728_v24, 0.0 }
 0x4c8   : > { %v2016_v6 = vsub.f32 %v4667_v51, %v1986_v54  ;;  %v2021_v0 = vsub.f32 %v4673_v33, %v2001_v44  ;;  %4051 = vpow2.f32 %v2038_v48  ;;  %2072 = vadd.xlane.f32.xlu1 %v2071_v7 }
 0x4ca   : > { %v4734_v18 = vpop.eup %4043  ;;  %v2040_v15 = vmul.f32 1.442695, %v2016_v6  ;;  %v2050_v22 = vmul.f32 1.442695, %v2021_v0 }
 0x4cb   : > { %v1992_v31 = vpop.xlane.xlu0 %1991  ;;  %v1995_v23 = vpop.xlane.xlu1 %1994  ;;  %v2065_v51 = vsel %vm1542_vm2, %v4734_v18, 0.0 }
 0x4cc   : > { %4053 = vpow2.f32 %v2040_v15  ;;  %v2019_v26 = vsub.f32 %v4677_v19, %v1995_v23  ;;  %2066 = vadd.xlane.f32.xlu1 %v2065_v51  ;;  %v2018_v14 = vsub.f32 %v4675_v40, %v1992_v31 }
 0x4cd   : > { %4055 = vpow2.f32 %v2050_v22 }
 0x4ce   : > { %v4739_v33 = vpop.eup %4045  ;;  %4057 = vpow2.f32 %v2036_v34  ;;  %v2046_v57 = vmul.f32 1.442695, %v2019_v26  ;;  %v2044_v40 = vmul.f32 1.442695, %v2018_v14 }
 0x4cf   : > { %v4742_v38 = vpop.eup %4047  ;;  %v1998_v8 = vpop.xlane.xlu0 %1997  ;;  %v2068_v39 = vsel %vm1542_vm2, %v4739_v33, 0.0 }
 0x4d0   : > { %v2192_v28 = vpop.permute.xlu1 %2191  ;;  %v4746_v32 = vpop.eup %4049  ;;  %v2020_v19 = vsub.f32 %v4683_v45, %v1998_v8  ;;  %2069 = vadd.xlane.f32.xlu0 %v2068_v39  ;;  %v2083_v46 = vsel %vm1542_vm2, %v4742_v38, 0.0  ;;  %4059 = vpow2.f32 %v2046_v57 }
 0x4d1   : > { %3924 = vmatpush3.bf16.msra.mxu1 %v2192_v28  ;;  %2084 = vadd.xlane.f32.xlu1 %v2083_v46  ;;  %v2062_v60 = vsel %vm1542_vm2, %v4746_v32, 0.0 }
 0x4d2   : > { %3935 = vmatprep.subr.bf16.mxu1 %v4109_v52  ;;  %v2048_v30 = vmul.f32 1.442695, %v2020_v19  ;;  %v4752_v58 = vpop.eup %4051 }
 0x4d3   : > { %v2004_v59 = vpop.xlane.xlu0 %2003  ;;  %v2077_v9 = vsel %vm1542_vm2, %v4752_v58, 0.0 }
 0x4d4   : > { %4061 = vpow2.f32 %v2048_v30  ;;  %v2022_v45 = vsub.f32 %v4689_v13, %v2004_v59  ;;  %2063 = vadd.xlane.f32.xlu0 %v2062_v60  ;;  %v2239_v48 = vpop.permute.xlu1 %2238 }
 0x4d5   : > { %2078 = vadd.xlane.f32.xlu1 %v2077_v9  ;;  %4063 = vpow2.f32 %v2044_v40 }
 0x4d6   : > { %v4759_v61 = vpop.eup %4053  ;;  %v2052_v43 = vmul.f32 1.442695, %v2022_v45 }
 0x4d7   : > { %v4761_v35 = vpop.eup %4055  ;;  %v2145_v47 = vpop.permute.xlu0 %2144  ;;  %v2080_v21 = vsel %vm1542_vm2, %v4759_v61, 0.0 }
 0x4d8   : > { %v4765_v63 = vpop.eup %4057  ;;  %2081 = vadd.xlane.f32.xlu0 %v2080_v21  ;;  %3918 = vmatpush3.bf16.msra.mxu0 %v2145_v47  ;;  %v2095_v13 = vsel %vm1542_vm2, %v4761_v35, 0.0  ;;  %4065 = vpow2.f32 %v2052_v43  ;;  %v4790_v54 = vpop.permute.xlu1 %2285 }
 0x4d9   : > { %2096 = vadd.xlane.f32.xlu1 %v2095_v13  ;;  %3929 = vmatprep.subr.bf16.mxu0 %v4109_v52  ;;  %v2074_v10 = vsel %vm1542_vm2, %v4765_v63, 0.0 }
 0x4da   : > { %v4770_v37 = vpop.eup %4059 }
 0x4db   : > { %v2089_v42 = vsel %vm1542_vm2, %v4770_v37, 0.0  ;;  %v2333_v15 = vpop.permute.xlu0 %2332 }
 0x4dc   : > { %2075 = vadd.xlane.f32.xlu0 %v2074_v10 }
 0x4dd   : > { %2090 = vadd.xlane.f32.xlu1 %v2089_v42 }
 0x4de   : > { %v4776_v49 = vpop.eup %4061 }
 0x4df   : > { %v2092_v1 = vsel %vm1542_vm2, %v4776_v49, 0.0  ;;  %v4780_v25 = vpop.eup %4063 }
 0x4e0   : > { %2093 = vadd.xlane.f32.xlu0 %v2092_v1  ;;  %v2086_v62 = vsel %vm1542_vm2, %v4780_v25, 0.0 }
 0x4e2   : > { %v4784_v53 = vpop.eup %4065 }
 0x4e3   : > { %v2098_v20 = vsel %vm1542_vm2, %v4784_v53, 0.0 }
 0x4e4   : > { %2087 = vadd.xlane.f32.xlu0 %v2086_v62 }
 0x4e8   : > { %2099 = vadd.xlane.f32.xlu0 %v2098_v20 }
 0x4fe   : > { %2426 = vrot.lane.b32.xlu0 %v4551_v55, %s4115_s13 }
 0x508   : > { %v2007_v44 = vpop.xlane.xlu1 %2006 }
 0x509   : > { %v2023_v6 = vsub.f32 %v4691_v56, %v2007_v44 }
 0x50b   : > { %v2054_v0 = vmul.f32 1.442695, %v2023_v6 }
 0x50c   : > { %v4799_v22 = vpop.permute.xlu1 %2379 }
 0x50d   : > { %4067 = vpow2.f32 %v2054_v0 }
 0x517   : > { %v4793_v7 = vpop.eup %4067 }
 0x518   : > { %v2101_v34 = vsel %vm1542_vm2, %v4793_v7, 0.0 }
 0x519   : > { %2102 = vadd.xlane.f32.xlu1 %v2101_v34 }
 0x52a   : > { %2473 = vrot.lane.b32.xlu1 %v4561_v29, %s4115_s13 }
 0x54d   : > { %v2058_v55 = vpop.xlane.xlu0 %2057 }
 0x54e   : > { %4069 = vrcp.f32 %v2058_v55 }
 0x54f   : > { %v2061_v31 = vpop.xlane.xlu1 %2060 }
 0x550   : > { %4071 = vrcp.f32 %v2061_v31 }
 0x555   : > { %v2073_v23 = vpop.xlane.xlu1 %2072 }
 0x556   : > { %4073 = vrcp.f32 %v2073_v23 }
 0x558   : > { %v4070_v56 = vpop.eup %4069 }
 0x559   : > { %v2067_v51 = vpop.xlane.xlu1 %2066  ;;  %v2120_v14 = vmul.f32 %v4070_v56, %v4715_v27 }
 0x55a   : > { %v4072_v26 = vpop.eup %4071 }
 0x55b   : > { %v2121_v57 = vmul.f32 %v4072_v26, %v4720_v36 }
 0x55d   : > { %v2070_v8 = vpop.xlane.xlu0 %2069  ;;  %v2136_v39 = vpack.c.bf16 %v2121_v57, %v2120_v14 }
 0x55e   : > { %4075 = vrcp.f32 %v2070_v8  ;;  %v2085_v29 = vpop.xlane.xlu1 %2084 }
 0x55f   : > { %3920 = vmatmul.mubr.msk.bf16.vlgmr.msra.gmra.mrb[16].mxu0 %vm1542_vm2, %v2136_v39  ;;  %4077 = vrcp.f32 %v2067_v51 }
 0x560   : > { %3930 = vmatpush3.bf16.msra.mxu0 %v2239_v48  ;;  %3931 = vmatprep.mubr.msk.bf16.mxu0 %vm4114_vm1, %v4109_v52  ;;  %v4074_v36 = vpop.eup %4073 }
 0x561   : > { %v2064_v28 = vpop.xlane.xlu0 %2063  ;;  %3941 = vmatprep.subr.bf16.mxu0 %v4109_v52  ;;  %v2125_v30 = vmul.f32 %v4074_v36, %v4728_v24 }
 0x562   : > { %4079 = vrcp.f32 %v2064_v28  ;;  %v2079_v19 = vpop.xlane.xlu1 %2078 }
 0x563   : > { %4081 = vrcp.f32 %v2085_v29 }
 0x565   : > { %v2082_v27 = vpop.xlane.xlu0 %2081 }
 0x566   : > { %4083 = vrcp.f32 %v2082_v27  ;;  %v2097_v46 = vpop.xlane.xlu1 %2096 }
 0x567   : > { %4085 = vrcp.f32 %v2079_v19 }
 0x568   : > { %v4076_v40 = vpop.eup %4075 }
 0x569   : > { %v2124_v59 = vmul.f32 %v4076_v40, %v4739_v33  ;;  %v2076_v60 = vpop.xlane.xlu0 %2075  ;;  %v4078_v45 = vpop.eup %4077 }
 0x56a   : > { %4087 = vrcp.f32 %v2076_v60  ;;  %v2123_v47 = vmul.f32 %v4078_v45, %v4734_v18  ;;  %v2091_v10 = vpop.xlane.xlu1 %2090 }
 0x56b   : > { %v2138_v9 = vpack.c.bf16 %v2125_v30, %v2124_v59  ;;  %4089 = vrcp.f32 %v2097_v46 }
 0x56c   : > { %v4080_v43 = vpop.eup %4079 }
 0x56d   : > { %v2122_v21 = vmul.f32 %v4080_v43, %v4746_v32  ;;  %3932 = vmatmul.mubr.msk.bf16.vlgmr.msra.gmra.mrb[20].mxu0 %vm1542_vm2, %v2138_v9  ;;  %v2094_v13 = vpop.xlane.xlu0 %2093  ;;  %v4082_v42 = vpop.eup %4081 }
 0x56e   : > { %3942 = vmatpush3.bf16.msra.mxu0 %v2333_v15  ;;  %4091 = vrcp.f32 %v2094_v13  ;;  %3943 = vmatprep.mubr.msk.bf16.mxu0 %vm4114_vm1, %v4109_v52  ;;  %v2129_v1 = vmul.f32 %v4082_v42, %v4742_v38 }
 0x56f   : > { %v2137_v24 = vpack.c.bf16 %v2123_v47, %v2122_v21  ;;  %3953 = vmatprep.subr.bf16.mxu0 %v4109_v52  ;;  %4093 = vrcp.f32 %v2091_v10 }
 0x570   : > { %v4084_v33 = vpop.eup %4083 }
 0x571   : > { %v2128_v18 = vmul.f32 %v4084_v33, %v4759_v61  ;;  %3926 = vmatmul.mubr.msk.bf16.vlgmr.msra.gmra.mrb[24].mxu1 %vm1542_vm2, %v2137_v24  ;;  %v2088_v32 = vpop.xlane.xlu0 %2087  ;;  %v4086_v62 = vpop.eup %4085 }
 0x572   : > { %3936 = vmatpush3.bf16.msra.mxu1 %v4790_v54  ;;  %4095 = vrcp.f32 %v2088_v32  ;;  %3937 = vmatprep.mubr.msk.bf16.mxu1 %vm4114_vm1, %v4109_v52  ;;  %v2127_v44 = vmul.f32 %v4086_v62, %v4752_v58 }
 0x573   : > { %v2140_v20 = vpack.c.bf16 %v2129_v1, %v2128_v18  ;;  %3947 = vmatprep.subr.bf16.mxu1 %v4109_v52 }
 0x574   : > { %v4088_v48 = vpop.eup %4087 }
 0x575   : > { %v2126_v38 = vmul.f32 %v4088_v48, %v4765_v63  ;;  %3944 = vmatmul.mubr.msk.bf16.vlgmr.msra.gmra.mrb[24].mxu0 %vm1542_vm2, %v2140_v20  ;;  %v2100_v61 = vpop.xlane.xlu0 %2099  ;;  %v4090_v6 = vpop.eup %4089 }
 0x576   : > { %3955 = vmatprep.mubr.msk.bf16.mxu0 %vm4114_vm1, %v4109_v52  ;;  %v2133_v34 = vmul.f32 %v4090_v6, %v4761_v35  ;;  %4097 = vrcp.f32 %v2100_v61 }
 0x577   : > { %v2139_v54 = vpack.c.bf16 %v2127_v44, %v2126_v38 }
 0x578   : > { %v4092_v0 = vpop.eup %4091 }
 0x579   : > { %v2132_v15 = vmul.f32 %v4092_v0, %v4776_v49  ;;  %3938 = vmatmul.mubr.msk.bf16.vlgmr.msra.gmra.mrb[28].mxu1 %vm1542_vm2, %v2139_v54  ;;  %v2427_v55 = vpop.permute.xlu0 %2426  ;;  %v4094_v31 = vpop.eup %4093 }
 0x57a   : > { %3948 = vmatpush3.bf16.msra.mxu1 %v4799_v22  ;;  %3954 = vmatpush3.bf16.msra.mxu0 %v2427_v55  ;;  %v2131_v23 = vmul.f32 %v4094_v31, %v4770_v37 }
 0x57b   : > { %v2142_v58 = vpack.c.bf16 %v2133_v34, %v2132_v15  ;;  %3949 = vmatprep.mubr.msk.bf16.mxu1 %vm4114_vm1, %v4109_v52  ;;  %3959 = vmatprep.subr.bf16.mxu1 %v4109_v52 }
 0x57c   : > { %v4096_v63 = vpop.eup %4095 }
 0x57d   : > { %v2130_v35 = vmul.f32 %v4096_v63, %v4780_v25  ;;  %3956 = vmatmul.mubr.msk.bf16.vlgmr.msra.gmra.mrb[28].mxu0 %vm1542_vm2, %v2142_v58 }
 0x57f   : > { %v2141_v49 = vpack.c.bf16 %v2131_v23, %v2130_v35 }
 0x580   : > { %v4098_v26 = vpop.eup %4097 }
 0x581   : > { %3950 = vmatmul.mubr.msk.bf16.vlgmr.msra.gmra.mrb[32].mxu1 %vm1542_vm2, %v2141_v49  ;;  %v2134_v14 = vmul.f32 %v4098_v26, %v4784_v53 }
 0x582   : > { %3961 = vmatprep.mubr.msk.bf16.mxu1 %vm4114_vm1, %v4109_v52 }
 0x5a6   : > { %v2103_v22 = vpop.xlane.xlu1 %2102 }
 0x5a7   : > { %4099 = vrcp.f32 %v2103_v22 }
 0x5aa   : > { %v2474_v56 = vpop.permute.xlu1 %2473 }
 0x5ab   : > { %3960 = vmatpush3.bf16.msra.mxu1 %v2474_v56 }
 0x5b1   : > { %v4100_v51 = vpop.eup %4099 }
 0x5b2   : > { %v2135_v37 = vmul.f32 %v4100_v51, %v4793_v7 }
 0x5b4   : > { %v2143_v25 = vpack.c.bf16 %v2135_v37, %v2134_v14 }
 0x5b6   : > { %3962 = vmatmul.mubr.msk.bf16.vlgmr.msra.gmra.mrb[36].mxu1 %vm1542_vm2, %v2143_v25 }
 0x632   : > { %v2184_v57 = vpop.f32.mrb[16].mxu0 }
 0x633   : > { %v3921_v8 = vpop.f32.mrb[17].mxu0  ;;  %v2520_v40 = vcombine.high %v2184_v57, %v4109_v52  ;;  %v2527_v9 = vrot.slane %v2184_v57, %v4287_v41 }
 0x634   : > { %v2187_v39 = vpop.f32.mrb[18].mxu0 }
 0x635   : > { %v3922_v29 = vpop.f32.mrb[19].mxu0  ;;  %v2586_v59 = vcombine.high %v2187_v39, %v4109_v52  ;;  %v2534_v43 = vrot.slane %v2520_v40, %v4287_v41  ;;  %v2593_v10 = vrot.slane %v2187_v39, %v4287_v41 }
 0x637   : > { %v2600_v42 = vrot.slane %v2586_v59, %v4287_v41 }
 0x640   : > { %v2278_v28 = vpop.f32.mrb[20].mxu0 }
 0x641   : > { %v3933_v19 = vpop.f32.mrb[21].mxu0  ;;  %v2784_v53 = vcombine.high %v2278_v28, %v4109_v52  ;;  %v4853_v24 = vrot.slane %v2278_v28, %v4287_v41 }
 0x642   : > { %v2281_v27 = vpop.f32.mrb[22].mxu0 }
 0x643   : > { %v3934_v36 = vpop.f32.mrb[23].mxu0  ;;  %v4856_v33 = vrot.slane %v2784_v53, %v4287_v41  ;;  %v2850_v44 = vcombine.high %v2281_v27, %v4109_v52  ;;  %v4862_v38 = vrot.slane %v2281_v27, %v4287_v41 }
 0x644   : > { %v2231_v46 = vpop.f32.mrb[24].mxu1 }
 0x645   : > { %v3927_v30 = vpop.f32.mrb[25].mxu1  ;;  %v2652_v61 = vcombine.high %v2231_v46, %v4109_v52  ;;  %v2864_v29 = vrot.slane %v2850_v44, %v4287_v41  ;;  %v4880_v28 = vrot.slane %v2231_v46, %v4287_v41 }
 0x646   : > { %v2234_v7 = vpop.f32.mrb[26].mxu1 }
 0x647   : > { %v3928_v60 = vpop.f32.mrb[27].mxu1  ;;  %v2718_v58 = vcombine.high %v2234_v7, %v4109_v52 }
 0x648   : > { %v2372_v45 = vpop.f32.mrb[24].mxu0 }
 0x649   : > { %v2535_v47 = vcombine.high %v2372_v45, %v4109_v52  ;;  %v2542_v21 = vrot.slane %v2372_v45, %v4287_v41  ;;  %v3945_v13 = vpop.f32.mrb[25].mxu0  ;;  %v4885_v45 = vrot.slane %v2652_v61, %v4287_v41 }
 0x64a   : > { %v2375_v1 = vpop.f32.mrb[26].mxu0 }
 0x64b   : > { %v2549_v18 = vrot.slane %v2535_v47, %v4287_v41  ;;  %v2550_v32 = vcombine.low %v2527_v9, %v2542_v21  ;;  %v2551_v62 = vcombine.high %v2527_v9, %v2542_v21  ;;  %v2601_v20 = vcombine.high %v2375_v1, %v4109_v52  ;;  %v3946_v48 = vpop.f32.mrb[27].mxu0 }
 0x64c   : > { %v2608_v6 = vrot.slane %v2375_v1, %v4287_v41  ;;  %v4866_v54 = vpop.f32.mrb[28].mxu1  ;;  %v4888_v9 = vrot.slane %v2234_v7, %v4287_v41 }
 0x64d   : > { %v2558_v0 = vrot.slane %v2550_v32, %v4297_v50  ;;  %v2565_v34 = vrot.slane %v2551_v62, %v4297_v50  ;;  %v2566_v15 = vcombine.low %v2534_v43, %v2549_v18  ;;  %v2567_v55 = vcombine.high %v2534_v43, %v2549_v18  ;;  %v3939_v31 = vpop.f32.mrb[29].mxu1 }
 0x64e   : > { %v2615_v63 = vrot.slane %v2601_v20, %v4287_v41  ;;  %v2616_v23 = vcombine.low %v2593_v10, %v2608_v6  ;;  %v2617_v35 = vcombine.high %v2593_v10, %v2608_v6  ;;  %v4872_v49 = vpop.f32.mrb[30].mxu1  ;;  %v4891_v43 = vrot.slane %v2718_v58, %v4287_v41 }
 0x64f   : > { %v2574_v22 = vrot.slane %v2566_v15, %v4297_v50  ;;  %v2581_v56 = vrot.slane %v2567_v55, %v4297_v50  ;;  %v3048_v26 = vcombine.low %v2558_v0, %v2565_v34  ;;  %v3751_v51 = vcombine.high %v2558_v0, %v2565_v34  ;;  %v3940_v14 = vpop.f32.mrb[31].mxu1 }
 0x650   : > { %v2624_v37 = vrot.slane %v2616_v23, %v4297_v50  ;;  %v2631_v25 = vrot.slane %v2617_v35, %v4297_v50  ;;  %v2632_v57 = vcombine.low %v2600_v42, %v2615_v63  ;;  %v2633_v8 = vcombine.high %v2600_v42, %v2615_v63  ;;  %v2466_v39 = vpop.f32.mrb[28].mxu0 }
 0x651   : > { %v3064_v19 = vcombine.low %v2574_v22, %v2581_v56  ;;  %v3752_v27 = vcombine.high %v2574_v22, %v2581_v56  ;;  %v3957_v36 = vpop.f32.mrb[29].mxu0  ;;  %v4894_v46 = vrot.slane %v3048_v26, %v4287_v41  ;;  %v4897_v21 = vrot.slane %v3751_v51, %v4287_v41 }
 0x652   : > { %v2640_v40 = vrot.slane %v2632_v57, %v4297_v50  ;;  %v2647_v30 = vrot.slane %v2633_v8, %v4297_v50  ;;  %v3098_v59 = vcombine.low %v2624_v37, %v2631_v25  ;;  %v3753_v53 = vcombine.high %v2624_v37, %v2631_v25  ;;  %v2469_v60 = vpop.f32.mrb[30].mxu0 }
 0x653   : > { %v3958_v47 = vpop.f32.mrb[31].mxu0  ;;  %v4900_v13 = vrot.slane %v3064_v19, %v4287_v41  ;;  %v4903_v18 = vrot.slane %v3752_v27, %v4287_v41  ;;  %v2799_v32 = vcombine.high %v2466_v39, %v4109_v52  ;;  %v2806_v62 = vrot.slane %v2466_v39, %v4287_v41 }
 0x654   : > { %v3114_v10 = vcombine.low %v2640_v40, %v2647_v30  ;;  %v3754_v42 = vcombine.high %v2640_v40, %v2647_v30  ;;  %v2419_v1 = vpop.f32.mrb[32].mxu1  ;;  %v4906_v7 = vrot.slane %v3098_v59, %v4287_v41  ;;  %v4911_v48 = vrot.slane %v3753_v53, %v4287_v41 }
 0x655   : > { %v3951_v20 = vpop.f32.mrb[33].mxu1  ;;  %v2865_v61 = vcombine.high %v2469_v60, %v4109_v52  ;;  %v2872_v6 = vrot.slane %v2469_v60, %v4287_v41  ;;  %v2813_v15 = vrot.slane %v2799_v32, %v4287_v41  ;;  %v2814_v55 = vcombine.low %v4853_v24, %v2806_v62 }
 0x656   : > { %v4914_v44 = vrot.slane %v3114_v10, %v4287_v41  ;;  %v2422_v0 = vpop.f32.mrb[34].mxu1  ;;  %v4919_v34 = vrot.slane %v3754_v42, %v4287_v41  ;;  %v2815_v31 = vcombine.high %v4853_v24, %v2806_v62  ;;  %v2667_v22 = vcombine.high %v2419_v1, %v4109_v52 }
 0x657   : > { %v3952_v58 = vpop.f32.mrb[35].mxu1  ;;  %v2879_v63 = vrot.slane %v2865_v61, %v4287_v41  ;;  %v2880_v23 = vcombine.low %v4862_v38, %v2872_v6  ;;  %v2881_v35 = vcombine.high %v4862_v38, %v2872_v6  ;;  %v2822_v56 = vrot.slane %v2814_v55, %v4297_v50 }
 0x658   : > { %v2829_v26 = vrot.slane %v2815_v31, %v4297_v50  ;;  %v2830_v51 = vcombine.low %v4856_v33, %v2813_v15  ;;  %v2831_v14 = vcombine.high %v4856_v33, %v2813_v15  ;;  %v2674_v20 = vrot.slane %v2419_v1, %v4287_v41 }
 0x659   : > { %v2888_v37 = vrot.slane %v2880_v23, %v4297_v50  ;;  %v2895_v24 = vrot.slane %v2881_v35, %v4297_v50  ;;  %v2896_v25 = vcombine.low %v2864_v29, %v2879_v63  ;;  %v2897_v57 = vcombine.high %v2864_v29, %v2879_v63 }
 0x65a   : > { %v2838_v8 = vrot.slane %v2830_v51, %v4297_v50  ;;  %v2845_v38 = vrot.slane %v2831_v14, %v4297_v50  ;;  %v3248_v39 = vcombine.low %v2822_v56, %v2829_v26  ;;  %v3759_v19 = vcombine.high %v2822_v56, %v2829_v26 }
 0x65b   : > { %v2904_v27 = vrot.slane %v2896_v25, %v4297_v50  ;;  %v2911_v36 = vrot.slane %v2897_v57, %v4297_v50  ;;  %v3298_v40 = vcombine.low %v2888_v37, %v2895_v24  ;;  %v3761_v30 = vcombine.high %v2888_v37, %v2895_v24 }
 0x65c   : > { %v3255_v33 = vrot.slane %v3248_v39, %v4287_v41  ;;  %v3263_v59 = vrot.slane %v3759_v19, %v4287_v41  ;;  %v3264_v53 = vcombine.low %v2838_v8, %v2845_v38  ;;  %v3760_v60 = vcombine.high %v2838_v8, %v2845_v38 }
 0x65d   : > { %v4941_v29 = vrot.slane %v3298_v40, %v4287_v41  ;;  %v4944_v47 = vrot.slane %v3761_v30, %v4287_v41  ;;  %v3314_v10 = vcombine.low %v2904_v27, %v2911_v36  ;;  %v3762_v42 = vcombine.high %v2904_v27, %v2911_v36 }
 0x65e   : > { %v3271_v32 = vrot.slane %v3264_v53, %v4287_v41  ;;  %v3279_v62 = vrot.slane %v3760_v60, %v4287_v41  ;;  %v2681_v61 = vrot.slane %v2667_v22, %v4287_v41  ;;  %v2733_v55 = vcombine.high %v2422_v0, %v4109_v52 }
 0x65f   : > { %v3321_v6 = vrot.slane %v3314_v10, %v4287_v41  ;;  %v3329_v15 = vrot.slane %v3762_v42, %v4287_v41  ;;  %v2740_v31 = vrot.slane %v2422_v0, %v4287_v41  ;;  %v2682_v58 = vcombine.low %v4880_v28, %v2674_v20 }
 0x660   : > { %v2683_v63 = vcombine.high %v4880_v28, %v2674_v20  ;;  %v2698_v23 = vcombine.low %v4885_v45, %v2681_v61  ;;  %v2699_v35 = vcombine.high %v4885_v45, %v2681_v61  ;;  %v2747_v1 = vrot.slane %v2733_v55, %v4287_v41 }
 0x661   : > { %v2748_v22 = vcombine.low %v4888_v9, %v2740_v31  ;;  %v2749_v56 = vcombine.high %v4888_v9, %v2740_v31  ;;  %v3080_v26 = vcombine.low %v4894_v46, %v4897_v21  ;;  %v2690_v51 = vrot.slane %v2682_v58, %v4297_v50 }
 0x662   : > { %v2697_v0 = vrot.slane %v2683_v63, %v4297_v50  ;;  %v2706_v14 = vrot.slane %v2698_v23, %v4297_v50  ;;  %v2713_v28 = vrot.slane %v2699_v35, %v4297_v50  ;;  %v2764_v24 = vcombine.low %v4891_v43, %v2747_v1 }
 0x663   : > { %v2756_v37 = vrot.slane %v2748_v22, %v4297_v50  ;;  %v2763_v45 = vrot.slane %v2749_v56, %v4297_v50  ;;  %v2765_v25 = vcombine.high %v4891_v43, %v2747_v1  ;;  %v4980_v42 = vrot.slane %v3080_v26, %v4297_v50 }
 0x664   : > { %v3148_v9 = vcombine.low %v2690_v51, %v2697_v0  ;;  %v3755_v57 = vcombine.high %v2690_v51, %v2697_v0  ;;  %v3164_v8 = vcombine.low %v2706_v14, %v2713_v28  ;;  %v3756_v46 = vcombine.high %v2706_v14, %v2713_v28 }
 0x665   : > { %v2772_v21 = vrot.slane %v2764_v24, %v4297_v50  ;;  %v2779_v38 = vrot.slane %v2765_v25, %v4297_v50  ;;  %v3198_v39 = vcombine.low %v2756_v37, %v2763_v45  ;;  %v3757_v19 = vcombine.high %v2756_v37, %v2763_v45 }
 0x666   : > { %v3155_v27 = vrot.slane %v3148_v9, %v4287_v41  ;;  %v3163_v36 = vrot.slane %v3755_v57, %v4287_v41  ;;  %v3171_v40 = vrot.slane %v3164_v8, %v4287_v41  ;;  %v3179_v30 = vrot.slane %v3756_v46, %v4287_v41 }
 0x667   : > { %v3205_v43 = vrot.slane %v3198_v39, %v4287_v41  ;;  %v3213_v53 = vrot.slane %v3757_v19, %v4287_v41  ;;  %v3214_v60 = vcombine.low %v2772_v21, %v2779_v38  ;;  %v3758_v10 = vcombine.high %v2772_v21, %v2779_v38 }
 0x668   : > { %v3088_v20 = vcombine.low %v4900_v13, %v4903_v18  ;;  %v3130_v61 = vcombine.low %v4906_v7, %v4911_v48  ;;  %v3138_v55 = vcombine.low %v4914_v44, %v4919_v34  ;;  %v3280_v63 = vcombine.low %v3255_v33, %v3263_v59  ;;  %v4019_v7 = vld [vmem:[%s5167_s5] sm:$0xff]  }
 0x669   : > { %v3221_v31 = vrot.slane %v3214_v60, %v4287_v41  ;;  %v3229_v58 = vrot.slane %v3758_v10, %v4287_v41  ;;  %v3288_v23 = vcombine.low %v3271_v32, %v3279_v62  ;;  %v3330_v18 = vcombine.low %v4941_v29, %v4944_v47  ;;  %3965 = vmatprep.subr.bf16.mxu0 %v4019_v7  ;;  %v4020_v62 = vld [vmem:[%s5167_s5 + $0x8] sm:$0xff]  }
 0x66a   : > { %v4991_v35 = vrot.slane %v3088_v20, %v4297_v50  ;;  %v4994_v1 = vrot.slane %v3130_v61, %v4297_v50  ;;  %v4997_v13 = vrot.slane %v3138_v55, %v4297_v50  ;;  %v5005_v48 = vrot.slane %v3280_v63, %v4297_v50  ;;  %3966 = vmatpush3.bf16.msra.mxu0 %v4019_v7 }
 0x66b   : > { %v5008_v44 = vrot.slane %v3288_v23, %v4297_v50  ;;  %v3338_v34 = vcombine.low %v3321_v6, %v3329_v15  ;;  %v3180_v33 = vcombine.low %v3155_v27, %v3163_v36  ;;  %v5024_v15 = vrot.slane %v3330_v18, %v4297_v50  ;;  %3967 = vmatprep.subr.bf16.mxu0 %v4020_v62 }
 0x66c   : > { %v3096_v59 = vcombine.low %v4980_v42, %v4991_v35  ;;  %v3097_v32 = vcombine.high %v4980_v42, %v4991_v35  ;;  %v3147_v29 = vcombine.high %v4994_v1, %v4997_v13  ;;  %v3146_v47 = vcombine.low %v4994_v1, %v4997_v13 }
 0x66d   : > { %v3297_v6 = vcombine.high %v5005_v48, %v5008_v44  ;;  %v5027_v22 = vrot.slane %v3338_v34, %v4297_v50  ;;  %v3188_v26 = vcombine.low %v3171_v40, %v3179_v30  ;;  %v3230_v51 = vcombine.low %v3205_v43, %v3213_v53 }
 0x66e   : > { %v3997_v56 = vpack.i.bf16 %v3147_v29, %v3097_v32  ;;  %v3238_v0 = vcombine.low %v3221_v31, %v3229_v58  ;;  %v3296_v28 = vcombine.low %v5005_v48, %v5008_v44  ;;  %v5037_v45 = vrot.slane %v3180_v33, %v4297_v50  ;;  %3968 = vmatpush3.bf16.msra.mxu0 %v4020_v62 }
 0x66f   : > { %v3347_v14 = vcombine.high %v5024_v15, %v5027_v22  ;;  %v3346_v37 = vcombine.low %v5024_v15, %v5027_v22  ;;  %v5040_v24 = vrot.slane %v3188_v26, %v4297_v50  ;;  %v5043_v25 = vrot.slane %v3230_v51, %v4297_v50 }
 0x670   : > { %3998 = vrot.lane.b32.xlu0 %v3997_v56, %s4116_s18  ;;  %v5046_v9 = vrot.slane %v3238_v0, %v4297_v50  ;;  %v2916_v19 = vcombine.high %v4866_v54, %v4109_v52  ;;  %v2923_v36 = vrot.slane %v4866_v54, %v4287_v41  ;;  %v2982_v60 = vcombine.high %v4872_v49, %v4109_v52 }
 0x671   : > { %v4007_v57 = vpack.i.bf16 %v3347_v14, %v3297_v6  ;;  %v3196_v8 = vcombine.low %v5037_v45, %v5040_v24  ;;  %v3197_v46 = vcombine.high %v5037_v45, %v5040_v24  ;;  %v2989_v54 = vrot.slane %v4872_v49, %v4287_v41  ;;  %v3767_v24 = vld [vmem:[%s5168_s6] ss:$0 sm:$0xff] }
 0x672   : > { %v3247_v21 = vcombine.high %v5043_v25, %v5046_v9  ;;  %v3246_v38 = vcombine.low %v5043_v25, %v5046_v9  ;;  %v2930_v53 = vrot.slane %v2916_v19, %v4287_v41  ;;  %v2996_v33 = vrot.slane %v2982_v60, %v4287_v41 }
 0x674   : > { %4008 = vrot.lane.b32.xlu0 %v4007_v57, %s4116_s18  ;;  %v4002_v39 = vpack.i.bf16 %v3247_v21, %v3197_v46 }
 0x676   : > { %4003 = vrot.lane.b32.xlu1 %v4002_v39, %s4116_s18 }
 0x689   : > { %v2513_v27 = vpop.f32.mrb[36].mxu1 }
 0x68a   : > { %v2931_v40 = vcombine.high %v2513_v27, %v4109_v52  ;;  %v2938_v30 = vrot.slane %v2513_v27, %v4287_v41  ;;  %v3963_v43 = vpop.f32.mrb[37].mxu1 }
 0x68b   : > { %v2516_v10 = vpop.f32.mrb[38].mxu1 }
 0x68c   : > { %v2945_v20 = vrot.slane %v2931_v40, %v4287_v41  ;;  %v2946_v61 = vcombine.low %v2923_v36, %v2938_v30  ;;  %v2947_v55 = vcombine.high %v2923_v36, %v2938_v30  ;;  %v2997_v31 = vcombine.high %v2516_v10, %v4109_v52  ;;  %v3964_v58 = vpop.f32.mrb[39].mxu1 }
 0x68d   : > { %v3004_v63 = vrot.slane %v2516_v10, %v4287_v41 }
 0x68e   : > { %v2954_v23 = vrot.slane %v2946_v61, %v4297_v50  ;;  %v2961_v18 = vrot.slane %v2947_v55, %v4297_v50  ;;  %v2962_v7 = vcombine.low %v2930_v53, %v2945_v20  ;;  %v2963_v34 = vcombine.high %v2930_v53, %v2945_v20 }
 0x68f   : > { %v3011_v32 = vrot.slane %v2997_v31, %v4287_v41  ;;  %v3012_v29 = vcombine.low %v2989_v54, %v3004_v63  ;;  %v3013_v62 = vcombine.high %v2989_v54, %v3004_v63 }
 0x690   : > { %v2970_v52 = vrot.slane %v2962_v7, %v4297_v50  ;;  %v2977_v6 = vrot.slane %v2963_v34, %v4297_v50  ;;  %v3348_v56 = vcombine.low %v2954_v23, %v2961_v18  ;;  %v3763_v49 = vcombine.high %v2954_v23, %v2961_v18 }
 0x691   : > { %v3020_v26 = vrot.slane %v3012_v29, %v4297_v50  ;;  %v3027_v51 = vrot.slane %v3013_v62, %v4297_v50  ;;  %v3028_v0 = vcombine.low %v2996_v33, %v3011_v32  ;;  %v3029_v14 = vcombine.high %v2996_v33, %v3011_v32 }
 0x692   : > { %v3355_v57 = vrot.slane %v3348_v56, %v4287_v41  ;;  %v3363_v46 = vrot.slane %v3763_v49, %v4287_v41  ;;  %v3364_v21 = vcombine.low %v2970_v52, %v2977_v6  ;;  %v3764_v39 = vcombine.high %v2970_v52, %v2977_v6 }
 0x693   : > { %v3036_v19 = vrot.slane %v3028_v0, %v4297_v50  ;;  %v3043_v27 = vrot.slane %v3029_v14, %v4297_v50  ;;  %v3398_v36 = vcombine.low %v3020_v26, %v3027_v51  ;;  %v3765_v40 = vcombine.high %v3020_v26, %v3027_v51 }
 0x694   : > { %v3371_v30 = vrot.slane %v3364_v21, %v4287_v41  ;;  %v3379_v43 = vrot.slane %v3764_v39, %v4287_v41  ;;  %v3380_v53 = vcombine.low %v3355_v57, %v3363_v46 }
 0x695   : > { %v3405_v60 = vrot.slane %v3398_v36, %v4287_v41  ;;  %v3413_v10 = vrot.slane %v3765_v40, %v4287_v41  ;;  %v3414_v20 = vcombine.low %v3036_v19, %v3043_v27  ;;  %v3766_v61 = vcombine.high %v3036_v19, %v3043_v27 }
 0x696   : > { %v3388_v55 = vcombine.low %v3371_v30, %v3379_v43  ;;  %v3387_v63 = vrot.slane %v3380_v53, %v4297_v50 }
 0x697   : > { %v3421_v31 = vrot.slane %v3414_v20, %v4287_v41  ;;  %v3429_v58 = vrot.slane %v3766_v61, %v4287_v41  ;;  %v3430_v54 = vcombine.low %v3405_v60, %v3413_v10 }
 0x698   : > { %v3395_v23 = vrot.slane %v3388_v55, %v4297_v50 }
 0x699   : > { %v3438_v18 = vcombine.low %v3421_v31, %v3429_v58  ;;  %v3437_v33 = vrot.slane %v3430_v54, %v4297_v50 }
 0x69a   : > { %v3397_v7 = vcombine.high %v3387_v63, %v3395_v23  ;;  %v3396_v34 = vcombine.low %v3387_v63, %v3395_v23 }
 0x69b   : > { %v3445_v32 = vrot.slane %v3438_v18, %v4297_v50 }
 0x69d   : > { %v3447_v29 = vcombine.high %v3437_v33, %v3445_v32  ;;  %v3446_v62 = vcombine.low %v3437_v33, %v3445_v32 }
 0x69f   : > { %v4012_v52 = vpack.i.bf16 %v3447_v29, %v3397_v7 }
 0x6a1   : > { %4013 = vrot.lane.b32.xlu1 %v4012_v52, %s4116_s18 }
 0x6e2   : > { %v3999_v6 = vpop.permute.xlu0 %3998 }
 0x6e3   : > { %v4001_v56 = vunpack.i.h.bf16 %v3999_v6  ;;  %v4000_v41 = vunpack.i.l.bf16 %v3999_v6 }
 0x6e5   : > { %v3481_v49 = vsel %vm1542_vm2, %v3146_v47, %v4001_v56  ;;  %v3480_v26 = vsel %vm1542_vm2, %v3096_v59, %v4000_v41 }
 0x6e6   : > { %v3488_v51 = vpack.c.bf16 %v3481_v49, %v3480_v26  ;;  %v4009_v50 = vpop.permute.xlu0 %4008 }
 0x6e7   : > { %v4011_v0 = vunpack.i.h.bf16 %v4009_v50  ;;  %v4010_v14 = vunpack.i.l.bf16 %v4009_v50 }
 0x6e8   : > { %3969 = vmatprep.mubr.msk.bf16.mxu0 %vm331_vm0, %v3488_v51  ;;  %v4004_v57 = vpop.permute.xlu1 %4003 }
 0x6e9   : > { %v3485_v46 = vsel %vm1542_vm2, %v3346_v37, %v4011_v0  ;;  %v3484_v1 = vsel %vm1542_vm2, %v3296_v28, %v4010_v14  ;;  %v4006_v42 = vunpack.i.h.bf16 %v4004_v57  ;;  %v4005_v35 = vunpack.i.l.bf16 %v4004_v57 }
 0x6ea   : > { %v3490_v13 = vpack.c.bf16 %v3485_v46, %v3484_v1 }
 0x6eb   : > { %v3482_v59 = vsel %vm1542_vm2, %v3196_v8, %v4005_v35  ;;  %v3483_v47 = vsel %vm1542_vm2, %v3246_v38, %v4006_v42 }
 0x6ec   : > { %v3489_v15 = vpack.c.bf16 %v3483_v47, %v3482_v59 }
 0x6ee   : > { %3970 = vmatmul.mubr.msk.bf16.vlgmr.msra.gmra.mrb[32].mxu0 %vm331_vm0, %v3489_v15 }
 0x6ef   : > { %3973 = vmatprep.mubr.msk.bf16.mxu0 %vm331_vm0, %v3490_v13 }
 0x713   : > { %v4014_v48 = vpop.permute.xlu1 %4013 }
 0x714   : > { %v4016_v44 = vunpack.i.h.bf16 %v4014_v48  ;;  %v4015_v22 = vunpack.i.l.bf16 %v4014_v48 }
 0x716   : > { %v3486_v28 = vsel %vm1542_vm2, %v3396_v34, %v4015_v22  ;;  %v3487_v37 = vsel %vm1542_vm2, %v3446_v62, %v4016_v44 }
 0x717   : > { %v3491_v45 = vpack.c.bf16 %v3487_v37, %v3486_v28 }
 0x719   : > { %3974 = vmatmul.mubr.msk.bf16.gmra.mrb[36].mxu0 %vm331_vm0, %v3491_v45 }
 0x7c1   : > { %v3971_v25 = vpop.f32.mrb[32].mxu0 }
 0x7c2   : > { %v3570_v9 = vadd.f32 %v3971_v25, %v3767_v24  ;;  %v3561_v8 = vpop.f32.mrb[33].mxu0 }
 0x7c3   : > { %v3562_v38 = vadd.f32 %v3767_v24, %v3561_v8  ;;  %v3972_v21 = vpop.f32.mrb[34].mxu0 }
 0x7c4   : > { %v3594_v39 = vadd.f32 %v4180_v3, %v3570_v9  ;;  %v3573_v19 = vadd.f32 %v3972_v21, %v3767_v24  ;;  %v3564_v27 = vpop.f32.mrb[35].mxu0 }
 0x7c5   : > { %v3592_v36 = vadd.f32 %v4178_v2, %v3562_v38  ;;  %v3565_v40 = vadd.f32 %v3767_v24, %v3564_v27 }
 0x7c6   : > { %v3595_v30 = vadd.f32 %v4184_v5, %v3573_v19  ;;  %v3788_v53 = vpack.c.bf16 %v3594_v39, %v3594_v39 }
 0x7c7   : > { %v3786_v43 = vpack.c.bf16 %v3592_v36, %v3592_v36  ;;  %v3593_v3 = vadd.f32 %v4182_v4, %v3565_v40 }
 0x7c8   : > { %3635 = vst.msk [vmem:[%s5135_s23 + $0x8] sm:$0xf] %vm3632_vm3, %v3788_v53  ;;  %v3789_v60 = vpack.c.bf16 %v3595_v30, %v3595_v30 }
 0x7c9   : > { %3633 = vst.msk [vmem:[%s5135_s23] sm:$0xf] %vm3632_vm3, %v3786_v43  ;;  %v3787_v2 = vpack.c.bf16 %v3593_v3, %v3593_v3 }
 0x7ca   : > { %3636 = vst.msk [vmem:[%s5135_s23 + $0xc] sm:$0xf] %vm3632_vm3, %v3789_v60 }
 0x7cb   : > { %3634 = vst.msk [vmem:[%s5135_s23 + $0x4] sm:$0xf] %vm3632_vm3, %v3787_v2 }
 0x7ec   : > { %v3975_v10 = vpop.f32.mrb[36].mxu0 }
 0x7ed   : > { %v3586_v20 = vadd.f32 %v3975_v10, %v3767_v24  ;;  %v3577_v61 = vpop.f32.mrb[37].mxu0 }
 0x7ee   : > { %v3578_v5 = vadd.f32 %v3767_v24, %v3577_v61  ;;  %v3976_v4 = vpop.f32.mrb[38].mxu0 }
 0x7ef   : > { %v3598_v55 = vadd.f32 %v4202_v16, %v3586_v20  ;;  %v3589_v31 = vadd.f32 %v3976_v4, %v3767_v24  ;;  %v3580_v58 = vpop.f32.mrb[39].mxu0 }
 0x7f0   : > { %v3596_v54 = vadd.f32 %v4194_v11, %v3578_v5  ;;  %v3581_v63 = vadd.f32 %v3767_v24, %v3580_v58 }
 0x7f1   : > { %v3599_v23 = vadd.f32 %v4204_v17, %v3589_v31  ;;  %v3792_v34 = vpack.c.bf16 %v3598_v55, %v3598_v55 }
 0x7f2   : > { %v3790_v18 = vpack.c.bf16 %v3596_v54, %v3596_v54  ;;  %v3597_v7 = vadd.f32 %v4196_v12, %v3581_v63 }
 0x7f3   : > { %3639 = vst.msk [vmem:[%s5135_s23 + $0x18] sm:$0xf] %vm3632_vm3, %v3792_v34  ;;  %v3793_v32 = vpack.c.bf16 %v3599_v23, %v3599_v23 }
 0x7f4   : > { %3637 = vst.msk [vmem:[%s5135_s23 + $0x10] sm:$0xf] %vm3632_vm3, %v3790_v18  ;;  %v3791_v33 = vpack.c.bf16 %v3597_v7, %v3597_v7 }
 0x7f5   : > { %3640 = vst.msk [vmem:[%s5135_s23 + $0x1c] sm:$0xf] %vm3632_vm3, %v3793_v32 }
 0x7f6   : > { %3638 = vst.msk [vmem:[%s5135_s23 + $0x14] sm:$0xf] %vm3632_vm3, %v3791_v33 }
 0x7f7 PF: > { %s18_s27 = sadd.s32 1, %s4107_s27  }
 0x7f8   : > { %p15_p4 = scmp.ge.s32.totalorder %s18_s27, 4  }
 0x7fa   :  { %17 = sbr.rel (!%p15_p4) target bundleno = 1 (0x1), region = 82 }

// kernel: _lambda_.17
= control target key start
LH: loop header
LB: loop body
LE: loop exit
PB: predicated region body
PF: predicated region fallthrough
CT: control target
= control target key end

     0   :  { %s575_s18 = smov 0   ;;  %s632_s0 = inlined_call_operand.vmem [shape: bf16[32,128], index: 0, kind: input, shape index: {}]   ;;  %s633_s1 = inlined_call_operand.vmem [shape: f32[1,128], index: 1, kind: input, shape index: {}]   ;;  %s634_s2 = inlined_call_operand.vmem [shape: f32[1,128], index: 2, kind: input, shape index: {}]   ;;  %s635_s3 = inlined_call_operand.vmem [shape: bf16[128,64], index: 3, kind: input, shape index: {}]   ;;  %s636_s4 = inlined_call_operand.vmem [shape: f32[1,64], index: 4, kind: input, shape index: {}]   ;;  %s637_s5 = inlined_call_operand.vmem [shape: bf16[32,64], index: 5, kind: output, shape index: {}]  }
   0x1 LB: > { %s454_s19 = sadd.s32 4294967295, %s541_s18   ;;  %p458_p0 = scmp.ge.s32.totalorder %s541_s18, 1  ;;  %s541_s18 = sphi %s575_s18, %s15_s18  }
   0x2   : > { %p188_p1 = scmp.lt.s32.totalorder %s541_s18, 3 }
   0x4   : > { %p189_p2 = pnand %p458_p0, %p188_p1 }
   0x5   : > { %s459_s20 = sshll.u32 (!%p189_p2), %s454_s19, 1  ;;  %v523_v3 = vld [vmem:[%s635_s3] sm:$0xff] (!%p189_p2)   ;;  %v543_v4 = vmov (!%p189_p2), 0.0   ;;  %v524_v13 = vld [vmem:[%s635_s3 + $0x8] sm:$0xff] (!%p189_p2)   ;;  %v525_v14 = vld [vmem:[%s635_s3 + $0x10] sm:$0xff] (!%p189_p2)   ;;  %vm544_vm0 = vmmov (!%p189_p2), 0  }
   0x6   : > { %192 = sbr.rel (%p189_p2) target bundleno = 555 (0x22b), region = 40  ;;  %p217_p3 = scmp.lt.s32.totalorder (!%p189_p2), %s459_s20, 3  ;;  %493 = vmatprep.subr.bf16.mxu0 (!%p189_p2), %v543_v4  ;;  %v526_v15 = vld [vmem:[%s635_s3 + $0x18] sm:$0xff] (!%p189_p2)   ;;  %v527_v16 = vld [vmem:[%s635_s3 + $0x20] sm:$0xff] (!%p189_p2)   ;;  %509 = vmatprep.mubr.msk.bf16.mxu0 (!%p189_p2), %vm544_vm0, %v543_v4  ;;  %v528_v17 = vld [vmem:[%s635_s3 + $0x28] sm:$0xff] (!%p189_p2)   ;;  %vm395_vm1 = vcmask (!%p189_p2), 519168  }
   0x7   : > { %494 = vmatpush3.bf16.msra.mxu0 (!%p189_p2), %v523_v3  ;;  %v529_v18 = vld [vmem:[%s635_s3 + $0x30] sm:$0xff] (!%p189_p2)   ;;  %v530_v19 = vld [vmem:[%s635_s3 + $0x38] sm:$0xff] (!%p189_p2)   ;;  %v463_v28 = vld [vmem:[%s633_s1] ss:$0 sm:$0xff] (!%p189_p2) }
   0x8   : > { %495 = vmatprep.subr.bf16.mxu0 (!%p189_p2), %v543_v4  ;;  %v464_v32 = vld [vmem:[%s634_s2] ss:$0 sm:$0xff] (!%p189_p2) }
   0x9   : > { %v465_v37 = vld [vmem:[%s636_s4] ss:$0 sm:$0xff] (!%p189_p2) }
   0xb   : > { %496 = vmatpush3.bf16.msra.mxu0 (!%p189_p2), %v524_v13 }
   0xc   : > { %497 = vmatprep.subr.bf16.mxu0 (!%p189_p2), %v543_v4 }
   0xd   : > { %s639_s20 = smov (!%p217_p3, %s459_s20), 3 }
   0xe   : > { %s460_s21 = sshll.u32 %s639_s20, 2 }
   0xf   : > { %s220_s24 = scalar_lea.vmem %s632_s0, %s460_s21  ;;  %498 = vmatpush3.bf16.msra.mxu0 %v525_v14  ;;  %s226_s27 = scalar_lea.vmem %s637_s5, %s460_s21 }
  0x10   : > { %v481_v0 = vld [vmem:[%s220_s24] sm:$0xff]   ;;  %499 = vmatprep.subr.bf16.mxu0 %v543_v4 }
  0x11   : > { %v482_v1 = vunpack.c.l.bf16 %v481_v0  ;;  %v483_v2 = vunpack.c.h.bf16 %v481_v0 }
  0x13   : > { %233 = vadd.xlane.f32.xlu0 %v482_v1  ;;  %500 = vmatpush3.bf16.msra.mxu0 %v526_v15 }
  0x14   : > { %501 = vmatprep.subr.bf16.mxu0 %v543_v4 }
  0x17   : > { %235 = vadd.xlane.f32.xlu0 %v483_v2  ;;  %502 = vmatpush3.bf16.msra.mxu0 %v527_v16 }
  0x18   : > { %503 = vmatprep.subr.bf16.mxu0 %v543_v4 }
  0x1b   : > { %504 = vmatpush3.bf16.msra.mxu0 %v528_v17 }
  0x1c   : > { %505 = vmatprep.subr.bf16.mxu0 %v543_v4 }
  0x1f   : > { %506 = vmatpush3.bf16.msra.mxu0 %v529_v18 }
  0x20   : > { %507 = vmatprep.subr.bf16.mxu0 %v543_v4 }
  0x23   : > { %508 = vmatpush3.bf16.msra.mxu0 %v530_v19 }
  0xa0   : > { %v234_v5 = vpop.xlane.xlu0 %233 }
  0xa1   : > { %v238_v6 = vmul.f32 0.0078125, %v234_v5 }
  0xa3   : > { %v240_v7 = vsub.f32 %v482_v1, %v238_v6 }
  0xa4   : > { %v236_v8 = vpop.xlane.xlu0 %235 }
  0xa5   : > { %v239_v9 = vmul.f32 0.0078125, %v236_v8  ;;  %v242_v10 = vmul.f32 %v240_v7, %v240_v7 }
  0xa7   : > { %v241_v11 = vsub.f32 %v483_v2, %v239_v9  ;;  %244 = vadd.xlane.f32.xlu1 %v242_v10 }
  0xa9   : > { %v243_v12 = vmul.f32 %v241_v11, %v241_v11 }
  0xab   : > { %246 = vadd.xlane.f32.xlu1 %v243_v12 }
 0x134   : > { %v245_v20 = vpop.xlane.xlu1 %244 }
 0x135   : > { %v248_v21 = vmul.f32 0.0078125, %v245_v20 }
 0x137   : > { %v250_v22 = vadd.f32 1e-05, %v248_v21 }
 0x138   : > { %v247_v23 = vpop.xlane.xlu1 %246 }
 0x139   : > { %531 = vrsqrt.f32 %v250_v22  ;;  %v249_v24 = vmul.f32 0.0078125, %v247_v23 }
 0x13b   : > { %v251_v25 = vadd.f32 1e-05, %v249_v24 }
 0x13d   : > { %533 = vrsqrt.f32 %v251_v25 }
 0x143   : > { %v532_v26 = vpop.eup %531 }
 0x144   : > { %v254_v27 = vmul.f32 %v532_v26, %v240_v7 }
 0x146   : > { %v263_v31 = vmul.f32 %v463_v28, %v254_v27 }
 0x147   : > { %v534_v29 = vpop.eup %533 }
 0x148   : > { %v255_v30 = vmul.f32 %v534_v29, %v241_v11  ;;  %v272_v34 = vadd.f32 %v464_v32, %v263_v31 }
 0x14a   : > { %v264_v33 = vmul.f32 %v463_v28, %v255_v30 }
 0x14c   : > { %v273_v35 = vadd.f32 %v464_v32, %v264_v33 }
 0x14e   : > { %v274_v36 = vpack.c.bf16 %v273_v35, %v272_v34 }
 0x150   : > { %510 = vmatmul.mubr.bf16.vlgmr.msra.gmra.mrb[0].mxu0 %v274_v36 }
 0x223   : > { %v380_v38 = vpop.f32.mrb[0].mxu0 }
 0x224   : > { %v381_v39 = vadd.f32 %v465_v37, %v380_v38  ;;  %v511_v40 = vpop.f32.mrb[1].mxu0 }
 0x225   : > { %v383_v41 = vpop.f32.mrb[2].mxu0 }
 0x226   : > { %v478_v42 = vpack.c.bf16 %v381_v39, %v381_v39  ;;  %v384_v43 = vadd.f32 %v465_v37, %v383_v41  ;;  %v512_v44 = vpop.f32.mrb[3].mxu0 }
 0x228   : > { %396 = vst.msk [vmem:[%s226_s27] sm:$0xf] %vm395_vm1, %v478_v42  ;;  %v479_v45 = vpack.c.bf16 %v384_v43, %v384_v43 }
 0x22a   : > { %397 = vst.msk [vmem:[%s226_s27 + $0x4] sm:$0xf] %vm395_vm1, %v479_v45 }
 0x22b PF: > { %s15_s18 = sadd.s32 1, %s541_s18  }
 0x22c   : > { %p12_p4 = scmp.ge.s32.totalorder %s15_s18, 4  }
 0x22e   :  { %14 = sbr.rel (!%p12_p4) target bundleno = 1 (0x1), region = 70 }

// kernel: _lambda_.15
= control target key start
LH: loop header
LB: loop body
LE: loop exit
PB: predicated region body
PF: predicated region fallthrough
CT: control target
= control target key end

     0   :  { %s4218_s30 = smov 0   ;;  %s5250_s0 = inlined_call_operand.vmem [shape: bf16[8,16,32], index: 0, kind: input, shape index: {}]   ;;  %s5251_s1 = inlined_call_operand.vmem [shape: f32[1,32], index: 1, kind: input, shape index: {}]   ;;  %s5252_s2 = inlined_call_operand.vmem [shape: f32[1,32], index: 2, kind: input, shape index: {}]   ;;  %s5253_s3 = inlined_call_operand.vmem [shape: bf16[32,96], index: 3, kind: input, shape index: {}]   ;;  %s5254_s4 = inlined_call_operand.vmem [shape: f32[1,96], index: 4, kind: input, shape index: {}]   ;;  %s5255_s5 = inlined_call_operand.vmem [shape: bf16[32,32], index: 5, kind: input, shape index: {}]   ;;  %s5256_s6 = inlined_call_operand.vmem [shape: f32[1,32], index: 6, kind: input, shape index: {}]   ;;  %s5257_s7 = inlined_call_operand.vmem [shape: f32[2,16,16], index: 7, kind: input, shape index: {}]   ;;  %s5258_s8 = inlined_call_operand.vmem [shape: f32[4,16,16], index: 8, kind: input, shape index: {}]   ;;  %s5259_s9 = inlined_call_operand.vmem [shape: bf16[8,16,32], index: 9, kind: output, shape index: {}]  }
   0x1 LB: > { %s3750_s10 = sadd.s32 4294967295, %s4158_s30   ;;  %p3754_p0 = scmp.ge.s32.totalorder %s4158_s30, 1  ;;  %s4158_s30 = sphi %s4218_s30, %s19_s30  }
   0x2   : > { %p289_p1 = scmp.lt.s32.totalorder %s4158_s30, 3 }
   0x4   : > { %p290_p2 = pnand %p3754_p0, %p289_p1 }
   0x5   : > { %s3755_s11 = sshll.u32 (!%p290_p2), %s3750_s10, 2  ;;  %vm358_vm0 = vcmask (!%p290_p2), 261120   ;;  %v4068_v60 = vld [vmem:[%s5253_s3] sm:$0xff] (!%p290_p2)   ;;  %v4069_v61 = vld [vmem:[%s5253_s3 + $0x8] sm:$0xff] (!%p290_p2)   ;;  %s4161_s26 = smov (!%p290_p2), 80   ;;  %vm4165_vm1 = vmmov (!%p290_p2), 0  }
   0x6   : > { %293 = sbr.rel (%p290_p2) target bundleno = 2041 (0x7f9), region = 56  ;;  %p328_p3 = scmp.lt.s32.totalorder (!%p290_p2), %s3755_s11, 7  ;;  %3908 = vmatprep.subr.bf16.mxu0 (!%p290_p2), %v4068_v60  ;;  %4028 = vmatprep.subr.bf16.mxu1 (!%p290_p2), %v4068_v60  ;;  %vm1569_vm2 = vcmask (!%p290_p2), 130048   ;;  %vm3683_vm3 = vcmask (!%p290_p2), 257024  }
   0x7   : > { %3909 = vmatpush3.bf16.msra.mxu0 (!%p290_p2), %v4068_v60  ;;  %4030 = vmatpush3.bf16.msra.mxu1 (!%p290_p2), %v4068_v60  ;;  %s4164_s27 = smov (!%p290_p2), 112   ;;  %s4166_s16 = smov (!%p290_p2), 96  }
   0x8   : > { %3910 = vmatprep.subr.bf16.mxu0 (!%p290_p2), %v4069_v61  ;;  %4029 = vmatprep.subr.bf16.mxu1 (!%p290_p2), %v4069_v61  ;;  %s4167_s21 = smov (!%p290_p2), 16  }
   0xb   : > { %3911 = vmatpush3.bf16.msra.mxu0 (!%p290_p2), %v4069_v61  ;;  %4031 = vmatpush3.bf16.msra.mxu1 (!%p290_p2), %v4069_v61 }
   0xd   : > { %s5261_s11 = smov (!%p328_p3, %s3755_s11), 7 }
   0xe   : > { %s3835_s12 = sshll.u32 %s5261_s11, 3 }
   0xf   : > { %s332_s15 = scalar_lea.vmem %s5250_s0, %s3835_s12 }
  0x10   : > { %v3846_v0 = vld [vmem:[%s332_s15] sm:$0xff]   ;;  %v3861_v1 = vld [vmem:[%s332_s15 + $0x8] sm:$0xff]   ;;  %v3862_v6 = vld [vmem:[%s332_s15 + $0x10] sm:$0xff]  }
  0x11   : > { %v4234_v2 = vunpack.c.l.bf16 %v3846_v0  ;;  %v4236_v3 = vunpack.c.l.bf16 %v3861_v1  ;;  %v4238_v4 = vunpack.c.h.bf16 %v3846_v0  ;;  %v4240_v5 = vunpack.c.h.bf16 %v3861_v1  ;;  %v3863_v13 = vld [vmem:[%s332_s15 + $0x18] sm:$0xff]  }
  0x12   : > { %v4250_v11 = vunpack.c.l.bf16 %v3862_v6  ;;  %v4252_v12 = vunpack.c.h.bf16 %v3862_v6  ;;  %v4258_v16 = vunpack.c.l.bf16 %v3863_v13  ;;  %v4260_v17 = vunpack.c.h.bf16 %v3863_v13 }
  0x13   : > { %v359_v7 = vsel %vm358_vm0, %v4234_v2, 0.0  ;;  %v365_v8 = vsel %vm358_vm0, %v4236_v3, 0.0  ;;  %v362_v9 = vsel %vm358_vm0, %v4238_v4, 0.0  ;;  %v368_v10 = vsel %vm358_vm0, %v4240_v5, 0.0 }
  0x14   : > { %360 = vadd.xlane.f32.xlu0 %v359_v7  ;;  %366 = vadd.xlane.f32.xlu1 %v365_v8  ;;  %v371_v14 = vsel %vm358_vm0, %v4250_v11, 0.0  ;;  %v374_v15 = vsel %vm358_vm0, %v4252_v12, 0.0  ;;  %v377_v18 = vsel %vm358_vm0, %v4258_v16, 0.0  ;;  %v380_v19 = vsel %vm358_vm0, %v4260_v17, 0.0 }
  0x18   : > { %363 = vadd.xlane.f32.xlu0 %v362_v9  ;;  %369 = vadd.xlane.f32.xlu1 %v368_v10 }
  0x1c   : > { %372 = vadd.xlane.f32.xlu0 %v371_v14  ;;  %375 = vadd.xlane.f32.xlu1 %v374_v15 }
  0x20   : > { %378 = vadd.xlane.f32.xlu0 %v377_v18  ;;  %381 = vadd.xlane.f32.xlu1 %v380_v19 }
  0xa1   : > { %v361_v20 = vpop.xlane.xlu0 %360  ;;  %v367_v21 = vpop.xlane.xlu1 %366 }
  0xa2   : > { %v384_v22 = vmul.f32 0.03125, %v361_v20  ;;  %v386_v23 = vmul.f32 0.03125, %v367_v21 }
  0xa4   : > { %v4267_v24 = vsub.f32 %v4234_v2, %v384_v22  ;;  %v4270_v25 = vsub.f32 %v4236_v3, %v386_v23 }
  0xa5   : > { %v364_v26 = vpop.xlane.xlu0 %363  ;;  %v370_v27 = vpop.xlane.xlu1 %369 }
  0xa6   : > { %v385_v28 = vmul.f32 0.03125, %v364_v26  ;;  %v387_v29 = vmul.f32 0.03125, %v370_v27  ;;  %v400_v30 = vmul.f32 %v4267_v24, %v4267_v24  ;;  %v402_v31 = vmul.f32 %v4270_v25, %v4270_v25 }
  0xa8   : > { %v4277_v32 = vsub.f32 %v4238_v4, %v385_v28  ;;  %v4280_v33 = vsub.f32 %v4240_v5, %v387_v29  ;;  %v408_v34 = vsel %vm358_vm0, %v400_v30, 0.0  ;;  %v414_v37 = vsel %vm358_vm0, %v402_v31, 0.0 }
  0xa9   : > { %409 = vadd.xlane.f32.xlu0 %v408_v34  ;;  %v373_v35 = vpop.xlane.xlu0 %372  ;;  %v376_v36 = vpop.xlane.xlu1 %375 }
  0xaa   : > { %v388_v38 = vmul.f32 0.03125, %v373_v35  ;;  %v389_v39 = vmul.f32 0.03125, %v376_v36  ;;  %v401_v40 = vmul.f32 %v4277_v32, %v4277_v32  ;;  %v403_v41 = vmul.f32 %v4280_v33, %v4280_v33  ;;  %v3761_v35 = vld [vmem:[%s5251_s1] ss:$0 sm:$0xff] }
  0xac   : > { %v4289_v42 = vsub.f32 %v4250_v11, %v388_v38  ;;  %v4292_v43 = vsub.f32 %v4252_v12, %v389_v39  ;;  %v411_v44 = vsel %vm358_vm0, %v401_v40, 0.0  ;;  %v417_v47 = vsel %vm358_vm0, %v403_v41, 0.0 }
  0xad   : > { %415 = vadd.xlane.f32.xlu0 %v414_v37  ;;  %412 = vadd.xlane.f32.xlu1 %v411_v44  ;;  %v379_v45 = vpop.xlane.xlu0 %378  ;;  %v382_v46 = vpop.xlane.xlu1 %381 }
  0xae   : > { %v390_v48 = vmul.f32 0.03125, %v379_v45  ;;  %v391_v49 = vmul.f32 0.03125, %v382_v46  ;;  %v404_v50 = vmul.f32 %v4289_v42, %v4289_v42  ;;  %v405_v51 = vmul.f32 %v4292_v43, %v4292_v43 }
  0xb0   : > { %v4301_v52 = vsub.f32 %v4258_v16, %v390_v48  ;;  %v4304_v53 = vsub.f32 %v4260_v17, %v391_v49  ;;  %v420_v54 = vsel %vm358_vm0, %v404_v50, 0.0  ;;  %v423_v55 = vsel %vm358_vm0, %v405_v51, 0.0 }
  0xb1   : > { %418 = vadd.xlane.f32.xlu1 %v417_v47  ;;  %421 = vadd.xlane.f32.xlu0 %v420_v54 }
  0xb2   : > { %v406_v56 = vmul.f32 %v4301_v52, %v4301_v52  ;;  %v407_v57 = vmul.f32 %v4304_v53, %v4304_v53 }
  0xb4   : > { %v426_v58 = vsel %vm358_vm0, %v406_v56, 0.0  ;;  %v429_v59 = vsel %vm358_vm0, %v407_v57, 0.0 }
  0xb5   : > { %424 = vadd.xlane.f32.xlu1 %v423_v55  ;;  %427 = vadd.xlane.f32.xlu0 %v426_v58 }
  0xb9   : > { %430 = vadd.xlane.f32.xlu1 %v429_v59 }
 0x136   : > { %v410_v62 = vpop.xlane.xlu0 %409 }
 0x137   : > { %v432_v63 = vmul.f32 0.03125, %v410_v62 }
 0x139   : > { %v440_v0 = vadd.f32 1e-05, %v432_v63 }
 0x13a   : > { %v413_v1 = vpop.xlane.xlu1 %412  ;;  %v416_v6 = vpop.xlane.xlu0 %415 }
 0x13b   : > { %4072 = vrsqrt.f32 %v440_v0  ;;  %v433_v7 = vmul.f32 0.03125, %v413_v1  ;;  %v434_v8 = vmul.f32 0.03125, %v416_v6 }
 0x13d   : > { %v441_v9 = vadd.f32 1e-05, %v433_v7  ;;  %v442_v10 = vadd.f32 1e-05, %v434_v8 }
 0x13e   : > { %v419_v13 = vpop.xlane.xlu1 %418  ;;  %v422_v14 = vpop.xlane.xlu0 %421 }
 0x13f   : > { %4074 = vrsqrt.f32 %v441_v9  ;;  %v435_v15 = vmul.f32 0.03125, %v419_v13  ;;  %v436_v18 = vmul.f32 0.03125, %v422_v14 }
 0x140   : > { %4076 = vrsqrt.f32 %v442_v10 }
 0x141   : > { %v443_v19 = vadd.f32 1e-05, %v435_v15  ;;  %v444_v20 = vadd.f32 1e-05, %v436_v18 }
 0x142   : > { %v425_v21 = vpop.xlane.xlu1 %424  ;;  %v428_v22 = vpop.xlane.xlu0 %427 }
 0x143   : > { %4078 = vrsqrt.f32 %v443_v19  ;;  %v437_v23 = vmul.f32 0.03125, %v425_v21  ;;  %v438_v26 = vmul.f32 0.03125, %v428_v22 }
 0x144   : > { %4080 = vrsqrt.f32 %v444_v20 }
 0x145   : > { %v4073_v27 = vpop.eup %4072  ;;  %v445_v28 = vadd.f32 1e-05, %v437_v23  ;;  %v446_v29 = vadd.f32 1e-05, %v438_v26 }
 0x146   : > { %v431_v30 = vpop.xlane.xlu1 %430  ;;  %v456_v31 = vmul.f32 %v4073_v27, %v4267_v24  ;;  %v3762_v24 = vld [vmem:[%s5252_s2] ss:$0 sm:$0xff] }
 0x147   : > { %4082 = vrsqrt.f32 %v445_v28  ;;  %v439_v34 = vmul.f32 0.03125, %v431_v30 }
 0x148   : > { %4084 = vrsqrt.f32 %v446_v29  ;;  %v471_v40 = vmul.f32 %v3761_v35, %v456_v31 }
 0x149   : > { %v4075_v36 = vpop.eup %4074  ;;  %v447_v37 = vadd.f32 1e-05, %v439_v34  ;;  %v4162_v34 = vmov 1983009808  }
 0x14a   : > { %v4077_v38 = vpop.eup %4076  ;;  %v457_v39 = vmul.f32 %v4075_v36, %v4277_v32  ;;  %v486_v48 = vadd.f32 %v3762_v24, %v471_v40  ;;  %v634_v36 = vlaneseq }
 0x14b   : > { %v458_v41 = vmul.f32 %v4077_v38, %v4270_v25  ;;  %4086 = vrsqrt.f32 %v447_v37 }
 0x14c   : > { %v472_v44 = vmul.f32 %v3761_v35, %v457_v39  ;;  %v635_v38 = vshrl.u32 %v634_v36, 7  ;;  %v4163_v39 = vmov 1934713408  }
 0x14d   : > { %v4079_v45 = vpop.eup %4078  ;;  %v473_v50 = vmul.f32 %v3761_v35, %v458_v41  ;;  %v663_v40 = vunpack.c.l.s4 %v4163_v39 }
 0x14e   : > { %v4081_v46 = vpop.eup %4080  ;;  %v459_v47 = vmul.f32 %v4079_v45, %v4280_v33  ;;  %v487_v49 = vadd.f32 %v3762_v24, %v472_v44 }
 0x14f   : > { %v460_v51 = vmul.f32 %v4081_v46, %v4289_v42  ;;  %v488_v25 = vadd.f32 %v3762_v24, %v473_v50 }
 0x150   : > { %v494_v54 = vpack.c.bf16 %v487_v49, %v486_v48  ;;  %v474_v32 = vmul.f32 %v3761_v35, %v459_v47 }
 0x151   : > { %v4083_v55 = vpop.eup %4082  ;;  %v475_v59 = vmul.f32 %v3761_v35, %v460_v51 }
 0x152   : > { %v4085_v56 = vpop.eup %4084  ;;  %3912 = vmatprep.mubr.msk.bf16.mxu0 %vm358_vm0, %v494_v54  ;;  %v489_v57 = vadd.f32 %v3762_v24, %v474_v32  ;;  %v461_v58 = vmul.f32 %v4083_v55, %v4292_v43 }
 0x153   : > { %v462_v60 = vmul.f32 %v4085_v56, %v4301_v52  ;;  %v490_v42 = vadd.f32 %v3762_v24, %v475_v59  ;;  %v4160_v52 = vmov 0.0  }
 0x154   : > { %v495_v61 = vpack.c.bf16 %v489_v57, %v488_v25  ;;  %v476_v33 = vmul.f32 %v3761_v35, %v461_v58  ;;  %3920 = vmatprep.subr.bf16.mxu1 %v4160_v52  ;;  %3932 = vmatprep.subr.bf16.mxu0 %v4160_v52 }
 0x155   : > { %v4087_v62 = vpop.eup %4086  ;;  %v477_v1 = vmul.f32 %v3761_v35, %v462_v60 }
 0x156   : > { %v463_v63 = vmul.f32 %v4087_v62, %v4304_v53  ;;  %3913 = vmatmul.mubr.msk.bf16.vlgmr.msra.gmra.mrb[0].mxu0 %vm358_vm0, %v495_v61  ;;  %v491_v0 = vadd.f32 %v3762_v24, %v476_v33  ;;  %v3763_v53 = vld [vmem:[%s5254_s4] ss:$0 sm:$0xff] }
 0x157   : > { %v492_v8 = vadd.f32 %v3762_v24, %v477_v1  ;;  %3934 = vmatprep.mubr.msk.bf16.mxu0 %vm4165_vm1, %v4160_v52 }
 0x158   : > { %v496_v6 = vpack.c.bf16 %v491_v0, %v490_v42  ;;  %v478_v7 = vmul.f32 %v3761_v35, %v463_v63  ;;  %v632_v35 = vunpack.c.l.s4 %v4162_v34 }
 0x15a   : > { %3916 = vmatprep.mubr.msk.bf16.mxu1 %vm358_vm0, %v496_v6  ;;  %v493_v9 = vadd.f32 %v3762_v24, %v478_v7  ;;  %v633_v37 = vunpack.c.0.s8 %v632_v35  ;;  %v664_v24 = vunpack.c.0.s8 %v663_v40 }
 0x15c   : > { %v497_v43 = vpack.c.bf16 %v493_v9, %v492_v8  ;;  %v4343_v41 = vsub.s32 %v633_v37, %v635_v38  ;;  %v4353_v50 = vsub.s32 %v664_v24, %v635_v38 }
 0x15e   : > { %3917 = vmatmul.mubr.msk.bf16.vlgmr.msra.gmra.mrb[0].mxu1 %vm358_vm0, %v497_v43 }
 0x15f   : > { %3922 = vmatprep.mubr.msk.bf16.mxu1 %vm4165_vm1, %v4160_v52 }
 0x229   : > { %v3914_v10 = vpop.f32.mrb[0].mxu0 }
 0x22a   : > { %v567_v13 = vpop.f32.mrb[1].mxu0  ;;  %v576_v20 = vadd.f32 %v3914_v10, %v3763_v53 }
 0x22b   : > { %v568_v14 = vadd.f32 %v3763_v53, %v567_v13  ;;  %v3915_v15 = vpop.f32.mrb[2].mxu0 }
 0x22c   : > { %v570_v18 = vpop.f32.mrb[3].mxu0  ;;  %v579_v28 = vadd.f32 %v3915_v15, %v3763_v53  ;;  %v762_v44 = vcombine.high %v576_v20, %v4160_v52  ;;  %v4350_v48 = vrot.slane %v576_v20, %v4343_v41 }
 0x22d   : > { %v571_v19 = vadd.f32 %v3763_v53, %v570_v18  ;;  %606 = vrot.lane.b32.xlu0 %v568_v14, %s4161_s26  ;;  %v630_v45 = vcombine.high %v568_v14, %v4160_v52  ;;  %v637_v54 = vrot.slane %v568_v14, %v4343_v41 }
 0x22e   : > { %v828_v46 = vcombine.high %v579_v28, %v4160_v52  ;;  %v4356_v51 = vrot.slane %v762_v44, %v4343_v41  ;;  %v4361_v55 = vrot.slane %v579_v28, %v4343_v41 }
 0x22f   : > { %608 = vrot.lane.b32.xlu1 %v571_v19, %s4161_s26  ;;  %v696_v47 = vcombine.high %v571_v19, %v4160_v52  ;;  %v644_v32 = vrot.slane %v630_v45, %v4343_v41  ;;  %v703_v25 = vrot.slane %v571_v19, %v4343_v41 }
 0x230   : > { %v4364_v56 = vrot.slane %v828_v46, %v4343_v41 }
 0x231   : > { %v3918_v21 = vpop.f32.mrb[0].mxu1  ;;  %v710_v60 = vrot.slane %v696_v47, %v4343_v41 }
 0x232   : > { %v583_v22 = vpop.f32.mrb[1].mxu1  ;;  %v592_v29 = vadd.f32 %v3918_v21, %v3763_v53 }
 0x233   : > { %v584_v23 = vadd.f32 %v3763_v53, %v583_v22  ;;  %610 = vrot.lane.b32.xlu1 %v576_v20, %s4161_s26  ;;  %v3919_v26 = vpop.f32.mrb[2].mxu1 }
 0x234   : > { %v586_v27 = vpop.f32.mrb[3].mxu1  ;;  %v595_v31 = vadd.f32 %v3919_v26, %v3763_v53  ;;  %v1026_v49 = vcombine.high %v592_v29, %v4160_v52  ;;  %v4371_v61 = vrot.slane %v592_v29, %v4343_v41 }
 0x235   : > { %614 = vrot.lane.b32.xlu0 %v584_v23, %s4161_s26  ;;  %v587_v30 = vadd.f32 %v3763_v53, %v586_v27  ;;  %v894_v57 = vcombine.high %v584_v23, %v4160_v52  ;;  %v4379_v42 = vrot.slane %v584_v23, %v4343_v41 }
 0x236   : > { %v1092_v58 = vcombine.high %v595_v31, %v4160_v52  ;;  %v4376_v63 = vrot.slane %v1026_v49, %v4343_v41  ;;  %v4382_v0 = vrot.slane %v595_v31, %v4343_v41 }
 0x237   : > { %612 = vrot.lane.b32.xlu1 %v579_v28, %s4161_s26  ;;  %v960_v1 = vcombine.high %v587_v30, %v4160_v52  ;;  %v4388_v53 = vrot.slane %v894_v57, %v4343_v41  ;;  %v4394_v13 = vrot.slane %v587_v30, %v4343_v41 }
 0x238   : > { %v4391_v10 = vrot.slane %v1092_v58, %v4343_v41 }
 0x239   : > { %618 = vrot.lane.b32.xlu0 %v592_v29, %s4161_s26  ;;  %v4400_v21 = vrot.slane %v960_v1, %v4343_v41 }
 0x23b   : > { %616 = vrot.lane.b32.xlu1 %v587_v30, %s4161_s26 }
 0x23f   : > { %620 = vrot.lane.b32.xlu1 %v595_v31, %s4161_s26  ;;  %s5223_s26 = scalar_lea.vmem %s5259_s9, %s3835_s12 }
 0x29f   : > { %v607_v59 = vpop.permute.xlu0 %606 }
 0x2a0   : > { %v645_v33 = vcombine.high %v607_v59, %v4160_v52  ;;  %v652_v62 = vrot.slane %v607_v59, %v4343_v41 }
 0x2a1   : > { %v609_v6 = vpop.permute.xlu1 %608 }
 0x2a2   : > { %v659_v7 = vrot.slane %v645_v33, %v4343_v41  ;;  %v660_v8 = vcombine.low %v637_v54, %v652_v62  ;;  %v661_v9 = vcombine.high %v637_v54, %v652_v62  ;;  %v711_v43 = vcombine.high %v609_v6, %v4160_v52 }
 0x2a3   : > { %v718_v14 = vrot.slane %v609_v6, %v4343_v41 }
 0x2a4   : > { %v668_v15 = vrot.slane %v660_v8, %v4353_v50  ;;  %v675_v18 = vrot.slane %v661_v9, %v4353_v50  ;;  %v676_v19 = vcombine.low %v644_v32, %v659_v7  ;;  %v677_v20 = vcombine.high %v644_v32, %v659_v7 }
 0x2a5   : > { %v725_v22 = vrot.slane %v711_v43, %v4343_v41  ;;  %v726_v23 = vcombine.low %v703_v25, %v718_v14  ;;  %v727_v26 = vcombine.high %v703_v25, %v718_v14  ;;  %v611_v27 = vpop.permute.xlu1 %610 }
 0x2a6   : > { %v684_v28 = vrot.slane %v676_v19, %v4353_v50  ;;  %v691_v29 = vrot.slane %v677_v20, %v4353_v50  ;;  %v1158_v30 = vcombine.low %v668_v15, %v675_v18  ;;  %v3770_v31 = vcombine.high %v668_v15, %v675_v18 }
 0x2a7   : > { %v734_v34 = vrot.slane %v726_v23, %v4353_v50  ;;  %v741_v35 = vrot.slane %v727_v26, %v4353_v50  ;;  %v742_v36 = vcombine.low %v710_v60, %v725_v22  ;;  %v743_v37 = vcombine.high %v710_v60, %v725_v22  ;;  %v615_v49 = vpop.permute.xlu0 %614 }
 0x2a8   : > { %v4408_v38 = vrot.slane %v1158_v30, %v4343_v41  ;;  %v4411_v39 = vrot.slane %v3770_v31, %v4343_v41  ;;  %v1174_v40 = vcombine.low %v684_v28, %v691_v29  ;;  %v3771_v24 = vcombine.high %v684_v28, %v691_v29 }
 0x2a9   : > { %v750_v44 = vrot.slane %v742_v36, %v4353_v50  ;;  %v757_v45 = vrot.slane %v743_v37, %v4353_v50  ;;  %v1208_v46 = vcombine.low %v734_v34, %v741_v35  ;;  %v3772_v47 = vcombine.high %v734_v34, %v741_v35  ;;  %v613_v58 = vpop.permute.xlu1 %612 }
 0x2aa   : > { %v4416_v54 = vrot.slane %v1174_v40, %v4343_v41  ;;  %v4419_v32 = vrot.slane %v3771_v24, %v4343_v41  ;;  %v777_v25 = vcombine.high %v611_v27, %v4160_v52  ;;  %v784_v57 = vrot.slane %v611_v27, %v4343_v41 }
 0x2ab   : > { %v4424_v59 = vrot.slane %v1208_v46, %v4343_v41  ;;  %v4427_v60 = vrot.slane %v3772_v47, %v4343_v41  ;;  %v1224_v33 = vcombine.low %v750_v44, %v757_v45  ;;  %v3773_v62 = vcombine.high %v750_v44, %v757_v45 }
 0x2ac   : > { %v791_v1 = vrot.slane %v777_v25, %v4343_v41  ;;  %v792_v6 = vcombine.low %v4350_v48, %v784_v57  ;;  %v793_v7 = vcombine.high %v4350_v48, %v784_v57  ;;  %v909_v8 = vcombine.high %v615_v49, %v4160_v52 }
 0x2ad   : > { %v4434_v9 = vrot.slane %v1224_v33, %v4343_v41  ;;  %v4437_v43 = vrot.slane %v3773_v62, %v4343_v41  ;;  %v916_v14 = vrot.slane %v615_v49, %v4343_v41  ;;  %v843_v15 = vcombine.high %v613_v58, %v4160_v52 }
 0x2ae   : > { %v800_v18 = vrot.slane %v792_v6, %v4353_v50  ;;  %v807_v19 = vrot.slane %v793_v7, %v4353_v50  ;;  %v808_v20 = vcombine.low %v4356_v51, %v791_v1  ;;  %v809_v48 = vcombine.high %v4356_v51, %v791_v1  ;;  %v617_v7 = vpop.permute.xlu1 %616 }
 0x2af   : > { %v923_v22 = vrot.slane %v909_v8, %v4343_v41  ;;  %v924_v23 = vcombine.low %v4379_v42, %v916_v14  ;;  %v925_v26 = vcombine.high %v4379_v42, %v916_v14  ;;  %v850_v27 = vrot.slane %v613_v58, %v4343_v41  ;;  %v619_v58 = vpop.permute.xlu0 %618 }
 0x2b0   : > { %v816_v28 = vrot.slane %v808_v20, %v4353_v50  ;;  %v823_v29 = vrot.slane %v809_v48, %v4353_v50  ;;  %v1258_v30 = vcombine.low %v800_v18, %v807_v19  ;;  %v3774_v31 = vcombine.high %v800_v18, %v807_v19 }
 0x2b1   : > { %v932_v34 = vrot.slane %v924_v23, %v4353_v50  ;;  %v939_v35 = vrot.slane %v925_v26, %v4353_v50  ;;  %v940_v51 = vcombine.low %v4388_v53, %v923_v22  ;;  %v941_v36 = vcombine.high %v4388_v53, %v923_v22 }
 0x2b2   : > { %v4456_v37 = vrot.slane %v1258_v30, %v4343_v41  ;;  %v4459_v42 = vrot.slane %v3774_v31, %v4343_v41  ;;  %v1274_v40 = vcombine.low %v816_v28, %v823_v29  ;;  %v3775_v24 = vcombine.high %v816_v28, %v823_v29 }
 0x2b3   : > { %v948_v44 = vrot.slane %v940_v51, %v4353_v50  ;;  %v955_v45 = vrot.slane %v941_v36, %v4353_v50  ;;  %v1358_v46 = vcombine.low %v932_v34, %v939_v35  ;;  %v3778_v47 = vcombine.high %v932_v34, %v939_v35 }
 0x2b4   : > { %v4464_v49 = vrot.slane %v1274_v40, %v4343_v41  ;;  %v4467_v25 = vrot.slane %v3775_v24, %v4343_v41  ;;  %v857_v53 = vrot.slane %v843_v15, %v4343_v41  ;;  %v858_v57 = vcombine.low %v4361_v55, %v850_v27 }
 0x2b5   : > { %v4472_v33 = vrot.slane %v1358_v46, %v4343_v41  ;;  %v4475_v62 = vrot.slane %v3778_v47, %v4343_v41  ;;  %v1374_v1 = vcombine.low %v948_v44, %v955_v45  ;;  %v3779_v6 = vcombine.high %v948_v44, %v955_v45  ;;  %v621_v45 = vpop.permute.xlu1 %620 }
 0x2b6   : > { %v859_v8 = vcombine.high %v4361_v55, %v850_v27  ;;  %v866_v14 = vrot.slane %v858_v57, %v4353_v50  ;;  %v874_v18 = vcombine.low %v4364_v56, %v857_v53  ;;  %v875_v15 = vcombine.high %v4364_v56, %v857_v53 }
 0x2b7   : > { %v4482_v19 = vrot.slane %v1374_v1, %v4343_v41  ;;  %v4485_v20 = vrot.slane %v3779_v6, %v4343_v41  ;;  %v1041_v48 = vcombine.high %v619_v58, %v4160_v52  ;;  %v1048_v22 = vrot.slane %v619_v58, %v4343_v41 }
 0x2b8   : > { %v873_v23 = vrot.slane %v859_v8, %v4353_v50  ;;  %v882_v55 = vrot.slane %v874_v18, %v4353_v50  ;;  %v889_v26 = vrot.slane %v875_v15, %v4353_v50  ;;  %v975_v27 = vcombine.high %v617_v7, %v4160_v52 }
 0x2b9   : > { %v1055_v56 = vrot.slane %v1041_v48, %v4343_v41  ;;  %v1056_v28 = vcombine.low %v4371_v61, %v1048_v22  ;;  %v1057_v29 = vcombine.high %v4371_v61, %v1048_v22  ;;  %v982_v30 = vrot.slane %v617_v7, %v4343_v41 }
 0x2ba   : > { %v1308_v31 = vcombine.low %v866_v14, %v873_v23  ;;  %v3776_v34 = vcombine.high %v866_v14, %v873_v23  ;;  %v1324_v35 = vcombine.low %v882_v55, %v889_v26  ;;  %v3777_v51 = vcombine.high %v882_v55, %v889_v26 }
 0x2bb   : > { %v1064_v36 = vrot.slane %v1056_v28, %v4353_v50  ;;  %v1071_v40 = vrot.slane %v1057_v29, %v4353_v50  ;;  %v1072_v24 = vcombine.low %v4376_v63, %v1055_v56  ;;  %v1073_v44 = vcombine.high %v4376_v63, %v1055_v56 }
 0x2bc   : > { %v4502_v46 = vrot.slane %v1308_v31, %v4343_v41  ;;  %v4505_v61 = vrot.slane %v3776_v34, %v4343_v41  ;;  %v4508_v47 = vrot.slane %v1324_v35, %v4343_v41  ;;  %v4511_v53 = vrot.slane %v3777_v51, %v4343_v41 }
 0x2bd   : > { %v1080_v57 = vrot.slane %v1072_v24, %v4353_v50  ;;  %v1087_v58 = vrot.slane %v1073_v44, %v4353_v50  ;;  %v1458_v1 = vcombine.low %v1064_v36, %v1071_v40  ;;  %v3782_v6 = vcombine.high %v1064_v36, %v1071_v40 }
 0x2be   : > { %v989_v63 = vrot.slane %v975_v27, %v4343_v41  ;;  %v990_v7 = vcombine.low %v4394_v13, %v982_v30  ;;  %v991_v8 = vcombine.high %v4394_v13, %v982_v30  ;;  %v1107_v14 = vcombine.high %v621_v45, %v4160_v52 }
 0x2bf   : > { %v4520_v18 = vrot.slane %v1458_v1, %v4343_v41  ;;  %v4523_v15 = vrot.slane %v3782_v6, %v4343_v41  ;;  %v1474_v48 = vcombine.low %v1080_v57, %v1087_v58  ;;  %v3783_v22 = vcombine.high %v1080_v57, %v1087_v58 }
 0x2c0   : > { %v998_v23 = vrot.slane %v990_v7, %v4353_v50  ;;  %v1005_v55 = vrot.slane %v991_v8, %v4353_v50  ;;  %v1006_v26 = vcombine.low %v4400_v21, %v989_v63  ;;  %v1007_v27 = vcombine.high %v4400_v21, %v989_v63 }
 0x2c1   : > { %v4530_v13 = vrot.slane %v1474_v48, %v4343_v41  ;;  %v4533_v56 = vrot.slane %v3783_v22, %v4343_v41  ;;  %v1114_v28 = vrot.slane %v621_v45, %v4343_v41  ;;  %v1121_v29 = vrot.slane %v1107_v14, %v4343_v41 }
 0x2c2   : > { %v1014_v30 = vrot.slane %v1006_v26, %v4353_v50  ;;  %v1021_v31 = vrot.slane %v1007_v27, %v4353_v50  ;;  %v1408_v34 = vcombine.low %v998_v23, %v1005_v55  ;;  %v3780_v35 = vcombine.high %v998_v23, %v1005_v55 }
 0x2c3   : > { %v1122_v51 = vcombine.low %v4382_v0, %v1114_v28  ;;  %v1123_v21 = vcombine.high %v4382_v0, %v1114_v28  ;;  %v1138_v36 = vcombine.low %v4391_v10, %v1121_v29  ;;  %v1139_v40 = vcombine.high %v4391_v10, %v1121_v29 }
 0x2c4   : > { %v1415_v24 = vrot.slane %v1408_v34, %v4343_v41  ;;  %v1423_v44 = vrot.slane %v3780_v35, %v4343_v41  ;;  %v1424_v45 = vcombine.low %v1014_v30, %v1021_v31  ;;  %v3781_v57 = vcombine.high %v1014_v30, %v1021_v31 }
 0x2c5   : > { %v1130_v58 = vrot.slane %v1122_v51, %v4353_v50  ;;  %v1137_v1 = vrot.slane %v1123_v21, %v4353_v50  ;;  %v1146_v6 = vrot.slane %v1138_v36, %v4353_v50  ;;  %v1153_v63 = vrot.slane %v1139_v40, %v4353_v50 }
 0x2c6   : > { %v1431_v0 = vrot.slane %v1424_v45, %v4343_v41  ;;  %v1439_v7 = vrot.slane %v3781_v57, %v4343_v41  ;;  %v1190_v10 = vcombine.low %v4408_v38, %v4411_v39  ;;  %v1198_v8 = vcombine.low %v4416_v54, %v4419_v32 }
 0x2c7   : > { %v1508_v14 = vcombine.low %v1130_v58, %v1137_v1  ;;  %v3784_v48 = vcombine.high %v1130_v58, %v1137_v1  ;;  %v1524_v22 = vcombine.low %v1146_v6, %v1153_v63  ;;  %v3785_v23 = vcombine.high %v1146_v6, %v1153_v63 }
 0x2c8   : > { %v1197_v55 = vrot.slane %v1190_v10, %v4353_v50  ;;  %v1205_v26 = vrot.slane %v1198_v8, %v4353_v50  ;;  %v1240_v27 = vcombine.low %v4424_v59, %v4427_v60  ;;  %v1248_v28 = vcombine.low %v4434_v9, %v4437_v43 }
 0x2c9   : > { %v1515_v29 = vrot.slane %v1508_v14, %v4343_v41  ;;  %v1523_v38 = vrot.slane %v3784_v48, %v4343_v41  ;;  %v1531_v39 = vrot.slane %v1524_v22, %v4343_v41  ;;  %v1539_v54 = vrot.slane %v3785_v23, %v4343_v41 }
 0x2ca   : > { %v1206_v32 = vcombine.low %v1197_v55, %v1205_v26  ;;  %v1247_v30 = vrot.slane %v1240_v27, %v4353_v50  ;;  %v1255_v31 = vrot.slane %v1248_v28, %v4353_v50  ;;  %v1290_v34 = vcombine.low %v4456_v37, %v4459_v42 }
 0x2cb   : > { %v1298_v59 = vcombine.low %v4464_v49, %v4467_v25  ;;  %v1340_v60 = vcombine.low %v4502_v46, %v4505_v61  ;;  %v1348_v9 = vcombine.low %v4508_v47, %v4511_v53  ;;  %v1390_v43 = vcombine.low %v4472_v33, %v4475_v62 }
 0x2cc   : > { %v1256_v35 = vcombine.low %v1247_v30, %v1255_v31  ;;  %v1297_v51 = vrot.slane %v1290_v34, %v4353_v50  ;;  %v1398_v21 = vcombine.low %v4482_v19, %v4485_v20  ;;  %v1440_v36 = vcombine.low %v1415_v24, %v1423_v44 }
 0x2cd   : > { %v1305_v37 = vrot.slane %v1298_v59, %v4353_v50  ;;  %v1347_v42 = vrot.slane %v1340_v60, %v4353_v50  ;;  %v1355_v49 = vrot.slane %v1348_v9, %v4353_v50  ;;  %v1397_v25 = vrot.slane %v1390_v43, %v4353_v50 }
 0x2ce   : > { %v4584_v46 = vpack.c.bf16 %v1256_v35, %v1206_v32  ;;  %v1405_v61 = vrot.slane %v1398_v21, %v4353_v50  ;;  %v1447_v33 = vrot.slane %v1440_v36, %v4353_v50  ;;  %v1448_v62 = vcombine.low %v1431_v0, %v1439_v7 }
 0x2cf   : > { %v1306_v47 = vcombine.low %v1297_v51, %v1305_v37  ;;  %v1356_v53 = vcombine.low %v1347_v42, %v1355_v49  ;;  %v1207_v40 = vcombine.high %v1197_v55, %v1205_v26  ;;  %v1257_v19 = vcombine.high %v1247_v30, %v1255_v31 }
 0x2d0   : > { %1567 = vrot.lane.b32.xlu0 %v4584_v46, %s4164_s27  ;;  %v1406_v20 = vcombine.low %v1397_v25, %v1405_v61  ;;  %v1455_v24 = vrot.slane %v1448_v62, %v4353_v50  ;;  %v1490_v44 = vcombine.low %v4520_v18, %v4523_v15  ;;  %v1498_v45 = vcombine.low %v4530_v13, %v4533_v56 }
 0x2d1   : > { %v4595_v57 = vpack.c.bf16 %v1356_v53, %v1306_v47  ;;  %v4597_v58 = vpack.c.bf16 %v1257_v19, %v1207_v40  ;;  %v1540_v1 = vcombine.low %v1515_v29, %v1523_v38  ;;  %v1548_v6 = vcombine.low %v1531_v39, %v1539_v54  ;;  %v1988_v53 = vld [vmem:[%s5258_s8 + $0x8] sm:$0xff] }
 0x2d2   : > { %v1456_v63 = vcombine.low %v1447_v33, %v1455_v24  ;;  %v1497_v0 = vrot.slane %v1490_v44, %v4353_v50  ;;  %v1505_v7 = vrot.slane %v1498_v45, %v4353_v50  ;;  %v1407_v10 = vcombine.high %v1397_v25, %v1405_v61  ;;  %v1968_v25 = vld [vmem:[%s5257_s7 + $0x8] sm:$0xff]  ;;  %v4688_v61 = vld [vmem:[%s5258_s8] sm:$0xff] }
 0x2d3   : > { %1618 = vrot.lane.b32.xlu1 %v4595_v57, %s4164_s27  ;;  %v1547_v18 = vrot.slane %v1540_v1, %v4353_v50  ;;  %v1555_v15 = vrot.slane %v1548_v6, %v4353_v50  ;;  %v1457_v13 = vcombine.high %v1447_v33, %v1455_v24  ;;  %v1307_v56 = vcombine.high %v1297_v51, %v1305_v37 }
 0x2d4   : > { %v4605_v8 = vpack.c.bf16 %v1456_v63, %v1406_v20  ;;  %v1506_v14 = vcombine.low %v1497_v0, %v1505_v7  ;;  %v1357_v48 = vcombine.high %v1347_v42, %v1355_v49  ;;  %v1507_v22 = vcombine.high %v1497_v0, %v1505_v7  ;;  %v1967_v42 = vld [vmem:[%s5257_s7] sm:$0xff]  ;;  %v4705_v0 = vld [vmem:[%s5258_s8 + $0x10] sm:$0xff] }
 0x2d5   : > { %v1556_v23 = vcombine.low %v1547_v18, %v1555_v15  ;;  %v4607_v55 = vpack.c.bf16 %v1457_v13, %v1407_v10  ;;  %v1557_v26 = vcombine.high %v1547_v18, %v1555_v15  ;;  %v1992_v10 = vld [vmem:[%s5258_s8 + $0x28] sm:$0xff] }
 0x2d6   : > { %1668 = vrot.lane.b32.xlu0 %v4605_v8, %s4164_s27  ;;  %v4611_v27 = vpack.c.bf16 %v1357_v48, %v1307_v56  ;;  %v1990_v48 = vld [vmem:[%s5258_s8 + $0x18] sm:$0xff] }
 0x2d7   : > { %v4615_v28 = vpack.c.bf16 %v1556_v23, %v1506_v14  ;;  %v4617_v29 = vpack.c.bf16 %v1557_v26, %v1507_v22 }
 0x2d9   : > { %1718 = vrot.lane.b32.xlu1 %v4615_v28, %s4164_s27 }
 0x2da   : > { %1768 = vrot.lane.b32.xlu0 %v4597_v58, %s4164_s27 }
 0x2dd   : > { %1818 = vrot.lane.b32.xlu1 %v4611_v27, %s4164_s27 }
 0x2de   : > { %1868 = vrot.lane.b32.xlu0 %v4607_v55, %s4164_s27 }
 0x2e1   : > { %1918 = vrot.lane.b32.xlu1 %v4617_v29, %s4164_s27 }
 0x342   : > { %v1568_v38 = vpop.permute.xlu0 %1567 }
 0x343   : > { %v1574_v39 = vsel %vm1569_vm2, %v1568_v38, 0 }
 0x344   : > { %3921 = vmatpush3.bf16.xpose.msra.mxu1 %v1574_v39 }
 0x345   : > { %3926 = vmatprep.subr.bf16.mxu1 %v4160_v52  ;;  %v1619_v54 = vpop.permute.xlu1 %1618 }
 0x346   : > { %v1624_v30 = vsel %vm1569_vm2, %v1619_v54, 0 }
 0x348   : > { %v1669_v32 = vpop.permute.xlu0 %1668 }
 0x349   : > { %v1674_v31 = vsel %vm1569_vm2, %v1669_v32, 0 }
 0x34a   : > { %3933 = vmatpush3.bf16.xpose.msra.mxu0 %v1674_v31 }
 0x34b   : > { %3923 = vmatmul.mubr.msk.bf16.vlgmr.msra.gmra.mrb[4].mxu1 %vm1569_vm2, %v4584_v46  ;;  %3944 = vmatprep.subr.bf16.mxu0 %v4160_v52  ;;  %v1719_v34 = vpop.permute.xlu1 %1718 }
 0x34c   : > { %3927 = vmatpush3.bf16.xpose.msra.mxu1 %v1624_v30  ;;  %3928 = vmatprep.mubr.msk.bf16.mxu1 %vm4165_vm1, %v4160_v52  ;;  %v1769_v59 = vpop.permute.xlu0 %1768  ;;  %v1724_v60 = vsel %vm1569_vm2, %v1719_v34, 0  ;;  %v1991_v34 = vld [vmem:[%s5258_s8 + $0x20] sm:$0xff] }
 0x34d   : > { %3938 = vmatprep.subr.bf16.mxu1 %v4160_v52  ;;  %v1774_v9 = vsel %vm1569_vm2, %v1769_v59, 0  ;;  %v1970_v59 = vld [vmem:[%s5257_s7 + $0x18] sm:$0xff] }
 0x34f   : > { %v1819_v35 = vpop.permute.xlu1 %1818 }
 0x350   : > { %v1869_v43 = vpop.permute.xlu0 %1868  ;;  %v1824_v21 = vsel %vm1569_vm2, %v1819_v35, 0 }
 0x351   : > { %3935 = vmatmul.mubr.msk.bf16.vlgmr.msra.gmra.mrb[4].mxu0 %vm1569_vm2, %v4605_v8  ;;  %v1874_v51 = vsel %vm1569_vm2, %v1869_v43, 0 }
 0x352   : > { %3945 = vmatpush3.bf16.xpose.msra.mxu0 %v1774_v9  ;;  %3946 = vmatprep.mubr.msk.bf16.mxu0 %vm4165_vm1, %v4160_v52 }
 0x353   : > { %3929 = vmatmul.mubr.msk.bf16.vlgmr.msra.gmra.mrb[8].mxu1 %vm1569_vm2, %v4595_v57  ;;  %3956 = vmatprep.subr.bf16.mxu0 %v4160_v52  ;;  %v1919_v36 = vpop.permute.xlu1 %1918 }
 0x354   : > { %3939 = vmatpush3.bf16.xpose.msra.mxu1 %v1724_v60  ;;  %3940 = vmatprep.mubr.msk.bf16.mxu1 %vm4165_vm1, %v4160_v52  ;;  %v1924_v37 = vsel %vm1569_vm2, %v1919_v36, 0  ;;  %v1969_v36 = vld [vmem:[%s5257_s7 + $0x10] sm:$0xff] }
 0x355   : > { %3950 = vmatprep.subr.bf16.mxu1 %v4160_v52 }
 0x359   : > { %3947 = vmatmul.mubr.msk.bf16.vlgmr.msra.gmra.mrb[8].mxu0 %vm1569_vm2, %v4597_v58 }
 0x35a   : > { %3957 = vmatpush3.bf16.xpose.msra.mxu0 %v1874_v51  ;;  %3958 = vmatprep.mubr.msk.bf16.mxu0 %vm4165_vm1, %v4160_v52 }
 0x35b   : > { %3941 = vmatmul.mubr.msk.bf16.vlgmr.msra.gmra.mrb[12].mxu1 %vm1569_vm2, %v4615_v28  ;;  %3968 = vmatprep.subr.bf16.mxu0 %v4160_v52 }
 0x35c   : > { %3951 = vmatpush3.bf16.xpose.msra.mxu1 %v1824_v21  ;;  %3952 = vmatprep.mubr.msk.bf16.mxu1 %vm4165_vm1, %v4160_v52 }
 0x35d   : > { %3962 = vmatprep.subr.bf16.mxu1 %v4160_v52 }
 0x361   : > { %3959 = vmatmul.mubr.msk.bf16.vlgmr.msra.gmra.mrb[12].mxu0 %vm1569_vm2, %v4607_v55 }
 0x362   : > { %3970 = vmatprep.mubr.msk.bf16.mxu0 %vm4165_vm1, %v4160_v52 }
 0x363   : > { %3953 = vmatmul.mubr.msk.bf16.vlgmr.msra.gmra.mrb[16].mxu1 %vm1569_vm2, %v4611_v27 }
 0x364   : > { %3963 = vmatpush3.bf16.xpose.msra.mxu1 %v1924_v37  ;;  %3964 = vmatprep.mubr.msk.bf16.mxu1 %vm4165_vm1, %v4160_v52 }
 0x365   : > { %3974 = vmatprep.subr.bf16.mxu1 %v4160_v52 }
 0x36b   : > { %3965 = vmatmul.mubr.msk.bf16.vlgmr.msra.gmra.mrb[20].mxu1 %vm1569_vm2, %v4617_v29 }
 0x36c   : > { %3976 = vmatprep.mubr.msk.bf16.mxu1 %vm4165_vm1, %v4160_v52 }
 0x41e   : > { %v1610_v49 = vpop.f32.mrb[4].mxu1 }
 0x41f   : > { %v1971_v33 = vadd.f32 %v1967_v42, %v1610_v49  ;;  %v3924_v62 = vpop.f32.mrb[5].mxu1 }
 0x420   : > { %v1613_v47 = vpop.f32.mrb[6].mxu1 }
 0x421   : > { %v1972_v40 = vadd.f32 %v1968_v25, %v1613_v47  ;;  %v3925_v19 = vpop.f32.mrb[7].mxu1  ;;  %v4694_v20 = vadd.f32 %v4688_v61, %v1971_v33  ;;  %v1993_v47 = vld [vmem:[%s5258_s8 + $0x30] sm:$0xff] }
 0x423   : > { %v2011_v24 = vsel %vm1569_vm2, %v4694_v20, -inf  ;;  %v4698_v44 = vadd.f32 %v1988_v53, %v1972_v40 }
 0x424   : > { %2012 = vmax.xlane.f32.xlu0 %v2011_v24  ;;  %v1710_v45 = vpop.f32.mrb[4].mxu0 }
 0x425   : > { %v2014_v1 = vsel %vm1569_vm2, %v4698_v44, -inf  ;;  %v3936_v6 = vpop.f32.mrb[5].mxu0  ;;  %v1975_v39 = vadd.f32 %v1967_v42, %v1710_v45 }
 0x426   : > { %2015 = vmax.xlane.f32.xlu1 %v2014_v1  ;;  %v1660_v63 = vpop.f32.mrb[8].mxu1  ;;  %v1713_v7 = vpop.f32.mrb[6].mxu0 }
 0x427   : > { %v1973_v18 = vadd.f32 %v1967_v42, %v1660_v63  ;;  %v3930_v15 = vpop.f32.mrb[9].mxu1  ;;  %v1976_v13 = vadd.f32 %v1968_v25, %v1713_v7  ;;  %v3937_v56 = vpop.f32.mrb[7].mxu0  ;;  %v4735_v37 = vadd.f32 %v1991_v34, %v1975_v39 }
 0x428   : > { %v1663_v14 = vpop.f32.mrb[10].mxu1 }
 0x429   : > { %v1974_v22 = vadd.f32 %v1968_v25, %v1663_v14  ;;  %v3931_v23 = vpop.f32.mrb[11].mxu1  ;;  %v4714_v26 = vadd.f32 %v4705_v0, %v1973_v18  ;;  %v4716_v38 = vadd.f32 %v1992_v10, %v1976_v13  ;;  %v2023_v1 = vsel %vm1569_vm2, %v4735_v37, -inf }
 0x42b   : > { %v2017_v54 = vsel %vm1569_vm2, %v4714_v26, -inf  ;;  %v4720_v32 = vadd.f32 %v1990_v48, %v1974_v22  ;;  %v2026_v30 = vsel %vm1569_vm2, %v4716_v38, -inf }
 0x42c   : > { %2018 = vmax.xlane.f32.xlu0 %v2017_v54  ;;  %2027 = vmax.xlane.f32.xlu1 %v2026_v30  ;;  %v1810_v31 = vpop.f32.mrb[8].mxu0 }
 0x42d   : > { %v3948_v60 = vpop.f32.mrb[9].mxu0  ;;  %v2020_v21 = vsel %vm1569_vm2, %v4720_v32, -inf  ;;  %v1979_v45 = vadd.f32 %v1969_v36, %v1810_v31 }
 0x42e   : > { %v1760_v9 = vpop.f32.mrb[12].mxu1  ;;  %v1813_v43 = vpop.f32.mrb[10].mxu0 }
 0x42f   : > { %v1977_v35 = vadd.f32 %v1967_v42, %v1760_v9  ;;  %v3942_v51 = vpop.f32.mrb[13].mxu1  ;;  %v1980_v49 = vadd.f32 %v1970_v59, %v1813_v43  ;;  %v3949_v33 = vpop.f32.mrb[11].mxu0  ;;  %v1994_v42 = vld [vmem:[%s5258_s8 + $0x38] sm:$0xff] }
 0x430   : > { %2021 = vmax.xlane.f32.xlu0 %v2020_v21  ;;  %v1763_v62 = vpop.f32.mrb[14].mxu1 }
 0x431   : > { %v1978_v40 = vadd.f32 %v1968_v25, %v1763_v62  ;;  %v3943_v19 = vpop.f32.mrb[15].mxu1  ;;  %v4743_v24 = vadd.f32 %v1988_v53, %v1980_v49  ;;  %v4747_v6 = vadd.f32 %v1993_v47, %v1977_v35  ;;  %v4754_v25 = vadd.f32 %v4688_v61, %v1979_v45 }
 0x433   : > { %v2038_v63 = vsel %vm1569_vm2, %v4743_v24, -inf  ;;  %v4751_v7 = vadd.f32 %v1994_v42, %v1978_v40  ;;  %v2029_v22 = vsel %vm1569_vm2, %v4747_v6, -inf  ;;  %v2035_v61 = vsel %vm1569_vm2, %v4754_v25, -inf }
 0x434   : > { %2024 = vmax.xlane.f32.xlu0 %v2023_v1  ;;  %2039 = vmax.xlane.f32.xlu1 %v2038_v63  ;;  %v1910_v18 = vpop.f32.mrb[12].mxu0 }
 0x435   : > { %v3960_v15 = vpop.f32.mrb[13].mxu0  ;;  %v2032_v54 = vsel %vm1569_vm2, %v4751_v7, -inf  ;;  %v1983_v43 = vadd.f32 %v1969_v36, %v1910_v18 }
 0x436   : > { %v1860_v13 = vpop.f32.mrb[16].mxu1  ;;  %v1913_v53 = vpop.f32.mrb[14].mxu0 }
 0x437   : > { %v1981_v56 = vadd.f32 %v1969_v36, %v1860_v13  ;;  %v3954_v14 = vpop.f32.mrb[17].mxu1  ;;  %v1984_v23 = vadd.f32 %v1970_v59, %v1913_v53  ;;  %v3961_v39 = vpop.f32.mrb[15].mxu0  ;;  %v4773_v40 = vadd.f32 %v1991_v34, %v1983_v43 }
 0x438   : > { %v1863_v30 = vpop.f32.mrb[18].mxu1  ;;  %2030 = vmax.xlane.f32.xlu0 %v2029_v22  ;;  %2033 = vmax.xlane.f32.xlu1 %v2032_v54 }
 0x439   : > { %v1982_v31 = vadd.f32 %v1970_v59, %v1863_v30  ;;  %v3955_v60 = vpop.f32.mrb[19].mxu1  ;;  %v4760_v9 = vadd.f32 %v1992_v10, %v1984_v23  ;;  %v4765_v35 = vadd.f32 %v4705_v0, %v1981_v56 }
 0x43b   : > { %v2050_v51 = vsel %vm1569_vm2, %v4760_v9, -inf  ;;  %v4769_v21 = vadd.f32 %v1990_v48, %v1982_v31  ;;  %v2041_v10 = vsel %vm1569_vm2, %v4765_v35, -inf  ;;  %v2047_v48 = vsel %vm1569_vm2, %v4773_v40, -inf }
 0x43c   : > { %2036 = vmax.xlane.f32.xlu0 %v2035_v61  ;;  %2051 = vmax.xlane.f32.xlu1 %v2050_v51 }
 0x43d   : > { %v2044_v19 = vsel %vm1569_vm2, %v4769_v21, -inf }
 0x43e   : > { %v1960_v49 = vpop.f32.mrb[20].mxu1 }
 0x43f   : > { %v1985_v33 = vadd.f32 %v1969_v36, %v1960_v49  ;;  %v3966_v62 = vpop.f32.mrb[21].mxu1 }
 0x440   : > { %v1963_v0 = vpop.f32.mrb[22].mxu1  ;;  %2042 = vmax.xlane.f32.xlu0 %v2041_v10  ;;  %2045 = vmax.xlane.f32.xlu1 %v2044_v19 }
 0x441   : > { %v1986_v45 = vadd.f32 %v1970_v59, %v1963_v0  ;;  %v3967_v1 = vpop.f32.mrb[23].mxu1  ;;  %v4779_v63 = vadd.f32 %v1993_v47, %v1985_v33 }
 0x443   : > { %v4781_v36 = vadd.f32 %v1994_v42, %v1986_v45  ;;  %v2053_v34 = vsel %vm1569_vm2, %v4779_v63, -inf }
 0x444   : > { %2048 = vmax.xlane.f32.xlu0 %v2047_v48 }
 0x445   : > { %v2056_v59 = vsel %vm1569_vm2, %v4781_v36, -inf }
 0x448   : > { %2054 = vmax.xlane.f32.xlu0 %v2053_v34 }
 0x451   : > { %2242 = vrot.lane.b32.xlu1 %v4595_v57, %s4166_s16 }
 0x455   : > { %2289 = vrot.lane.b32.xlu1 %v4605_v8, %s4166_s16 }
 0x459   : > { %2336 = vrot.lane.b32.xlu1 %v4615_v28, %s4166_s16 }
 0x45e   : > { %2195 = vrot.lane.b32.xlu0 %v4584_v46, %s4166_s16 }
 0x462   : > { %2383 = vrot.lane.b32.xlu0 %v4597_v58, %s4166_s16 }
 0x47d   : > { %2057 = vmax.xlane.f32.xlu1 %v2056_v59 }
 0x48e   : > { %2430 = vrot.lane.b32.xlu1 %v4611_v27, %s4166_s16 }
 0x4b1   : > { %v2013_v57 = vpop.xlane.xlu0 %2012 }
 0x4b2   : > { %v2059_v47 = vsub.f32 %v4694_v20, %v2013_v57 }
 0x4b3   : > { %v2016_v8 = vpop.xlane.xlu1 %2015 }
 0x4b4   : > { %v2075_v42 = vmul.f32 1.442695, %v2059_v47  ;;  %v2060_v28 = vsub.f32 %v4698_v44, %v2016_v8 }
 0x4b6   : > { %4088 = vpow2.f32 %v2075_v42  ;;  %v2077_v18 = vmul.f32 1.442695, %v2060_v28 }
 0x4b8   : > { %4090 = vpow2.f32 %v2077_v18 }
 0x4b9   : > { %v2019_v46 = vpop.xlane.xlu0 %2018  ;;  %v2028_v15 = vpop.xlane.xlu1 %2027 }
 0x4ba   : > { %v2064_v58 = vsub.f32 %v4716_v38, %v2028_v15  ;;  %v2061_v20 = vsub.f32 %v4714_v26, %v2019_v46 }
 0x4bc   : > { %v2085_v13 = vmul.f32 1.442695, %v2064_v58  ;;  %v2079_v30 = vmul.f32 1.442695, %v2061_v20 }
 0x4bd   : > { %v2022_v53 = vpop.xlane.xlu0 %2021 }
 0x4be   : > { %v2062_v56 = vsub.f32 %v4720_v32, %v2022_v53  ;;  %4092 = vpow2.f32 %v2085_v13 }
 0x4c0   : > { %v4803_v27 = vpop.eup %4088  ;;  %v2081_v14 = vmul.f32 1.442695, %v2062_v56 }
 0x4c1   : > { %v2025_v22 = vpop.xlane.xlu0 %2024  ;;  %v2107_v44 = vsel %vm1569_vm2, %v4803_v27, 0.0  ;;  %v2040_v23 = vpop.xlane.xlu1 %2039 }
 0x4c2   : > { %v4808_v39 = vpop.eup %4090  ;;  %4094 = vpow2.f32 %v2081_v14  ;;  %v2063_v38 = vsub.f32 %v4735_v37, %v2025_v22  ;;  %2108 = vadd.xlane.f32.xlu0 %v2107_v44  ;;  %v2068_v54 = vsub.f32 %v4743_v24, %v2040_v23 }
 0x4c3   : > { %v2110_v32 = vsel %vm1569_vm2, %v4808_v39, 0.0 }
 0x4c4   : > { %v2083_v31 = vmul.f32 1.442695, %v2063_v38  ;;  %2111 = vadd.xlane.f32.xlu1 %v2110_v32  ;;  %v2093_v26 = vmul.f32 1.442695, %v2068_v54 }
 0x4c5   : > { %v2031_v60 = vpop.xlane.xlu0 %2030  ;;  %v2034_v61 = vpop.xlane.xlu1 %2033 }
 0x4c6   : > { %4096 = vpow2.f32 %v2083_v31  ;;  %v2066_v43 = vsub.f32 %v4751_v7, %v2034_v61  ;;  %v2065_v51 = vsub.f32 %v4747_v6, %v2031_v60 }
 0x4c7   : > { %4098 = vpow2.f32 %v2093_v26 }
 0x4c8   : > { %4100 = vpow2.f32 %v2079_v30  ;;  %v2089_v37 = vmul.f32 1.442695, %v2066_v43  ;;  %v4816_v49 = vpop.eup %4092  ;;  %v2087_v7 = vmul.f32 1.442695, %v2065_v51 }
 0x4c9   : > { %v2037_v24 = vpop.xlane.xlu0 %2036  ;;  %v2052_v33 = vpop.xlane.xlu1 %2051  ;;  %v2122_v19 = vsel %vm1569_vm2, %v4816_v49, 0.0 }
 0x4ca   : > { %v2067_v62 = vsub.f32 %v4754_v25, %v2037_v24  ;;  %v2072_v10 = vsub.f32 %v4760_v9, %v2052_v33  ;;  %4102 = vpow2.f32 %v2089_v37  ;;  %2123 = vadd.xlane.f32.xlu1 %v2122_v19 }
 0x4cc   : > { %v4822_v0 = vpop.eup %4094  ;;  %v2091_v45 = vmul.f32 1.442695, %v2067_v62  ;;  %v2101_v1 = vmul.f32 1.442695, %v2072_v10 }
 0x4cd   : > { %v2043_v6 = vpop.xlane.xlu0 %2042  ;;  %v2046_v48 = vpop.xlane.xlu1 %2045  ;;  %v2116_v25 = vsel %vm1569_vm2, %v4822_v0, 0.0 }
 0x4ce   : > { %4104 = vpow2.f32 %v2091_v45  ;;  %v2070_v34 = vsub.f32 %v4769_v21, %v2046_v48  ;;  %2117 = vadd.xlane.f32.xlu1 %v2116_v25  ;;  %v2069_v59 = vsub.f32 %v4765_v35, %v2043_v6 }
 0x4cf   : > { %4106 = vpow2.f32 %v2101_v1 }
 0x4d0   : > { %v4827_v9 = vpop.eup %4096  ;;  %4108 = vpow2.f32 %v2087_v7  ;;  %v2097_v57 = vmul.f32 1.442695, %v2070_v34  ;;  %v2095_v35 = vmul.f32 1.442695, %v2069_v59 }
 0x4d1   : > { %v4830_v47 = vpop.eup %4098  ;;  %v2049_v8 = vpop.xlane.xlu0 %2048  ;;  %v2119_v42 = vsel %vm1569_vm2, %v4827_v9, 0.0 }
 0x4d2   : > { %v2243_v28 = vpop.permute.xlu1 %2242  ;;  %v4834_v18 = vpop.eup %4100  ;;  %v2071_v21 = vsub.f32 %v4773_v40, %v2049_v8  ;;  %2120 = vadd.xlane.f32.xlu0 %v2119_v42  ;;  %v2134_v46 = vsel %vm1569_vm2, %v4830_v47, 0.0  ;;  %4110 = vpow2.f32 %v2097_v57 }
 0x4d3   : > { %3975 = vmatpush3.bf16.msra.mxu1 %v2243_v28  ;;  %2135 = vadd.xlane.f32.xlu1 %v2134_v46  ;;  %v2113_v53 = vsel %vm1569_vm2, %v4834_v18, 0.0 }
 0x4d4   : > { %3986 = vmatprep.subr.bf16.mxu1 %v4160_v52  ;;  %v2099_v15 = vmul.f32 1.442695, %v2071_v21  ;;  %v4840_v58 = vpop.eup %4102 }
 0x4d5   : > { %v2055_v13 = vpop.xlane.xlu0 %2054  ;;  %v2128_v56 = vsel %vm1569_vm2, %v4840_v58, 0.0 }
 0x4d6   : > { %4112 = vpow2.f32 %v2099_v15  ;;  %v2073_v40 = vsub.f32 %v4779_v63, %v2055_v13  ;;  %2114 = vadd.xlane.f32.xlu0 %v2113_v53  ;;  %v2290_v37 = vpop.permute.xlu1 %2289 }
 0x4d7   : > { %2129 = vadd.xlane.f32.xlu1 %v2128_v56  ;;  %4114 = vpow2.f32 %v2095_v35 }
 0x4d8   : > { %v4847_v20 = vpop.eup %4104  ;;  %v2103_v14 = vmul.f32 1.442695, %v2073_v40 }
 0x4d9   : > { %v4849_v22 = vpop.eup %4106  ;;  %v2196_v44 = vpop.permute.xlu0 %2195  ;;  %v2131_v23 = vsel %vm1569_vm2, %v4847_v20, 0.0 }
 0x4da   : > { %v4853_v38 = vpop.eup %4108  ;;  %2132 = vadd.xlane.f32.xlu0 %v2131_v23  ;;  %3969 = vmatpush3.bf16.msra.mxu0 %v2196_v44  ;;  %v2146_v63 = vsel %vm1569_vm2, %v4849_v22, 0.0  ;;  %4116 = vpow2.f32 %v2103_v14  ;;  %v4878_v24 = vpop.permute.xlu1 %2336 }
 0x4db   : > { %2147 = vadd.xlane.f32.xlu1 %v2146_v63  ;;  %3980 = vmatprep.subr.bf16.mxu0 %v4160_v52  ;;  %v2125_v32 = vsel %vm1569_vm2, %v4853_v38, 0.0 }
 0x4dc   : > { %v4858_v54 = vpop.eup %4110 }
 0x4dd   : > { %v2140_v30 = vsel %vm1569_vm2, %v4858_v54, 0.0  ;;  %v2384_v45 = vpop.permute.xlu0 %2383 }
 0x4de   : > { %2126 = vadd.xlane.f32.xlu0 %v2125_v32 }
 0x4df   : > { %2141 = vadd.xlane.f32.xlu1 %v2140_v30 }
 0x4e0   : > { %v4864_v31 = vpop.eup %4112 }
 0x4e1   : > { %v2143_v26 = vsel %vm1569_vm2, %v4864_v31, 0.0  ;;  %v4868_v60 = vpop.eup %4114 }
 0x4e2   : > { %2144 = vadd.xlane.f32.xlu0 %v2143_v26  ;;  %v2137_v61 = vsel %vm1569_vm2, %v4868_v60, 0.0 }
 0x4e4   : > { %v4872_v43 = vpop.eup %4116 }
 0x4e5   : > { %v2149_v51 = vsel %vm1569_vm2, %v4872_v43, 0.0 }
 0x4e6   : > { %2138 = vadd.xlane.f32.xlu0 %v2137_v61 }
 0x4ea   : > { %2150 = vadd.xlane.f32.xlu0 %v2149_v51 }
 0x500   : > { %2477 = vrot.lane.b32.xlu0 %v4607_v55, %s4166_s16 }
 0x50a   : > { %v2058_v33 = vpop.xlane.xlu1 %2057 }
 0x50b   : > { %v2074_v62 = vsub.f32 %v4781_v36, %v2058_v33 }
 0x50d   : > { %v2105_v10 = vmul.f32 1.442695, %v2074_v62 }
 0x50e   : > { %v4887_v1 = vpop.permute.xlu1 %2430 }
 0x50f   : > { %4118 = vpow2.f32 %v2105_v10 }
 0x519   : > { %v4881_v19 = vpop.eup %4118 }
 0x51a   : > { %v2152_v7 = vsel %vm1569_vm2, %v4881_v19, 0.0 }
 0x51b   : > { %2153 = vadd.xlane.f32.xlu1 %v2152_v7 }
 0x52c   : > { %2524 = vrot.lane.b32.xlu1 %v4617_v29, %s4166_s16 }
 0x54f   : > { %v2109_v55 = vpop.xlane.xlu0 %2108 }
 0x550   : > { %4120 = vrcp.f32 %v2109_v55 }
 0x551   : > { %v2112_v6 = vpop.xlane.xlu1 %2111 }
 0x552   : > { %4122 = vrcp.f32 %v2112_v6 }
 0x557   : > { %v2124_v48 = vpop.xlane.xlu1 %2123 }
 0x558   : > { %4124 = vrcp.f32 %v2124_v48 }
 0x55a   : > { %v4121_v36 = vpop.eup %4120 }
 0x55b   : > { %v2118_v25 = vpop.xlane.xlu1 %2117  ;;  %v2171_v59 = vmul.f32 %v4121_v36, %v4803_v27 }
 0x55c   : > { %v4123_v34 = vpop.eup %4122 }
 0x55d   : > { %v2172_v57 = vmul.f32 %v4123_v34, %v4808_v39 }
 0x55f   : > { %v2121_v8 = vpop.xlane.xlu0 %2120  ;;  %v2187_v42 = vpack.c.bf16 %v2172_v57, %v2171_v59 }
 0x560   : > { %4126 = vrcp.f32 %v2121_v8  ;;  %v2136_v29 = vpop.xlane.xlu1 %2135 }
 0x561   : > { %3971 = vmatmul.mubr.msk.bf16.vlgmr.msra.gmra.mrb[16].mxu0 %vm1569_vm2, %v2187_v42  ;;  %4128 = vrcp.f32 %v2118_v25 }
 0x562   : > { %3981 = vmatpush3.bf16.msra.mxu0 %v2290_v37  ;;  %3982 = vmatprep.mubr.msk.bf16.mxu0 %vm4165_vm1, %v4160_v52  ;;  %v4125_v39 = vpop.eup %4124 }
 0x563   : > { %v2115_v28 = vpop.xlane.xlu0 %2114  ;;  %3992 = vmatprep.subr.bf16.mxu0 %v4160_v52  ;;  %v2176_v15 = vmul.f32 %v4125_v39, %v4816_v49 }
 0x564   : > { %4130 = vrcp.f32 %v2115_v28  ;;  %v2130_v21 = vpop.xlane.xlu1 %2129 }
 0x565   : > { %4132 = vrcp.f32 %v2136_v29 }
 0x567   : > { %v2133_v27 = vpop.xlane.xlu0 %2132 }
 0x568   : > { %4134 = vrcp.f32 %v2133_v27  ;;  %v2148_v46 = vpop.xlane.xlu1 %2147 }
 0x569   : > { %4136 = vrcp.f32 %v2130_v21 }
 0x56a   : > { %v4127_v35 = vpop.eup %4126 }
 0x56b   : > { %v2175_v13 = vmul.f32 %v4127_v35, %v4827_v9  ;;  %v2127_v53 = vpop.xlane.xlu0 %2126  ;;  %v4129_v40 = vpop.eup %4128 }
 0x56c   : > { %4138 = vrcp.f32 %v2127_v53  ;;  %v2174_v44 = vmul.f32 %v4129_v40, %v4822_v0  ;;  %v2142_v32 = vpop.xlane.xlu1 %2141 }
 0x56d   : > { %v2189_v56 = vpack.c.bf16 %v2176_v15, %v2175_v13  ;;  %4140 = vrcp.f32 %v2148_v46 }
 0x56e   : > { %v4131_v14 = vpop.eup %4130 }
 0x56f   : > { %v2173_v23 = vmul.f32 %v4131_v14, %v4834_v18  ;;  %3983 = vmatmul.mubr.msk.bf16.vlgmr.msra.gmra.mrb[20].mxu0 %vm1569_vm2, %v2189_v56  ;;  %v2145_v63 = vpop.xlane.xlu0 %2144  ;;  %v4133_v30 = vpop.eup %4132 }
 0x570   : > { %3993 = vmatpush3.bf16.msra.mxu0 %v2384_v45  ;;  %4142 = vrcp.f32 %v2145_v63  ;;  %3994 = vmatprep.mubr.msk.bf16.mxu0 %vm4165_vm1, %v4160_v52  ;;  %v2180_v26 = vmul.f32 %v4133_v30, %v4830_v47 }
 0x571   : > { %v2188_v49 = vpack.c.bf16 %v2174_v44, %v2173_v23  ;;  %4004 = vmatprep.subr.bf16.mxu0 %v4160_v52  ;;  %4144 = vrcp.f32 %v2142_v32 }
 0x572   : > { %v4135_v9 = vpop.eup %4134 }
 0x573   : > { %v2179_v0 = vmul.f32 %v4135_v9, %v4847_v20  ;;  %3977 = vmatmul.mubr.msk.bf16.vlgmr.msra.gmra.mrb[24].mxu1 %vm1569_vm2, %v2188_v49  ;;  %v2139_v18 = vpop.xlane.xlu0 %2138  ;;  %v4137_v61 = vpop.eup %4136 }
 0x574   : > { %3987 = vmatpush3.bf16.msra.mxu1 %v4878_v24  ;;  %4146 = vrcp.f32 %v2139_v18  ;;  %3988 = vmatprep.mubr.msk.bf16.mxu1 %vm4165_vm1, %v4160_v52  ;;  %v2178_v33 = vmul.f32 %v4137_v61, %v4840_v58 }
 0x575   : > { %v2191_v51 = vpack.c.bf16 %v2180_v26, %v2179_v0  ;;  %3998 = vmatprep.subr.bf16.mxu1 %v4160_v52 }
 0x576   : > { %v4139_v37 = vpop.eup %4138 }
 0x577   : > { %v2177_v47 = vmul.f32 %v4139_v37, %v4853_v38  ;;  %3995 = vmatmul.mubr.msk.bf16.vlgmr.msra.gmra.mrb[24].mxu0 %vm1569_vm2, %v2191_v51  ;;  %v2151_v20 = vpop.xlane.xlu0 %2150  ;;  %v4141_v62 = vpop.eup %4140 }
 0x578   : > { %4006 = vmatprep.mubr.msk.bf16.mxu0 %vm4165_vm1, %v4160_v52  ;;  %v2184_v7 = vmul.f32 %v4141_v62, %v4849_v22  ;;  %4148 = vrcp.f32 %v2151_v20 }
 0x579   : > { %v2190_v24 = vpack.c.bf16 %v2178_v33, %v2177_v47 }
 0x57a   : > { %v4143_v10 = vpop.eup %4142 }
 0x57b   : > { %v2183_v45 = vmul.f32 %v4143_v10, %v4864_v31  ;;  %3989 = vmatmul.mubr.msk.bf16.vlgmr.msra.gmra.mrb[28].mxu1 %vm1569_vm2, %v2190_v24  ;;  %v2478_v55 = vpop.permute.xlu0 %2477  ;;  %v4145_v6 = vpop.eup %4144 }
 0x57c   : > { %3999 = vmatpush3.bf16.msra.mxu1 %v4887_v1  ;;  %4005 = vmatpush3.bf16.msra.mxu0 %v2478_v55  ;;  %v2182_v48 = vmul.f32 %v4145_v6, %v4858_v54 }
 0x57d   : > { %v2193_v58 = vpack.c.bf16 %v2184_v7, %v2183_v45  ;;  %4000 = vmatprep.mubr.msk.bf16.mxu1 %vm4165_vm1, %v4160_v52  ;;  %4010 = vmatprep.subr.bf16.mxu1 %v4160_v52 }
 0x57e   : > { %v4147_v38 = vpop.eup %4146 }
 0x57f   : > { %v2181_v22 = vmul.f32 %v4147_v38, %v4868_v60  ;;  %4007 = vmatmul.mubr.msk.bf16.vlgmr.msra.gmra.mrb[28].mxu0 %vm1569_vm2, %v2193_v58 }
 0x581   : > { %v2192_v31 = vpack.c.bf16 %v2182_v48, %v2181_v22 }
 0x582   : > { %v4149_v34 = vpop.eup %4148 }
 0x583   : > { %4001 = vmatmul.mubr.msk.bf16.vlgmr.msra.gmra.mrb[32].mxu1 %vm1569_vm2, %v2192_v31  ;;  %v2185_v59 = vmul.f32 %v4149_v34, %v4872_v43 }
 0x584   : > { %4012 = vmatprep.mubr.msk.bf16.mxu1 %vm4165_vm1, %v4160_v52 }
 0x5a8   : > { %v2154_v1 = vpop.xlane.xlu1 %2153 }
 0x5a9   : > { %4150 = vrcp.f32 %v2154_v1 }
 0x5ac   : > { %v2525_v36 = vpop.permute.xlu1 %2524 }
 0x5ad   : > { %4011 = vmatpush3.bf16.msra.mxu1 %v2525_v36 }
 0x5b3   : > { %v4151_v25 = vpop.eup %4150 }
 0x5b4   : > { %v2186_v54 = vmul.f32 %v4151_v25, %v4881_v19 }
 0x5b6   : > { %v2194_v60 = vpack.c.bf16 %v2186_v54, %v2185_v59 }
 0x5b8   : > { %4013 = vmatmul.mubr.msk.bf16.vlgmr.msra.gmra.mrb[36].mxu1 %vm1569_vm2, %v2194_v60 }
 0x634   : > { %v2235_v57 = vpop.f32.mrb[16].mxu0 }
 0x635   : > { %v3972_v8 = vpop.f32.mrb[17].mxu0  ;;  %v2571_v35 = vcombine.high %v2235_v57, %v4160_v52  ;;  %v2578_v56 = vrot.slane %v2235_v57, %v4343_v41 }
 0x636   : > { %v2238_v42 = vpop.f32.mrb[18].mxu0 }
 0x637   : > { %v3973_v29 = vpop.f32.mrb[19].mxu0  ;;  %v2637_v13 = vcombine.high %v2238_v42, %v4160_v52  ;;  %v2585_v14 = vrot.slane %v2571_v35, %v4343_v41  ;;  %v2644_v32 = vrot.slane %v2238_v42, %v4343_v41 }
 0x639   : > { %v2651_v30 = vrot.slane %v2637_v13, %v4343_v41 }
 0x642   : > { %v2329_v28 = vpop.f32.mrb[20].mxu0 }
 0x643   : > { %v3984_v21 = vpop.f32.mrb[21].mxu0  ;;  %v2835_v43 = vcombine.high %v2329_v28, %v4160_v52  ;;  %v4941_v49 = vrot.slane %v2329_v28, %v4343_v41 }
 0x644   : > { %v2332_v27 = vpop.f32.mrb[22].mxu0 }
 0x645   : > { %v3985_v39 = vpop.f32.mrb[23].mxu0  ;;  %v4944_v9 = vrot.slane %v2835_v43, %v4343_v41  ;;  %v2901_v33 = vcombine.high %v2332_v27, %v4160_v52  ;;  %v4950_v47 = vrot.slane %v2332_v27, %v4343_v41 }
 0x646   : > { %v2282_v46 = vpop.f32.mrb[24].mxu1 }
 0x647   : > { %v3978_v15 = vpop.f32.mrb[25].mxu1  ;;  %v2703_v20 = vcombine.high %v2282_v46, %v4160_v52  ;;  %v2915_v29 = vrot.slane %v2901_v33, %v4343_v41  ;;  %v4968_v28 = vrot.slane %v2282_v46, %v4343_v41 }
 0x648   : > { %v2285_v19 = vpop.f32.mrb[26].mxu1 }
 0x649   : > { %v3979_v53 = vpop.f32.mrb[27].mxu1  ;;  %v2769_v58 = vcombine.high %v2285_v19, %v4160_v52 }
 0x64a   : > { %v2423_v40 = vpop.f32.mrb[24].mxu0 }
 0x64b   : > { %v2586_v44 = vcombine.high %v2423_v40, %v4160_v52  ;;  %v2593_v23 = vrot.slane %v2423_v40, %v4343_v41  ;;  %v3996_v63 = vpop.f32.mrb[25].mxu0  ;;  %v4973_v40 = vrot.slane %v2703_v20, %v4343_v41 }
 0x64c   : > { %v2426_v26 = vpop.f32.mrb[26].mxu0 }
 0x64d   : > { %v2600_v0 = vrot.slane %v2586_v44, %v4343_v41  ;;  %v2601_v18 = vcombine.low %v2578_v56, %v2593_v23  ;;  %v2602_v61 = vcombine.high %v2578_v56, %v2593_v23  ;;  %v2652_v51 = vcombine.high %v2426_v26, %v4160_v52  ;;  %v3997_v37 = vpop.f32.mrb[27].mxu0 }
 0x64e   : > { %v2659_v62 = vrot.slane %v2426_v26, %v4343_v41  ;;  %v4954_v24 = vpop.f32.mrb[28].mxu1  ;;  %v4976_v56 = vrot.slane %v2285_v19, %v4343_v41 }
 0x64f   : > { %v2609_v10 = vrot.slane %v2601_v18, %v4353_v50  ;;  %v2616_v7 = vrot.slane %v2602_v61, %v4353_v50  ;;  %v2617_v45 = vcombine.low %v2585_v14, %v2600_v0  ;;  %v2618_v55 = vcombine.high %v2585_v14, %v2600_v0  ;;  %v3990_v6 = vpop.f32.mrb[29].mxu1 }
 0x650   : > { %v2666_v38 = vrot.slane %v2652_v51, %v4343_v41  ;;  %v2667_v48 = vcombine.low %v2644_v32, %v2659_v62  ;;  %v2668_v22 = vcombine.high %v2644_v32, %v2659_v62  ;;  %v4960_v31 = vpop.f32.mrb[30].mxu1  ;;  %v4979_v14 = vrot.slane %v2769_v58, %v4343_v41 }
 0x651   : > { %v2625_v1 = vrot.slane %v2617_v45, %v4353_v50  ;;  %v2632_v36 = vrot.slane %v2618_v55, %v4353_v50  ;;  %v3099_v34 = vcombine.low %v2609_v10, %v2616_v7  ;;  %v3802_v25 = vcombine.high %v2609_v10, %v2616_v7  ;;  %v3991_v59 = vpop.f32.mrb[31].mxu1 }
 0x652   : > { %v2675_v54 = vrot.slane %v2667_v48, %v4353_v50  ;;  %v2682_v60 = vrot.slane %v2668_v22, %v4353_v50  ;;  %v2683_v57 = vcombine.low %v2651_v30, %v2666_v38  ;;  %v2684_v8 = vcombine.high %v2651_v30, %v2666_v38  ;;  %v2517_v42 = vpop.f32.mrb[28].mxu0 }
 0x653   : > { %v3115_v21 = vcombine.low %v2625_v1, %v2632_v36  ;;  %v3803_v27 = vcombine.high %v2625_v1, %v2632_v36  ;;  %v4008_v39 = vpop.f32.mrb[29].mxu0  ;;  %v4982_v46 = vrot.slane %v3099_v34, %v4343_v41  ;;  %v4985_v23 = vrot.slane %v3802_v25, %v4343_v41 }
 0x654   : > { %v2691_v35 = vrot.slane %v2683_v57, %v4353_v50  ;;  %v2698_v15 = vrot.slane %v2684_v8, %v4353_v50  ;;  %v3149_v13 = vcombine.low %v2675_v54, %v2682_v60  ;;  %v3804_v43 = vcombine.high %v2675_v54, %v2682_v60  ;;  %v2520_v53 = vpop.f32.mrb[30].mxu0 }
 0x655   : > { %v4009_v44 = vpop.f32.mrb[31].mxu0  ;;  %v4988_v63 = vrot.slane %v3115_v21, %v4343_v41  ;;  %v4991_v0 = vrot.slane %v3803_v27, %v4343_v41  ;;  %v2850_v18 = vcombine.high %v2517_v42, %v4160_v52  ;;  %v2857_v61 = vrot.slane %v2517_v42, %v4343_v41 }
 0x656   : > { %v3165_v32 = vcombine.low %v2691_v35, %v2698_v15  ;;  %v3805_v30 = vcombine.high %v2691_v35, %v2698_v15  ;;  %v2470_v26 = vpop.f32.mrb[32].mxu1  ;;  %v4994_v19 = vrot.slane %v3149_v13, %v4343_v41  ;;  %v4999_v37 = vrot.slane %v3804_v43, %v4343_v41 }
 0x657   : > { %v4002_v51 = vpop.f32.mrb[33].mxu1  ;;  %v2916_v20 = vcombine.high %v2520_v53, %v4160_v52  ;;  %v2923_v62 = vrot.slane %v2520_v53, %v4343_v41  ;;  %v2864_v45 = vrot.slane %v2850_v18, %v4343_v41  ;;  %v2865_v55 = vcombine.low %v4941_v49, %v2857_v61 }
 0x658   : > { %v5002_v33 = vrot.slane %v3165_v32, %v4343_v41  ;;  %v2473_v10 = vpop.f32.mrb[34].mxu1  ;;  %v5007_v7 = vrot.slane %v3805_v30, %v4343_v41  ;;  %v2866_v6 = vcombine.high %v4941_v49, %v2857_v61  ;;  %v2718_v1 = vcombine.high %v2470_v26, %v4160_v52 }
 0x659   : > { %v4003_v58 = vpop.f32.mrb[35].mxu1  ;;  %v2930_v38 = vrot.slane %v2916_v20, %v4343_v41  ;;  %v2931_v48 = vcombine.low %v4950_v47, %v2923_v62  ;;  %v2932_v22 = vcombine.high %v4950_v47, %v2923_v62  ;;  %v2873_v36 = vrot.slane %v2865_v55, %v4353_v50 }
 0x65a   : > { %v2880_v34 = vrot.slane %v2866_v6, %v4353_v50  ;;  %v2881_v25 = vcombine.low %v4944_v9, %v2864_v45  ;;  %v2882_v59 = vcombine.high %v4944_v9, %v2864_v45  ;;  %v2725_v51 = vrot.slane %v2470_v26, %v4343_v41 }
 0x65b   : > { %v2939_v54 = vrot.slane %v2931_v48, %v4353_v50  ;;  %v2946_v49 = vrot.slane %v2932_v22, %v4353_v50  ;;  %v2947_v60 = vcombine.low %v2915_v29, %v2930_v38  ;;  %v2948_v57 = vcombine.high %v2915_v29, %v2930_v38 }
 0x65c   : > { %v2889_v8 = vrot.slane %v2881_v25, %v4353_v50  ;;  %v2896_v47 = vrot.slane %v2882_v59, %v4353_v50  ;;  %v3299_v42 = vcombine.low %v2873_v36, %v2880_v34  ;;  %v3810_v21 = vcombine.high %v2873_v36, %v2880_v34 }
 0x65d   : > { %v2955_v27 = vrot.slane %v2947_v60, %v4353_v50  ;;  %v2962_v39 = vrot.slane %v2948_v57, %v4353_v50  ;;  %v3349_v35 = vcombine.low %v2939_v54, %v2946_v49  ;;  %v3812_v15 = vcombine.high %v2939_v54, %v2946_v49 }
 0x65e   : > { %v3306_v9 = vrot.slane %v3299_v42, %v4343_v41  ;;  %v3314_v13 = vrot.slane %v3810_v21, %v4343_v41  ;;  %v3315_v43 = vcombine.low %v2889_v8, %v2896_v47  ;;  %v3811_v53 = vcombine.high %v2889_v8, %v2896_v47 }
 0x65f   : > { %v5029_v29 = vrot.slane %v3349_v35, %v4343_v41  ;;  %v5032_v44 = vrot.slane %v3812_v15, %v4343_v41  ;;  %v3365_v32 = vcombine.low %v2955_v27, %v2962_v39  ;;  %v3813_v30 = vcombine.high %v2955_v27, %v2962_v39 }
 0x660   : > { %v3322_v18 = vrot.slane %v3315_v43, %v4343_v41  ;;  %v3330_v61 = vrot.slane %v3811_v53, %v4343_v41  ;;  %v2732_v20 = vrot.slane %v2718_v1, %v4343_v41  ;;  %v2784_v55 = vcombine.high %v2473_v10, %v4160_v52 }
 0x661   : > { %v3372_v62 = vrot.slane %v3365_v32, %v4343_v41  ;;  %v3380_v45 = vrot.slane %v3813_v30, %v4343_v41  ;;  %v2791_v6 = vrot.slane %v2473_v10, %v4343_v41  ;;  %v2733_v58 = vcombine.low %v4968_v28, %v2725_v51 }
 0x662   : > { %v2734_v38 = vcombine.high %v4968_v28, %v2725_v51  ;;  %v2749_v48 = vcombine.low %v4973_v40, %v2732_v20  ;;  %v2750_v22 = vcombine.high %v4973_v40, %v2732_v20  ;;  %v2798_v26 = vrot.slane %v2784_v55, %v4343_v41 }
 0x663   : > { %v2799_v1 = vcombine.low %v4976_v56, %v2791_v6  ;;  %v2800_v36 = vcombine.high %v4976_v56, %v2791_v6  ;;  %v3131_v34 = vcombine.low %v4982_v46, %v4985_v23  ;;  %v2741_v25 = vrot.slane %v2733_v58, %v4353_v50 }
 0x664   : > { %v2748_v10 = vrot.slane %v2734_v38, %v4353_v50  ;;  %v2757_v59 = vrot.slane %v2749_v48, %v4353_v50  ;;  %v2764_v28 = vrot.slane %v2750_v22, %v4353_v50  ;;  %v2815_v49 = vcombine.low %v4979_v14, %v2798_v26 }
 0x665   : > { %v2807_v54 = vrot.slane %v2799_v1, %v4353_v50  ;;  %v2814_v40 = vrot.slane %v2800_v36, %v4353_v50  ;;  %v2816_v60 = vcombine.high %v4979_v14, %v2798_v26  ;;  %v5068_v30 = vrot.slane %v3131_v34, %v4353_v50 }
 0x666   : > { %v3199_v56 = vcombine.low %v2741_v25, %v2748_v10  ;;  %v3806_v57 = vcombine.high %v2741_v25, %v2748_v10  ;;  %v3215_v8 = vcombine.low %v2757_v59, %v2764_v28  ;;  %v3807_v46 = vcombine.high %v2757_v59, %v2764_v28 }
 0x667   : > { %v2823_v23 = vrot.slane %v2815_v49, %v4353_v50  ;;  %v2830_v47 = vrot.slane %v2816_v60, %v4353_v50  ;;  %v3249_v42 = vcombine.low %v2807_v54, %v2814_v40  ;;  %v3808_v21 = vcombine.high %v2807_v54, %v2814_v40 }
 0x668   : > { %v3206_v27 = vrot.slane %v3199_v56, %v4343_v41  ;;  %v3214_v39 = vrot.slane %v3806_v57, %v4343_v41  ;;  %v3222_v35 = vrot.slane %v3215_v8, %v4343_v41  ;;  %v3230_v15 = vrot.slane %v3807_v46, %v4343_v41 }
 0x669   : > { %v3256_v14 = vrot.slane %v3249_v42, %v4343_v41  ;;  %v3264_v43 = vrot.slane %v3808_v21, %v4343_v41  ;;  %v3265_v53 = vcombine.low %v2823_v23, %v2830_v47  ;;  %v3809_v32 = vcombine.high %v2823_v23, %v2830_v47 }
 0x66a   : > { %v3139_v51 = vcombine.low %v4988_v63, %v4991_v0  ;;  %v3181_v20 = vcombine.low %v4994_v19, %v4999_v37  ;;  %v3189_v55 = vcombine.low %v5002_v33, %v5007_v7  ;;  %v3331_v38 = vcombine.low %v3306_v9, %v3314_v13  ;;  %v4070_v19 = vld [vmem:[%s5255_s5] sm:$0xff]  }
 0x66b   : > { %v3272_v6 = vrot.slane %v3265_v53, %v4343_v41  ;;  %v3280_v58 = vrot.slane %v3809_v32, %v4343_v41  ;;  %v3339_v48 = vcombine.low %v3322_v18, %v3330_v61  ;;  %v3381_v0 = vcombine.low %v5029_v29, %v5032_v44  ;;  %4016 = vmatprep.subr.bf16.mxu0 %v4070_v19  ;;  %v4071_v61 = vld [vmem:[%s5255_s5 + $0x8] sm:$0xff]  }
 0x66c   : > { %v5079_v22 = vrot.slane %v3139_v51, %v4353_v50  ;;  %v5082_v26 = vrot.slane %v3181_v20, %v4353_v50  ;;  %v5085_v63 = vrot.slane %v3189_v55, %v4353_v50  ;;  %v5093_v37 = vrot.slane %v3331_v38, %v4353_v50  ;;  %4017 = vmatpush3.bf16.msra.mxu0 %v4070_v19 }
 0x66d   : > { %v5096_v33 = vrot.slane %v3339_v48, %v4353_v50  ;;  %v3389_v7 = vcombine.low %v3372_v62, %v3380_v45  ;;  %v3231_v9 = vcombine.low %v3206_v27, %v3214_v39  ;;  %v5112_v45 = vrot.slane %v3381_v0, %v4353_v50  ;;  %4018 = vmatprep.subr.bf16.mxu0 %v4071_v61 }
 0x66e   : > { %v3147_v13 = vcombine.low %v5068_v30, %v5079_v22  ;;  %v3148_v18 = vcombine.high %v5068_v30, %v5079_v22  ;;  %v3198_v29 = vcombine.high %v5082_v26, %v5085_v63  ;;  %v3197_v44 = vcombine.low %v5082_v26, %v5085_v63 }
 0x66f   : > { %v3348_v62 = vcombine.high %v5093_v37, %v5096_v33  ;;  %v5115_v1 = vrot.slane %v3389_v7, %v4353_v50  ;;  %v3239_v34 = vcombine.low %v3222_v35, %v3230_v15  ;;  %v3281_v25 = vcombine.low %v3256_v14, %v3264_v43 }
 0x670   : > { %v4048_v36 = vpack.i.bf16 %v3198_v29, %v3148_v18  ;;  %v3289_v10 = vcombine.low %v3272_v6, %v3280_v58  ;;  %v3347_v28 = vcombine.low %v5093_v37, %v5096_v33  ;;  %v5125_v40 = vrot.slane %v3231_v9, %v4353_v50  ;;  %4019 = vmatpush3.bf16.msra.mxu0 %v4071_v61 }
 0x671   : > { %v3398_v59 = vcombine.high %v5112_v45, %v5115_v1  ;;  %v3397_v54 = vcombine.low %v5112_v45, %v5115_v1  ;;  %v5128_v49 = vrot.slane %v3239_v34, %v4353_v50  ;;  %v5131_v60 = vrot.slane %v3281_v25, %v4353_v50 }
 0x672   : > { %4049 = vrot.lane.b32.xlu0 %v4048_v36, %s4167_s21  ;;  %v5134_v56 = vrot.slane %v3289_v10, %v4353_v50  ;;  %v2967_v21 = vcombine.high %v4954_v24, %v4160_v52  ;;  %v2974_v39 = vrot.slane %v4954_v24, %v4343_v41  ;;  %v3033_v53 = vcombine.high %v4960_v31, %v4160_v52 }
 0x673   : > { %v4058_v57 = vpack.i.bf16 %v3398_v59, %v3348_v62  ;;  %v3247_v8 = vcombine.low %v5125_v40, %v5128_v49  ;;  %v3248_v46 = vcombine.high %v5125_v40, %v5128_v49  ;;  %v3040_v24 = vrot.slane %v4960_v31, %v4343_v41  ;;  %v3818_v49 = vld [vmem:[%s5256_s6] ss:$0 sm:$0xff] }
 0x674   : > { %v3298_v23 = vcombine.high %v5131_v60, %v5134_v56  ;;  %v3297_v47 = vcombine.low %v5131_v60, %v5134_v56  ;;  %v2981_v43 = vrot.slane %v2967_v21, %v4343_v41  ;;  %v3047_v9 = vrot.slane %v3033_v53, %v4343_v41 }
 0x676   : > { %4059 = vrot.lane.b32.xlu0 %v4058_v57, %s4167_s21  ;;  %v4053_v42 = vpack.i.bf16 %v3298_v23, %v3248_v46 }
 0x678   : > { %4054 = vrot.lane.b32.xlu1 %v4053_v42, %s4167_s21 }
 0x68b   : > { %v2564_v27 = vpop.f32.mrb[36].mxu1 }
 0x68c   : > { %v2982_v35 = vcombine.high %v2564_v27, %v4160_v52  ;;  %v2989_v15 = vrot.slane %v2564_v27, %v4343_v41  ;;  %v4014_v14 = vpop.f32.mrb[37].mxu1 }
 0x68d   : > { %v2567_v32 = vpop.f32.mrb[38].mxu1 }
 0x68e   : > { %v2996_v51 = vrot.slane %v2982_v35, %v4343_v41  ;;  %v2997_v20 = vcombine.low %v2974_v39, %v2989_v15  ;;  %v2998_v55 = vcombine.high %v2974_v39, %v2989_v15  ;;  %v3048_v6 = vcombine.high %v2567_v32, %v4160_v52  ;;  %v4015_v58 = vpop.f32.mrb[39].mxu1 }
 0x68f   : > { %v3055_v38 = vrot.slane %v2567_v32, %v4343_v41 }
 0x690   : > { %v3005_v48 = vrot.slane %v2997_v20, %v4353_v50  ;;  %v3012_v0 = vrot.slane %v2998_v55, %v4353_v50  ;;  %v3013_v19 = vcombine.low %v2981_v43, %v2996_v51  ;;  %v3014_v7 = vcombine.high %v2981_v43, %v2996_v51 }
 0x691   : > { %v3062_v18 = vrot.slane %v3048_v6, %v4343_v41  ;;  %v3063_v29 = vcombine.low %v3040_v24, %v3055_v38  ;;  %v3064_v61 = vcombine.high %v3040_v24, %v3055_v38 }
 0x692   : > { %v3021_v52 = vrot.slane %v3013_v19, %v4353_v50  ;;  %v3028_v62 = vrot.slane %v3014_v7, %v4353_v50  ;;  %v3399_v36 = vcombine.low %v3005_v48, %v3012_v0  ;;  %v3814_v31 = vcombine.high %v3005_v48, %v3012_v0 }
 0x693   : > { %v3071_v34 = vrot.slane %v3063_v29, %v4353_v50  ;;  %v3078_v25 = vrot.slane %v3064_v61, %v4353_v50  ;;  %v3079_v10 = vcombine.low %v3047_v9, %v3062_v18  ;;  %v3080_v59 = vcombine.high %v3047_v9, %v3062_v18 }
 0x694   : > { %v3406_v57 = vrot.slane %v3399_v36, %v4343_v41  ;;  %v3414_v46 = vrot.slane %v3814_v31, %v4343_v41  ;;  %v3415_v23 = vcombine.low %v3021_v52, %v3028_v62  ;;  %v3815_v42 = vcombine.high %v3021_v52, %v3028_v62 }
 0x695   : > { %v3087_v21 = vrot.slane %v3079_v10, %v4353_v50  ;;  %v3094_v27 = vrot.slane %v3080_v59, %v4353_v50  ;;  %v3449_v39 = vcombine.low %v3071_v34, %v3078_v25  ;;  %v3816_v35 = vcombine.high %v3071_v34, %v3078_v25 }
 0x696   : > { %v3422_v15 = vrot.slane %v3415_v23, %v4343_v41  ;;  %v3430_v14 = vrot.slane %v3815_v42, %v4343_v41  ;;  %v3431_v43 = vcombine.low %v3406_v57, %v3414_v46 }
 0x697   : > { %v3456_v53 = vrot.slane %v3449_v39, %v4343_v41  ;;  %v3464_v32 = vrot.slane %v3816_v35, %v4343_v41  ;;  %v3465_v51 = vcombine.low %v3087_v21, %v3094_v27  ;;  %v3817_v20 = vcombine.high %v3087_v21, %v3094_v27 }
 0x698   : > { %v3439_v55 = vcombine.low %v3422_v15, %v3430_v14  ;;  %v3438_v38 = vrot.slane %v3431_v43, %v4353_v50 }
 0x699   : > { %v3472_v6 = vrot.slane %v3465_v51, %v4343_v41  ;;  %v3480_v58 = vrot.slane %v3817_v20, %v4343_v41  ;;  %v3481_v24 = vcombine.low %v3456_v53, %v3464_v32 }
 0x69a   : > { %v3446_v48 = vrot.slane %v3439_v55, %v4353_v50 }
 0x69b   : > { %v3489_v0 = vcombine.low %v3472_v6, %v3480_v58  ;;  %v3488_v9 = vrot.slane %v3481_v24, %v4353_v50 }
 0x69c   : > { %v3448_v19 = vcombine.high %v3438_v38, %v3446_v48  ;;  %v3447_v7 = vcombine.low %v3438_v38, %v3446_v48 }
 0x69d   : > { %v3496_v18 = vrot.slane %v3489_v0, %v4353_v50 }
 0x69f   : > { %v3498_v29 = vcombine.high %v3488_v9, %v3496_v18  ;;  %v3497_v61 = vcombine.low %v3488_v9, %v3496_v18 }
 0x6a1   : > { %v4063_v52 = vpack.i.bf16 %v3498_v29, %v3448_v19 }
 0x6a3   : > { %4064 = vrot.lane.b32.xlu1 %v4063_v52, %s4167_s21 }
 0x6e4   : > { %v4050_v62 = vpop.permute.xlu0 %4049 }
 0x6e5   : > { %v4052_v36 = vunpack.i.h.bf16 %v4050_v62  ;;  %v4051_v41 = vunpack.i.l.bf16 %v4050_v62 }
 0x6e7   : > { %v3532_v31 = vsel %vm1569_vm2, %v3197_v44, %v4052_v36  ;;  %v3531_v34 = vsel %vm1569_vm2, %v3147_v13, %v4051_v41 }
 0x6e8   : > { %v3539_v25 = vpack.c.bf16 %v3532_v31, %v3531_v34  ;;  %v4060_v50 = vpop.permute.xlu0 %4059 }
 0x6e9   : > { %v4062_v10 = vunpack.i.h.bf16 %v4060_v50  ;;  %v4061_v59 = vunpack.i.l.bf16 %v4060_v50 }
 0x6ea   : > { %4020 = vmatprep.mubr.msk.bf16.mxu0 %vm358_vm0, %v3539_v25  ;;  %v4055_v57 = vpop.permute.xlu1 %4054 }
 0x6eb   : > { %v3536_v46 = vsel %vm1569_vm2, %v3397_v54, %v4062_v10  ;;  %v3535_v26 = vsel %vm1569_vm2, %v3347_v28, %v4061_v59  ;;  %v4057_v30 = vunpack.i.h.bf16 %v4055_v57  ;;  %v4056_v22 = vunpack.i.l.bf16 %v4055_v57 }
 0x6ec   : > { %v3541_v63 = vpack.c.bf16 %v3536_v46, %v3535_v26 }
 0x6ed   : > { %v3533_v13 = vsel %vm1569_vm2, %v3247_v8, %v4056_v22  ;;  %v3534_v44 = vsel %vm1569_vm2, %v3297_v47, %v4057_v30 }
 0x6ee   : > { %v3540_v45 = vpack.c.bf16 %v3534_v44, %v3533_v13 }
 0x6f0   : > { %4021 = vmatmul.mubr.msk.bf16.vlgmr.msra.gmra.mrb[32].mxu0 %vm358_vm0, %v3540_v45 }
 0x6f1   : > { %4024 = vmatprep.mubr.msk.bf16.mxu0 %vm358_vm0, %v3541_v63 }
 0x715   : > { %v4065_v37 = vpop.permute.xlu1 %4064 }
 0x716   : > { %v4067_v33 = vunpack.i.h.bf16 %v4065_v37  ;;  %v4066_v1 = vunpack.i.l.bf16 %v4065_v37 }
 0x718   : > { %v3537_v28 = vsel %vm1569_vm2, %v3447_v7, %v4066_v1  ;;  %v3538_v54 = vsel %vm1569_vm2, %v3497_v61, %v4067_v33 }
 0x719   : > { %v3542_v40 = vpack.c.bf16 %v3538_v54, %v3537_v28 }
 0x71b   : > { %4025 = vmatmul.mubr.msk.bf16.gmra.mrb[36].mxu0 %vm358_vm0, %v3542_v40 }
 0x7c3   : > { %v4022_v60 = vpop.f32.mrb[32].mxu0 }
 0x7c4   : > { %v3621_v56 = vadd.f32 %v4022_v60, %v3818_v49  ;;  %v3612_v8 = vpop.f32.mrb[33].mxu0 }
 0x7c5   : > { %v3613_v47 = vadd.f32 %v3818_v49, %v3612_v8  ;;  %v4023_v23 = vpop.f32.mrb[34].mxu0 }
 0x7c6   : > { %v3645_v42 = vadd.f32 %v4236_v3, %v3621_v56  ;;  %v3624_v21 = vadd.f32 %v4023_v23, %v3818_v49  ;;  %v3615_v27 = vpop.f32.mrb[35].mxu0 }
 0x7c7   : > { %v3643_v39 = vadd.f32 %v4234_v2, %v3613_v47  ;;  %v3616_v35 = vadd.f32 %v3818_v49, %v3615_v27 }
 0x7c8   : > { %v3646_v15 = vadd.f32 %v4240_v5, %v3624_v21  ;;  %v3839_v43 = vpack.c.bf16 %v3645_v42, %v3645_v42 }
 0x7c9   : > { %v3837_v14 = vpack.c.bf16 %v3643_v39, %v3643_v39  ;;  %v3644_v3 = vadd.f32 %v4238_v4, %v3616_v35 }
 0x7ca   : > { %3686 = vst.msk [vmem:[%s5223_s26 + $0x8] sm:$0xf] %vm3683_vm3, %v3839_v43  ;;  %v3840_v53 = vpack.c.bf16 %v3646_v15, %v3646_v15 }
 0x7cb   : > { %3684 = vst.msk [vmem:[%s5223_s26] sm:$0xf] %vm3683_vm3, %v3837_v14  ;;  %v3838_v2 = vpack.c.bf16 %v3644_v3, %v3644_v3 }
 0x7cc   : > { %3687 = vst.msk [vmem:[%s5223_s26 + $0xc] sm:$0xf] %vm3683_vm3, %v3840_v53 }
 0x7cd   : > { %3685 = vst.msk [vmem:[%s5223_s26 + $0x4] sm:$0xf] %vm3683_vm3, %v3838_v2 }
 0x7ee   : > { %v4026_v32 = vpop.f32.mrb[36].mxu0 }
 0x7ef   : > { %v3637_v51 = vadd.f32 %v4026_v32, %v3818_v49  ;;  %v3628_v20 = vpop.f32.mrb[37].mxu0 }
 0x7f0   : > { %v3629_v5 = vadd.f32 %v3818_v49, %v3628_v20  ;;  %v4027_v4 = vpop.f32.mrb[38].mxu0 }
 0x7f1   : > { %v3649_v55 = vadd.f32 %v4258_v16, %v3637_v51  ;;  %v3640_v6 = vadd.f32 %v4027_v4, %v3818_v49  ;;  %v3631_v58 = vpop.f32.mrb[39].mxu0 }
 0x7f2   : > { %v3647_v24 = vadd.f32 %v4250_v11, %v3629_v5  ;;  %v3632_v38 = vadd.f32 %v3818_v49, %v3631_v58 }
 0x7f3   : > { %v3650_v48 = vadd.f32 %v4260_v17, %v3640_v6  ;;  %v3843_v7 = vpack.c.bf16 %v3649_v55, %v3649_v55 }
 0x7f4   : > { %v3841_v0 = vpack.c.bf16 %v3647_v24, %v3647_v24  ;;  %v3648_v19 = vadd.f32 %v4252_v12, %v3632_v38 }
 0x7f5   : > { %3690 = vst.msk [vmem:[%s5223_s26 + $0x18] sm:$0xf] %vm3683_vm3, %v3843_v7  ;;  %v3844_v18 = vpack.c.bf16 %v3650_v48, %v3650_v48 }
 0x7f6   : > { %3688 = vst.msk [vmem:[%s5223_s26 + $0x10] sm:$0xf] %vm3683_vm3, %v3841_v0  ;;  %v3842_v9 = vpack.c.bf16 %v3648_v19, %v3648_v19 }
 0x7f7   : > { %3691 = vst.msk [vmem:[%s5223_s26 + $0x1c] sm:$0xf] %vm3683_vm3, %v3844_v18 }
 0x7f8   : > { %3689 = vst.msk [vmem:[%s5223_s26 + $0x14] sm:$0xf] %vm3683_vm3, %v3842_v9 }
 0x7f9 PF: > { %s19_s30 = sadd.s32 1, %s4158_s30  }
 0x7fa   : > { %p16_p4 = scmp.ge.s32.totalorder %s19_s30, 4  }
 0x7fc   :  { %18 = sbr.rel (!%p16_p4) target bundleno = 1 (0x1), region = 86 }

// kernel: _lambda_.18
= control target key start
LH: loop header
LB: loop body
LE: loop exit
PB: predicated region body
PF: predicated region fallthrough
CT: control target
= control target key end

     0   :  { %s2006_s27 = smov 0   ;;  %s2293_s0 = inlined_call_operand.vmem [shape: bf16[2,16,64], index: 0, kind: input, shape index: {}]   ;;  %s2294_s1 = inlined_call_operand.vmem [shape: f32[1,64], index: 1, kind: input, shape index: {}]   ;;  %s2295_s2 = inlined_call_operand.vmem [shape: f32[1,64], index: 2, kind: input, shape index: {}]   ;;  %s2296_s3 = inlined_call_operand.vmem [shape: bf16[64,192], index: 3, kind: input, shape index: {}]   ;;  %s2297_s4 = inlined_call_operand.vmem [shape: f32[1,192], index: 4, kind: input, shape index: {}]   ;;  %s2298_s5 = inlined_call_operand.vmem [shape: bf16[64,64], index: 5, kind: input, shape index: {}]   ;;  %s2299_s6 = inlined_call_operand.vmem [shape: f32[1,64], index: 6, kind: input, shape index: {}]   ;;  %s2300_s7 = inlined_call_operand.vmem [shape: f32[4,16,16], index: 7, kind: input, shape index: {}]   ;;  %s2301_s8 = inlined_call_operand.vmem [shape: bf16[2,16,64], index: 8, kind: output, shape index: {}]  }
   0x1 LB: > { %s1721_s28 = sadd.s32 4294967295, %s1948_s27   ;;  %p1725_p0 = scmp.ge.s32.totalorder %s1948_s27, 1  ;;  %s1948_s27 = sphi %s2006_s27, %s18_s27  }
   0x2   : > { %p262_p1 = scmp.lt.s32.totalorder %s1948_s27, 3 }
   0x4   : > { %p263_p2 = pnand %p1725_p0, %p262_p1 }
   0x5   : > { %p296_p3 = scmp.lt.s32.totalorder (!%p263_p2), %s1721_s28, 1  ;;  %vm311_vm0 = vcmask (!%p263_p2), 523264   ;;  %v1890_v15 = vld [vmem:[%s2296_s3 + $0x4] ss:$8 sps:$4 sm:$0xff] (!%p263_p2)   ;;  %v1892_v16 = vld [vmem:[%s2296_s3] ss:$8 sps:$4 sm:$0xff] (!%p263_p2)   ;;  %v368_v41 = vlaneseq (!%p263_p2) }
   0x6   : > { %266 = sbr.rel (%p263_p2) target bundleno = 2012 (0x7dc), region = 52  ;;  %421 = vmatprep.subr.bf16.mxu0 (!%p263_p2), %v1890_v15  ;;  %v1893_v17 = vld [vmem:[%s2296_s3 + $0x14] ss:$8 sps:$4 sm:$0xff] (!%p263_p2)   ;;  %v1895_v18 = vld [vmem:[%s2296_s3 + $0x10] ss:$8 sps:$4 sm:$0xff] (!%p263_p2)   ;;  %v1950_v23 = vmov (!%p263_p2), 0  }
   0x7   : > { %422 = vmatpush1.bf16.msra.mxu0 (!%p263_p2), %v1892_v16  ;;  %v1896_v19 = vld [vmem:[%s2296_s3 + $0x24] ss:$8 sps:$4 sm:$0xff] (!%p263_p2)   ;;  %v1898_v20 = vld [vmem:[%s2296_s3 + $0x20] ss:$8 sps:$4 sm:$0xff] (!%p263_p2)   ;;  %v1899_v21 = vld [vmem:[%s2296_s3 + $0x34] ss:$8 sps:$4 sm:$0xff] (!%p263_p2)   ;;  %453 = vmatprep.mubr.bf16.mxu0 (!%p263_p2), %v1950_v23 }
   0x8   : > { %423 = vmatprep.subr.bf16.mxu0 (!%p263_p2), %v1893_v17  ;;  %v1901_v22 = vld [vmem:[%s2296_s3 + $0x30] ss:$8 sps:$4 sm:$0xff] (!%p263_p2)   ;;  %v1730_v32 = vld [vmem:[%s2294_s1] ss:$0 sm:$0xff] (!%p263_p2)  ;;  %v369_v42 = vshrl.u32 (!%p263_p2), %v368_v41, 7  ;;  %s1951_s14 = smov (!%p263_p2), 32  }
   0x9   : > { %v1731_v36 = vld [vmem:[%s2295_s2] ss:$0 sm:$0xff] (!%p263_p2)  ;;  %s1952_s15 = smov (!%p263_p2), 80   ;;  %s1953_s16 = smov (!%p263_p2), 112   ;;  %v1954_v56 = vmov (!%p263_p2), 1983009808  }
   0xa   : > { %v370_v43 = vsub.s32 (!%p263_p2), 0, %v369_v42  ;;  %v366_v44 = vld [vmem:[%s2297_s4] sm:$0x3] (!%p263_p2)  ;;  %v374_v45 = vsub.s32 (!%p263_p2), 1, %v369_v42  ;;  %v496_v57 = vunpack.c.l.s4 (!%p263_p2), %v1954_v56  ;;  %vm482_vm1 = vcmask (!%p263_p2), 261120   ;;  %s1959_s24 = smov (!%p263_p2), 16  }
   0xb   : > { %424 = vmatpush1.bf16.msra.mxu0 (!%p263_p2), %v1895_v18  ;;  %v1955_v60 = vmov (!%p263_p2), 1934713408   ;;  %vm1957_vm2 = vmmov (!%p263_p2), 0   ;;  %vm772_vm3 = vcmask (!%p263_p2), 130048   ;;  %s1960_s25 = smov (!%p263_p2), 48   ;;  %vm1566_vm4 = vcmask (!%p263_p2), 392192  }
   0xc   : > { %425 = vmatprep.subr.bf16.mxu0 (!%p263_p2), %v1896_v19  ;;  %v371_v46 = vrot.slane (!%p263_p2), %v366_v44, %v370_v43  ;;  %v375_v47 = vrot.slane (!%p263_p2), %v366_v44, %v374_v45  ;;  %v528_v61 = vunpack.c.l.s4 (!%p263_p2), %v1955_v60  ;;  %v497_v62 = vunpack.c.0.s8 (!%p263_p2), %v496_v57 }
   0xd   : > { %s2303_s28 = smov (!%p296_p3, %s1721_s28), 1  ;;  %vm1663_vm5 = vcmask 519168  }
   0xe   : > { %s1767_s29 = sshll.u32 %s2303_s28, 3 }
   0xf   : > { %s300_s10 = scalar_lea.vmem %s2293_s0, %s1767_s29  ;;  %426 = vmatpush1.bf16.msra.mxu0 %v1898_v20 }
  0x10   : > { %v1772_v0 = vld [vmem:[%s300_s10] sm:$0xff]   ;;  %427 = vmatprep.subr.bf16.mxu0 %v1899_v21  ;;  %s305_s10 = scalar_lea.vmem %s2301_s8, %s1767_s29 }
  0x11   : > { %v2022_v1 = vunpack.c.l.bf16 %v1772_v0  ;;  %v2024_v2 = vunpack.c.h.bf16 %v1772_v0 }
  0x13   : > { %v312_v3 = vsel %vm311_vm0, %v2022_v1, 0.0  ;;  %v315_v4 = vsel %vm311_vm0, %v2024_v2, 0.0  ;;  %428 = vmatpush1.bf16.msra.mxu0 %v1901_v22 }
  0x14   : > { %313 = vadd.xlane.f32.xlu0 %v312_v3 }
  0x18   : > { %316 = vadd.xlane.f32.xlu0 %v315_v4  ;;  %v529_v4 = vunpack.c.0.s8 %v528_v61 }
  0xa1   : > { %v314_v5 = vpop.xlane.xlu0 %313 }
  0xa2   : > { %v319_v6 = vmul.f32 0.015625, %v314_v5  ;;  %v2075_v5 = vsub.s32 %v497_v62, %v369_v42 }
  0xa4   : > { %v321_v7 = vsub.f32 %v2022_v1, %v319_v6 }
  0xa5   : > { %v317_v8 = vpop.xlane.xlu0 %316 }
  0xa6   : > { %v320_v9 = vmul.f32 0.015625, %v317_v8  ;;  %v323_v10 = vmul.f32 %v321_v7, %v321_v7 }
  0xa8   : > { %v322_v11 = vsub.f32 %v2024_v2, %v320_v9  ;;  %v325_v12 = vsel %vm311_vm0, %v323_v10, 0.0 }
  0xa9   : > { %326 = vadd.xlane.f32.xlu1 %v325_v12  ;;  %v2077_v12 = vsub.s32 %v529_v4, %v369_v42 }
  0xaa   : > { %v324_v13 = vmul.f32 %v322_v11, %v322_v11 }
  0xac   : > { %v328_v14 = vsel %vm311_vm0, %v324_v13, 0.0 }
  0xad   : > { %329 = vadd.xlane.f32.xlu1 %v328_v14 }
 0x136   : > { %v327_v24 = vpop.xlane.xlu1 %326 }
 0x137   : > { %v331_v25 = vmul.f32 0.015625, %v327_v24 }
 0x139   : > { %v333_v26 = vadd.f32 1e-05, %v331_v25 }
 0x13a   : > { %v330_v27 = vpop.xlane.xlu1 %329 }
 0x13b   : > { %1906 = vrsqrt.f32 %v333_v26  ;;  %v332_v28 = vmul.f32 0.015625, %v330_v27 }
 0x13d   : > { %v334_v29 = vadd.f32 1e-05, %v332_v28 }
 0x13f   : > { %1908 = vrsqrt.f32 %v334_v29 }
 0x145   : > { %v1907_v30 = vpop.eup %1906 }
 0x146   : > { %v337_v31 = vmul.f32 %v1907_v30, %v321_v7 }
 0x148   : > { %v346_v35 = vmul.f32 %v1730_v32, %v337_v31 }
 0x149   : > { %v1909_v33 = vpop.eup %1908 }
 0x14a   : > { %v338_v34 = vmul.f32 %v1909_v33, %v322_v11  ;;  %v355_v38 = vadd.f32 %v1731_v36, %v346_v35 }
 0x14c   : > { %v347_v37 = vmul.f32 %v1730_v32, %v338_v34 }
 0x14e   : > { %v356_v39 = vadd.f32 %v1731_v36, %v347_v37 }
 0x150   : > { %v357_v40 = vpack.c.bf16 %v356_v39, %v355_v38 }
 0x152   : > { %1740 = vmatmul.mubr.msk.bf16.vlgmr.msra.gmra.mrb[0].mxu0 %vm311_vm0, %v357_v40 }
 0x225   : > { %v455_v48 = vpop.f32.mrb[0].mxu0 }
 0x226   : > { %v456_v49 = vadd.f32 %v455_v48, %v371_v46  ;;  %v457_v50 = vpop.f32.mrb[1].mxu0 }
 0x227   : > { %v458_v51 = vadd.f32 %v457_v50, %v375_v47  ;;  %v459_v52 = vpop.f32.mrb[2].mxu0 }
 0x228   : > { %v461_v53 = vpop.f32.mrb[3].mxu0  ;;  %474 = vrot.lane.b32.xlu0 %v456_v49, %s1951_s14  ;;  %v460_v54 = vadd.f32 %v459_v52, %v371_v46 }
 0x229   : > { %476 = vrot.lane.b32.xlu1 %v458_v51, %s1951_s14  ;;  %v462_v55 = vadd.f32 %v461_v53, %v375_v47 }
 0x22c   : > { %466 = vrot.lane.b32.xlu0 %v456_v49, %s1952_s15 }
 0x22d   : > { %478 = vrot.lane.b32.xlu1 %v460_v54, %s1951_s14 }
 0x230   : > { %487 = vrot.lane.b32.xlu0 %v458_v51, %s1953_s16 }
 0x231   : > { %468 = vrot.lane.b32.xlu1 %v460_v54, %s1952_s15  ;;  %s1958_s15 = smov 96  }
 0x235   : > { %480 = vrot.lane.b32.xlu1 %v462_v55, %s1951_s14 }
 0x239   : > { %489 = vrot.lane.b32.xlu1 %v462_v55, %s1953_s16 }
 0x29a   : > { %v475_v58 = vpop.permute.xlu0 %474 }
 0x29b   : > { %v477_v59 = vpop.permute.xlu1 %476 }
 0x29c   : > { %v483_v63 = vsel %vm482_vm1, %v475_v58, %v477_v59 }
 0x29d   : > { %v493_v6 = vcombine.low %v456_v49, %v483_v63  ;;  %v494_v7 = vcombine.high %v456_v49, %v483_v63  ;;  %v1956_v63 = vmov 0.0  }
 0x29e   : > { %v467_v0 = vpop.permute.xlu0 %466  ;;  %1796 = vmatprep.subr.bf16.mxu1 %v1956_v63  ;;  %1820 = vmatprep.subr.bf16.mxu0 %v1956_v63 }
 0x29f   : > { %v479_v3 = vpop.permute.xlu1 %478  ;;  %v501_v13 = vrot.slane %v493_v6, %v2075_v5  ;;  %v508_v14 = vrot.slane %v494_v7, %v2075_v5  ;;  %1798 = vmatprep.mubr.msk.bf16.mxu1 %vm1957_vm2, %v1956_v63  ;;  %1822 = vmatprep.mubr.msk.bf16.mxu0 %vm1957_vm2, %v1956_v63 }
 0x2a2   : > { %v488_v8 = vpop.permute.xlu0 %487 }
 0x2a3   : > { %v509_v9 = vcombine.low %v467_v0, %v488_v8  ;;  %v510_v10 = vcombine.high %v467_v0, %v488_v8  ;;  %v469_v11 = vpop.permute.xlu1 %468 }
 0x2a5   : > { %v517_v15 = vrot.slane %v509_v9, %v2075_v5  ;;  %v524_v16 = vrot.slane %v510_v10, %v2075_v5 }
 0x2a7   : > { %v525_v17 = vcombine.low %v501_v13, %v517_v15  ;;  %v526_v18 = vcombine.high %v501_v13, %v517_v15  ;;  %v541_v19 = vcombine.low %v508_v14, %v524_v16  ;;  %v542_v20 = vcombine.high %v508_v14, %v524_v16  ;;  %v481_v21 = vpop.permute.xlu1 %480 }
 0x2a8   : > { %v484_v22 = vsel %vm482_vm1, %v479_v3, %v481_v21 }
 0x2a9   : > { %v533_v23 = vrot.slane %v525_v17, %v2077_v12  ;;  %v540_v24 = vrot.slane %v526_v18, %v2077_v12  ;;  %v549_v25 = vrot.slane %v541_v19, %v2077_v12  ;;  %v556_v26 = vrot.slane %v542_v20, %v2077_v12 }
 0x2aa   : > { %v561_v27 = vcombine.low %v460_v54, %v484_v22  ;;  %v562_v28 = vcombine.high %v460_v54, %v484_v22 }
 0x2ab   : > { %v629_v29 = vcombine.low %v533_v23, %v540_v24  ;;  %v1741_v30 = vcombine.high %v533_v23, %v540_v24  ;;  %v645_v31 = vcombine.low %v549_v25, %v556_v26  ;;  %v1742_v32 = vcombine.high %v549_v25, %v556_v26  ;;  %v490_v33 = vpop.permute.xlu1 %489 }
 0x2ac   : > { %v577_v34 = vcombine.low %v469_v11, %v490_v33  ;;  %v578_v35 = vcombine.high %v469_v11, %v490_v33  ;;  %v569_v36 = vrot.slane %v561_v27, %v2075_v5  ;;  %v576_v37 = vrot.slane %v562_v28, %v2075_v5 }
 0x2ad   : > { %v636_v40 = vrot.slane %v629_v29, %v2075_v5  ;;  %v644_v41 = vrot.slane %v1741_v30, %v2075_v5  ;;  %v652_v42 = vrot.slane %v645_v31, %v2075_v5  ;;  %v660_v43 = vrot.slane %v1742_v32, %v2075_v5 }
 0x2ae   : > { %v585_v38 = vrot.slane %v577_v34, %v2075_v5  ;;  %v592_v39 = vrot.slane %v578_v35, %v2075_v5 }
 0x2af   : > { %v661_v52 = vcombine.low %v636_v40, %v644_v41  ;;  %v677_v53 = vcombine.low %v652_v42, %v660_v43  ;;  %v662_v58 = vcombine.high %v636_v40, %v644_v41  ;;  %v678_v4 = vcombine.high %v652_v42, %v660_v43 }
 0x2b0   : > { %v593_v44 = vcombine.low %v569_v36, %v585_v38  ;;  %v594_v45 = vcombine.high %v569_v36, %v585_v38  ;;  %v609_v46 = vcombine.low %v576_v37, %v592_v39  ;;  %v610_v47 = vcombine.high %v576_v37, %v592_v39  ;;  %v970_v37 = vld [vmem:[%s2300_s7] sm:$0xff]  ;;  %v971_v39 = vld [vmem:[%s2300_s7 + $0x8] sm:$0xff] }
 0x2b1   : > { %v669_v0 = vrot.slane %v661_v52, %v2077_v12  ;;  %v685_v3 = vrot.slane %v677_v53, %v2077_v12  ;;  %v676_v15 = vrot.slane %v662_v58, %v2077_v12  ;;  %v692_v16 = vrot.slane %v678_v4, %v2077_v12 }
 0x2b2   : > { %v601_v48 = vrot.slane %v593_v44, %v2077_v12  ;;  %v608_v49 = vrot.slane %v594_v45, %v2077_v12  ;;  %v617_v50 = vrot.slane %v609_v46, %v2077_v12  ;;  %v624_v51 = vrot.slane %v610_v47, %v2077_v12  ;;  %v972_v47 = vld [vmem:[%s2300_s7 + $0x10] sm:$0xff] }
 0x2b3   : > { %v694_v17 = vcombine.high %v669_v0, %v685_v3  ;;  %v693_v19 = vcombine.low %v669_v0, %v685_v3  ;;  %v696_v25 = vcombine.high %v676_v15, %v692_v16  ;;  %v695_v26 = vcombine.low %v676_v15, %v692_v16 }
 0x2b4   : > { %v697_v54 = vcombine.low %v601_v48, %v608_v49  ;;  %v1743_v55 = vcombine.high %v601_v48, %v608_v49  ;;  %v713_v56 = vcombine.low %v617_v50, %v624_v51  ;;  %v1744_v57 = vcombine.high %v617_v50, %v624_v51  ;;  %v973_v49 = vld [vmem:[%s2300_s7 + $0x18] sm:$0xff] }
 0x2b6   : > { %v704_v59 = vrot.slane %v697_v54, %v2075_v5  ;;  %v712_v60 = vrot.slane %v1743_v55, %v2075_v5  ;;  %v720_v61 = vrot.slane %v713_v56, %v2075_v5  ;;  %v728_v62 = vrot.slane %v1744_v57, %v2075_v5  ;;  %v974_v56 = vld [vmem:[%s2300_s7 + $0x20] sm:$0xff] }
 0x2b8   : > { %v729_v6 = vcombine.low %v704_v59, %v712_v60  ;;  %v745_v7 = vcombine.low %v720_v61, %v728_v62  ;;  %v730_v8 = vcombine.high %v704_v59, %v712_v60  ;;  %v746_v9 = vcombine.high %v720_v61, %v728_v62  ;;  %v975_v59 = vld [vmem:[%s2300_s7 + $0x28] sm:$0xff] }
 0x2ba   : > { %v737_v10 = vrot.slane %v729_v6, %v2077_v12  ;;  %v753_v11 = vrot.slane %v745_v7, %v2077_v12  ;;  %v744_v13 = vrot.slane %v730_v8, %v2077_v12  ;;  %v760_v14 = vrot.slane %v746_v9, %v2077_v12  ;;  %v976_v7 = vld [vmem:[%s2300_s7 + $0x30] sm:$0xff]  ;;  %v977_v9 = vld [vmem:[%s2300_s7 + $0x38] sm:$0xff] }
 0x2bc   : > { %v762_v18 = vcombine.high %v737_v10, %v753_v11  ;;  %v761_v20 = vcombine.low %v737_v10, %v753_v11  ;;  %v764_v23 = vcombine.high %v744_v13, %v760_v14  ;;  %v763_v24 = vcombine.low %v744_v13, %v760_v14 }
 0x2be   : > { %v2118_v21 = vpack.c.bf16 %v762_v18, %v694_v17  ;;  %v2120_v22 = vpack.c.bf16 %v761_v20, %v693_v19  ;;  %v2126_v27 = vpack.c.bf16 %v764_v23, %v696_v25  ;;  %v2128_v28 = vpack.c.bf16 %v763_v24, %v695_v26 }
 0x2c0   : > { %821 = vrot.lane.b32.xlu1 %v2118_v21, %s1953_s16  ;;  %770 = vrot.lane.b32.xlu0 %v2120_v22, %s1953_s16 }
 0x2c4   : > { %921 = vrot.lane.b32.xlu1 %v2126_v27, %s1953_s16  ;;  %871 = vrot.lane.b32.xlu0 %v2128_v28, %s1953_s16 }
 0x332   : > { %v771_v29 = vpop.permute.xlu0 %770  ;;  %v822_v31 = vpop.permute.xlu1 %821 }
 0x333   : > { %v777_v30 = vsel %vm772_vm3, %v771_v29, 0  ;;  %v827_v32 = vsel %vm772_vm3, %v822_v31, 0 }
 0x334   : > { %1797 = vmatpush3.bf16.xpose.msra.mxu1 %v777_v30 }
 0x335   : > { %1802 = vmatprep.subr.bf16.mxu1 %v1956_v63 }
 0x336   : > { %v872_v33 = vpop.permute.xlu0 %871  ;;  %v922_v35 = vpop.permute.xlu1 %921 }
 0x337   : > { %v877_v34 = vsel %vm772_vm3, %v872_v33, 0  ;;  %v927_v36 = vsel %vm772_vm3, %v922_v35, 0 }
 0x33b   : > { %1799 = vmatmul.mubr.msk.bf16.vlgmr.msra.gmra.mrb[0].mxu1 %vm772_vm3, %v2120_v22 }
 0x33c   : > { %1803 = vmatpush3.bf16.xpose.msra.mxu1 %v827_v32  ;;  %1804 = vmatprep.mubr.msk.bf16.mxu1 %vm1957_vm2, %v1956_v63 }
 0x33d   : > { %1808 = vmatprep.subr.bf16.mxu1 %v1956_v63 }
 0x343   : > { %1805 = vmatmul.mubr.msk.bf16.vlgmr.msra.gmra.mrb[4].mxu1 %vm772_vm3, %v2118_v21 }
 0x344   : > { %1809 = vmatpush3.bf16.xpose.msra.mxu1 %v877_v34  ;;  %1810 = vmatprep.mubr.msk.bf16.mxu1 %vm1957_vm2, %v1956_v63 }
 0x345   : > { %1814 = vmatprep.subr.bf16.mxu1 %v1956_v63 }
 0x34b   : > { %1811 = vmatmul.mubr.msk.bf16.vlgmr.msra.gmra.mrb[8].mxu1 %vm772_vm3, %v2128_v28 }
 0x34c   : > { %1815 = vmatpush3.bf16.xpose.msra.mxu1 %v927_v36  ;;  %1816 = vmatprep.mubr.msk.bf16.mxu1 %vm1957_vm2, %v1956_v63 }
 0x34d   : > { %1826 = vmatprep.subr.bf16.mxu1 %v1956_v63 }
 0x353   : > { %1817 = vmatmul.mubr.msk.bf16.vlgmr.msra.gmra.mrb[12].mxu1 %vm772_vm3, %v2126_v27 }
 0x354   : > { %1828 = vmatprep.mubr.msk.bf16.mxu1 %vm1957_vm2, %v1956_v63 }
 0x40e   : > { %v813_v38 = vpop.f32.mrb[0].mxu1 }
 0x40f   : > { %v978_v40 = vadd.f32 %v970_v37, %v813_v38  ;;  %v1800_v41 = vpop.f32.mrb[1].mxu1 }
 0x410   : > { %v816_v42 = vpop.f32.mrb[2].mxu1 }
 0x411   : > { %v979_v43 = vadd.f32 %v971_v39, %v816_v42  ;;  %v1801_v44 = vpop.f32.mrb[3].mxu1  ;;  %v986_v45 = vsel %vm772_vm3, %v978_v40, -inf }
 0x412   : > { %987 = vmax.xlane.f32.xlu0 %v986_v45 }
 0x413   : > { %v989_v46 = vsel %vm772_vm3, %v979_v43, -inf }
 0x414   : > { %990 = vmax.xlane.f32.xlu1 %v989_v46 }
 0x416   : > { %v863_v48 = vpop.f32.mrb[4].mxu1 }
 0x417   : > { %v980_v50 = vadd.f32 %v972_v47, %v863_v48  ;;  %v1806_v51 = vpop.f32.mrb[5].mxu1 }
 0x418   : > { %v866_v52 = vpop.f32.mrb[6].mxu1 }
 0x419   : > { %v981_v53 = vadd.f32 %v973_v49, %v866_v52  ;;  %v1807_v54 = vpop.f32.mrb[7].mxu1  ;;  %v992_v55 = vsel %vm772_vm3, %v980_v50, -inf }
 0x41a   : > { %993 = vmax.xlane.f32.xlu0 %v992_v55 }
 0x41b   : > { %v995_v57 = vsel %vm772_vm3, %v981_v53, -inf }
 0x41e   : > { %996 = vmax.xlane.f32.xlu0 %v995_v57  ;;  %v913_v58 = vpop.f32.mrb[8].mxu1 }
 0x41f   : > { %v982_v60 = vadd.f32 %v974_v56, %v913_v58  ;;  %v1812_v61 = vpop.f32.mrb[9].mxu1 }
 0x420   : > { %v916_v62 = vpop.f32.mrb[10].mxu1 }
 0x421   : > { %v983_v0 = vadd.f32 %v975_v59, %v916_v62  ;;  %v1813_v3 = vpop.f32.mrb[11].mxu1  ;;  %v998_v4 = vsel %vm772_vm3, %v982_v60, -inf }
 0x422   : > { %999 = vmax.xlane.f32.xlu0 %v998_v4 }
 0x423   : > { %v1001_v6 = vsel %vm772_vm3, %v983_v0, -inf }
 0x424   : > { %1002 = vmax.xlane.f32.xlu1 %v1001_v6 }
 0x426   : > { %v963_v8 = vpop.f32.mrb[12].mxu1 }
 0x427   : > { %v984_v10 = vadd.f32 %v976_v7, %v963_v8  ;;  %v1818_v11 = vpop.f32.mrb[13].mxu1 }
 0x428   : > { %v966_v13 = vpop.f32.mrb[14].mxu1 }
 0x429   : > { %v985_v14 = vadd.f32 %v977_v9, %v966_v13  ;;  %v1819_v15 = vpop.f32.mrb[15].mxu1  ;;  %v1004_v16 = vsel %vm772_vm3, %v984_v10, -inf }
 0x42a   : > { %1005 = vmax.xlane.f32.xlu0 %v1004_v16 }
 0x42b   : > { %v1007_v17 = vsel %vm772_vm3, %v985_v14, -inf }
 0x42c   : > { %1008 = vmax.xlane.f32.xlu1 %v1007_v17 }
 0x49f   : > { %v988_v18 = vpop.xlane.xlu0 %987 }
 0x4a0   : > { %v1010_v19 = vsub.f32 %v978_v40, %v988_v18 }
 0x4a1   : > { %v991_v20 = vpop.xlane.xlu1 %990 }
 0x4a2   : > { %v1018_v23 = vmul.f32 1.442695, %v1010_v19  ;;  %v1011_v24 = vsub.f32 %v979_v43, %v991_v20 }
 0x4a4   : > { %1910 = vpow2.f32 %v1018_v23  ;;  %v1020_v25 = vmul.f32 1.442695, %v1011_v24 }
 0x4a6   : > { %1912 = vpow2.f32 %v1020_v25 }
 0x4a7   : > { %v994_v26 = vpop.xlane.xlu0 %993 }
 0x4a8   : > { %v1012_v29 = vsub.f32 %v980_v50, %v994_v26 }
 0x4aa   : > { %v1022_v30 = vmul.f32 1.442695, %v1012_v29 }
 0x4ab   : > { %v997_v31 = vpop.xlane.xlu0 %996 }
 0x4ac   : > { %1914 = vpow2.f32 %v1022_v30  ;;  %v1013_v32 = vsub.f32 %v981_v53, %v997_v31 }
 0x4ae   : > { %v2190_v33 = vpop.eup %1910  ;;  %v1024_v34 = vmul.f32 1.442695, %v1013_v32 }
 0x4af   : > { %v1000_v35 = vpop.xlane.xlu0 %999  ;;  %v1034_v36 = vsel %vm772_vm3, %v2190_v33, 0.0 }
 0x4b0   : > { %v2194_v37 = vpop.eup %1912  ;;  %1916 = vpow2.f32 %v1024_v34  ;;  %v1014_v38 = vsub.f32 %v982_v60, %v1000_v35  ;;  %1035 = vadd.xlane.f32.xlu0 %v1034_v36  ;;  %v1902_v35 = vld [vmem:[%s2298_s5] sm:$0xff]   ;;  %v1903_v36 = vld [vmem:[%s2298_s5 + $0x8] sm:$0xff]  }
 0x4b1   : > { %v1003_v39 = vpop.xlane.xlu1 %1002  ;;  %v1037_v40 = vsel %vm772_vm3, %v2194_v37, 0.0 }
 0x4b2   : > { %v1026_v41 = vmul.f32 1.442695, %v1014_v38  ;;  %v1015_v42 = vsub.f32 %v983_v0, %v1003_v39  ;;  %1038 = vadd.xlane.f32.xlu1 %v1037_v40 }
 0x4b4   : > { %1918 = vpow2.f32 %v1026_v41  ;;  %v1028_v43 = vmul.f32 1.442695, %v1015_v42 }
 0x4b6   : > { %v1915_v44 = vpop.eup %1914  ;;  %1920 = vpow2.f32 %v1028_v43 }
 0x4b7   : > { %v1006_v45 = vpop.xlane.xlu0 %1005  ;;  %v1040_v46 = vsel %vm772_vm3, %v1915_v44, 0.0 }
 0x4b8   : > { %v1016_v47 = vsub.f32 %v984_v10, %v1006_v45  ;;  %1041 = vadd.xlane.f32.xlu0 %v1040_v46 }
 0x4b9   : > { %v1009_v57 = vpop.xlane.xlu1 %1008 }
 0x4ba   : > { %v1917_v48 = vpop.eup %1916  ;;  %v1030_v49 = vmul.f32 1.442695, %v1016_v47  ;;  %v1017_v58 = vsub.f32 %v985_v14, %v1009_v57 }
 0x4bb   : > { %v1043_v50 = vsel %vm772_vm3, %v1917_v48, 0.0 }
 0x4bc   : > { %1922 = vpow2.f32 %v1030_v49  ;;  %1044 = vadd.xlane.f32.xlu1 %v1043_v50  ;;  %v1032_v59 = vmul.f32 1.442695, %v1017_v58 }
 0x4be   : > { %v1919_v51 = vpop.eup %1918  ;;  %1924 = vpow2.f32 %v1032_v59 }
 0x4bf   : > { %v1046_v52 = vsel %vm772_vm3, %v1919_v51, 0.0 }
 0x4c0   : > { %v1921_v53 = vpop.eup %1920  ;;  %1047 = vadd.xlane.f32.xlu0 %v1046_v52 }
 0x4c1   : > { %v1049_v54 = vsel %vm772_vm3, %v1921_v53, 0.0 }
 0x4c2   : > { %1050 = vadd.xlane.f32.xlu1 %v1049_v54 }
 0x4c6   : > { %v2202_v55 = vpop.eup %1922 }
 0x4c7   : > { %v1052_v56 = vsel %vm772_vm3, %v2202_v55, 0.0 }
 0x4c8   : > { %1053 = vadd.xlane.f32.xlu0 %v1052_v56  ;;  %v1925_v60 = vpop.eup %1924 }
 0x4c9   : > { %v1055_v61 = vsel %vm772_vm3, %v1925_v60, 0.0 }
 0x4d3   : > { %1125 = vrot.lane.b32.xlu1 %v2118_v21, %s1958_s15 }
 0x4d7   : > { %1172 = vrot.lane.b32.xlu1 %v2128_v28, %s1958_s15 }
 0x4de   : > { %1078 = vrot.lane.b32.xlu0 %v2120_v22, %s1958_s15 }
 0x4fb   : > { %1056 = vadd.xlane.f32.xlu1 %v1055_v61 }
 0x50c   : > { %1219 = vrot.lane.b32.xlu1 %v2126_v27, %s1958_s15 }
 0x53d   : > { %v1036_v62 = vpop.xlane.xlu0 %1035 }
 0x53f   : > { %v1039_v0 = vpop.xlane.xlu1 %1038 }
 0x545   : > { %v1042_v3 = vpop.xlane.xlu0 %1041 }
 0x546   : > { %1926 = vrcp.f32 %v1042_v3 }
 0x547   : > { %1928 = vrcp.f32 %v1039_v0 }
 0x549   : > { %v1045_v21 = vpop.xlane.xlu1 %1044 }
 0x54a   : > { %1930 = vrcp.f32 %v1045_v21 }
 0x54b   : > { %1932 = vrcp.f32 %v1036_v62 }
 0x54d   : > { %v1048_v22 = vpop.xlane.xlu0 %1047 }
 0x54f   : > { %v1051_v28 = vpop.xlane.xlu1 %1050 }
 0x550   : > { %v1927_v4 = vpop.eup %1926  ;;  %1934 = vrcp.f32 %v1051_v28 }
 0x551   : > { %v1929_v6 = vpop.eup %1928  ;;  %1936 = vrcp.f32 %v1048_v22  ;;  %v1068_v9 = vmul.f32 %v1927_v4, %v1915_v44 }
 0x552   : > { %v1067_v13 = vmul.f32 %v1929_v6, %v2194_v37 }
 0x553   : > { %v1126_v7 = vpop.permute.xlu1 %1125 }
 0x554   : > { %v1931_v8 = vpop.eup %1930  ;;  %1827 = vmatpush3.bf16.msra.mxu1 %v1126_v7 }
 0x555   : > { %v1069_v10 = vmul.f32 %v1931_v8, %v1917_v48  ;;  %v1054_v27 = vpop.xlane.xlu0 %1053  ;;  %1838 = vmatprep.subr.bf16.mxu1 %v1956_v63  ;;  %v1933_v11 = vpop.eup %1932 }
 0x556   : > { %v1066_v15 = vmul.f32 %v1933_v11, %v2190_v33  ;;  %1938 = vrcp.f32 %v1054_v27 }
 0x557   : > { %v1075_v14 = vpack.c.bf16 %v1069_v10, %v1068_v9  ;;  %v1173_v19 = vpop.permute.xlu1 %1172 }
 0x558   : > { %v1074_v17 = vpack.c.bf16 %v1067_v13, %v1066_v15 }
 0x559   : > { %1829 = vmatmul.mubr.msk.bf16.vlgmr.msra.gmra.mrb[16].mxu1 %vm772_vm3, %v1075_v14  ;;  %v1079_v16 = vpop.permute.xlu0 %1078 }
 0x55a   : > { %1821 = vmatpush3.bf16.msra.mxu0 %v1079_v16  ;;  %1840 = vmatprep.mubr.msk.bf16.mxu1 %vm1957_vm2, %v1956_v63  ;;  %v1935_v18 = vpop.eup %1934 }
 0x55b   : > { %1832 = vmatprep.subr.bf16.mxu0 %v1956_v63  ;;  %v1937_v20 = vpop.eup %1936  ;;  %v1071_v23 = vmul.f32 %v1935_v18, %v1921_v53 }
 0x55c   : > { %v1070_v24 = vmul.f32 %v1937_v20, %v1919_v51 }
 0x55d   : > { %1823 = vmatmul.mubr.msk.bf16.vlgmr.msra.gmra.mrb[4].mxu0 %vm772_vm3, %v1074_v17 }
 0x55e   : > { %1833 = vmatpush3.bf16.msra.mxu0 %v1173_v19  ;;  %1834 = vmatprep.mubr.msk.bf16.mxu0 %vm1957_vm2, %v1956_v63  ;;  %v1076_v25 = vpack.c.bf16 %v1071_v23, %v1070_v24 }
 0x55f   : > { %1844 = vmatprep.subr.bf16.mxu0 %v1956_v63 }
 0x560   : > { %v1939_v30 = vpop.eup %1938 }
 0x561   : > { %v1072_v32 = vmul.f32 %v1939_v30, %v2202_v55 }
 0x565   : > { %1835 = vmatmul.mubr.msk.bf16.vlgmr.msra.gmra.mrb[8].mxu0 %vm772_vm3, %v1076_v25 }
 0x566   : > { %1852 = vmatprep.mubr.msk.bf16.mxu0 %vm1957_vm2, %v1956_v63  ;;  %1845 = vmatpush3.bf16.msra.mxu0 %v1902_v35 }
 0x567   : > { %1846 = vmatprep.subr.bf16.mxu0 %v1956_v63 }
 0x56a   : > { %1847 = vmatpush3.bf16.msra.mxu0 %v1903_v36 }
 0x56b   : > { %1848 = vmatprep.subr.bf16.mxu0 %v1956_v63 }
 0x588   : > { %v1057_v26 = vpop.xlane.xlu1 %1056 }
 0x589   : > { %1940 = vrcp.f32 %v1057_v26 }
 0x58c   : > { %v1220_v29 = vpop.permute.xlu1 %1219 }
 0x58d   : > { %1839 = vmatpush3.bf16.msra.mxu1 %v1220_v29 }
 0x593   : > { %v1941_v31 = vpop.eup %1940 }
 0x594   : > { %v1073_v33 = vmul.f32 %v1941_v31, %v1925_v60 }
 0x596   : > { %v1077_v34 = vpack.c.bf16 %v1073_v33, %v1072_v32 }
 0x598   : > { %1841 = vmatmul.mubr.msk.bf16.vlgmr.msra.gmra.mrb[20].mxu1 %vm772_vm3, %v1077_v34  ;;  %v1904_v34 = vld [vmem:[%s2298_s5 + $0x10] sm:$0xff]  }
 0x599   : > { %1849 = vmatpush3.bf16.msra.mxu0 %v1904_v34 }
 0x59a   : > { %1850 = vmatprep.subr.bf16.mxu0 %v1956_v63 }
 0x62c   : > { %v1165_v37 = vpop.f32.mrb[16].mxu1 }
 0x62d   : > { %v1830_v38 = vpop.f32.mrb[17].mxu1 }
 0x62e   : > { %v1168_v39 = vpop.f32.mrb[18].mxu1 }
 0x62f   : > { %v1831_v40 = vpop.f32.mrb[19].mxu1 }
 0x630   : > { %v1118_v41 = vpop.f32.mrb[4].mxu0 }
 0x631   : > { %v1824_v42 = vpop.f32.mrb[5].mxu0 }
 0x632   : > { %v1121_v43 = vpop.f32.mrb[6].mxu0 }
 0x633   : > { %v1825_v44 = vpop.f32.mrb[7].mxu0 }
 0x638   : > { %v1212_v45 = vpop.f32.mrb[8].mxu0 }
 0x639   : > { %v1266_v46 = vcombine.low %v1118_v41, %v1212_v45  ;;  %v1267_v47 = vcombine.high %v1118_v41, %v1212_v45  ;;  %v1836_v48 = vpop.f32.mrb[9].mxu0 }
 0x63a   : > { %v1215_v49 = vpop.f32.mrb[10].mxu0 }
 0x63b   : > { %v1334_v50 = vcombine.low %v1121_v43, %v1215_v49  ;;  %v1335_v51 = vcombine.high %v1121_v43, %v1215_v49  ;;  %v1837_v52 = vpop.f32.mrb[11].mxu0  ;;  %v1274_v57 = vrot.slane %v1266_v46, %v2075_v5  ;;  %v1281_v58 = vrot.slane %v1267_v47, %v2075_v5 }
 0x63d   : > { %v1342_v6 = vrot.slane %v1334_v50, %v2075_v5  ;;  %v1349_v7 = vrot.slane %v1335_v51, %v2075_v5  ;;  %v1905_v51 = vld [vmem:[%s2298_s5 + $0x18] sm:$0xff]  }
 0x63e   : > { %1851 = vmatpush3.bf16.msra.mxu0 %v1905_v51 }
 0x66b   : > { %v1259_v53 = vpop.f32.mrb[20].mxu1 }
 0x66c   : > { %v1282_v54 = vcombine.low %v1165_v37, %v1259_v53  ;;  %v1283_v55 = vcombine.high %v1165_v37, %v1259_v53  ;;  %v1842_v56 = vpop.f32.mrb[21].mxu1 }
 0x66d   : > { %v1262_v59 = vpop.f32.mrb[22].mxu1 }
 0x66e   : > { %v1290_v60 = vrot.slane %v1282_v54, %v2075_v5  ;;  %v1297_v61 = vrot.slane %v1283_v55, %v2075_v5  ;;  %v1350_v62 = vcombine.low %v1168_v39, %v1262_v59  ;;  %v1351_v0 = vcombine.high %v1168_v39, %v1262_v59  ;;  %v1843_v3 = vpop.f32.mrb[23].mxu1 }
 0x670   : > { %v1298_v21 = vcombine.low %v1274_v57, %v1290_v60  ;;  %v1299_v28 = vcombine.high %v1274_v57, %v1290_v60  ;;  %v1314_v22 = vcombine.low %v1281_v58, %v1297_v61  ;;  %v1315_v4 = vcombine.high %v1281_v58, %v1297_v61 }
 0x671   : > { %v1358_v8 = vrot.slane %v1350_v62, %v2075_v5  ;;  %v1365_v9 = vrot.slane %v1351_v0, %v2075_v5 }
 0x672   : > { %v1306_v10 = vrot.slane %v1298_v21, %v2077_v12  ;;  %v1313_v27 = vrot.slane %v1299_v28, %v2077_v12  ;;  %v1322_v11 = vrot.slane %v1314_v22, %v2077_v12  ;;  %v1329_v13 = vrot.slane %v1315_v4, %v2077_v12 }
 0x673   : > { %v1366_v14 = vcombine.low %v1342_v6, %v1358_v8  ;;  %v1367_v15 = vcombine.high %v1342_v6, %v1358_v8  ;;  %v1382_v16 = vcombine.low %v1349_v7, %v1365_v9  ;;  %v1383_v17 = vcombine.high %v1349_v7, %v1365_v9 }
 0x674   : > { %v1402_v18 = vcombine.low %v1306_v10, %v1313_v27  ;;  %v1753_v19 = vcombine.high %v1306_v10, %v1313_v27  ;;  %v1418_v20 = vcombine.low %v1322_v11, %v1329_v13  ;;  %v1754_v23 = vcombine.high %v1322_v11, %v1329_v13 }
 0x675   : > { %v1374_v24 = vrot.slane %v1366_v14, %v2077_v12  ;;  %v1381_v25 = vrot.slane %v1367_v15, %v2077_v12  ;;  %v1390_v26 = vrot.slane %v1382_v16, %v2077_v12  ;;  %v1397_v29 = vrot.slane %v1383_v17, %v2077_v12 }
 0x676   : > { %v1409_v30 = vrot.slane %v1402_v18, %v2075_v5  ;;  %v1417_v31 = vrot.slane %v1753_v19, %v2075_v5  ;;  %v1425_v32 = vrot.slane %v1418_v20, %v2075_v5  ;;  %v1433_v33 = vrot.slane %v1754_v23, %v2075_v5  ;;  %v1757_v23 = vld [vmem:[%s2299_s6] ss:$0 sm:$0xff] }
 0x677   : > { %v1470_v35 = vcombine.low %v1374_v24, %v1381_v25  ;;  %v1755_v36 = vcombine.high %v1374_v24, %v1381_v25  ;;  %v1486_v37 = vcombine.low %v1390_v26, %v1397_v29  ;;  %v1756_v38 = vcombine.high %v1390_v26, %v1397_v29 }
 0x678   : > { %v1435_v39 = vcombine.high %v1409_v30, %v1417_v31  ;;  %v1451_v40 = vcombine.high %v1425_v32, %v1433_v33  ;;  %v1434_v41 = vcombine.low %v1409_v30, %v1417_v31  ;;  %v1450_v42 = vcombine.low %v1425_v32, %v1433_v33 }
 0x679   : > { %v1477_v43 = vrot.slane %v1470_v35, %v2075_v5  ;;  %v1485_v44 = vrot.slane %v1755_v36, %v2075_v5  ;;  %v1493_v45 = vrot.slane %v1486_v37, %v2075_v5  ;;  %v1501_v46 = vrot.slane %v1756_v38, %v2075_v5 }
 0x67a   : > { %v1449_v47 = vrot.slane %v1435_v39, %v2077_v12  ;;  %v1465_v48 = vrot.slane %v1451_v40, %v2077_v12  ;;  %v1442_v49 = vrot.slane %v1434_v41, %v2077_v12  ;;  %v1458_v50 = vrot.slane %v1450_v42, %v2077_v12 }
 0x67b   : > { %v1503_v52 = vcombine.high %v1477_v43, %v1485_v44  ;;  %v1519_v53 = vcombine.high %v1493_v45, %v1501_v46  ;;  %v1502_v54 = vcombine.low %v1477_v43, %v1485_v44  ;;  %v1518_v55 = vcombine.low %v1493_v45, %v1501_v46 }
 0x67c   : > { %v1468_v56 = vcombine.low %v1449_v47, %v1465_v48  ;;  %v1466_v5 = vcombine.low %v1442_v49, %v1458_v50  ;;  %v1467_v57 = vcombine.high %v1442_v49, %v1458_v50  ;;  %v1469_v63 = vcombine.high %v1449_v47, %v1465_v48 }
 0x67d   : > { %v1517_v58 = vrot.slane %v1503_v52, %v2077_v12  ;;  %v1533_v59 = vrot.slane %v1519_v53, %v2077_v12  ;;  %v1510_v60 = vrot.slane %v1502_v54, %v2077_v12  ;;  %v1526_v61 = vrot.slane %v1518_v55, %v2077_v12 }
 0x67f   : > { %v1536_v62 = vcombine.low %v1517_v58, %v1533_v59  ;;  %v1535_v0 = vcombine.high %v1510_v60, %v1526_v61  ;;  %v1534_v3 = vcombine.low %v1510_v60, %v1526_v61  ;;  %v1537_v21 = vcombine.high %v1517_v58, %v1533_v59 }
 0x681   : > { %v1880_v28 = vpack.i.bf16 %v1536_v62, %v1468_v56  ;;  %v1875_v22 = vpack.i.bf16 %v1535_v0, %v1467_v57  ;;  %v1885_v4 = vpack.i.bf16 %v1537_v21, %v1469_v63 }
 0x683   : > { %1881 = vrot.lane.b32.xlu1 %v1880_v28, %s1951_s14  ;;  %1876 = vrot.lane.b32.xlu0 %v1875_v22, %s1959_s24 }
 0x687   : > { %1886 = vrot.lane.b32.xlu0 %v1885_v4, %s1960_s25 }
 0x6f5   : > { %v1882_v6 = vpop.permute.xlu1 %1881  ;;  %v1877_v7 = vpop.permute.xlu0 %1876 }
 0x6f6   : > { %v1879_v8 = vunpack.i.h.bf16 %v1877_v7  ;;  %v1878_v9 = vunpack.i.l.bf16 %v1877_v7  ;;  %v1884_v10 = vunpack.i.h.bf16 %v1882_v6  ;;  %v1883_v27 = vunpack.i.l.bf16 %v1882_v6 }
 0x6f8   : > { %v1562_v12 = vsel %vm772_vm3, %v1466_v5, %v1878_v9  ;;  %v1563_v11 = vsel %vm772_vm3, %v1534_v3, %v1879_v8 }
 0x6f9   : > { %v1887_v13 = vpop.permute.xlu0 %1886  ;;  %v1564_v16 = vsel %vm482_vm1, %v1562_v12, %v1883_v27  ;;  %v1565_v17 = vsel %vm482_vm1, %v1563_v11, %v1884_v10 }
 0x6fa   : > { %v1889_v14 = vunpack.i.h.bf16 %v1887_v13  ;;  %v1888_v15 = vunpack.i.l.bf16 %v1887_v13 }
 0x6fc   : > { %v1567_v18 = vsel %vm1566_vm4, %v1564_v16, %v1888_v15  ;;  %v1568_v19 = vsel %vm1566_vm4, %v1565_v17, %v1889_v14 }
 0x6fd   : > { %v1569_v20 = vpack.c.bf16 %v1568_v19, %v1567_v18 }
 0x6ff   : > { %1853 = vmatmul.mubr.msk.bf16.vlgmr.msra.gmra.mrb[12].mxu0 %vm311_vm0, %v1569_v20 }
 0x7d2   : > { %v1646_v24 = vpop.f32.mrb[12].mxu0 }
 0x7d3   : > { %v1647_v25 = vadd.f32 %v1757_v23, %v1646_v24  ;;  %v1854_v26 = vpop.f32.mrb[13].mxu0 }
 0x7d4   : > { %v1649_v29 = vpop.f32.mrb[14].mxu0 }
 0x7d5   : > { %v1653_v30 = vadd.f32 %v2022_v1, %v1647_v25  ;;  %v1650_v31 = vadd.f32 %v1757_v23, %v1649_v29  ;;  %v1855_v32 = vpop.f32.mrb[15].mxu0 }
 0x7d7   : > { %v1769_v33 = vpack.c.bf16 %v1653_v30, %v1653_v30  ;;  %v1654_v34 = vadd.f32 %v2024_v2, %v1650_v31 }
 0x7d9   : > { %1664 = vst.msk [vmem:[%s305_s10] sm:$0xf] %vm1663_vm5, %v1769_v33  ;;  %v1770_v35 = vpack.c.bf16 %v1654_v34, %v1654_v34 }
 0x7db   : > { %1665 = vst.msk [vmem:[%s305_s10 + $0x4] sm:$0xf] %vm1663_vm5, %v1770_v35 }
 0x7dc PF: > { %s18_s27 = sadd.s32 1, %s1948_s27  }
 0x7dd   : > { %p15_p4 = scmp.ge.s32.totalorder %s18_s27, 4  }
 0x7df   :  { %17 = sbr.rel (!%p15_p4) target bundleno = 1 (0x1), region = 82 }

// kernel: _lambda_.19
= control target key start
LH: loop header
LB: loop body
LE: loop exit
PB: predicated region body
PF: predicated region fallthrough
CT: control target
= control target key end

     0   :  { %s890_s24 = smov 0   ;;  %s1013_s0 = inlined_call_operand.vmem [shape: bf16[32,64], index: 0, kind: input, shape index: {}]   ;;  %s1014_s1 = inlined_call_operand.vmem [shape: f32[1,64], index: 1, kind: input, shape index: {}]   ;;  %s1015_s2 = inlined_call_operand.vmem [shape: f32[1,64], index: 2, kind: input, shape index: {}]   ;;  %s1016_s3 = inlined_call_operand.vmem [shape: bf16[64,256], index: 3, kind: input, shape index: {}]   ;;  %s1017_s4 = inlined_call_operand.vmem [shape: f32[1,256], index: 4, kind: input, shape index: {}]   ;;  %s1018_s5 = inlined_call_operand.vmem [shape: bf16[256,64], index: 5, kind: input, shape index: {}]   ;;  %s1019_s6 = inlined_call_operand.vmem [shape: f32[1,64], index: 6, kind: input, shape index: {}]   ;;  %s1020_s7 = inlined_call_operand.vmem [shape: bf16[32,64], index: 7, kind: output, shape index: {}]  }
   0x1 LB: > { %s723_s25 = sadd.s32 4294967295, %s847_s24   ;;  %p727_p0 = scmp.ge.s32.totalorder %s847_s24, 1  ;;  %s847_s24 = sphi %s890_s24, %s17_s24  }
   0x2   : > { %p238_p1 = scmp.lt.s32.totalorder %s847_s24, 3 }
   0x4   : > { %p239_p2 = pnand %p727_p0, %p238_p1 }
   0x5   : > { %s728_s26 = sshll.u32 (!%p239_p2), %s723_s25, 1  ;;  %vm287_vm0 = vcmask (!%p239_p2), 523264   ;;  %v801_v15 = vld [vmem:[%s1016_s3 + $0x4] ss:$8 sps:$4 sm:$0xff] (!%p239_p2)   ;;  %v803_v16 = vld [vmem:[%s1016_s3] ss:$8 sps:$4 sm:$0xff] (!%p239_p2)   ;;  %v344_v57 = vlaneseq (!%p239_p2) }
   0x6   : > { %242 = sbr.rel (%p239_p2) target bundleno = 807 (0x327), region = 48  ;;  %p271_p3 = scmp.lt.s32.totalorder (!%p239_p2), %s728_s26, 3  ;;  %397 = vmatprep.subr.bf16.mxu0 (!%p239_p2), %v801_v15  ;;  %v804_v17 = vld [vmem:[%s1016_s3 + $0x14] ss:$8 sps:$4 sm:$0xff] (!%p239_p2)   ;;  %v806_v18 = vld [vmem:[%s1016_s3 + $0x10] ss:$8 sps:$4 sm:$0xff] (!%p239_p2)  }
   0x7   : > { %398 = vmatpush1.bf16.msra.mxu0 (!%p239_p2), %v803_v16  ;;  %v807_v19 = vld [vmem:[%s1016_s3 + $0x24] ss:$8 sps:$4 sm:$0xff] (!%p239_p2)   ;;  %v809_v20 = vld [vmem:[%s1016_s3 + $0x20] ss:$8 sps:$4 sm:$0xff] (!%p239_p2)   ;;  %v810_v21 = vld [vmem:[%s1016_s3 + $0x34] ss:$8 sps:$4 sm:$0xff] (!%p239_p2)  }
   0x8   : > { %399 = vmatprep.subr.bf16.mxu0 (!%p239_p2), %v804_v17  ;;  %v812_v22 = vld [vmem:[%s1016_s3 + $0x30] ss:$8 sps:$4 sm:$0xff] (!%p239_p2)   ;;  %v849_v23 = vmov (!%p239_p2), 0   ;;  %v732_v32 = vld [vmem:[%s1014_s1] ss:$0 sm:$0xff] (!%p239_p2)  ;;  %v815_v43 = vld [vmem:[%s1018_s5 + $0x48] sm:$0xff] (!%p239_p2)  }
   0x9   : > { %429 = vmatprep.mubr.bf16.mxu0 (!%p239_p2), %v849_v23  ;;  %v733_v36 = vld [vmem:[%s1015_s2] ss:$0 sm:$0xff] (!%p239_p2)  ;;  %v816_v44 = vld [vmem:[%s1018_s5 + $0x8] sm:$0xff] (!%p239_p2)   ;;  %v817_v45 = vld [vmem:[%s1018_s5 + $0x50] sm:$0xff] (!%p239_p2)   ;;  %v345_v58 = vshrl.u32 (!%p239_p2), %v344_v57, 7  ;;  %vm664_vm1 = vcmask (!%p239_p2), 519168  }
   0xa   : > { %v813_v41 = vld [vmem:[%s1018_s5 + $0x40] sm:$0xff] (!%p239_p2)   ;;  %v818_v46 = vld [vmem:[%s1018_s5 + $0x10] sm:$0xff] (!%p239_p2)   ;;  %v819_v47 = vld [vmem:[%s1018_s5 + $0x58] sm:$0xff] (!%p239_p2)  }
   0xb   : > { %400 = vmatpush1.bf16.msra.mxu0 (!%p239_p2), %v806_v18  ;;  %v814_v42 = vld [vmem:[%s1018_s5] sm:$0xff] (!%p239_p2)   ;;  %770 = vmatprep.subr.bf16.mxu1 (!%p239_p2), %v813_v41  ;;  %v820_v48 = vld [vmem:[%s1018_s5 + $0x18] sm:$0xff] (!%p239_p2)   ;;  %v823_v51 = vld [vmem:[%s1018_s5 + $0x68] sm:$0xff] (!%p239_p2)   ;;  %v346_v59 = vsub.s32 (!%p239_p2), 0, %v345_v58  ;;  %v350_v61 = vsub.s32 (!%p239_p2), 1, %v345_v58 }
   0xc   : > { %401 = vmatprep.subr.bf16.mxu0 (!%p239_p2), %v807_v19  ;;  %771 = vmatpush3.bf16.msra.mxu1 (!%p239_p2), %v814_v42  ;;  %v821_v49 = vld [vmem:[%s1018_s5 + $0x60] sm:$0xff] (!%p239_p2)   ;;  %v824_v52 = vld [vmem:[%s1018_s5 + $0x28] sm:$0xff] (!%p239_p2)   ;;  %v825_v53 = vld [vmem:[%s1018_s5 + $0x70] sm:$0xff] (!%p239_p2)  }
   0xd   : > { %s1022_s26 = smov (!%p271_p3, %s728_s26), 3  ;;  %772 = vmatprep.subr.bf16.mxu1 %v815_v43  ;;  %v822_v50 = vld [vmem:[%s1018_s5 + $0x20] sm:$0xff]   ;;  %v826_v54 = vld [vmem:[%s1018_s5 + $0x30] sm:$0xff]   ;;  %v827_v55 = vld [vmem:[%s1018_s5 + $0x78] sm:$0xff]  }
   0xe   : > { %s729_s27 = sshll.u32 %s1022_s26, 2  ;;  %v828_v56 = vld [vmem:[%s1018_s5 + $0x38] sm:$0xff]   ;;  %v342_v60 = vld [vmem:[%s1017_s4] sm:$0x3] }
   0xf   : > { %s274_s30 = scalar_lea.vmem %s1013_s0, %s729_s27  ;;  %402 = vmatpush1.bf16.msra.mxu0 %v809_v20  ;;  %v347_v62 = vrot.slane %v342_v60, %v346_v59  ;;  %v351_v63 = vrot.slane %v342_v60, %v350_v61  ;;  %s280_s29 = scalar_lea.vmem %s1020_s7, %s729_s27 }
  0x10   : > { %v767_v0 = vld [vmem:[%s274_s30] sm:$0xff]   ;;  %403 = vmatprep.subr.bf16.mxu0 %v810_v21  ;;  %773 = vmatpush3.bf16.msra.mxu1 %v816_v44 }
  0x11   : > { %v906_v1 = vunpack.c.l.bf16 %v767_v0  ;;  %v908_v2 = vunpack.c.h.bf16 %v767_v0  ;;  %774 = vmatprep.subr.bf16.mxu1 %v817_v45 }
  0x13   : > { %v288_v3 = vsel %vm287_vm0, %v906_v1, 0.0  ;;  %v291_v4 = vsel %vm287_vm0, %v908_v2, 0.0  ;;  %404 = vmatpush1.bf16.msra.mxu0 %v812_v22 }
  0x14   : > { %289 = vadd.xlane.f32.xlu0 %v288_v3  ;;  %775 = vmatpush3.bf16.msra.mxu1 %v818_v46 }
  0x15   : > { %776 = vmatprep.subr.bf16.mxu1 %v819_v47 }
  0x18   : > { %292 = vadd.xlane.f32.xlu0 %v291_v4  ;;  %777 = vmatpush3.bf16.msra.mxu1 %v820_v48 }
  0x19   : > { %778 = vmatprep.subr.bf16.mxu1 %v821_v49  ;;  %v743_v49 = vld [vmem:[%s1019_s6] ss:$0 sm:$0xff] }
  0x1c   : > { %779 = vmatpush3.bf16.msra.mxu1 %v822_v50 }
  0x1d   : > { %780 = vmatprep.subr.bf16.mxu1 %v823_v51 }
  0x20   : > { %781 = vmatpush3.bf16.msra.mxu1 %v824_v52 }
  0x21   : > { %782 = vmatprep.subr.bf16.mxu1 %v825_v53 }
  0x24   : > { %783 = vmatpush3.bf16.msra.mxu1 %v826_v54 }
  0x25   : > { %784 = vmatprep.subr.bf16.mxu1 %v827_v55 }
  0x28   : > { %785 = vmatpush3.bf16.msra.mxu1 %v828_v56 }
  0xa1   : > { %v290_v5 = vpop.xlane.xlu0 %289 }
  0xa2   : > { %v295_v6 = vmul.f32 0.015625, %v290_v5 }
  0xa4   : > { %v297_v7 = vsub.f32 %v906_v1, %v295_v6 }
  0xa5   : > { %v293_v8 = vpop.xlane.xlu0 %292 }
  0xa6   : > { %v296_v9 = vmul.f32 0.015625, %v293_v8  ;;  %v299_v10 = vmul.f32 %v297_v7, %v297_v7 }
  0xa8   : > { %v298_v11 = vsub.f32 %v908_v2, %v296_v9  ;;  %v301_v12 = vsel %vm287_vm0, %v299_v10, 0.0 }
  0xa9   : > { %302 = vadd.xlane.f32.xlu1 %v301_v12 }
  0xaa   : > { %v300_v13 = vmul.f32 %v298_v11, %v298_v11 }
  0xac   : > { %v304_v14 = vsel %vm287_vm0, %v300_v13, 0.0 }
  0xad   : > { %305 = vadd.xlane.f32.xlu1 %v304_v14 }
 0x136   : > { %v303_v24 = vpop.xlane.xlu1 %302 }
 0x137   : > { %v307_v25 = vmul.f32 0.015625, %v303_v24 }
 0x139   : > { %v309_v26 = vadd.f32 1e-05, %v307_v25 }
 0x13a   : > { %v306_v27 = vpop.xlane.xlu1 %305 }
 0x13b   : > { %829 = vrsqrt.f32 %v309_v26  ;;  %v308_v28 = vmul.f32 0.015625, %v306_v27 }
 0x13d   : > { %v310_v29 = vadd.f32 1e-05, %v308_v28 }
 0x13f   : > { %831 = vrsqrt.f32 %v310_v29 }
 0x145   : > { %v830_v30 = vpop.eup %829 }
 0x146   : > { %v313_v31 = vmul.f32 %v830_v30, %v297_v7 }
 0x148   : > { %v322_v35 = vmul.f32 %v732_v32, %v313_v31 }
 0x149   : > { %v832_v33 = vpop.eup %831 }
 0x14a   : > { %v314_v34 = vmul.f32 %v832_v33, %v298_v11  ;;  %v331_v38 = vadd.f32 %v733_v36, %v322_v35 }
 0x14c   : > { %v323_v37 = vmul.f32 %v732_v32, %v314_v34 }
 0x14e   : > { %v332_v39 = vadd.f32 %v733_v36, %v323_v37 }
 0x150   : > { %v333_v40 = vpack.c.bf16 %v332_v39, %v331_v38 }
 0x152   : > { %742 = vmatmul.mubr.msk.bf16.vlgmr.msra.gmra.mrb[0].mxu0 %vm287_vm0, %v333_v40 }
 0x225   : > { %v431_v0 = vpop.f32.mrb[0].mxu0 }
 0x226   : > { %v432_v3 = vadd.f32 %v431_v0, %v347_v62  ;;  %v433_v4 = vpop.f32.mrb[1].mxu0 }
 0x227   : > { %v434_v5 = vadd.f32 %v433_v4, %v351_v63  ;;  %v435_v6 = vpop.f32.mrb[2].mxu0 }
 0x228   : > { %v444_v7 = vmul.f32 0.044715, %v432_v3  ;;  %v436_v8 = vadd.f32 %v435_v6, %v347_v62  ;;  %v437_v9 = vpop.f32.mrb[3].mxu0  ;;  %v440_v36 = vmul.f32 0.5, %v432_v3 }
 0x229   : > { %v445_v10 = vmul.f32 0.044715, %v434_v5  ;;  %v438_v11 = vadd.f32 %v437_v9, %v351_v63  ;;  %v441_v39 = vmul.f32 0.5, %v434_v5 }
 0x22a   : > { %v448_v12 = vmul.f32 %v444_v7, %v432_v3  ;;  %v446_v13 = vmul.f32 0.044715, %v436_v8  ;;  %v442_v37 = vmul.f32 0.5, %v436_v8 }
 0x22b   : > { %v447_v14 = vmul.f32 0.044715, %v438_v11  ;;  %v449_v15 = vmul.f32 %v445_v10, %v434_v5  ;;  %v443_v40 = vmul.f32 0.5, %v438_v11 }
 0x22c   : > { %v452_v16 = vmul.f32 %v448_v12, %v432_v3  ;;  %v450_v17 = vmul.f32 %v446_v13, %v436_v8 }
 0x22d   : > { %v451_v18 = vmul.f32 %v447_v14, %v438_v11  ;;  %v453_v19 = vmul.f32 %v449_v15, %v434_v5 }
 0x22e   : > { %v454_v20 = vmul.f32 %v450_v17, %v436_v8  ;;  %v456_v21 = vadd.f32 %v452_v16, %v432_v3 }
 0x22f   : > { %v455_v22 = vmul.f32 %v451_v18, %v438_v11  ;;  %v457_v23 = vadd.f32 %v453_v19, %v434_v5 }
 0x230   : > { %v458_v24 = vadd.f32 %v454_v20, %v436_v8  ;;  %v460_v25 = vmul.f32 0.7978846, %v456_v21 }
 0x231   : > { %v459_v26 = vadd.f32 %v455_v22, %v438_v11  ;;  %v461_v27 = vmul.f32 0.7978846, %v457_v23 }
 0x232   : > { %v462_v28 = vmul.f32 0.7978846, %v458_v24  ;;  %833 = vtanh.f32 %v460_v25 }
 0x233   : > { %v463_v29 = vmul.f32 0.7978846, %v459_v26  ;;  %835 = vtanh.f32 %v461_v27 }
 0x234   : > { %837 = vtanh.f32 %v462_v28 }
 0x235   : > { %839 = vtanh.f32 %v463_v29 }
 0x23c   : > { %v834_v30 = vpop.eup %833 }
 0x23d   : > { %v836_v31 = vpop.eup %835  ;;  %v468_v32 = vadd.f32 1.0, %v834_v30 }
 0x23e   : > { %v838_v33 = vpop.eup %837  ;;  %v469_v34 = vadd.f32 1.0, %v836_v31 }
 0x23f   : > { %v840_v35 = vpop.eup %839  ;;  %v470_v38 = vadd.f32 1.0, %v838_v33  ;;  %v472_v42 = vmul.f32 %v468_v32, %v440_v36 }
 0x240   : > { %v471_v41 = vadd.f32 1.0, %v840_v35  ;;  %v473_v44 = vmul.f32 %v469_v34, %v441_v39 }
 0x241   : > { %v474_v43 = vmul.f32 %v470_v38, %v442_v37 }
 0x242   : > { %v475_v45 = vmul.f32 %v471_v41, %v443_v40 }
 0x243   : > { %v476_v46 = vpack.c.bf16 %v474_v43, %v472_v42 }
 0x244   : > { %v477_v47 = vpack.c.bf16 %v475_v45, %v473_v44 }
 0x246   : > { %645 = vmatprep.mubr.bf16.mxu1 %v477_v47 }
 0x247   : > { %646 = vmatmul.mubr.bf16.vlgmr.msra.gmra.mrb[0].mxu1 %v476_v46 }
 0x31a   : > { %v786_v48 = vpop.f32.mrb[0].mxu1 }
 0x31b   : > { %v787_v50 = vpop.f32.mrb[1].mxu1 }
 0x31c   : > { %v788_v51 = vadd.f32 %v787_v50, %v786_v48  ;;  %v789_v52 = vpop.f32.mrb[2].mxu1 }
 0x31d   : > { %v790_v53 = vpop.f32.mrb[3].mxu1 }
 0x31e   : > { %v648_v54 = vadd.f32 %v788_v51, %v743_v49  ;;  %v791_v55 = vadd.f32 %v790_v53, %v789_v52 }
 0x320   : > { %v654_v56 = vadd.f32 %v906_v1, %v648_v54  ;;  %v651_v57 = vadd.f32 %v791_v55, %v743_v49 }
 0x322   : > { %v764_v58 = vpack.c.bf16 %v654_v56, %v654_v56  ;;  %v655_v59 = vadd.f32 %v908_v2, %v651_v57 }
 0x324   : > { %665 = vst.msk [vmem:[%s280_s29] sm:$0xf] %vm664_vm1, %v764_v58  ;;  %v765_v60 = vpack.c.bf16 %v655_v59, %v655_v59 }
 0x326   : > { %666 = vst.msk [vmem:[%s280_s29 + $0x4] sm:$0xf] %vm664_vm1, %v765_v60 }
 0x327 PF: > { %s17_s24 = sadd.s32 1, %s847_s24  }
 0x328   : > { %p14_p4 = scmp.ge.s32.totalorder %s17_s24, 4  }
 0x32a   :  { %16 = sbr.rel (!%p14_p4) target bundleno = 1 (0x1), region = 78 }

// kernel: _lambda_.22
= control target key start
LH: loop header
LB: loop body
LE: loop exit
PB: predicated region body
PF: predicated region fallthrough
CT: control target
= control target key end

     0   :  { %v43_v29 = vlaneseq  ;;  %s402_s0 = inlined_call_operand.vmem [shape: bf16[8,256], index: 0, kind: input, shape index: {}]   ;;  %s403_s3 = inlined_call_operand.vmem [shape: bf16[256,128], index: 3, kind: input, shape index: {}]   ;;  %s404_s1 = inlined_call_operand.vmem [shape: f32[1,256], index: 1, kind: input, shape index: {}]   ;;  %s405_s2 = inlined_call_operand.vmem [shape: f32[1,256], index: 2, kind: input, shape index: {}]   ;;  %s406_s4 = inlined_call_operand.vmem [shape: f32[1,128], index: 4, kind: input, shape index: {}]   ;;  %s407_s5 = inlined_call_operand.vmem [shape: bf16[8,128], index: 5, kind: output, shape index: {}]  }
   0x1   :  { %v21_v0 = vld [vmem:[%s402_s0] sm:$0xff]  ;;  %v293_v6 = vld [vmem:[%s403_s3 + $0x48] sm:$0xff]   ;;  %v295_v15 = vld [vmem:[%s403_s3 + $0x50] sm:$0xff]  }
   0x2   :  { %v22_v1 = vunpack.c.l.bf16 %v21_v0  ;;  %v23_v2 = vunpack.c.h.bf16 %v21_v0  ;;  %v291_v4 = vld [vmem:[%s403_s3 + $0x40] sm:$0xff]   ;;  %v294_v7 = vld [vmem:[%s403_s3 + $0x8] sm:$0xff]   ;;  %v296_v16 = vld [vmem:[%s403_s3 + $0x10] sm:$0xff]   ;;  %v44_v31 = vshrl.u32 %v43_v29, 7 }
   0x3   :  { %v292_v5 = vld [vmem:[%s403_s3] sm:$0xff]   ;;  %269 = vmatprep.subr.bf16.mxu0 %v291_v4  ;;  %v297_v17 = vld [vmem:[%s403_s3 + $0x58] sm:$0xff]   ;;  %v301_v21 = vld [vmem:[%s403_s3 + $0x68] sm:$0xff]  }
   0x4   :  { %v24_v3 = vadd.f32 %v23_v2, %v22_v1  ;;  %270 = vmatpush3.bf16.msra.mxu0 %v292_v5  ;;  %v298_v18 = vld [vmem:[%s403_s3 + $0x18] sm:$0xff]   ;;  %v299_v19 = vld [vmem:[%s403_s3 + $0x60] sm:$0xff]   ;;  %v302_v22 = vld [vmem:[%s403_s3 + $0x28] sm:$0xff]   ;;  %v45_v32 = vsub.s32 0, %v44_v31  ;;  %v49_v33 = vsub.s32 1, %v44_v31 }
   0x5   :  { %271 = vmatprep.subr.bf16.mxu0 %v293_v6  ;;  %v300_v20 = vld [vmem:[%s403_s3 + $0x20] sm:$0xff]   ;;  %v303_v23 = vld [vmem:[%s403_s3 + $0x70] sm:$0xff]   ;;  %v305_v25 = vld [vmem:[%s403_s3 + $0x78] sm:$0xff]  }
   0x6   :  { %25 = vadd.xlane.f32.xlu0 %v24_v3  ;;  %v304_v24 = vld [vmem:[%s403_s3 + $0x30] sm:$0xff]   ;;  %v306_v26 = vld [vmem:[%s403_s3 + $0x38] sm:$0xff]   ;;  %v41_v34 = vld [vmem:[%s404_s1] sm:$0x3] }
   0x7   :  { %v55_v35 = vld [vmem:[%s405_s2] sm:$0x3]  ;;  %v46_v36 = vrot.slane %v41_v34, %v45_v32  ;;  %v50_v37 = vrot.slane %v41_v34, %v49_v33 }
   0x8   :  { %272 = vmatpush3.bf16.msra.mxu0 %v294_v7  ;;  %v60_v40 = vrot.slane %v55_v35, %v45_v32  ;;  %v64_v41 = vrot.slane %v55_v35, %v49_v33  ;;  %v252_v50 = vld [vmem:[%s406_s4] ss:$0 sm:$0xff] }
   0x9   :  { %273 = vmatprep.subr.bf16.mxu0 %v295_v15 }
   0xc   :  { %274 = vmatpush3.bf16.msra.mxu0 %v296_v16 }
   0xd   :  { %275 = vmatprep.subr.bf16.mxu0 %v297_v17 }
  0x10   :  { %276 = vmatpush3.bf16.msra.mxu0 %v298_v18 }
  0x11   :  { %277 = vmatprep.subr.bf16.mxu0 %v299_v19 }
  0x14   :  { %278 = vmatpush3.bf16.msra.mxu0 %v300_v20 }
  0x15   :  { %279 = vmatprep.subr.bf16.mxu0 %v301_v21 }
  0x18   :  { %280 = vmatpush3.bf16.msra.mxu0 %v302_v22 }
  0x19   :  { %281 = vmatprep.subr.bf16.mxu0 %v303_v23 }
  0x1c   :  { %282 = vmatpush3.bf16.msra.mxu0 %v304_v24 }
  0x1d   :  { %283 = vmatprep.subr.bf16.mxu0 %v305_v25 }
  0x20   :  { %284 = vmatpush3.bf16.msra.mxu0 %v306_v26 }
  0x93   :  { %v26_v8 = vpop.xlane.xlu0 %25 }
  0x94   :  { %v28_v9 = vmul.f32 0.00390625, %v26_v8 }
  0x96   :  { %v29_v10 = vsub.f32 %v22_v1, %v28_v9  ;;  %v30_v11 = vsub.f32 %v23_v2, %v28_v9 }
  0x98   :  { %v31_v12 = vmul.f32 %v29_v10, %v29_v10  ;;  %v32_v13 = vmul.f32 %v30_v11, %v30_v11 }
  0x9a   :  { %v33_v14 = vadd.f32 %v32_v13, %v31_v12 }
  0x9c   :  { %34 = vadd.xlane.f32.xlu0 %v33_v14 }
 0x129   :  { %v35_v27 = vpop.xlane.xlu0 %34 }
 0x12a   :  { %v36_v28 = vmul.f32 0.00390625, %v35_v27 }
 0x12c   :  { %v37_v30 = vadd.f32 1e-05, %v36_v28 }
 0x12e   :  { %307 = vrsqrt.f32 %v37_v30 }
 0x138   :  { %v308_v38 = vpop.eup %307 }
 0x139   :  { %v40_v39 = vmul.f32 %v308_v38, %v30_v11  ;;  %v39_v42 = vmul.f32 %v308_v38, %v29_v10 }
 0x13b   :  { %v54_v43 = vmul.f32 %v50_v37, %v40_v39  ;;  %v53_v44 = vmul.f32 %v46_v36, %v39_v42 }
 0x13d   :  { %v68_v45 = vadd.f32 %v64_v41, %v54_v43  ;;  %v67_v46 = vadd.f32 %v60_v40, %v53_v44 }
 0x13f   :  { %v70_v47 = vpack.c.bf16 %v68_v45, %v68_v45  ;;  %v69_v48 = vpack.c.bf16 %v67_v46, %v67_v46 }
 0x141   :  { %238 = vmatprep.mubr.bf16.mxu0 %v70_v47 }
 0x142   :  { %239 = vmatmul.mubr.bf16.vlgmr.msra.gmra.mrb[0].mxu0 %v69_v48 }
 0x215   :  { %v285_v49 = vpop.f32.mrb[0].mxu0 }
 0x216   :  { %v286_v51 = vpop.f32.mrb[1].mxu0 }
 0x217   :  { %v287_v52 = vadd.f32 %v286_v51, %v285_v49  ;;  %v288_v53 = vpop.f32.mrb[2].mxu0 }
 0x218   :  { %v289_v54 = vpop.f32.mrb[3].mxu0 }
 0x219   :  { %v241_v55 = vadd.f32 %v287_v52, %v252_v50 }
 0x21b   :  { %v246_v56 = vpack.c.bf16 %v241_v55, %v241_v55 }
 0x21d   :  { %247 = vst [vmem:[%s407_s5] sm:$0xf] %v246_v56 }

// kernel: _lambda_.23
= control target key start
LH: loop header
LB: loop body
LE: loop exit
PB: predicated region body
PF: predicated region fallthrough
CT: control target
= control target key end

     0   :  { %vm26_vm0 = vcmask 1043456   ;;  %s395_s0 = inlined_call_operand.vmem [shape: bf16[2,4,128], index: 0, kind: input, shape index: {}]   ;;  %s396_s1 = inlined_call_operand.vmem [shape: f32[1,1,128], index: 1, kind: input, shape index: {}]   ;;  %s397_s2 = inlined_call_operand.vmem [shape: f32[1,1,128], index: 2, kind: input, shape index: {}]   ;;  %s398_s3 = inlined_call_operand.vmem [shape: bf16[128,10], index: 3, kind: input, shape index: {}]   ;;  %s399_s4 = inlined_call_operand.vmem [shape: f32[1,10], index: 4, kind: input, shape index: {}]   ;;  %s400_s5 = inlined_call_operand.hbm [shape: f32[2,10], index: 5, kind: output, shape index: {}]  }
   0x1   :  { %v22_v0 = vld [vmem:[%s395_s0] sm:$0x3]  ;;  %v23_v1 = vld [vmem:[%s395_s0 + $0x2] sm:$0x3] }
   0x2   :  { %v24_v2 = vunpack.c.l.bf16 %v22_v0  ;;  %v25_v3 = vunpack.c.l.bf16 %v23_v1 }
   0x4   :  { %v27_v4 = vsel %vm26_vm0, %v24_v2, 0.0  ;;  %v30_v5 = vsel %vm26_vm0, %v25_v3, 0.0 }
   0x5   :  { %28 = vadd.xlane.f32.xlu0 %v27_v4 }
   0x6   :  { %10 = vsyncpa [#allocation3], 0  ;;  %v269_v16 = vld [vmem:[%s398_s3] sm:$0xff]   ;;  %v305_v17 = vmov 0.0   ;;  %v270_v18 = vld [vmem:[%s398_s3 + $0x8] sm:$0xff]   ;;  %vm306_vm1 = vmmov 0  }
   0x7   :  { %246 = vmatprep.subr.bf16.mxu0 %v305_v17  ;;  %v271_v19 = vld [vmem:[%s398_s3 + $0x10] sm:$0xff]   ;;  %v272_v20 = vld [vmem:[%s398_s3 + $0x18] sm:$0xff]   ;;  %262 = vmatprep.mubr.msk.bf16.mxu0 %vm306_vm1, %v305_v17  ;;  %v273_v21 = vld [vmem:[%s398_s3 + $0x20] sm:$0xff]   ;;  %vm118_vm2 = vcmask 1041409   ;;  %vm210_vm3 = vcmask 74752  }
   0x8   :  { %247 = vmatpush3.bf16.msra.mxu0 %v269_v16  ;;  %v274_v22 = vld [vmem:[%s398_s3 + $0x28] sm:$0xff]   ;;  %v275_v23 = vld [vmem:[%s398_s3 + $0x30] sm:$0xff]   ;;  %v276_v24 = vld [vmem:[%s398_s3 + $0x38] sm:$0xff]   ;;  %s307_s3 = smov [#allocation2]  }
   0x9   :  { %31 = vadd.xlane.f32.xlu0 %v30_v5  ;;  %248 = vmatprep.subr.bf16.mxu0 %v305_v17  ;;  %v226_v32 = vld [vmem:[%s396_s1] ss:$0 sm:$0xff]  ;;  %s218_s16 = sshll.u32 %s307_s3, 4  ;;  %s219_s16 = int_to_ptr.vmem [resolvable:$true] %s218_s16 }
   0xa   :  { %v227_v34 = vld [vmem:[%s397_s2] ss:$0 sm:$0xff]  ;;  %s281_s17 = scalar_lea.vmem %s219_s16, 32  ;;  %p286_p1 = scmp.lt.s32.totalorder %s219_s16, %s219_s16 }
   0xb   :  { %v228_v63 = vld [vmem:[%s399_s4] ss:$0 sm:$0xff]  ;;  %p282_p0 = scmp.ne.s32.totalorder %s219_s16, %s281_s17  ;;  %p287_p2 = scmp.lt.s32.totalorder %s281_s17, %s281_s17 }
   0xc   :  { %249 = vmatpush3.bf16.msra.mxu0 %v270_v18 }
   0xd   :  { %250 = vmatprep.subr.bf16.mxu0 %v305_v17  ;;  %p288_p3 = por %p287_p2, %p286_p1 }
   0xf   :  { %p289_p4 = pnand %p288_p3, %p282_p0 }
  0x10   :  { %251 = vmatpush3.bf16.msra.mxu0 %v271_v19 }
  0x11   :  { %252 = vmatprep.subr.bf16.mxu0 %v305_v17 }
  0x14   :  { %253 = vmatpush3.bf16.msra.mxu0 %v272_v20 }
  0x15   :  { %254 = vmatprep.subr.bf16.mxu0 %v305_v17 }
  0x18   :  { %255 = vmatpush3.bf16.msra.mxu0 %v273_v21 }
  0x19   :  { %256 = vmatprep.subr.bf16.mxu0 %v305_v17 }
  0x1c   :  { %257 = vmatpush3.bf16.msra.mxu0 %v274_v22 }
  0x1d   :  { %258 = vmatprep.subr.bf16.mxu0 %v305_v17 }
  0x20   :  { %259 = vmatpush3.bf16.msra.mxu0 %v275_v23 }
  0x21   :  { %260 = vmatprep.subr.bf16.mxu0 %v305_v17 }
  0x24   :  { %261 = vmatpush3.bf16.msra.mxu0 %v276_v24 }
  0x92   :  { %v29_v6 = vpop.xlane.xlu0 %28 }
  0x93   :  { %v34_v7 = vmul.f32 0.0078125, %v29_v6 }
  0x95   :  { %v36_v8 = vsub.f32 %v24_v2, %v34_v7 }
  0x96   :  { %v32_v9 = vpop.xlane.xlu0 %31 }
  0x97   :  { %v35_v10 = vmul.f32 0.0078125, %v32_v9  ;;  %v38_v11 = vmul.f32 %v36_v8, %v36_v8 }
  0x99   :  { %v37_v12 = vsub.f32 %v25_v3, %v35_v10  ;;  %v40_v13 = vsel %vm26_vm0, %v38_v11, 0.0 }
  0x9a   :  { %41 = vadd.xlane.f32.xlu1 %v40_v13 }
  0x9b   :  { %v39_v14 = vmul.f32 %v37_v12, %v37_v12 }
  0x9d   :  { %v43_v15 = vsel %vm26_vm0, %v39_v14, 0.0 }
  0x9e   :  { %44 = vadd.xlane.f32.xlu1 %v43_v15 }
 0x127   :  { %v42_v25 = vpop.xlane.xlu1 %41 }
 0x128   :  { %v46_v26 = vmul.f32 0.0078125, %v42_v25 }
 0x12a   :  { %v48_v27 = vadd.f32 1e-05, %v46_v26 }
 0x12b   :  { %v45_v28 = vpop.xlane.xlu1 %44 }
 0x12c   :  { %277 = vrsqrt.f32 %v48_v27  ;;  %v47_v29 = vmul.f32 0.0078125, %v45_v28 }
 0x12e   :  { %v49_v30 = vadd.f32 1e-05, %v47_v29 }
 0x130   :  { %279 = vrsqrt.f32 %v49_v30 }
 0x136   :  { %v278_v31 = vpop.eup %277 }
 0x137   :  { %v52_v33 = vmul.f32 %v278_v31, %v36_v8 }
 0x139   :  { %v61_v35 = vmul.f32 %v226_v32, %v52_v33 }
 0x13a   :  { %v280_v36 = vpop.eup %279 }
 0x13b   :  { %v70_v37 = vadd.f32 %v227_v34, %v61_v35  ;;  %v53_v38 = vmul.f32 %v280_v36, %v37_v12 }
 0x13d   :  { %v62_v39 = vmul.f32 %v226_v32, %v53_v38  ;;  %v72_v40 = vsel %vm26_vm0, %v70_v37, 0.0 }
 0x13e   :  { %v73_v41 = vrot.slane %v72_v40, 4 }
 0x13f   :  { %v71_v42 = vadd.f32 %v227_v34, %v62_v39 }
 0x140   :  { %v74_v43 = vadd.f32 %v73_v41, %v72_v40 }
 0x141   :  { %v79_v44 = vsel %vm26_vm0, %v71_v42, 0.0 }
 0x142   :  { %v75_v45 = vrot.slane %v74_v43, 2  ;;  %v80_v46 = vrot.slane %v79_v44, 4 }
 0x144   :  { %v76_v47 = vadd.f32 %v75_v45, %v74_v43  ;;  %v81_v48 = vadd.f32 %v80_v46, %v79_v44 }
 0x146   :  { %v77_v49 = vrot.slane %v76_v47, 1  ;;  %v82_v50 = vrot.slane %v81_v48, 2 }
 0x148   :  { %v78_v51 = vadd.f32 %v77_v49, %v76_v47  ;;  %v83_v52 = vadd.f32 %v82_v50, %v81_v48 }
 0x14a   :  { %v84_v53 = vrot.slane %v83_v52, 1  ;;  %v87_v54 = vmul.f32 0.25, %v78_v51 }
 0x14c   :  { %v85_v55 = vadd.f32 %v84_v53, %v83_v52  ;;  %v89_v57 = vpack.c.bf16 %v87_v54, %v87_v54 }
 0x14e   :  { %v88_v56 = vmul.f32 0.25, %v85_v55  ;;  %v116_v59 = vunpack.c.l.b16 %v89_v57 }
 0x150   :  { %v90_v58 = vpack.c.bf16 %v88_v56, %v88_v56 }
 0x152   :  { %v117_v60 = vunpack.c.l.b16 %v90_v58 }
 0x154   :  { %v119_v61 = vsel %vm118_vm2, %v117_v60, %v116_v59 }
 0x155   :  { %v120_v62 = vpack.c.b16 %v119_v61, %v119_v61 }
 0x157   :  { %263 = vmatmul.mubr.bf16.vlgmr.msra.gmra.mrb[0].mxu0 %v120_v62 }
 0x22a   :  { %v204_v0 = vpop.f32.mrb[0].mxu0 }
 0x22b   :  { %v205_v1 = vadd.f32 %v228_v63, %v204_v0  ;;  %v264_v2 = vpop.f32.mrb[1].mxu0 }
 0x22c   :  { %v207_v3 = vpop.f32.mrb[2].mxu0 }
 0x22d   :  { %v265_v4 = vpop.f32.mrb[3].mxu0  ;;  %211 = vst.msk [vmem:[#allocation2] sm:$0x3] %vm210_vm3, %v205_v1 }
 0x22e   :  { %292 = shalt.err (!%p289_p4)
}
 0x22f   :  { %s293_s4 = scalar_lea.hbm %s400_s5, 32 }
 0x230   :  { %p294_p5 = scmp.ne.s32.totalorder %s400_s5, %s293_s4  ;;  %p297_p6 = scmp.lt.u32.totalorder %s293_s4, %s400_s5 }
 0x232   :  { %p299_p7 = pnand %p297_p6, %p294_p5 }
 0x234   :  { %302 = shalt.err (!%p299_p7)
}
 0x235   :  { %221 = dma.vmem_to_hbm [thread:$0]  %s219_s16, 32, %s400_s5, [#allocation3]  }
 0x236   :  { %303 = dma.done.wait [#allocation3], 32  }
 0x237   :  { %304 = vsyncadd [#allocation3], 4294967264 }
 0x238   :  { %225 = vsyncpa [#allocation3], 1 }

</bundles_post_ra>
